<compile_context>
chip_gen: v7x
topology: tpu7x:2x2x1
jax: 0.10.0
libtpu: 0.0.40
codegen_flags: <defaults>
</compile_context>

<pallas_src>
import functools

import jax
import jax.numpy as jnp
from jax.experimental import pallas as pl
from jax.experimental.pallas import tpu as pltpu


# ----------------------------------------------------------------------------
# In-kernel helpers
# ----------------------------------------------------------------------------
def _layer_norm(x, g, b, eps=1e-5):
    mu = jnp.mean(x, axis=-1, keepdims=True)
    xc = x - mu
    var = jnp.mean(xc * xc, axis=-1, keepdims=True)
    return xc * jax.lax.rsqrt(var + eps) * g + b


def _fused_kernel(x_ref, wqkv_ref, wout_ref, wff1_ref, wff2_ref,
                  vecs_ref, bn_ref, wgrows_ref, mask_ref, seg_ref,
                  out_ref, *, num_heads):
    """Whole MultiImageWeightGenerator forward: 3 fused stages, one output."""
    E = x_ref.shape[-1]
    H = num_heads
    Dh = E // H
    FF = wff1_ref.shape[-1]
    slice_num = out_ref.shape[0]

    x = x_ref[...]                                        # (R, E) f32
    w_total = jnp.zeros((slice_num, 1), jnp.float32)

    for stage in range(3):
        # ---- per-stage parameter slabs (static index / static slices) ------
        wqkv = wqkv_ref[stage]                            # (E, 3E) bf16, Q pre-scaled
        wout = wout_ref[stage]                            # (E, E)  bf16
        wff1 = wff1_ref[stage]                            # (E, FF) bf16
        wff2 = wff2_ref[stage]                            # (FF, E) bf16
        vecs = vecs_ref[stage]                            # (9, W)  f32 packed rows
        b_qkv = vecs[0:1, :3 * E]
        b_out = vecs[1:2, :E]
        b_ff1 = vecs[2:3, :FF]
        b_ff2 = vecs[3:4, :E]
        g1, be1 = vecs[4:5, :E], vecs[5:6, :E]
        g2, be2 = vecs[6:7, :E], vecs[7:8, :E]
        wg_b = vecs[8:9, 0:1]                             # (1, 1)
        bn_aff = bn_ref[stage]                            # (R, 2)
        bn_sc, bn_sh = bn_aff[:, 0:1], bn_aff[:, 1:2]
        wg_rows = wgrows_ref[stage]                       # (R, E)
        mask = mask_ref[stage]                            # (R, R) additive 0/-1e30
        seg = seg_ref[stage]                              # (slice_num, R) 0/1

        # ---- fused QKV projection: one lane-dense matmul --------------------
        x_bf = x.astype(jnp.bfloat16)
        qkv = jnp.dot(x_bf, wqkv, preferred_element_type=jnp.float32) + b_qkv
        qkv_bf = qkv.astype(jnp.bfloat16)                 # (R, 3E)

        # ---- per-head attention; softmax normalization deferred -------------
        o_parts = []
        for h in range(H):
            q = qkv_bf[:, h * Dh:(h + 1) * Dh]
            k = qkv_bf[:, E + h * Dh:E + (h + 1) * Dh]
            v = qkv_bf[:, 2 * E + h * Dh:2 * E + (h + 1) * Dh]
            s = jax.lax.dot_general(q, k, (((1,), (1,)), ((), ())),
                                    preferred_element_type=jnp.float32) + mask
            m = jnp.max(s, axis=-1, keepdims=True)
            p = jnp.exp(s - m)
            denom = jnp.sum(p, axis=-1, keepdims=True)
            o = jnp.dot(p.astype(jnp.bfloat16), v,
                        preferred_element_type=jnp.float32)       # (R, Dh)
            o = o * pl.reciprocal(denom, approx=True)
            o_parts.append(o.astype(jnp.bfloat16))
        o_cat = jnp.concatenate(o_parts, axis=-1)         # (R, E) bf16

        # ---- fused out-projection + post-norm encoder layer (eval) ----------
        attn = jnp.dot(o_cat, wout, preferred_element_type=jnp.float32) + b_out
        h1 = _layer_norm(x + attn, g1, be1)
        ff = jnp.dot(h1.astype(jnp.bfloat16), wff1,
                     preferred_element_type=jnp.float32) + b_ff1
        ff = jnp.maximum(ff, 0.0)
        ff = jnp.dot(ff.astype(jnp.bfloat16), wff2,
                     preferred_element_type=jnp.float32) + b_ff2
        t = _layer_norm(h1 + ff, g2, be2)

        # ---- eval BatchNorm1d (folded per-row affine) + residual ------------
        x = x + t * bn_sc + bn_sh

        # ---- weight generator: sigmoid(<x[slice].flatten(), Wg> + b) --------
        # seg already maps stage-slices to output rows (repeat_interleave),
        # the /rep divisor is a compile-time scalar.
        contrib = x * wg_rows                             # (R, E)
        rowsum = jnp.sum(contrib, axis=-1, keepdims=True)           # (R, 1)
        logit = jnp.dot(seg, rowsum,
                        preferred_element_type=jnp.float32) + wg_b  # (slice_num, 1)
        w_total = w_total + jax.nn.sigmoid(logit) * (1.0 / float(1 << stage))

    out_ref[...] = w_total


# ----------------------------------------------------------------------------
# Wrapper: one grid-less pallas_call, everything resident in VMEM
# ----------------------------------------------------------------------------
def multi_image_weight_generator(x, kernel_params, num_heads):
    slice_num, seq_len, feature_dim = x.shape
    x2d = x.reshape(slice_num * seq_len, feature_dim)

    n_inputs = 1 + len(kernel_params)
    in_specs = [pl.BlockSpec(memory_space=pltpu.MemorySpace.VMEM)
                for _ in range(n_inputs)]
    out_spec = pl.BlockSpec(memory_space=pltpu.MemorySpace.VMEM)

    # TODO(synk): add a leading "parallel" batch grid axis if multiple samples
    # per call become available (engages the 2nd TensorCore on v7x).
    return pl.pallas_call(
        functools.partial(_fused_kernel, num_heads=num_heads),
        out_shape=jax.ShapeDtypeStruct((slice_num, 1), jnp.float32),
        in_specs=in_specs,
        out_specs=out_spec,
    )(x2d, *kernel_params)


# ----------------------------------------------------------------------------
# One-time parameter preparation (fusion / folding / packing into 9 slabs)
# ----------------------------------------------------------------------------
def prepare_params(params, slice_num, seq_len, feature_dim, num_heads,
                   bn_eps=1e-5):
    E = feature_dim
    H = num_heads
    Dh = E // H
    R = slice_num * seq_len
    FF = params["tf1"]["lin1_w"].shape[0]
    W = max(3 * E, FF, E)
    qscale = 1.0 / float(Dh) ** 0.5

    w_qkv_l, w_out_l, w_ff1_l, w_ff2_l = [], [], [], []
    vecs_l, bn_l, wgrow_l, mask_l, seg_l = [], [], [], [], []

    rr = jnp.arange(R)
    S, C = slice_num, seq_len
    for tf_k, bn_k, wg_k in (("tf1", "bn1", "wg1"),
                             ("tf2", "bn2", "wg2"),
                             ("tf3", "bn3", "wg3")):
        tf, bn, wg = params[tf_k], params[bn_k], params[wg_k]
        rep = slice_num // S

        # fused QKV weight (E, 3E); fold the query scale into the Q block.
        wqkv = tf["in_proj_w"].T
        wqkv = wqkv.at[:, :E].multiply(qscale)
        bqkv = tf["in_proj_b"].at[:E].multiply(qscale)
        w_qkv_l.append(wqkv.astype(jnp.bfloat16))
        w_out_l.append(tf["out_proj_w"].T.astype(jnp.bfloat16))       # (E, E)
        w_ff1_l.append(tf["lin1_w"].T.astype(jnp.bfloat16))           # (E, FF)
        w_ff2_l.append(tf["lin2_w"].T.astype(jnp.bfloat16))           # (FF, E)

        # packed row-vector slab (biases, LN affine, weight-gen bias).
        vec = jnp.zeros((9, W), jnp.float32)
        vec = vec.at[0, :3 * E].set(bqkv)
        vec = vec.at[1, :E].set(tf["out_proj_b"])
        vec = vec.at[2, :FF].set(tf["lin1_b"])
        vec = vec.at[3, :E].set(tf["lin2_b"])
        vec = vec.at[4, :E].set(tf["ln1_g"])
        vec = vec.at[5, :E].set(tf["ln1_b"])
        vec = vec.at[6, :E].set(tf["ln2_g"])
        vec = vec.at[7, :E].set(tf["ln2_b"])
        vec = vec.at[8, 0].set(wg["b"][0])
        vecs_l.append(vec)

        # eval BatchNorm1d folded to per-row affine (channel = r % C).
        scale = bn["gamma"] / jnp.sqrt(bn["running_var"] + bn_eps)    # (C,)
        shift = bn["beta"] - bn["running_mean"] * scale
        bn_sc = jnp.tile(scale, (S,)).reshape(R, 1)
        bn_sh = jnp.tile(shift, (S,)).reshape(R, 1)
        bn_l.append(jnp.concatenate([bn_sc, bn_sh], axis=1).astype(jnp.float32))

        # weight-generator rows: row r uses Wg[r % C, :].
        wgrow_l.append(jnp.tile(wg["w"].reshape(C, E), (S, 1)).astype(jnp.float32))

        # additive attention-batch mask: rows attend iff same seq position.
        same = (rr[:, None] % C) == (rr[None, :] % C)
        mask_l.append(jnp.where(same, 0.0, -1e30).astype(jnp.float32))

        # segment matrix: output row i sums rows of stage-slice (i // rep);
        # this folds the PyTorch repeat_interleave into the matmul.
        ii = jnp.arange(slice_num)[:, None] // rep                    # (slice_num, 1)
        ss = rr[None, :] // C                                         # (1, R)
        seg_l.append((ii == ss).astype(jnp.float32))                  # (slice_num, R)

        S //= 2
        C *= 2

    return (jnp.stack(w_qkv_l), jnp.stack(w_out_l), jnp.stack(w_ff1_l),
            jnp.stack(w_ff2_l), jnp.stack(vecs_l), jnp.stack(bn_l),
            jnp.stack(wgrow_l), jnp.stack(mask_l), jnp.stack(seg_l))


# ----------------------------------------------------------------------------
# Deterministic parameter initialization (shapes follow the module __init__)
# ----------------------------------------------------------------------------
def init_params(key, seq_len, feature_dim, dim_ff):
    E = feature_dim

    def tf_params(k):
        ks = jax.random.split(k, 8)
        return dict(
            in_proj_w=0.02 * jax.random.normal(ks[0], (3 * E, E), jnp.float32),
            in_proj_b=0.01 * jax.random.normal(ks[1], (3 * E,), jnp.float32),
            out_proj_w=0.02 * jax.random.normal(ks[2], (E, E), jnp.float32),
            out_proj_b=0.01 * jax.random.normal(ks[3], (E,), jnp.float32),
            lin1_w=0.02 * jax.random.normal(ks[4], (dim_ff, E), jnp.float32),
            lin1_b=0.01 * jax.random.normal(ks[5], (dim_ff,), jnp.float32),
            lin2_w=0.02 * jax.random.normal(ks[6], (E, dim_ff), jnp.float32),
            lin2_b=0.01 * jax.random.normal(ks[7], (E,), jnp.float32),
            ln1_g=jnp.ones((E,), jnp.float32),
            ln1_b=jnp.zeros((E,), jnp.float32),
            ln2_g=jnp.ones((E,), jnp.float32),
            ln2_b=jnp.zeros((E,), jnp.float32),
        )

    def bn_params(k, C):
        ks = jax.random.split(k, 4)
        return dict(
            gamma=1.0 + 0.1 * jax.random.normal(ks[0], (C,), jnp.float32),
            beta=0.1 * jax.random.normal(ks[1], (C,), jnp.float32),
            running_mean=0.1 * jax.random.normal(ks[2], (C,), jnp.float32),
            running_var=jax.random.uniform(ks[3], (C,), jnp.float32, 0.5, 1.5),
        )

    def wg_params(k, in_dim):
        k1, k2 = jax.random.split(k)
        return dict(
            w=0.02 * jax.random.normal(k1, (1, in_dim), jnp.float32),
            b=0.01 * jax.random.normal(k2, (1,), jnp.float32),
        )

    keys = jax.random.split(key, 9)
    return dict(
        tf1=tf_params(keys[0]),
        tf2=tf_params(keys[1]),
        tf3=tf_params(keys[2]),
        bn1=bn_params(keys[3], seq_len),
        bn2=bn_params(keys[4], seq_len * 2),
        bn3=bn_params(keys[5], seq_len * 4),
        wg1=wg_params(keys[6], feature_dim * seq_len),
        wg2=wg_params(keys[7], feature_dim * seq_len * 2),
        wg3=wg_params(keys[8], feature_dim * seq_len * 4),
    )


# ----------------------------------------------------------------------------
if __name__ == "__main__":
    # Small config consistent with the module (feature_dim % num_heads == 0,
    # slice_num % 4 == 0).  dim_feedforward shrunk from the PyTorch default 2048.
    SLICE_NUM, SEQ_LEN, FEATURE_DIM, NUM_HEADS, DIM_FF = 8, 8, 32, 4, 64

    key = jax.random.PRNGKey(0)
    kx, kp = jax.random.split(key)
    x = jax.random.normal(kx, (SLICE_NUM, SEQ_LEN, FEATURE_DIM), jnp.float32)

    raw_params = init_params(kp, SEQ_LEN, FEATURE_DIM, DIM_FF)
    kernel_params = prepare_params(raw_params, SLICE_NUM, SEQ_LEN,
                                   FEATURE_DIM, NUM_HEADS)

    fwd = jax.jit(functools.partial(multi_image_weight_generator,
                                    num_heads=NUM_HEADS))
    out = fwd(x, kernel_params)
    jax.block_until_ready(out)

    assert out.shape == (SLICE_NUM, 1), out.shape
    assert bool(jnp.all(jnp.isfinite(out)))
    print("KERNEL_OK")
</pallas_src>

<mosaic_0001>
module attributes {stable_mosaic.version = 11 : i64} {
  func.func @_fused_kernel(%arg0: memref<64x32xf32, #tpu.memory_space<vmem>>, %arg1: memref<3x32x96xbf16, #tpu.memory_space<vmem>>, %arg2: memref<3x32x32xbf16, #tpu.memory_space<vmem>>, %arg3: memref<3x32x64xbf16, #tpu.memory_space<vmem>>, %arg4: memref<3x64x32xbf16, #tpu.memory_space<vmem>>, %arg5: memref<3x9x96xf32, #tpu.memory_space<vmem>>, %arg6: memref<3x64x2xf32, #tpu.memory_space<vmem>>, %arg7: memref<3x64x32xf32, #tpu.memory_space<vmem>>, %arg8: memref<3x64x64xf32, #tpu.memory_space<vmem>>, %arg9: memref<3x8x64xf32, #tpu.memory_space<vmem>>, %arg10: memref<8x1xf32, #tpu.memory_space<vmem>>) attributes {dimension_semantics = [], scalar_prefetch = 0 : i64, scratch_operands = 0 : i64, tpu.core_type = #tpu.core_type<tc>} {
    %c0 = arith.constant 0 : index
    %c0_0 = arith.constant 0 : index
    %0 = vector.load %arg0[%c0, %c0_0] : memref<64x32xf32, #tpu.memory_space<vmem>>, vector<64x32xf32>
    %cst = arith.constant 0.000000e+00 : f32
    %1 = vector.broadcast %cst : f32 to vector<8x1xf32>
    %c0_1 = arith.constant 0 : index
    %c0_2 = arith.constant 0 : index
    %c0_3 = arith.constant 0 : index
    %2 = vector.load %arg1[%c0_1, %c0_2, %c0_3] : memref<3x32x96xbf16, #tpu.memory_space<vmem>>, vector<1x32x96xbf16>
    %3 = vector.shape_cast %2 : vector<1x32x96xbf16> to vector<32x96xbf16>
    %c0_4 = arith.constant 0 : index
    %c0_5 = arith.constant 0 : index
    %c0_6 = arith.constant 0 : index
    %4 = vector.load %arg2[%c0_4, %c0_5, %c0_6] : memref<3x32x32xbf16, #tpu.memory_space<vmem>>, vector<1x32x32xbf16>
    %5 = vector.shape_cast %4 : vector<1x32x32xbf16> to vector<32x32xbf16>
    %c0_7 = arith.constant 0 : index
    %c0_8 = arith.constant 0 : index
    %c0_9 = arith.constant 0 : index
    %6 = vector.load %arg3[%c0_7, %c0_8, %c0_9] : memref<3x32x64xbf16, #tpu.memory_space<vmem>>, vector<1x32x64xbf16>
    %7 = vector.shape_cast %6 : vector<1x32x64xbf16> to vector<32x64xbf16>
    %c0_10 = arith.constant 0 : index
    %c0_11 = arith.constant 0 : index
    %c0_12 = arith.constant 0 : index
    %8 = vector.load %arg4[%c0_10, %c0_11, %c0_12] : memref<3x64x32xbf16, #tpu.memory_space<vmem>>, vector<1x64x32xbf16>
    %9 = vector.shape_cast %8 : vector<1x64x32xbf16> to vector<64x32xbf16>
    %c0_13 = arith.constant 0 : index
    %c0_14 = arith.constant 0 : index
    %c0_15 = arith.constant 0 : index
    %10 = vector.load %arg5[%c0_13, %c0_14, %c0_15] : memref<3x9x96xf32, #tpu.memory_space<vmem>>, vector<1x9x96xf32>
    %11 = vector.shape_cast %10 : vector<1x9x96xf32> to vector<9x96xf32>
    %12 = vector.extract_strided_slice %11 {offsets = [0, 0], sizes = [1, 96], strides = [1, 1]} : vector<9x96xf32> to vector<1x96xf32>
    %13 = vector.extract_strided_slice %11 {offsets = [1, 0], sizes = [1, 32], strides = [1, 1]} : vector<9x96xf32> to vector<1x32xf32>
    %14 = vector.extract_strided_slice %11 {offsets = [2, 0], sizes = [1, 64], strides = [1, 1]} : vector<9x96xf32> to vector<1x64xf32>
    %15 = vector.extract_strided_slice %11 {offsets = [3, 0], sizes = [1, 32], strides = [1, 1]} : vector<9x96xf32> to vector<1x32xf32>
    %16 = vector.extract_strided_slice %11 {offsets = [4, 0], sizes = [1, 32], strides = [1, 1]} : vector<9x96xf32> to vector<1x32xf32>
    %17 = vector.extract_strided_slice %11 {offsets = [5, 0], sizes = [1, 32], strides = [1, 1]} : vector<9x96xf32> to vector<1x32xf32>
    %18 = vector.extract_strided_slice %11 {offsets = [6, 0], sizes = [1, 32], strides = [1, 1]} : vector<9x96xf32> to vector<1x32xf32>
    %19 = vector.extract_strided_slice %11 {offsets = [7, 0], sizes = [1, 32], strides = [1, 1]} : vector<9x96xf32> to vector<1x32xf32>
    %20 = vector.extract_strided_slice %11 {offsets = [8, 0], sizes = [1, 1], strides = [1, 1]} : vector<9x96xf32> to vector<1x1xf32>
    %c0_16 = arith.constant 0 : index
    %c0_17 = arith.constant 0 : index
    %c0_18 = arith.constant 0 : index
    %21 = vector.load %arg6[%c0_16, %c0_17, %c0_18] : memref<3x64x2xf32, #tpu.memory_space<vmem>>, vector<1x64x2xf32>
    %22 = vector.shape_cast %21 : vector<1x64x2xf32> to vector<64x2xf32>
    %23 = vector.extract_strided_slice %22 {offsets = [0, 0], sizes = [64, 1], strides = [1, 1]} : vector<64x2xf32> to vector<64x1xf32>
    %24 = vector.extract_strided_slice %22 {offsets = [0, 1], sizes = [64, 1], strides = [1, 1]} : vector<64x2xf32> to vector<64x1xf32>
    %c0_19 = arith.constant 0 : index
    %c0_20 = arith.constant 0 : index
    %c0_21 = arith.constant 0 : index
    %25 = vector.load %arg7[%c0_19, %c0_20, %c0_21] : memref<3x64x32xf32, #tpu.memory_space<vmem>>, vector<1x64x32xf32>
    %26 = vector.shape_cast %25 : vector<1x64x32xf32> to vector<64x32xf32>
    %c0_22 = arith.constant 0 : index
    %c0_23 = arith.constant 0 : index
    %c0_24 = arith.constant 0 : index
    %27 = vector.load %arg8[%c0_22, %c0_23, %c0_24] : memref<3x64x64xf32, #tpu.memory_space<vmem>>, vector<1x64x64xf32>
    %28 = vector.shape_cast %27 : vector<1x64x64xf32> to vector<64x64xf32>
    %c0_25 = arith.constant 0 : index
    %c0_26 = arith.constant 0 : index
    %c0_27 = arith.constant 0 : index
    %29 = vector.load %arg9[%c0_25, %c0_26, %c0_27] : memref<3x8x64xf32, #tpu.memory_space<vmem>>, vector<1x8x64xf32>
    %30 = vector.shape_cast %29 : vector<1x8x64xf32> to vector<8x64xf32>
    %31 = arith.truncf %0 : vector<64x32xf32> to vector<64x32xbf16>
    %cst_28 = arith.constant dense<0.000000e+00> : vector<64x96xf32>
    %32 = tpu.matmul %31, %3, %cst_28 {dimension_numbers = #tpu.dot_dimension_numbers<[1], [0], [0], [1], [0, 0, 1, 1], [], []>} : vector<64x32xbf16>, vector<32x96xbf16>, vector<64x96xf32> -> vector<64x96xf32>
    %33 = vector.broadcast %12 : vector<1x96xf32> to vector<64x96xf32>
    %34 = arith.addf %32, %33 : vector<64x96xf32>
    %35 = arith.truncf %34 : vector<64x96xf32> to vector<64x96xbf16>
    %36 = vector.extract_strided_slice %35 {offsets = [0, 0], sizes = [64, 8], strides = [1, 1]} : vector<64x96xbf16> to vector<64x8xbf16>
    %37 = vector.extract_strided_slice %35 {offsets = [0, 32], sizes = [64, 8], strides = [1, 1]} : vector<64x96xbf16> to vector<64x8xbf16>
    %38 = vector.extract_strided_slice %35 {offsets = [0, 64], sizes = [64, 8], strides = [1, 1]} : vector<64x96xbf16> to vector<64x8xbf16>
    %cst_29 = arith.constant dense<0.000000e+00> : vector<64x64xf32>
    %39 = tpu.matmul %36, %37, %cst_29 {dimension_numbers = #tpu.dot_dimension_numbers<[1], [1], [0], [0], [0, 0, 1, 0], [], []>} : vector<64x8xbf16>, vector<64x8xbf16>, vector<64x64xf32> -> vector<64x64xf32>
    %40 = arith.addf %39, %28 : vector<64x64xf32>
    %cst_30 = arith.constant dense<0xFF800000> : vector<64xf32>
    %41 = vector.multi_reduction <maximumf>, %40, %cst_30 [1] : vector<64x64xf32> to vector<64xf32>
    %42 = vector.shape_cast %41 : vector<64xf32> to vector<64x1xf32>
    %43 = vector.broadcast %42 : vector<64x1xf32> to vector<64x64xf32>
    %44 = arith.subf %40, %43 : vector<64x64xf32>
    %45 = math.exp %44 : vector<64x64xf32>
    %cst_31 = arith.constant dense<0.000000e+00> : vector<64xf32>
    %46 = vector.multi_reduction <add>, %45, %cst_31 [1] : vector<64x64xf32> to vector<64xf32>
    %47 = vector.shape_cast %46 : vector<64xf32> to vector<64x1xf32>
    %48 = arith.truncf %45 : vector<64x64xf32> to vector<64x64xbf16>
    %cst_32 = arith.constant dense<0.000000e+00> : vector<64x8xf32>
    %49 = tpu.matmul %48, %38, %cst_32 {dimension_numbers = #tpu.dot_dimension_numbers<[1], [0], [0], [1], [0, 0, 1, 1], [], []>} : vector<64x64xbf16>, vector<64x8xbf16>, vector<64x8xf32> -> vector<64x8xf32>
    %50 = tpu.reciprocal %47 {approx = true} : vector<64x1xf32> -> vector<64x1xf32>
    %51 = vector.broadcast %50 : vector<64x1xf32> to vector<64x8xf32>
    %52 = arith.mulf %49, %51 : vector<64x8xf32>
    %53 = arith.truncf %52 : vector<64x8xf32> to vector<64x8xbf16>
    %54 = vector.extract_strided_slice %35 {offsets = [0, 8], sizes = [64, 8], strides = [1, 1]} : vector<64x96xbf16> to vector<64x8xbf16>
    %55 = vector.extract_strided_slice %35 {offsets = [0, 40], sizes = [64, 8], strides = [1, 1]} : vector<64x96xbf16> to vector<64x8xbf16>
    %56 = vector.extract_strided_slice %35 {offsets = [0, 72], sizes = [64, 8], strides = [1, 1]} : vector<64x96xbf16> to vector<64x8xbf16>
    %cst_33 = arith.constant dense<0.000000e+00> : vector<64x64xf32>
    %57 = tpu.matmul %54, %55, %cst_33 {dimension_numbers = #tpu.dot_dimension_numbers<[1], [1], [0], [0], [0, 0, 1, 0], [], []>} : vector<64x8xbf16>, vector<64x8xbf16>, vector<64x64xf32> -> vector<64x64xf32>
    %58 = arith.addf %57, %28 : vector<64x64xf32>
    %cst_34 = arith.constant dense<0xFF800000> : vector<64xf32>
    %59 = vector.multi_reduction <maximumf>, %58, %cst_34 [1] : vector<64x64xf32> to vector<64xf32>
    %60 = vector.shape_cast %59 : vector<64xf32> to vector<64x1xf32>
    %61 = vector.broadcast %60 : vector<64x1xf32> to vector<64x64xf32>
    %62 = arith.subf %58, %61 : vector<64x64xf32>
    %63 = math.exp %62 : vector<64x64xf32>
    %cst_35 = arith.constant dense<0.000000e+00> : vector<64xf32>
    %64 = vector.multi_reduction <add>, %63, %cst_35 [1] : vector<64x64xf32> to vector<64xf32>
    %65 = vector.shape_cast %64 : vector<64xf32> to vector<64x1xf32>
    %66 = arith.truncf %63 : vector<64x64xf32> to vector<64x64xbf16>
    %cst_36 = arith.constant dense<0.000000e+00> : vector<64x8xf32>
    %67 = tpu.matmul %66, %56, %cst_36 {dimension_numbers = #tpu.dot_dimension_numbers<[1], [0], [0], [1], [0, 0, 1, 1], [], []>} : vector<64x64xbf16>, vector<64x8xbf16>, vector<64x8xf32> -> vector<64x8xf32>
    %68 = tpu.reciprocal %65 {approx = true} : vector<64x1xf32> -> vector<64x1xf32>
    %69 = vector.broadcast %68 : vector<64x1xf32> to vector<64x8xf32>
    %70 = arith.mulf %67, %69 : vector<64x8xf32>
    %71 = arith.truncf %70 : vector<64x8xf32> to vector<64x8xbf16>
    %72 = vector.extract_strided_slice %35 {offsets = [0, 16], sizes = [64, 8], strides = [1, 1]} : vector<64x96xbf16> to vector<64x8xbf16>
    %73 = vector.extract_strided_slice %35 {offsets = [0, 48], sizes = [64, 8], strides = [1, 1]} : vector<64x96xbf16> to vector<64x8xbf16>
    %74 = vector.extract_strided_slice %35 {offsets = [0, 80], sizes = [64, 8], strides = [1, 1]} : vector<64x96xbf16> to vector<64x8xbf16>
    %cst_37 = arith.constant dense<0.000000e+00> : vector<64x64xf32>
    %75 = tpu.matmul %72, %73, %cst_37 {dimension_numbers = #tpu.dot_dimension_numbers<[1], [1], [0], [0], [0, 0, 1, 0], [], []>} : vector<64x8xbf16>, vector<64x8xbf16>, vector<64x64xf32> -> vector<64x64xf32>
    %76 = arith.addf %75, %28 : vector<64x64xf32>
    %cst_38 = arith.constant dense<0xFF800000> : vector<64xf32>
    %77 = vector.multi_reduction <maximumf>, %76, %cst_38 [1] : vector<64x64xf32> to vector<64xf32>
    %78 = vector.shape_cast %77 : vector<64xf32> to vector<64x1xf32>
    %79 = vector.broadcast %78 : vector<64x1xf32> to vector<64x64xf32>
    %80 = arith.subf %76, %79 : vector<64x64xf32>
    %81 = math.exp %80 : vector<64x64xf32>
    %cst_39 = arith.constant dense<0.000000e+00> : vector<64xf32>
    %82 = vector.multi_reduction <add>, %81, %cst_39 [1] : vector<64x64xf32> to vector<64xf32>
    %83 = vector.shape_cast %82 : vector<64xf32> to vector<64x1xf32>
    %84 = arith.truncf %81 : vector<64x64xf32> to vector<64x64xbf16>
    %cst_40 = arith.constant dense<0.000000e+00> : vector<64x8xf32>
    %85 = tpu.matmul %84, %74, %cst_40 {dimension_numbers = #tpu.dot_dimension_numbers<[1], [0], [0], [1], [0, 0, 1, 1], [], []>} : vector<64x64xbf16>, vector<64x8xbf16>, vector<64x8xf32> -> vector<64x8xf32>
    %86 = tpu.reciprocal %83 {approx = true} : vector<64x1xf32> -> vector<64x1xf32>
    %87 = vector.broadcast %86 : vector<64x1xf32> to vector<64x8xf32>
    %88 = arith.mulf %85, %87 : vector<64x8xf32>
    %89 = arith.truncf %88 : vector<64x8xf32> to vector<64x8xbf16>
    %90 = vector.extract_strided_slice %35 {offsets = [0, 24], sizes = [64, 8], strides = [1, 1]} : vector<64x96xbf16> to vector<64x8xbf16>
    %91 = vector.extract_strided_slice %35 {offsets = [0, 56], sizes = [64, 8], strides = [1, 1]} : vector<64x96xbf16> to vector<64x8xbf16>
    %92 = vector.extract_strided_slice %35 {offsets = [0, 88], sizes = [64, 8], strides = [1, 1]} : vector<64x96xbf16> to vector<64x8xbf16>
    %cst_41 = arith.constant dense<0.000000e+00> : vector<64x64xf32>
    %93 = tpu.matmul %90, %91, %cst_41 {dimension_numbers = #tpu.dot_dimension_numbers<[1], [1], [0], [0], [0, 0, 1, 0], [], []>} : vector<64x8xbf16>, vector<64x8xbf16>, vector<64x64xf32> -> vector<64x64xf32>
    %94 = arith.addf %93, %28 : vector<64x64xf32>
    %cst_42 = arith.constant dense<0xFF800000> : vector<64xf32>
    %95 = vector.multi_reduction <maximumf>, %94, %cst_42 [1] : vector<64x64xf32> to vector<64xf32>
    %96 = vector.shape_cast %95 : vector<64xf32> to vector<64x1xf32>
    %97 = vector.broadcast %96 : vector<64x1xf32> to vector<64x64xf32>
    %98 = arith.subf %94, %97 : vector<64x64xf32>
    %99 = math.exp %98 : vector<64x64xf32>
    %cst_43 = arith.constant dense<0.000000e+00> : vector<64xf32>
    %100 = vector.multi_reduction <add>, %99, %cst_43 [1] : vector<64x64xf32> to vector<64xf32>
    %101 = vector.shape_cast %100 : vector<64xf32> to vector<64x1xf32>
    %102 = arith.truncf %99 : vector<64x64xf32> to vector<64x64xbf16>
    %cst_44 = arith.constant dense<0.000000e+00> : vector<64x8xf32>
    %103 = tpu.matmul %102, %92, %cst_44 {dimension_numbers = #tpu.dot_dimension_numbers<[1], [0], [0], [1], [0, 0, 1, 1], [], []>} : vector<64x64xbf16>, vector<64x8xbf16>, vector<64x8xf32> -> vector<64x8xf32>
    %104 = tpu.reciprocal %101 {approx = true} : vector<64x1xf32> -> vector<64x1xf32>
    %105 = vector.broadcast %104 : vector<64x1xf32> to vector<64x8xf32>
    %106 = arith.mulf %103, %105 : vector<64x8xf32>
    %107 = arith.truncf %106 : vector<64x8xf32> to vector<64x8xbf16>
    %108 = tpu.concatenate %53, %71, %89, %107 in 1 : vector<64x8xbf16>, vector<64x8xbf16>, vector<64x8xbf16>, vector<64x8xbf16> -> vector<64x32xbf16>
    %cst_45 = arith.constant dense<0.000000e+00> : vector<64x32xf32>
    %109 = tpu.matmul %108, %5, %cst_45 {dimension_numbers = #tpu.dot_dimension_numbers<[1], [0], [0], [1], [0, 0, 1, 1], [], []>} : vector<64x32xbf16>, vector<32x32xbf16>, vector<64x32xf32> -> vector<64x32xf32>
    %110 = vector.broadcast %13 : vector<1x32xf32> to vector<64x32xf32>
    %111 = arith.addf %109, %110 : vector<64x32xf32>
    %112 = arith.addf %0, %111 : vector<64x32xf32>
    %cst_46 = arith.constant dense<0.000000e+00> : vector<64xf32>
    %113 = vector.multi_reduction <add>, %112, %cst_46 [1] : vector<64x32xf32> to vector<64xf32>
    %114 = vector.shape_cast %113 : vector<64xf32> to vector<64x1xf32>
    %cst_47 = arith.constant 3.200000e+01 : f32
    %115 = vector.broadcast %cst_47 : f32 to vector<64x1xf32>
    %116 = arith.divf %114, %115 : vector<64x1xf32>
    %117 = vector.broadcast %116 : vector<64x1xf32> to vector<64x32xf32>
    %118 = arith.subf %112, %117 : vector<64x32xf32>
    %119 = arith.mulf %118, %118 : vector<64x32xf32>
    %cst_48 = arith.constant dense<0.000000e+00> : vector<64xf32>
    %120 = vector.multi_reduction <add>, %119, %cst_48 [1] : vector<64x32xf32> to vector<64xf32>
    %121 = vector.shape_cast %120 : vector<64xf32> to vector<64x1xf32>
    %cst_49 = arith.constant 3.200000e+01 : f32
    %122 = vector.broadcast %cst_49 : f32 to vector<64x1xf32>
    %123 = arith.divf %121, %122 : vector<64x1xf32>
    %cst_50 = arith.constant 9.99999974E-6 : f32
    %124 = vector.broadcast %cst_50 : f32 to vector<64x1xf32>
    %125 = arith.addf %123, %124 : vector<64x1xf32>
    %126 = math.rsqrt %125 : vector<64x1xf32>
    %127 = vector.broadcast %126 : vector<64x1xf32> to vector<64x32xf32>
    %128 = arith.mulf %118, %127 : vector<64x32xf32>
    %129 = vector.broadcast %16 : vector<1x32xf32> to vector<64x32xf32>
    %130 = arith.mulf %128, %129 : vector<64x32xf32>
    %131 = vector.broadcast %17 : vector<1x32xf32> to vector<64x32xf32>
    %132 = arith.addf %130, %131 : vector<64x32xf32>
    %133 = arith.truncf %132 : vector<64x32xf32> to vector<64x32xbf16>
    %cst_51 = arith.constant dense<0.000000e+00> : vector<64x64xf32>
    %134 = tpu.matmul %133, %7, %cst_51 {dimension_numbers = #tpu.dot_dimension_numbers<[1], [0], [0], [1], [0, 0, 1, 1], [], []>} : vector<64x32xbf16>, vector<32x64xbf16>, vector<64x64xf32> -> vector<64x64xf32>
    %135 = vector.broadcast %14 : vector<1x64xf32> to vector<64x64xf32>
    %136 = arith.addf %134, %135 : vector<64x64xf32>
    %cst_52 = arith.constant 0.000000e+00 : f32
    %137 = vector.broadcast %cst_52 : f32 to vector<64x64xf32>
    %138 = arith.maximumf %136, %137 : vector<64x64xf32>
    %139 = arith.truncf %138 : vector<64x64xf32> to vector<64x64xbf16>
    %cst_53 = arith.constant dense<0.000000e+00> : vector<64x32xf32>
    %140 = tpu.matmul %139, %9, %cst_53 {dimension_numbers = #tpu.dot_dimension_numbers<[1], [0], [0], [1], [0, 0, 1, 1], [], []>} : vector<64x64xbf16>, vector<64x32xbf16>, vector<64x32xf32> -> vector<64x32xf32>
    %141 = vector.broadcast %15 : vector<1x32xf32> to vector<64x32xf32>
    %142 = arith.addf %140, %141 : vector<64x32xf32>
    %143 = arith.addf %132, %142 : vector<64x32xf32>
    %cst_54 = arith.constant dense<0.000000e+00> : vector<64xf32>
    %144 = vector.multi_reduction <add>, %143, %cst_54 [1] : vector<64x32xf32> to vector<64xf32>
    %145 = vector.shape_cast %144 : vector<64xf32> to vector<64x1xf32>
    %cst_55 = arith.constant 3.200000e+01 : f32
    %146 = vector.broadcast %cst_55 : f32 to vector<64x1xf32>
    %147 = arith.divf %145, %146 : vector<64x1xf32>
    %148 = vector.broadcast %147 : vector<64x1xf32> to vector<64x32xf32>
    %149 = arith.subf %143, %148 : vector<64x32xf32>
    %150 = arith.mulf %149, %149 : vector<64x32xf32>
    %cst_56 = arith.constant dense<0.000000e+00> : vector<64xf32>
    %151 = vector.multi_reduction <add>, %150, %cst_56 [1] : vector<64x32xf32> to vector<64xf32>
    %152 = vector.shape_cast %151 : vector<64xf32> to vector<64x1xf32>
    %cst_57 = arith.constant 3.200000e+01 : f32
    %153 = vector.broadcast %cst_57 : f32 to vector<64x1xf32>
    %154 = arith.divf %152, %153 : vector<64x1xf32>
    %cst_58 = arith.constant 9.99999974E-6 : f32
    %155 = vector.broadcast %cst_58 : f32 to vector<64x1xf32>
    %156 = arith.addf %154, %155 : vector<64x1xf32>
    %157 = math.rsqrt %156 : vector<64x1xf32>
    %158 = vector.broadcast %157 : vector<64x1xf32> to vector<64x32xf32>
    %159 = arith.mulf %149, %158 : vector<64x32xf32>
    %160 = vector.broadcast %18 : vector<1x32xf32> to vector<64x32xf32>
    %161 = arith.mulf %159, %160 : vector<64x32xf32>
    %162 = vector.broadcast %19 : vector<1x32xf32> to vector<64x32xf32>
    %163 = arith.addf %161, %162 : vector<64x32xf32>
    %164 = vector.broadcast %23 : vector<64x1xf32> to vector<64x32xf32>
    %165 = arith.mulf %163, %164 : vector<64x32xf32>
    %166 = arith.addf %0, %165 : vector<64x32xf32>
    %167 = vector.broadcast %24 : vector<64x1xf32> to vector<64x32xf32>
    %168 = arith.addf %166, %167 : vector<64x32xf32>
    %169 = arith.mulf %168, %26 : vector<64x32xf32>
    %cst_59 = arith.constant dense<0.000000e+00> : vector<64xf32>
    %170 = vector.multi_reduction <add>, %169, %cst_59 [1] : vector<64x32xf32> to vector<64xf32>
    %171 = vector.shape_cast %170 : vector<64xf32> to vector<64x1xf32>
    %cst_60 = arith.constant dense<0.000000e+00> : vector<8x1xf32>
    %172 = tpu.matmul %30, %171, %cst_60 {dimension_numbers = #tpu.dot_dimension_numbers<[1], [0], [0], [1], [0, 0, 1, 1], [], []>} : vector<8x64xf32>, vector<64x1xf32>, vector<8x1xf32> -> vector<8x1xf32>
    %173 = vector.broadcast %20 : vector<1x1xf32> to vector<8x1xf32>
    %174 = arith.addf %172, %173 : vector<8x1xf32>
    %175 = arith.negf %174 : vector<8x1xf32>
    %176 = math.exp %175 : vector<8x1xf32>
    %cst_61 = arith.constant 1.000000e+00 : f32
    %177 = vector.broadcast %cst_61 : f32 to vector<8x1xf32>
    %178 = arith.addf %177, %176 : vector<8x1xf32>
    %179 = arith.divf %177, %178 : vector<8x1xf32>
    %cst_62 = arith.constant 1.000000e+00 : f32
    %180 = vector.broadcast %cst_62 : f32 to vector<8x1xf32>
    %181 = arith.mulf %179, %180 : vector<8x1xf32>
    %182 = arith.addf %1, %181 : vector<8x1xf32>
    %c1 = arith.constant 1 : index
    %c0_63 = arith.constant 0 : index
    %c0_64 = arith.constant 0 : index
    %183 = vector.load %arg1[%c1, %c0_63, %c0_64] : memref<3x32x96xbf16, #tpu.memory_space<vmem>>, vector<1x32x96xbf16>
    %184 = vector.shape_cast %183 : vector<1x32x96xbf16> to vector<32x96xbf16>
    %c1_65 = arith.constant 1 : index
    %c0_66 = arith.constant 0 : index
    %c0_67 = arith.constant 0 : index
    %185 = vector.load %arg2[%c1_65, %c0_66, %c0_67] : memref<3x32x32xbf16, #tpu.memory_space<vmem>>, vector<1x32x32xbf16>
    %186 = vector.shape_cast %185 : vector<1x32x32xbf16> to vector<32x32xbf16>
    %c1_68 = arith.constant 1 : index
    %c0_69 = arith.constant 0 : index
    %c0_70 = arith.constant 0 : index
    %187 = vector.load %arg3[%c1_68, %c0_69, %c0_70] : memref<3x32x64xbf16, #tpu.memory_space<vmem>>, vector<1x32x64xbf16>
    %188 = vector.shape_cast %187 : vector<1x32x64xbf16> to vector<32x64xbf16>
    %c1_71 = arith.constant 1 : index
    %c0_72 = arith.constant 0 : index
    %c0_73 = arith.constant 0 : index
    %189 = vector.load %arg4[%c1_71, %c0_72, %c0_73] : memref<3x64x32xbf16, #tpu.memory_space<vmem>>, vector<1x64x32xbf16>
    %190 = vector.shape_cast %189 : vector<1x64x32xbf16> to vector<64x32xbf16>
    %c1_74 = arith.constant 1 : index
    %c0_75 = arith.constant 0 : index
    %c0_76 = arith.constant 0 : index
    %191 = vector.load %arg5[%c1_74, %c0_75, %c0_76] : memref<3x9x96xf32, #tpu.memory_space<vmem>>, vector<1x9x96xf32>
    %192 = vector.shape_cast %191 : vector<1x9x96xf32> to vector<9x96xf32>
    %193 = vector.extract_strided_slice %192 {offsets = [0, 0], sizes = [1, 96], strides = [1, 1]} : vector<9x96xf32> to vector<1x96xf32>
    %194 = vector.extract_strided_slice %192 {offsets = [1, 0], sizes = [1, 32], strides = [1, 1]} : vector<9x96xf32> to vector<1x32xf32>
    %195 = vector.extract_strided_slice %192 {offsets = [2, 0], sizes = [1, 64], strides = [1, 1]} : vector<9x96xf32> to vector<1x64xf32>
    %196 = vector.extract_strided_slice %192 {offsets = [3, 0], sizes = [1, 32], strides = [1, 1]} : vector<9x96xf32> to vector<1x32xf32>
    %197 = vector.extract_strided_slice %192 {offsets = [4, 0], sizes = [1, 32], strides = [1, 1]} : vector<9x96xf32> to vector<1x32xf32>
    %198 = vector.extract_strided_slice %192 {offsets = [5, 0], sizes = [1, 32], strides = [1, 1]} : vector<9x96xf32> to vector<1x32xf32>
    %199 = vector.extract_strided_slice %192 {offsets = [6, 0], sizes = [1, 32], strides = [1, 1]} : vector<9x96xf32> to vector<1x32xf32>
    %200 = vector.extract_strided_slice %192 {offsets = [7, 0], sizes = [1, 32], strides = [1, 1]} : vector<9x96xf32> to vector<1x32xf32>
    %201 = vector.extract_strided_slice %192 {offsets = [8, 0], sizes = [1, 1], strides = [1, 1]} : vector<9x96xf32> to vector<1x1xf32>
    %c1_77 = arith.constant 1 : index
    %c0_78 = arith.constant 0 : index
    %c0_79 = arith.constant 0 : index
    %202 = vector.load %arg6[%c1_77, %c0_78, %c0_79] : memref<3x64x2xf32, #tpu.memory_space<vmem>>, vector<1x64x2xf32>
    %203 = vector.shape_cast %202 : vector<1x64x2xf32> to vector<64x2xf32>
    %204 = vector.extract_strided_slice %203 {offsets = [0, 0], sizes = [64, 1], strides = [1, 1]} : vector<64x2xf32> to vector<64x1xf32>
    %205 = vector.extract_strided_slice %203 {offsets = [0, 1], sizes = [64, 1], strides = [1, 1]} : vector<64x2xf32> to vector<64x1xf32>
    %c1_80 = arith.constant 1 : index
    %c0_81 = arith.constant 0 : index
    %c0_82 = arith.constant 0 : index
    %206 = vector.load %arg7[%c1_80, %c0_81, %c0_82] : memref<3x64x32xf32, #tpu.memory_space<vmem>>, vector<1x64x32xf32>
    %207 = vector.shape_cast %206 : vector<1x64x32xf32> to vector<64x32xf32>
    %c1_83 = arith.constant 1 : index
    %c0_84 = arith.constant 0 : index
    %c0_85 = arith.constant 0 : index
    %208 = vector.load %arg8[%c1_83, %c0_84, %c0_85] : memref<3x64x64xf32, #tpu.memory_space<vmem>>, vector<1x64x64xf32>
    %209 = vector.shape_cast %208 : vector<1x64x64xf32> to vector<64x64xf32>
    %c1_86 = arith.constant 1 : index
    %c0_87 = arith.constant 0 : index
    %c0_88 = arith.constant 0 : index
    %210 = vector.load %arg9[%c1_86, %c0_87, %c0_88] : memref<3x8x64xf32, #tpu.memory_space<vmem>>, vector<1x8x64xf32>
    %211 = vector.shape_cast %210 : vector<1x8x64xf32> to vector<8x64xf32>
    %212 = arith.truncf %168 : vector<64x32xf32> to vector<64x32xbf16>
    %cst_89 = arith.constant dense<0.000000e+00> : vector<64x96xf32>
    %213 = tpu.matmul %212, %184, %cst_89 {dimension_numbers = #tpu.dot_dimension_numbers<[1], [0], [0], [1], [0, 0, 1, 1], [], []>} : vector<64x32xbf16>, vector<32x96xbf16>, vector<64x96xf32> -> vector<64x96xf32>
    %214 = vector.broadcast %193 : vector<1x96xf32> to vector<64x96xf32>
    %215 = arith.addf %213, %214 : vector<64x96xf32>
    %216 = arith.truncf %215 : vector<64x96xf32> to vector<64x96xbf16>
    %217 = vector.extract_strided_slice %216 {offsets = [0, 0], sizes = [64, 8], strides = [1, 1]} : vector<64x96xbf16> to vector<64x8xbf16>
    %218 = vector.extract_strided_slice %216 {offsets = [0, 32], sizes = [64, 8], strides = [1, 1]} : vector<64x96xbf16> to vector<64x8xbf16>
    %219 = vector.extract_strided_slice %216 {offsets = [0, 64], sizes = [64, 8], strides = [1, 1]} : vector<64x96xbf16> to vector<64x8xbf16>
    %cst_90 = arith.constant dense<0.000000e+00> : vector<64x64xf32>
    %220 = tpu.matmul %217, %218, %cst_90 {dimension_numbers = #tpu.dot_dimension_numbers<[1], [1], [0], [0], [0, 0, 1, 0], [], []>} : vector<64x8xbf16>, vector<64x8xbf16>, vector<64x64xf32> -> vector<64x64xf32>
    %221 = arith.addf %220, %209 : vector<64x64xf32>
    %cst_91 = arith.constant dense<0xFF800000> : vector<64xf32>
    %222 = vector.multi_reduction <maximumf>, %221, %cst_91 [1] : vector<64x64xf32> to vector<64xf32>
    %223 = vector.shape_cast %222 : vector<64xf32> to vector<64x1xf32>
    %224 = vector.broadcast %223 : vector<64x1xf32> to vector<64x64xf32>
    %225 = arith.subf %221, %224 : vector<64x64xf32>
    %226 = math.exp %225 : vector<64x64xf32>
    %cst_92 = arith.constant dense<0.000000e+00> : vector<64xf32>
    %227 = vector.multi_reduction <add>, %226, %cst_92 [1] : vector<64x64xf32> to vector<64xf32>
    %228 = vector.shape_cast %227 : vector<64xf32> to vector<64x1xf32>
    %229 = arith.truncf %226 : vector<64x64xf32> to vector<64x64xbf16>
    %cst_93 = arith.constant dense<0.000000e+00> : vector<64x8xf32>
    %230 = tpu.matmul %229, %219, %cst_93 {dimension_numbers = #tpu.dot_dimension_numbers<[1], [0], [0], [1], [0, 0, 1, 1], [], []>} : vector<64x64xbf16>, vector<64x8xbf16>, vector<64x8xf32> -> vector<64x8xf32>
    %231 = tpu.reciprocal %228 {approx = true} : vector<64x1xf32> -> vector<64x1xf32>
    %232 = vector.broadcast %231 : vector<64x1xf32> to vector<64x8xf32>
    %233 = arith.mulf %230, %232 : vector<64x8xf32>
    %234 = arith.truncf %233 : vector<64x8xf32> to vector<64x8xbf16>
    %235 = vector.extract_strided_slice %216 {offsets = [0, 8], sizes = [64, 8], strides = [1, 1]} : vector<64x96xbf16> to vector<64x8xbf16>
    %236 = vector.extract_strided_slice %216 {offsets = [0, 40], sizes = [64, 8], strides = [1, 1]} : vector<64x96xbf16> to vector<64x8xbf16>
    %237 = vector.extract_strided_slice %216 {offsets = [0, 72], sizes = [64, 8], strides = [1, 1]} : vector<64x96xbf16> to vector<64x8xbf16>
    %cst_94 = arith.constant dense<0.000000e+00> : vector<64x64xf32>
    %238 = tpu.matmul %235, %236, %cst_94 {dimension_numbers = #tpu.dot_dimension_numbers<[1], [1], [0], [0], [0, 0, 1, 0], [], []>} : vector<64x8xbf16>, vector<64x8xbf16>, vector<64x64xf32> -> vector<64x64xf32>
    %239 = arith.addf %238, %209 : vector<64x64xf32>
    %cst_95 = arith.constant dense<0xFF800000> : vector<64xf32>
    %240 = vector.multi_reduction <maximumf>, %239, %cst_95 [1] : vector<64x64xf32> to vector<64xf32>
    %241 = vector.shape_cast %240 : vector<64xf32> to vector<64x1xf32>
    %242 = vector.broadcast %241 : vector<64x1xf32> to vector<64x64xf32>
    %243 = arith.subf %239, %242 : vector<64x64xf32>
    %244 = math.exp %243 : vector<64x64xf32>
    %cst_96 = arith.constant dense<0.000000e+00> : vector<64xf32>
    %245 = vector.multi_reduction <add>, %244, %cst_96 [1] : vector<64x64xf32> to vector<64xf32>
    %246 = vector.shape_cast %245 : vector<64xf32> to vector<64x1xf32>
    %247 = arith.truncf %244 : vector<64x64xf32> to vector<64x64xbf16>
    %cst_97 = arith.constant dense<0.000000e+00> : vector<64x8xf32>
    %248 = tpu.matmul %247, %237, %cst_97 {dimension_numbers = #tpu.dot_dimension_numbers<[1], [0], [0], [1], [0, 0, 1, 1], [], []>} : vector<64x64xbf16>, vector<64x8xbf16>, vector<64x8xf32> -> vector<64x8xf32>
    %249 = tpu.reciprocal %246 {approx = true} : vector<64x1xf32> -> vector<64x1xf32>
    %250 = vector.broadcast %249 : vector<64x1xf32> to vector<64x8xf32>
    %251 = arith.mulf %248, %250 : vector<64x8xf32>
    %252 = arith.truncf %251 : vector<64x8xf32> to vector<64x8xbf16>
    %253 = vector.extract_strided_slice %216 {offsets = [0, 16], sizes = [64, 8], strides = [1, 1]} : vector<64x96xbf16> to vector<64x8xbf16>
    %254 = vector.extract_strided_slice %216 {offsets = [0, 48], sizes = [64, 8], strides = [1, 1]} : vector<64x96xbf16> to vector<64x8xbf16>
    %255 = vector.extract_strided_slice %216 {offsets = [0, 80], sizes = [64, 8], strides = [1, 1]} : vector<64x96xbf16> to vector<64x8xbf16>
    %cst_98 = arith.constant dense<0.000000e+00> : vector<64x64xf32>
    %256 = tpu.matmul %253, %254, %cst_98 {dimension_numbers = #tpu.dot_dimension_numbers<[1], [1], [0], [0], [0, 0, 1, 0], [], []>} : vector<64x8xbf16>, vector<64x8xbf16>, vector<64x64xf32> -> vector<64x64xf32>
    %257 = arith.addf %256, %209 : vector<64x64xf32>
    %cst_99 = arith.constant dense<0xFF800000> : vector<64xf32>
    %258 = vector.multi_reduction <maximumf>, %257, %cst_99 [1] : vector<64x64xf32> to vector<64xf32>
    %259 = vector.shape_cast %258 : vector<64xf32> to vector<64x1xf32>
    %260 = vector.broadcast %259 : vector<64x1xf32> to vector<64x64xf32>
    %261 = arith.subf %257, %260 : vector<64x64xf32>
    %262 = math.exp %261 : vector<64x64xf32>
    %cst_100 = arith.constant dense<0.000000e+00> : vector<64xf32>
    %263 = vector.multi_reduction <add>, %262, %cst_100 [1] : vector<64x64xf32> to vector<64xf32>
    %264 = vector.shape_cast %263 : vector<64xf32> to vector<64x1xf32>
    %265 = arith.truncf %262 : vector<64x64xf32> to vector<64x64xbf16>
    %cst_101 = arith.constant dense<0.000000e+00> : vector<64x8xf32>
    %266 = tpu.matmul %265, %255, %cst_101 {dimension_numbers = #tpu.dot_dimension_numbers<[1], [0], [0], [1], [0, 0, 1, 1], [], []>} : vector<64x64xbf16>, vector<64x8xbf16>, vector<64x8xf32> -> vector<64x8xf32>
    %267 = tpu.reciprocal %264 {approx = true} : vector<64x1xf32> -> vector<64x1xf32>
    %268 = vector.broadcast %267 : vector<64x1xf32> to vector<64x8xf32>
    %269 = arith.mulf %266, %268 : vector<64x8xf32>
    %270 = arith.truncf %269 : vector<64x8xf32> to vector<64x8xbf16>
    %271 = vector.extract_strided_slice %216 {offsets = [0, 24], sizes = [64, 8], strides = [1, 1]} : vector<64x96xbf16> to vector<64x8xbf16>
    %272 = vector.extract_strided_slice %216 {offsets = [0, 56], sizes = [64, 8], strides = [1, 1]} : vector<64x96xbf16> to vector<64x8xbf16>
    %273 = vector.extract_strided_slice %216 {offsets = [0, 88], sizes = [64, 8], strides = [1, 1]} : vector<64x96xbf16> to vector<64x8xbf16>
    %cst_102 = arith.constant dense<0.000000e+00> : vector<64x64xf32>
    %274 = tpu.matmul %271, %272, %cst_102 {dimension_numbers = #tpu.dot_dimension_numbers<[1], [1], [0], [0], [0, 0, 1, 0], [], []>} : vector<64x8xbf16>, vector<64x8xbf16>, vector<64x64xf32> -> vector<64x64xf32>
    %275 = arith.addf %274, %209 : vector<64x64xf32>
    %cst_103 = arith.constant dense<0xFF800000> : vector<64xf32>
    %276 = vector.multi_reduction <maximumf>, %275, %cst_103 [1] : vector<64x64xf32> to vector<64xf32>
    %277 = vector.shape_cast %276 : vector<64xf32> to vector<64x1xf32>
    %278 = vector.broadcast %277 : vector<64x1xf32> to vector<64x64xf32>
    %279 = arith.subf %275, %278 : vector<64x64xf32>
    %280 = math.exp %279 : vector<64x64xf32>
    %cst_104 = arith.constant dense<0.000000e+00> : vector<64xf32>
    %281 = vector.multi_reduction <add>, %280, %cst_104 [1] : vector<64x64xf32> to vector<64xf32>
    %282 = vector.shape_cast %281 : vector<64xf32> to vector<64x1xf32>
    %283 = arith.truncf %280 : vector<64x64xf32> to vector<64x64xbf16>
    %cst_105 = arith.constant dense<0.000000e+00> : vector<64x8xf32>
    %284 = tpu.matmul %283, %273, %cst_105 {dimension_numbers = #tpu.dot_dimension_numbers<[1], [0], [0], [1], [0, 0, 1, 1], [], []>} : vector<64x64xbf16>, vector<64x8xbf16>, vector<64x8xf32> -> vector<64x8xf32>
    %285 = tpu.reciprocal %282 {approx = true} : vector<64x1xf32> -> vector<64x1xf32>
    %286 = vector.broadcast %285 : vector<64x1xf32> to vector<64x8xf32>
    %287 = arith.mulf %284, %286 : vector<64x8xf32>
    %288 = arith.truncf %287 : vector<64x8xf32> to vector<64x8xbf16>
    %289 = tpu.concatenate %234, %252, %270, %288 in 1 : vector<64x8xbf16>, vector<64x8xbf16>, vector<64x8xbf16>, vector<64x8xbf16> -> vector<64x32xbf16>
    %cst_106 = arith.constant dense<0.000000e+00> : vector<64x32xf32>
    %290 = tpu.matmul %289, %186, %cst_106 {dimension_numbers = #tpu.dot_dimension_numbers<[1], [0], [0], [1], [0, 0, 1, 1], [], []>} : vector<64x32xbf16>, vector<32x32xbf16>, vector<64x32xf32> -> vector<64x32xf32>
    %291 = vector.broadcast %194 : vector<1x32xf32> to vector<64x32xf32>
    %292 = arith.addf %290, %291 : vector<64x32xf32>
    %293 = arith.addf %168, %292 : vector<64x32xf32>
    %cst_107 = arith.constant dense<0.000000e+00> : vector<64xf32>
    %294 = vector.multi_reduction <add>, %293, %cst_107 [1] : vector<64x32xf32> to vector<64xf32>
    %295 = vector.shape_cast %294 : vector<64xf32> to vector<64x1xf32>
    %cst_108 = arith.constant 3.200000e+01 : f32
    %296 = vector.broadcast %cst_108 : f32 to vector<64x1xf32>
    %297 = arith.divf %295, %296 : vector<64x1xf32>
    %298 = vector.broadcast %297 : vector<64x1xf32> to vector<64x32xf32>
    %299 = arith.subf %293, %298 : vector<64x32xf32>
    %300 = arith.mulf %299, %299 : vector<64x32xf32>
    %cst_109 = arith.constant dense<0.000000e+00> : vector<64xf32>
    %301 = vector.multi_reduction <add>, %300, %cst_109 [1] : vector<64x32xf32> to vector<64xf32>
    %302 = vector.shape_cast %301 : vector<64xf32> to vector<64x1xf32>
    %cst_110 = arith.constant 3.200000e+01 : f32
    %303 = vector.broadcast %cst_110 : f32 to vector<64x1xf32>
    %304 = arith.divf %302, %303 : vector<64x1xf32>
    %cst_111 = arith.constant 9.99999974E-6 : f32
    %305 = vector.broadcast %cst_111 : f32 to vector<64x1xf32>
    %306 = arith.addf %304, %305 : vector<64x1xf32>
    %307 = math.rsqrt %306 : vector<64x1xf32>
    %308 = vector.broadcast %307 : vector<64x1xf32> to vector<64x32xf32>
    %309 = arith.mulf %299, %308 : vector<64x32xf32>
    %310 = vector.broadcast %197 : vector<1x32xf32> to vector<64x32xf32>
    %311 = arith.mulf %309, %310 : vector<64x32xf32>
    %312 = vector.broadcast %198 : vector<1x32xf32> to vector<64x32xf32>
    %313 = arith.addf %311, %312 : vector<64x32xf32>
    %314 = arith.truncf %313 : vector<64x32xf32> to vector<64x32xbf16>
    %cst_112 = arith.constant dense<0.000000e+00> : vector<64x64xf32>
    %315 = tpu.matmul %314, %188, %cst_112 {dimension_numbers = #tpu.dot_dimension_numbers<[1], [0], [0], [1], [0, 0, 1, 1], [], []>} : vector<64x32xbf16>, vector<32x64xbf16>, vector<64x64xf32> -> vector<64x64xf32>
    %316 = vector.broadcast %195 : vector<1x64xf32> to vector<64x64xf32>
    %317 = arith.addf %315, %316 : vector<64x64xf32>
    %cst_113 = arith.constant 0.000000e+00 : f32
    %318 = vector.broadcast %cst_113 : f32 to vector<64x64xf32>
    %319 = arith.maximumf %317, %318 : vector<64x64xf32>
    %320 = arith.truncf %319 : vector<64x64xf32> to vector<64x64xbf16>
    %cst_114 = arith.constant dense<0.000000e+00> : vector<64x32xf32>
    %321 = tpu.matmul %320, %190, %cst_114 {dimension_numbers = #tpu.dot_dimension_numbers<[1], [0], [0], [1], [0, 0, 1, 1], [], []>} : vector<64x64xbf16>, vector<64x32xbf16>, vector<64x32xf32> -> vector<64x32xf32>
    %322 = vector.broadcast %196 : vector<1x32xf32> to vector<64x32xf32>
    %323 = arith.addf %321, %322 : vector<64x32xf32>
    %324 = arith.addf %313, %323 : vector<64x32xf32>
    %cst_115 = arith.constant dense<0.000000e+00> : vector<64xf32>
    %325 = vector.multi_reduction <add>, %324, %cst_115 [1] : vector<64x32xf32> to vector<64xf32>
    %326 = vector.shape_cast %325 : vector<64xf32> to vector<64x1xf32>
    %cst_116 = arith.constant 3.200000e+01 : f32
    %327 = vector.broadcast %cst_116 : f32 to vector<64x1xf32>
    %328 = arith.divf %326, %327 : vector<64x1xf32>
    %329 = vector.broadcast %328 : vector<64x1xf32> to vector<64x32xf32>
    %330 = arith.subf %324, %329 : vector<64x32xf32>
    %331 = arith.mulf %330, %330 : vector<64x32xf32>
    %cst_117 = arith.constant dense<0.000000e+00> : vector<64xf32>
    %332 = vector.multi_reduction <add>, %331, %cst_117 [1] : vector<64x32xf32> to vector<64xf32>
    %333 = vector.shape_cast %332 : vector<64xf32> to vector<64x1xf32>
    %cst_118 = arith.constant 3.200000e+01 : f32
    %334 = vector.broadcast %cst_118 : f32 to vector<64x1xf32>
    %335 = arith.divf %333, %334 : vector<64x1xf32>
    %cst_119 = arith.constant 9.99999974E-6 : f32
    %336 = vector.broadcast %cst_119 : f32 to vector<64x1xf32>
    %337 = arith.addf %335, %336 : vector<64x1xf32>
    %338 = math.rsqrt %337 : vector<64x1xf32>
    %339 = vector.broadcast %338 : vector<64x1xf32> to vector<64x32xf32>
    %340 = arith.mulf %330, %339 : vector<64x32xf32>
    %341 = vector.broadcast %199 : vector<1x32xf32> to vector<64x32xf32>
    %342 = arith.mulf %340, %341 : vector<64x32xf32>
    %343 = vector.broadcast %200 : vector<1x32xf32> to vector<64x32xf32>
    %344 = arith.addf %342, %343 : vector<64x32xf32>
    %345 = vector.broadcast %204 : vector<64x1xf32> to vector<64x32xf32>
    %346 = arith.mulf %344, %345 : vector<64x32xf32>
    %347 = arith.addf %168, %346 : vector<64x32xf32>
    %348 = vector.broadcast %205 : vector<64x1xf32> to vector<64x32xf32>
    %349 = arith.addf %347, %348 : vector<64x32xf32>
    %350 = arith.mulf %349, %207 : vector<64x32xf32>
    %cst_120 = arith.constant dense<0.000000e+00> : vector<64xf32>
    %351 = vector.multi_reduction <add>, %350, %cst_120 [1] : vector<64x32xf32> to vector<64xf32>
    %352 = vector.shape_cast %351 : vector<64xf32> to vector<64x1xf32>
    %cst_121 = arith.constant dense<0.000000e+00> : vector<8x1xf32>
    %353 = tpu.matmul %211, %352, %cst_121 {dimension_numbers = #tpu.dot_dimension_numbers<[1], [0], [0], [1], [0, 0, 1, 1], [], []>} : vector<8x64xf32>, vector<64x1xf32>, vector<8x1xf32> -> vector<8x1xf32>
    %354 = vector.broadcast %201 : vector<1x1xf32> to vector<8x1xf32>
    %355 = arith.addf %353, %354 : vector<8x1xf32>
    %356 = arith.negf %355 : vector<8x1xf32>
    %357 = math.exp %356 : vector<8x1xf32>
    %cst_122 = arith.constant 1.000000e+00 : f32
    %358 = vector.broadcast %cst_122 : f32 to vector<8x1xf32>
    %359 = arith.addf %358, %357 : vector<8x1xf32>
    %360 = arith.divf %358, %359 : vector<8x1xf32>
    %cst_123 = arith.constant 5.000000e-01 : f32
    %361 = vector.broadcast %cst_123 : f32 to vector<8x1xf32>
    %362 = arith.mulf %360, %361 : vector<8x1xf32>
    %363 = arith.addf %182, %362 : vector<8x1xf32>
    %c2 = arith.constant 2 : index
    %c0_124 = arith.constant 0 : index
    %c0_125 = arith.constant 0 : index
    %364 = vector.load %arg1[%c2, %c0_124, %c0_125] : memref<3x32x96xbf16, #tpu.memory_space<vmem>>, vector<1x32x96xbf16>
    %365 = vector.shape_cast %364 : vector<1x32x96xbf16> to vector<32x96xbf16>
    %c2_126 = arith.constant 2 : index
    %c0_127 = arith.constant 0 : index
    %c0_128 = arith.constant 0 : index
    %366 = vector.load %arg2[%c2_126, %c0_127, %c0_128] : memref<3x32x32xbf16, #tpu.memory_space<vmem>>, vector<1x32x32xbf16>
    %367 = vector.shape_cast %366 : vector<1x32x32xbf16> to vector<32x32xbf16>
    %c2_129 = arith.constant 2 : index
    %c0_130 = arith.constant 0 : index
    %c0_131 = arith.constant 0 : index
    %368 = vector.load %arg3[%c2_129, %c0_130, %c0_131] : memref<3x32x64xbf16, #tpu.memory_space<vmem>>, vector<1x32x64xbf16>
    %369 = vector.shape_cast %368 : vector<1x32x64xbf16> to vector<32x64xbf16>
    %c2_132 = arith.constant 2 : index
    %c0_133 = arith.constant 0 : index
    %c0_134 = arith.constant 0 : index
    %370 = vector.load %arg4[%c2_132, %c0_133, %c0_134] : memref<3x64x32xbf16, #tpu.memory_space<vmem>>, vector<1x64x32xbf16>
    %371 = vector.shape_cast %370 : vector<1x64x32xbf16> to vector<64x32xbf16>
    %c2_135 = arith.constant 2 : index
    %c0_136 = arith.constant 0 : index
    %c0_137 = arith.constant 0 : index
    %372 = vector.load %arg5[%c2_135, %c0_136, %c0_137] : memref<3x9x96xf32, #tpu.memory_space<vmem>>, vector<1x9x96xf32>
    %373 = vector.shape_cast %372 : vector<1x9x96xf32> to vector<9x96xf32>
    %374 = vector.extract_strided_slice %373 {offsets = [0, 0], sizes = [1, 96], strides = [1, 1]} : vector<9x96xf32> to vector<1x96xf32>
    %375 = vector.extract_strided_slice %373 {offsets = [1, 0], sizes = [1, 32], strides = [1, 1]} : vector<9x96xf32> to vector<1x32xf32>
    %376 = vector.extract_strided_slice %373 {offsets = [2, 0], sizes = [1, 64], strides = [1, 1]} : vector<9x96xf32> to vector<1x64xf32>
    %377 = vector.extract_strided_slice %373 {offsets = [3, 0], sizes = [1, 32], strides = [1, 1]} : vector<9x96xf32> to vector<1x32xf32>
    %378 = vector.extract_strided_slice %373 {offsets = [4, 0], sizes = [1, 32], strides = [1, 1]} : vector<9x96xf32> to vector<1x32xf32>
    %379 = vector.extract_strided_slice %373 {offsets = [5, 0], sizes = [1, 32], strides = [1, 1]} : vector<9x96xf32> to vector<1x32xf32>
    %380 = vector.extract_strided_slice %373 {offsets = [6, 0], sizes = [1, 32], strides = [1, 1]} : vector<9x96xf32> to vector<1x32xf32>
    %381 = vector.extract_strided_slice %373 {offsets = [7, 0], sizes = [1, 32], strides = [1, 1]} : vector<9x96xf32> to vector<1x32xf32>
    %382 = vector.extract_strided_slice %373 {offsets = [8, 0], sizes = [1, 1], strides = [1, 1]} : vector<9x96xf32> to vector<1x1xf32>
    %c2_138 = arith.constant 2 : index
    %c0_139 = arith.constant 0 : index
    %c0_140 = arith.constant 0 : index
    %383 = vector.load %arg6[%c2_138, %c0_139, %c0_140] : memref<3x64x2xf32, #tpu.memory_space<vmem>>, vector<1x64x2xf32>
    %384 = vector.shape_cast %383 : vector<1x64x2xf32> to vector<64x2xf32>
    %385 = vector.extract_strided_slice %384 {offsets = [0, 0], sizes = [64, 1], strides = [1, 1]} : vector<64x2xf32> to vector<64x1xf32>
    %386 = vector.extract_strided_slice %384 {offsets = [0, 1], sizes = [64, 1], strides = [1, 1]} : vector<64x2xf32> to vector<64x1xf32>
    %c2_141 = arith.constant 2 : index
    %c0_142 = arith.constant 0 : index
    %c0_143 = arith.constant 0 : index
    %387 = vector.load %arg7[%c2_141, %c0_142, %c0_143] : memref<3x64x32xf32, #tpu.memory_space<vmem>>, vector<1x64x32xf32>
    %388 = vector.shape_cast %387 : vector<1x64x32xf32> to vector<64x32xf32>
    %c2_144 = arith.constant 2 : index
    %c0_145 = arith.constant 0 : index
    %c0_146 = arith.constant 0 : index
    %389 = vector.load %arg8[%c2_144, %c0_145, %c0_146] : memref<3x64x64xf32, #tpu.memory_space<vmem>>, vector<1x64x64xf32>
    %390 = vector.shape_cast %389 : vector<1x64x64xf32> to vector<64x64xf32>
    %c2_147 = arith.constant 2 : index
    %c0_148 = arith.constant 0 : index
    %c0_149 = arith.constant 0 : index
    %391 = vector.load %arg9[%c2_147, %c0_148, %c0_149] : memref<3x8x64xf32, #tpu.memory_space<vmem>>, vector<1x8x64xf32>
    %392 = vector.shape_cast %391 : vector<1x8x64xf32> to vector<8x64xf32>
    %393 = arith.truncf %349 : vector<64x32xf32> to vector<64x32xbf16>
    %cst_150 = arith.constant dense<0.000000e+00> : vector<64x96xf32>
    %394 = tpu.matmul %393, %365, %cst_150 {dimension_numbers = #tpu.dot_dimension_numbers<[1], [0], [0], [1], [0, 0, 1, 1], [], []>} : vector<64x32xbf16>, vector<32x96xbf16>, vector<64x96xf32> -> vector<64x96xf32>
    %395 = vector.broadcast %374 : vector<1x96xf32> to vector<64x96xf32>
    %396 = arith.addf %394, %395 : vector<64x96xf32>
    %397 = arith.truncf %396 : vector<64x96xf32> to vector<64x96xbf16>
    %398 = vector.extract_strided_slice %397 {offsets = [0, 0], sizes = [64, 8], strides = [1, 1]} : vector<64x96xbf16> to vector<64x8xbf16>
    %399 = vector.extract_strided_slice %397 {offsets = [0, 32], sizes = [64, 8], strides = [1, 1]} : vector<64x96xbf16> to vector<64x8xbf16>
    %400 = vector.extract_strided_slice %397 {offsets = [0, 64], sizes = [64, 8], strides = [1, 1]} : vector<64x96xbf16> to vector<64x8xbf16>
    %cst_151 = arith.constant dense<0.000000e+00> : vector<64x64xf32>
    %401 = tpu.matmul %398, %399, %cst_151 {dimension_numbers = #tpu.dot_dimension_numbers<[1], [1], [0], [0], [0, 0, 1, 0], [], []>} : vector<64x8xbf16>, vector<64x8xbf16>, vector<64x64xf32> -> vector<64x64xf32>
    %402 = arith.addf %401, %390 : vector<64x64xf32>
    %cst_152 = arith.constant dense<0xFF800000> : vector<64xf32>
    %403 = vector.multi_reduction <maximumf>, %402, %cst_152 [1] : vector<64x64xf32> to vector<64xf32>
    %404 = vector.shape_cast %403 : vector<64xf32> to vector<64x1xf32>
    %405 = vector.broadcast %404 : vector<64x1xf32> to vector<64x64xf32>
    %406 = arith.subf %402, %405 : vector<64x64xf32>
    %407 = math.exp %406 : vector<64x64xf32>
    %cst_153 = arith.constant dense<0.000000e+00> : vector<64xf32>
    %408 = vector.multi_reduction <add>, %407, %cst_153 [1] : vector<64x64xf32> to vector<64xf32>
    %409 = vector.shape_cast %408 : vector<64xf32> to vector<64x1xf32>
    %410 = arith.truncf %407 : vector<64x64xf32> to vector<64x64xbf16>
    %cst_154 = arith.constant dense<0.000000e+00> : vector<64x8xf32>
    %411 = tpu.matmul %410, %400, %cst_154 {dimension_numbers = #tpu.dot_dimension_numbers<[1], [0], [0], [1], [0, 0, 1, 1], [], []>} : vector<64x64xbf16>, vector<64x8xbf16>, vector<64x8xf32> -> vector<64x8xf32>
    %412 = tpu.reciprocal %409 {approx = true} : vector<64x1xf32> -> vector<64x1xf32>
    %413 = vector.broadcast %412 : vector<64x1xf32> to vector<64x8xf32>
    %414 = arith.mulf %411, %413 : vector<64x8xf32>
    %415 = arith.truncf %414 : vector<64x8xf32> to vector<64x8xbf16>
    %416 = vector.extract_strided_slice %397 {offsets = [0, 8], sizes = [64, 8], strides = [1, 1]} : vector<64x96xbf16> to vector<64x8xbf16>
    %417 = vector.extract_strided_slice %397 {offsets = [0, 40], sizes = [64, 8], strides = [1, 1]} : vector<64x96xbf16> to vector<64x8xbf16>
    %418 = vector.extract_strided_slice %397 {offsets = [0, 72], sizes = [64, 8], strides = [1, 1]} : vector<64x96xbf16> to vector<64x8xbf16>
    %cst_155 = arith.constant dense<0.000000e+00> : vector<64x64xf32>
    %419 = tpu.matmul %416, %417, %cst_155 {dimension_numbers = #tpu.dot_dimension_numbers<[1], [1], [0], [0], [0, 0, 1, 0], [], []>} : vector<64x8xbf16>, vector<64x8xbf16>, vector<64x64xf32> -> vector<64x64xf32>
    %420 = arith.addf %419, %390 : vector<64x64xf32>
    %cst_156 = arith.constant dense<0xFF800000> : vector<64xf32>
    %421 = vector.multi_reduction <maximumf>, %420, %cst_156 [1] : vector<64x64xf32> to vector<64xf32>
    %422 = vector.shape_cast %421 : vector<64xf32> to vector<64x1xf32>
    %423 = vector.broadcast %422 : vector<64x1xf32> to vector<64x64xf32>
    %424 = arith.subf %420, %423 : vector<64x64xf32>
    %425 = math.exp %424 : vector<64x64xf32>
    %cst_157 = arith.constant dense<0.000000e+00> : vector<64xf32>
    %426 = vector.multi_reduction <add>, %425, %cst_157 [1] : vector<64x64xf32> to vector<64xf32>
    %427 = vector.shape_cast %426 : vector<64xf32> to vector<64x1xf32>
    %428 = arith.truncf %425 : vector<64x64xf32> to vector<64x64xbf16>
    %cst_158 = arith.constant dense<0.000000e+00> : vector<64x8xf32>
    %429 = tpu.matmul %428, %418, %cst_158 {dimension_numbers = #tpu.dot_dimension_numbers<[1], [0], [0], [1], [0, 0, 1, 1], [], []>} : vector<64x64xbf16>, vector<64x8xbf16>, vector<64x8xf32> -> vector<64x8xf32>
    %430 = tpu.reciprocal %427 {approx = true} : vector<64x1xf32> -> vector<64x1xf32>
    %431 = vector.broadcast %430 : vector<64x1xf32> to vector<64x8xf32>
    %432 = arith.mulf %429, %431 : vector<64x8xf32>
    %433 = arith.truncf %432 : vector<64x8xf32> to vector<64x8xbf16>
    %434 = vector.extract_strided_slice %397 {offsets = [0, 16], sizes = [64, 8], strides = [1, 1]} : vector<64x96xbf16> to vector<64x8xbf16>
    %435 = vector.extract_strided_slice %397 {offsets = [0, 48], sizes = [64, 8], strides = [1, 1]} : vector<64x96xbf16> to vector<64x8xbf16>
    %436 = vector.extract_strided_slice %397 {offsets = [0, 80], sizes = [64, 8], strides = [1, 1]} : vector<64x96xbf16> to vector<64x8xbf16>
    %cst_159 = arith.constant dense<0.000000e+00> : vector<64x64xf32>
    %437 = tpu.matmul %434, %435, %cst_159 {dimension_numbers = #tpu.dot_dimension_numbers<[1], [1], [0], [0], [0, 0, 1, 0], [], []>} : vector<64x8xbf16>, vector<64x8xbf16>, vector<64x64xf32> -> vector<64x64xf32>
    %438 = arith.addf %437, %390 : vector<64x64xf32>
    %cst_160 = arith.constant dense<0xFF800000> : vector<64xf32>
    %439 = vector.multi_reduction <maximumf>, %438, %cst_160 [1] : vector<64x64xf32> to vector<64xf32>
    %440 = vector.shape_cast %439 : vector<64xf32> to vector<64x1xf32>
    %441 = vector.broadcast %440 : vector<64x1xf32> to vector<64x64xf32>
    %442 = arith.subf %438, %441 : vector<64x64xf32>
    %443 = math.exp %442 : vector<64x64xf32>
    %cst_161 = arith.constant dense<0.000000e+00> : vector<64xf32>
    %444 = vector.multi_reduction <add>, %443, %cst_161 [1] : vector<64x64xf32> to vector<64xf32>
    %445 = vector.shape_cast %444 : vector<64xf32> to vector<64x1xf32>
    %446 = arith.truncf %443 : vector<64x64xf32> to vector<64x64xbf16>
    %cst_162 = arith.constant dense<0.000000e+00> : vector<64x8xf32>
    %447 = tpu.matmul %446, %436, %cst_162 {dimension_numbers = #tpu.dot_dimension_numbers<[1], [0], [0], [1], [0, 0, 1, 1], [], []>} : vector<64x64xbf16>, vector<64x8xbf16>, vector<64x8xf32> -> vector<64x8xf32>
    %448 = tpu.reciprocal %445 {approx = true} : vector<64x1xf32> -> vector<64x1xf32>
    %449 = vector.broadcast %448 : vector<64x1xf32> to vector<64x8xf32>
    %450 = arith.mulf %447, %449 : vector<64x8xf32>
    %451 = arith.truncf %450 : vector<64x8xf32> to vector<64x8xbf16>
    %452 = vector.extract_strided_slice %397 {offsets = [0, 24], sizes = [64, 8], strides = [1, 1]} : vector<64x96xbf16> to vector<64x8xbf16>
    %453 = vector.extract_strided_slice %397 {offsets = [0, 56], sizes = [64, 8], strides = [1, 1]} : vector<64x96xbf16> to vector<64x8xbf16>
    %454 = vector.extract_strided_slice %397 {offsets = [0, 88], sizes = [64, 8], strides = [1, 1]} : vector<64x96xbf16> to vector<64x8xbf16>
    %cst_163 = arith.constant dense<0.000000e+00> : vector<64x64xf32>
    %455 = tpu.matmul %452, %453, %cst_163 {dimension_numbers = #tpu.dot_dimension_numbers<[1], [1], [0], [0], [0, 0, 1, 0], [], []>} : vector<64x8xbf16>, vector<64x8xbf16>, vector<64x64xf32> -> vector<64x64xf32>
    %456 = arith.addf %455, %390 : vector<64x64xf32>
    %cst_164 = arith.constant dense<0xFF800000> : vector<64xf32>
    %457 = vector.multi_reduction <maximumf>, %456, %cst_164 [1] : vector<64x64xf32> to vector<64xf32>
    %458 = vector.shape_cast %457 : vector<64xf32> to vector<64x1xf32>
    %459 = vector.broadcast %458 : vector<64x1xf32> to vector<64x64xf32>
    %460 = arith.subf %456, %459 : vector<64x64xf32>
    %461 = math.exp %460 : vector<64x64xf32>
    %cst_165 = arith.constant dense<0.000000e+00> : vector<64xf32>
    %462 = vector.multi_reduction <add>, %461, %cst_165 [1] : vector<64x64xf32> to vector<64xf32>
    %463 = vector.shape_cast %462 : vector<64xf32> to vector<64x1xf32>
    %464 = arith.truncf %461 : vector<64x64xf32> to vector<64x64xbf16>
    %cst_166 = arith.constant dense<0.000000e+00> : vector<64x8xf32>
    %465 = tpu.matmul %464, %454, %cst_166 {dimension_numbers = #tpu.dot_dimension_numbers<[1], [0], [0], [1], [0, 0, 1, 1], [], []>} : vector<64x64xbf16>, vector<64x8xbf16>, vector<64x8xf32> -> vector<64x8xf32>
    %466 = tpu.reciprocal %463 {approx = true} : vector<64x1xf32> -> vector<64x1xf32>
    %467 = vector.broadcast %466 : vector<64x1xf32> to vector<64x8xf32>
    %468 = arith.mulf %465, %467 : vector<64x8xf32>
    %469 = arith.truncf %468 : vector<64x8xf32> to vector<64x8xbf16>
    %470 = tpu.concatenate %415, %433, %451, %469 in 1 : vector<64x8xbf16>, vector<64x8xbf16>, vector<64x8xbf16>, vector<64x8xbf16> -> vector<64x32xbf16>
    %cst_167 = arith.constant dense<0.000000e+00> : vector<64x32xf32>
    %471 = tpu.matmul %470, %367, %cst_167 {dimension_numbers = #tpu.dot_dimension_numbers<[1], [0], [0], [1], [0, 0, 1, 1], [], []>} : vector<64x32xbf16>, vector<32x32xbf16>, vector<64x32xf32> -> vector<64x32xf32>
    %472 = vector.broadcast %375 : vector<1x32xf32> to vector<64x32xf32>
    %473 = arith.addf %471, %472 : vector<64x32xf32>
    %474 = arith.addf %349, %473 : vector<64x32xf32>
    %cst_168 = arith.constant dense<0.000000e+00> : vector<64xf32>
    %475 = vector.multi_reduction <add>, %474, %cst_168 [1] : vector<64x32xf32> to vector<64xf32>
    %476 = vector.shape_cast %475 : vector<64xf32> to vector<64x1xf32>
    %cst_169 = arith.constant 3.200000e+01 : f32
    %477 = vector.broadcast %cst_169 : f32 to vector<64x1xf32>
    %478 = arith.divf %476, %477 : vector<64x1xf32>
    %479 = vector.broadcast %478 : vector<64x1xf32> to vector<64x32xf32>
    %480 = arith.subf %474, %479 : vector<64x32xf32>
    %481 = arith.mulf %480, %480 : vector<64x32xf32>
    %cst_170 = arith.constant dense<0.000000e+00> : vector<64xf32>
    %482 = vector.multi_reduction <add>, %481, %cst_170 [1] : vector<64x32xf32> to vector<64xf32>
    %483 = vector.shape_cast %482 : vector<64xf32> to vector<64x1xf32>
    %cst_171 = arith.constant 3.200000e+01 : f32
    %484 = vector.broadcast %cst_171 : f32 to vector<64x1xf32>
    %485 = arith.divf %483, %484 : vector<64x1xf32>
    %cst_172 = arith.constant 9.99999974E-6 : f32
    %486 = vector.broadcast %cst_172 : f32 to vector<64x1xf32>
    %487 = arith.addf %485, %486 : vector<64x1xf32>
    %488 = math.rsqrt %487 : vector<64x1xf32>
    %489 = vector.broadcast %488 : vector<64x1xf32> to vector<64x32xf32>
    %490 = arith.mulf %480, %489 : vector<64x32xf32>
    %491 = vector.broadcast %378 : vector<1x32xf32> to vector<64x32xf32>
    %492 = arith.mulf %490, %491 : vector<64x32xf32>
    %493 = vector.broadcast %379 : vector<1x32xf32> to vector<64x32xf32>
    %494 = arith.addf %492, %493 : vector<64x32xf32>
    %495 = arith.truncf %494 : vector<64x32xf32> to vector<64x32xbf16>
    %cst_173 = arith.constant dense<0.000000e+00> : vector<64x64xf32>
    %496 = tpu.matmul %495, %369, %cst_173 {dimension_numbers = #tpu.dot_dimension_numbers<[1], [0], [0], [1], [0, 0, 1, 1], [], []>} : vector<64x32xbf16>, vector<32x64xbf16>, vector<64x64xf32> -> vector<64x64xf32>
    %497 = vector.broadcast %376 : vector<1x64xf32> to vector<64x64xf32>
    %498 = arith.addf %496, %497 : vector<64x64xf32>
    %cst_174 = arith.constant 0.000000e+00 : f32
    %499 = vector.broadcast %cst_174 : f32 to vector<64x64xf32>
    %500 = arith.maximumf %498, %499 : vector<64x64xf32>
    %501 = arith.truncf %500 : vector<64x64xf32> to vector<64x64xbf16>
    %cst_175 = arith.constant dense<0.000000e+00> : vector<64x32xf32>
    %502 = tpu.matmul %501, %371, %cst_175 {dimension_numbers = #tpu.dot_dimension_numbers<[1], [0], [0], [1], [0, 0, 1, 1], [], []>} : vector<64x64xbf16>, vector<64x32xbf16>, vector<64x32xf32> -> vector<64x32xf32>
    %503 = vector.broadcast %377 : vector<1x32xf32> to vector<64x32xf32>
    %504 = arith.addf %502, %503 : vector<64x32xf32>
    %505 = arith.addf %494, %504 : vector<64x32xf32>
    %cst_176 = arith.constant dense<0.000000e+00> : vector<64xf32>
    %506 = vector.multi_reduction <add>, %505, %cst_176 [1] : vector<64x32xf32> to vector<64xf32>
    %507 = vector.shape_cast %506 : vector<64xf32> to vector<64x1xf32>
    %cst_177 = arith.constant 3.200000e+01 : f32
    %508 = vector.broadcast %cst_177 : f32 to vector<64x1xf32>
    %509 = arith.divf %507, %508 : vector<64x1xf32>
    %510 = vector.broadcast %509 : vector<64x1xf32> to vector<64x32xf32>
    %511 = arith.subf %505, %510 : vector<64x32xf32>
    %512 = arith.mulf %511, %511 : vector<64x32xf32>
    %cst_178 = arith.constant dense<0.000000e+00> : vector<64xf32>
    %513 = vector.multi_reduction <add>, %512, %cst_178 [1] : vector<64x32xf32> to vector<64xf32>
    %514 = vector.shape_cast %513 : vector<64xf32> to vector<64x1xf32>
    %cst_179 = arith.constant 3.200000e+01 : f32
    %515 = vector.broadcast %cst_179 : f32 to vector<64x1xf32>
    %516 = arith.divf %514, %515 : vector<64x1xf32>
    %cst_180 = arith.constant 9.99999974E-6 : f32
    %517 = vector.broadcast %cst_180 : f32 to vector<64x1xf32>
    %518 = arith.addf %516, %517 : vector<64x1xf32>
    %519 = math.rsqrt %518 : vector<64x1xf32>
    %520 = vector.broadcast %519 : vector<64x1xf32> to vector<64x32xf32>
    %521 = arith.mulf %511, %520 : vector<64x32xf32>
    %522 = vector.broadcast %380 : vector<1x32xf32> to vector<64x32xf32>
    %523 = arith.mulf %521, %522 : vector<64x32xf32>
    %524 = vector.broadcast %381 : vector<1x32xf32> to vector<64x32xf32>
    %525 = arith.addf %523, %524 : vector<64x32xf32>
    %526 = vector.broadcast %385 : vector<64x1xf32> to vector<64x32xf32>
    %527 = arith.mulf %525, %526 : vector<64x32xf32>
    %528 = arith.addf %349, %527 : vector<64x32xf32>
    %529 = vector.broadcast %386 : vector<64x1xf32> to vector<64x32xf32>
    %530 = arith.addf %528, %529 : vector<64x32xf32>
    %531 = arith.mulf %530, %388 : vector<64x32xf32>
    %cst_181 = arith.constant dense<0.000000e+00> : vector<64xf32>
    %532 = vector.multi_reduction <add>, %531, %cst_181 [1] : vector<64x32xf32> to vector<64xf32>
    %533 = vector.shape_cast %532 : vector<64xf32> to vector<64x1xf32>
    %cst_182 = arith.constant dense<0.000000e+00> : vector<8x1xf32>
    %534 = tpu.matmul %392, %533, %cst_182 {dimension_numbers = #tpu.dot_dimension_numbers<[1], [0], [0], [1], [0, 0, 1, 1], [], []>} : vector<8x64xf32>, vector<64x1xf32>, vector<8x1xf32> -> vector<8x1xf32>
    %535 = vector.broadcast %382 : vector<1x1xf32> to vector<8x1xf32>
    %536 = arith.addf %534, %535 : vector<8x1xf32>
    %537 = arith.negf %536 : vector<8x1xf32>
    %538 = math.exp %537 : vector<8x1xf32>
    %cst_183 = arith.constant 1.000000e+00 : f32
    %539 = vector.broadcast %cst_183 : f32 to vector<8x1xf32>
    %540 = arith.addf %539, %538 : vector<8x1xf32>
    %541 = arith.divf %539, %540 : vector<8x1xf32>
    %cst_184 = arith.constant 2.500000e-01 : f32
    %542 = vector.broadcast %cst_184 : f32 to vector<8x1xf32>
    %543 = arith.mulf %541, %542 : vector<8x1xf32>
    %544 = arith.addf %363, %543 : vector<8x1xf32>
    %c0_185 = arith.constant 0 : index
    %c0_186 = arith.constant 0 : index
    %545 = vector.load %arg10[%c0_185, %c0_186] : memref<8x1xf32, #tpu.memory_space<vmem>>, vector<8x1xf32>
    tpu.vector_store %arg10[%c0_185, %c0_186], %544 {strides = array<i32>} : memref<8x1xf32, #tpu.memory_space<vmem>>, vector<8x1xf32>,
    return
  }
}

</mosaic_0001>

<bundles_post_ra>
// kernel: multi_image_weight_generator.1
= control target key start
LH: loop header
LB: loop body
LE: loop exit
PB: predicated region body
PF: predicated region fallthrough
CT: control target
= control target key end

     0   :  { %vm111_vm0 = vcmask 261120   ;;  %v95_v14 = vlaneseq  ;;  %vm205_vm1 = vcmask 64512   ;;  %s8370_s15 = smov 96   ;;  %s8371_s16 = smov 64   ;;  %vm295_vm2 = vcmask 523264   ;;  %s11499_s1 = inlined_call_operand.vmem [shape: bf16[3,32,96], index: 1, kind: input, shape index: {}]   ;;  %s11500_s0 = inlined_call_operand.vmem [shape: f32[64,32], index: 0, kind: input, shape index: {}]   ;;  %s11501_s5 = inlined_call_operand.vmem [shape: f32[3,9,96], index: 5, kind: input, shape index: {}]   ;;  %s11502_s8 = inlined_call_operand.vmem [shape: f32[3,64,64], index: 8, kind: input, shape index: {}]   ;;  %s11503_s2 = inlined_call_operand.vmem [shape: bf16[3,32,32], index: 2, kind: input, shape index: {}]   ;;  %s11504_s3 = inlined_call_operand.vmem [shape: bf16[3,32,64], index: 3, kind: input, shape index: {}]   ;;  %s11505_s4 = inlined_call_operand.vmem [shape: bf16[3,64,32], index: 4, kind: input, shape index: {}]   ;;  %s11506_s6 = inlined_call_operand.vmem [shape: f32[3,64,2], index: 6, kind: input, shape index: {}]   ;;  %s11507_s7 = inlined_call_operand.vmem [shape: f32[3,64,32], index: 7, kind: input, shape index: {}]   ;;  %s11508_s9 = inlined_call_operand.vmem [shape: f32[3,8,64], index: 9, kind: input, shape index: {}]   ;;  %s11509_s10 = inlined_call_operand.vmem [shape: f32[8,1], index: 10, kind: output, shape index: {}]  }
   0x1   :  { %v7837_v0 = vld [vmem:[%s11499_s1] sm:$0xff]   ;;  %v7838_v1 = vld [vmem:[%s11499_s1 + $0x8] sm:$0xff]   ;;  %v38_v5 = vld [vmem:[%s11500_s0 + $0x10] sm:$0xff]  ;;  %s8372_s17 = smov 88   ;;  %s8373_s12 = smov 120   ;;  %vm1399_vm3 = vcmask 130048  }
   0x2   :  { %7115 = vmatprep.subr.bf16.mxu1 %v7837_v0  ;;  %v36_v2 = vld [vmem:[%s11500_s0] sm:$0xff]  ;;  %v37_v3 = vld [vmem:[%s11500_s0 + $0x8] sm:$0xff]  ;;  %v39_v6 = vld [vmem:[%s11500_s0 + $0x18] sm:$0xff]  ;;  %v8478_v15 = vshrl.u32 %v95_v14, 7  ;;  %s8374_s18 = smov 56   ;;  %s8375_s19 = smov 80  }
   0x3   :  { %7116 = vmatpush3.bf16.msra.mxu1 %v7837_v0  ;;  %v91_v4 = vpack.c.bf16 %v37_v3, %v36_v2  ;;  %v40_v7 = vld [vmem:[%s11500_s0 + $0x20] sm:$0xff]  ;;  %v41_v8 = vld [vmem:[%s11500_s0 + $0x28] sm:$0xff]  ;;  %v92_v9 = vpack.c.bf16 %v39_v6, %v38_v5  ;;  %v42_v11 = vld [vmem:[%s11500_s0 + $0x30] sm:$0xff]  ;;  %s8376_s20 = smov 112   ;;  %s8377_s21 = smov 48   ;;  %vm1408_vm4 = vcmask 195584  }
   0x4   :  { %7117 = vmatprep.subr.bf16.mxu1 %v7838_v1  ;;  %v93_v10 = vpack.c.bf16 %v41_v8, %v40_v7  ;;  %v43_v12 = vld [vmem:[%s11500_s0 + $0x38] sm:$0xff]  ;;  %11579 = vst [vmem:[#allocation2_spill] sm:$0xff] %v8478_v15  ;;  %v8481_v16 = vsub.s32 0, %v8478_v15  ;;  %v64_v17 = vld [vmem:[%s11501_s5] sm:$0xff]  ;;  %v8536_v52 = vld [vmem:[%s11502_s8 + $0x10] sm:$0xff]  ;;  %s8378_s22 = smov 72  }
   0x5   :  { %7119 = vmatprep.mubr.msk.bf16.mxu1 %vm111_vm0, %v91_v4  ;;  %v94_v13 = vpack.c.bf16 %v43_v12, %v42_v11  ;;  %v8541_v54 = vld [vmem:[%s11502_s8] sm:$0xff]  ;;  %v8547_v57 = vld [vmem:[%s11502_s8 + $0x8] sm:$0xff]  ;;  %v8554_v62 = vld [vmem:[%s11502_s8 + $0x18] sm:$0xff]  ;;  %s8379_s23 = smov 104   ;;  %s11558_s24 = smov 40   ;;  %vm8387_vm5 = vmmov 0  }
   0x6   :  { %11580 = vst [vmem:[#allocation3_spill] sm:$0xff] %v8481_v16  ;;  %v98_v18 = vrot.slane %v64_v17, %v8481_v16  ;;  %v8563_v3 = vld [vmem:[%s11502_s8 + $0x30] sm:$0xff]  ;;  %s11556_s25 = smov 8   ;;  %s11554_s26 = smov 16   ;;  %vm6535_vm6 = vcmask 7168  }
   0x7   :  { %7118 = vmatpush3.bf16.msra.mxu1 %v7838_v1  ;;  %s11514_s11 = smov 24  }
   0xa   :  { %7120 = vmatmul.mubr.msk.bf16.vlgmr.msra.gmra.mrb[0].mxu1 %vm111_vm0, %v92_v9 }
   0xb   :  { %7123 = vmatprep.mubr.msk.bf16.mxu1 %vm111_vm0, %v93_v10  ;;  %v8572_v10 = vld [vmem:[%s11502_s8 + $0x20] sm:$0xff] }
  0x12   :  { %7124 = vmatmul.mubr.msk.bf16.gmra.mrb[4].mxu1 %vm111_vm0, %v94_v13  ;;  %v8582_v13 = vld [vmem:[%s11502_s8 + $0x38] sm:$0xff] }
  0xdd   :  { %v7121_v19 = vpop.f32.mrb[0].mxu1 }
  0xde   :  { %v158_v20 = vpop.f32.mrb[1].mxu1  ;;  %v167_v22 = vadd.f32 %v7121_v19, %v98_v18  ;;  %v8600_v19 = vld [vmem:[%s11502_s8 + $0x28] sm:$0xff] }
  0xdf   :  { %v7122_v21 = vpop.f32.mrb[2].mxu1  ;;  %v159_v25 = vadd.f32 %v158_v20, %v98_v18 }
  0xe0   :  { %v170_v23 = vadd.f32 %v7122_v21, %v98_v18  ;;  %v161_v24 = vpop.f32.mrb[3].mxu1 }
  0xe1   :  { %v162_v26 = vadd.f32 %v161_v24, %v98_v18 }
  0xe2   :  { %v8487_v27 = vpack.c.bf16 %v170_v23, %v167_v22 }
  0xe3   :  { %v8489_v28 = vpack.c.bf16 %v162_v26, %v159_v25 }
  0xe5   :  { %v7125_v29 = vpop.f32.mrb[4].mxu1  ;;  %197 = vrot.lane.b32.xlu0 %v8489_v28, %s8370_s15  ;;  %7135 = vmatprep.mubr.msk.bf16.mxu1 %vm205_vm1, %v8489_v28 }
  0xe6   :  { %v183_v30 = vadd.f32 %v7125_v29, %v98_v18  ;;  %v174_v31 = vpop.f32.mrb[5].mxu1 }
  0xe7   :  { %v175_v32 = vadd.f32 %v174_v31, %v98_v18  ;;  %v7126_v33 = vpop.f32.mrb[6].mxu1 }
  0xe8   :  { %v186_v34 = vadd.f32 %v7126_v33, %v98_v18  ;;  %v177_v35 = vpop.f32.mrb[7].mxu1 }
  0xe9   :  { %v178_v36 = vadd.f32 %v177_v35, %v98_v18  ;;  %199 = vrot.lane.b32.xlu0 %v8487_v27, %s8370_s15 }
  0xea   :  { %v8497_v37 = vpack.c.bf16 %v186_v34, %v183_v30 }
  0xeb   :  { %v8499_v38 = vpack.c.bf16 %v178_v36, %v175_v32 }
  0xed   :  { %201 = vrot.lane.b32.xlu1 %v8499_v38, %s8370_s15  ;;  %374 = vrot.lane.b32.xlu0 %v8487_v27, %s8371_s16 }
  0xf1   :  { %203 = vrot.lane.b32.xlu1 %v8497_v37, %s8370_s15 }
  0xf5   :  { %372 = vrot.lane.b32.xlu1 %v8489_v28, %s8371_s16 }
  0xf9   :  { %378 = vrot.lane.b32.xlu1 %v8497_v37, %s8371_s16 }
  0xfd   :  { %489 = vrot.lane.b32.xlu1 %v8489_v28, %s8372_s17 }
 0x101   :  { %376 = vrot.lane.b32.xlu1 %v8499_v38, %s8371_s16 }
 0x157   :  { %v198_v39 = vpop.permute.xlu0 %197 }
 0x158   :  { %7748 = vmatprep.subr.msk.bf16.mxu1 %vm205_vm1, %v198_v39  ;;  %v219_v40 = vsel %vm205_vm1, %v198_v39, 0 }
 0x159   :  { %7128 = vmatpush3.bf16.xpose.msra.mxu1 %v219_v40 }
 0x15b   :  { %v200_v41 = vpop.permute.xlu0 %199 }
 0x15c   :  { %7749 = vmatprep.subr.msk.bf16.mxu1 %vm205_vm1, %v200_v41  ;;  %v222_v43 = vsel %vm205_vm1, %v200_v41, 0 }
 0x15f   :  { %v202_v42 = vpop.permute.xlu1 %201  ;;  %v375_v47 = vpop.permute.xlu0 %374 }
 0x160   :  { %v225_v46 = vsel %vm205_vm1, %v202_v42, 0 }
 0x161   :  { %7130 = vmatpush3.bf16.xpose.msra.mxu1 %v222_v43 }
 0x162   :  { %7750 = vmatprep.subr.msk.bf16.mxu1 %vm205_vm1, %v202_v42 }
 0x163   :  { %v204_v44 = vpop.permute.xlu1 %203 }
 0x164   :  { %v228_v50 = vsel %vm205_vm1, %v204_v44, 0 }
 0x167   :  { %v373_v45 = vpop.permute.xlu1 %372 }
 0x168   :  { %7143 = vmatprep.subr.bf16.mxu0 %v373_v45 }
 0x169   :  { %7132 = vmatpush3.bf16.xpose.msra.mxu1 %v225_v46  ;;  %7144 = vmatpush3.bf16.msra.mxu0 %v373_v45 }
 0x16a   :  { %7751 = vmatprep.subr.msk.bf16.mxu1 %vm205_vm1, %v204_v44  ;;  %7145 = vmatprep.subr.bf16.mxu0 %v375_v47 }
 0x16b   :  { %v379_v48 = vpop.permute.xlu1 %378 }
 0x16d   :  { %7146 = vmatpush3.bf16.msra.mxu0 %v375_v47 }
 0x16f   :  { %v8522_v49 = vpop.permute.xlu1 %489 }
 0x170   :  { %v510_v47 = vsel %vm205_vm1, %v8522_v49, 0 }
 0x171   :  { %7134 = vmatpush3.bf16.xpose.msra.mxu1 %v228_v50 }
 0x173   :  { %v377_v51 = vpop.permute.xlu1 %376 }
 0x174   :  { %7147 = vmatprep.subr.bf16.mxu0 %v377_v51 }
 0x175   :  { %7148 = vmatpush3.bf16.msra.mxu0 %v377_v51 }
 0x176   :  { %7149 = vmatprep.subr.bf16.mxu0 %v379_v48 }
 0x178   :  { %7136 = vmatmul.mubr.msk.bf16.vlgmr.msra.gmra.mrb[8].mxu1 %vm205_vm1, %v8487_v27 }
 0x179   :  { %7139 = vmatprep.mubr.msk.bf16.mxu1 %vm205_vm1, %v8499_v38  ;;  %7150 = vmatpush3.bf16.msra.mxu0 %v379_v48 }
 0x17a   :  { %7752 = vmatprep.subr.msk.bf16.mxu0 %vm205_vm1, %v8522_v49 }
 0x180   :  { %7140 = vmatmul.mubr.msk.bf16.gmra.mrb[12].mxu1 %vm205_vm1, %v8497_v37 }
 0x24b   :  { %v7137_v53 = vpop.f32.mrb[8].mxu1 }
 0x24c   :  { %v273_v55 = vadd.f32 %v7137_v53, %v8536_v52  ;;  %v264_v56 = vpop.f32.mrb[9].mxu1 }
 0x24d   :  { %v7138_v58 = vpop.f32.mrb[10].mxu1  ;;  %v265_v59 = vadd.f32 %v264_v56, %v8541_v54 }
 0x24e   :  { %v267_v60 = vpop.f32.mrb[11].mxu1  ;;  %v302_v61 = vsel %vm295_vm2, %v273_v55, -inf  ;;  %v276_v1 = vadd.f32 %v7138_v58, %v8554_v62 }
 0x24f   :  { %v268_v63 = vadd.f32 %v267_v60, %v8547_v57  ;;  %303 = vmax.xlane.f32.xlu0 %v302_v61  ;;  %v296_v2 = vsel %vm295_vm2, %v265_v59, -inf }
 0x250   :  { %v305_v9 = vsel %vm295_vm2, %v276_v1, -inf }
 0x251   :  { %v299_v0 = vsel %vm295_vm2, %v268_v63, -inf }
 0x252   :  { %300 = vmax.xlane.f32.xlu1 %v299_v0 }
 0x253   :  { %v7141_v4 = vpop.f32.mrb[12].mxu1  ;;  %297 = vmax.xlane.f32.xlu0 %v296_v2 }
 0x254   :  { %v280_v5 = vpop.f32.mrb[13].mxu1  ;;  %v8566_v7 = vadd.f32 %v7141_v4, %v8563_v3 }
 0x255   :  { %v7142_v6 = vpop.f32.mrb[14].mxu1  ;;  %v8575_v11 = vadd.f32 %v280_v5, %v8572_v10 }
 0x256   :  { %v283_v8 = vpop.f32.mrb[15].mxu1  ;;  %v314_v12 = vsel %vm295_vm2, %v8566_v7, -inf  ;;  %v8585_v14 = vadd.f32 %v7142_v6, %v8582_v13 }
 0x257   :  { %306 = vmax.xlane.f32.xlu0 %v305_v9  ;;  %v308_v17 = vsel %vm295_vm2, %v8575_v11, -inf  ;;  %v284_v20 = vadd.f32 %v283_v8, %v8600_v19 }
 0x258   :  { %v317_v18 = vsel %vm295_vm2, %v8585_v14, -inf }
 0x259   :  { %v311_v21 = vsel %vm295_vm2, %v284_v20, -inf }
 0x25b   :  { %315 = vmax.xlane.f32.xlu0 %v314_v12 }
 0x25f   :  { %309 = vmax.xlane.f32.xlu0 %v308_v17 }
 0x263   :  { %493 = vrot.lane.b32.xlu1 %v8499_v38, %s8372_s17  ;;  %318 = vmax.xlane.f32.xlu0 %v317_v18 }
 0x279   :  { %491 = vrot.lane.b32.xlu0 %v8487_v27, %s8372_s17 }
 0x27d   :  { %481 = vrot.lane.b32.xlu0 %v8489_v28, %s8373_s12 }
 0x281   :  { %485 = vrot.lane.b32.xlu0 %v8499_v38, %s8373_s12 }
 0x285   :  { %664 = vrot.lane.b32.xlu0 %v8487_v27, %s8374_s18 }
 0x287   :  { %312 = vmax.xlane.f32.xlu1 %v311_v21 }
 0x298   :  { %495 = vrot.lane.b32.xlu1 %v8497_v37, %s8372_s17 }
 0x29c   :  { %483 = vrot.lane.b32.xlu1 %v8487_v27, %s8373_s12 }
 0x2a0   :  { %487 = vrot.lane.b32.xlu1 %v8497_v37, %s8373_s12 }
 0x2a4   :  { %662 = vrot.lane.b32.xlu1 %v8489_v28, %s8374_s18 }
 0x2a8   :  { %666 = vrot.lane.b32.xlu1 %v8499_v38, %s8374_s18 }
 0x2ac   :  { %668 = vrot.lane.b32.xlu1 %v8497_v37, %s8374_s18 }
 0x2b0   :  { %779 = vrot.lane.b32.xlu1 %v8489_v28, %s8375_s19 }
 0x2dc   :  { %v304_v22 = vpop.xlane.xlu0 %303 }
 0x2dd   :  { %v322_v24 = vsub.f32 %v273_v55, %v304_v22 }
 0x2df   :  { %v301_v23 = vpop.xlane.xlu1 %300  ;;  %v332_v32 = vmul.f32 1.442695, %v322_v24 }
 0x2e0   :  { %v321_v25 = vsub.f32 %v268_v63, %v301_v23  ;;  %v298_v26 = vpop.xlane.xlu0 %297 }
 0x2e1   :  { %v320_v29 = vsub.f32 %v265_v59, %v298_v26 }
 0x2e2   :  { %v330_v30 = vmul.f32 1.442695, %v321_v25 }
 0x2e3   :  { %v328_v31 = vmul.f32 1.442695, %v320_v29  ;;  %v494_v51 = vpop.permute.xlu1 %493 }
 0x2e4   :  { %7867 = vpow2.f32 %v330_v30  ;;  %v307_v33 = vpop.xlane.xlu0 %306  ;;  %v516_v53 = vsel %vm205_vm1, %v494_v51, 0 }
 0x2e5   :  { %7869 = vpow2.f32 %v328_v31  ;;  %v323_v34 = vsub.f32 %v276_v1, %v307_v33 }
 0x2e6   :  { %7871 = vpow2.f32 %v332_v32 }
 0x2e7   :  { %v334_v35 = vmul.f32 1.442695, %v323_v34 }
 0x2e8   :  { %v316_v36 = vpop.xlane.xlu0 %315 }
 0x2e9   :  { %7873 = vpow2.f32 %v334_v35  ;;  %v326_v58 = vsub.f32 %v8566_v7, %v316_v36 }
 0x2eb   :  { %v340_v63 = vmul.f32 1.442695, %v326_v58 }
 0x2ec   :  { %v310_v39 = vpop.xlane.xlu0 %309 }
 0x2ed   :  { %v324_v55 = vsub.f32 %v8575_v11, %v310_v39 }
 0x2ee   :  { %v8622_v40 = vpop.eup %7867 }
 0x2ef   :  { %v8624_v41 = vpop.eup %7869  ;;  %v336_v49 = vmul.f32 1.442695, %v324_v55 }
 0x2f0   :  { %v368_v42 = vpack.c.bf16 %v8622_v40, %v8624_v41  ;;  %v319_v43 = vpop.xlane.xlu0 %318  ;;  %v8628_v44 = vpop.eup %7871 }
 0x2f1   :  { %v327_v56 = vsub.f32 %v8585_v14, %v319_v43  ;;  %7875 = vpow2.f32 %v336_v49 }
 0x2f2   :  { %7151 = vmatprep.mubr.msk.bf16.mxu0 %vm295_vm2, %v368_v42 }
 0x2f3   :  { %v8631_v45 = vpop.eup %7873  ;;  %v342_v59 = vmul.f32 1.442695, %v327_v56 }
 0x2f4   :  { %v369_v46 = vpack.c.bf16 %v8631_v45, %v8628_v44  ;;  %v492_v48 = vpop.permute.xlu0 %491 }
 0x2f5   :  { %v513_v50 = vsel %vm205_vm1, %v492_v48, 0  ;;  %7877 = vpow2.f32 %v342_v59 }
 0x2f6   :  { %7152 = vmatmul.mubr.msk.bf16.vlgmr.msra.gmra.mrb[0].mxu0 %vm295_vm2, %v369_v46 }
 0x2f7   :  { %7160 = vmatpush3.bf16.xpose.msra.mxu0 %v510_v47 }
 0x2f8   :  { %7753 = vmatprep.subr.msk.bf16.mxu0 %vm205_vm1, %v492_v48  ;;  %v482_v4 = vpop.permute.xlu0 %481 }
 0x2fb   :  { %v8647_v8 = vpop.eup %7875 }
 0x2fc   :  { %v486_v6 = vpop.permute.xlu0 %485 }
 0x2ff   :  { %7162 = vmatpush3.bf16.xpose.msra.mxu0 %v513_v50  ;;  %v8649_v9 = vpop.eup %7877 }
 0x300   :  { %7754 = vmatprep.subr.msk.bf16.mxu0 %vm205_vm1, %v494_v51 }
 0x307   :  { %7164 = vmatpush3.bf16.xpose.msra.mxu0 %v516_v53 }
 0x314   :  { %v313_v60 = vpop.xlane.xlu1 %312 }
 0x315   :  { %v325_v61 = vsub.f32 %v284_v20, %v313_v60  ;;  %v665_v20 = vpop.permute.xlu0 %664 }
 0x317   :  { %v338_v0 = vmul.f32 1.442695, %v325_v61 }
 0x318   :  { %v496_v1 = vpop.permute.xlu1 %495 }
 0x319   :  { %7879 = vpow2.f32 %v338_v0  ;;  %7755 = vmatprep.subr.msk.bf16.mxu0 %vm205_vm1, %v496_v1  ;;  %v519_v2 = vsel %vm205_vm1, %v496_v1, 0 }
 0x31a   :  { %7881 = vpow2.f32 %v340_v63  ;;  %7166 = vmatpush3.bf16.xpose.msra.mxu0 %v519_v2 }
 0x31c   :  { %v484_v5 = vpop.permute.xlu1 %483 }
 0x320   :  { %v488_v7 = vpop.permute.xlu1 %487 }
 0x323   :  { %v8651_v11 = vpop.eup %7879 }
 0x324   :  { %v8653_v12 = vpop.eup %7881  ;;  %v663_v14 = vpop.permute.xlu1 %662  ;;  %v370_v17 = vpack.c.bf16 %v8651_v11, %v8647_v8 }
 0x325   :  { %7175 = vmatprep.subr.bf16.mxu1 %v663_v14  ;;  %v371_v18 = vpack.c.bf16 %v8649_v9, %v8653_v12 }
 0x326   :  { %7155 = vmatprep.mubr.msk.bf16.mxu0 %vm295_vm2, %v370_v17  ;;  %7176 = vmatpush3.bf16.msra.mxu1 %v663_v14 }
 0x327   :  { %7156 = vmatmul.mubr.msk.bf16.gmra.mrb[4].mxu0 %vm295_vm2, %v371_v18  ;;  %7177 = vmatprep.subr.bf16.mxu1 %v665_v20 }
 0x328   :  { %v667_v21 = vpop.permute.xlu1 %666  ;;  %7167 = vmatprep.mubr.msk.bf16.mxu0 %vm205_vm1, %v482_v4 }
 0x32a   :  { %7178 = vmatpush3.bf16.msra.mxu1 %v665_v20 }
 0x32b   :  { %7179 = vmatprep.subr.bf16.mxu1 %v667_v21 }
 0x32c   :  { %v669_v22 = vpop.permute.xlu1 %668 }
 0x32e   :  { %7180 = vmatpush3.bf16.msra.mxu1 %v667_v21 }
 0x32f   :  { %7168 = vmatmul.mubr.msk.bf16.vlgmr.msra.gmra.mrb[8].mxu0 %vm205_vm1, %v484_v5  ;;  %7181 = vmatprep.subr.bf16.mxu1 %v669_v22 }
 0x330   :  { %7171 = vmatprep.mubr.msk.bf16.mxu0 %vm205_vm1, %v486_v6  ;;  %v8664_v23 = vpop.permute.xlu1 %779 }
 0x332   :  { %7182 = vmatpush3.bf16.msra.mxu1 %v669_v22 }
 0x333   :  { %7756 = vmatprep.subr.msk.bf16.mxu1 %vm205_vm1, %v8664_v23 }
 0x337   :  { %7172 = vmatmul.mubr.msk.bf16.gmra.mrb[12].mxu0 %vm205_vm1, %v488_v7 }
 0x3c9   :  { %v8669_v24 = vpop.f32.mrb[0].mxu0 }
 0x3ca   :  { %11581 = vst [vmem:[#allocation4_spill] sm:$0xff] %v8669_v24  ;;  %v8671_v25 = vpop.f32.mrb[1].mxu0 }
 0x3cb   :  { %v8673_v26 = vpop.f32.mrb[2].mxu0 }
 0x3cc   :  { %11582 = vst [vmem:[#allocation5_spill] sm:$0xff] %v8673_v26  ;;  %v8675_v29 = vpop.f32.mrb[3].mxu0 }
 0x3fa   :  { %v8677_v30 = vpop.f32.mrb[4].mxu0 }
 0x3fb   :  { %11583 = vst [vmem:[#allocation6_spill] sm:$0xff] %v8677_v30  ;;  %v8679_v31 = vpop.f32.mrb[5].mxu0 }
 0x3fc   :  { %11584 = vst [vmem:[#allocation7_spill] sm:$0xff] %v8679_v31  ;;  %v8681_v32 = vpop.f32.mrb[6].mxu0 }
 0x3fd   :  { %11585 = vst [vmem:[#allocation8_spill] sm:$0xff] %v8681_v32  ;;  %v8683_v33 = vpop.f32.mrb[7].mxu0 }
 0x3fe   :  { %11586 = vst [vmem:[#allocation9_spill] sm:$0xff] %v8683_v33 }
 0x402   :  { %v7169_v34 = vpop.f32.mrb[8].mxu0 }
 0x403   :  { %v564_v35 = vadd.f32 %v7169_v34, %v8536_v52  ;;  %v555_v36 = vpop.f32.mrb[9].mxu0 }
 0x404   :  { %v7170_v39 = vpop.f32.mrb[10].mxu0  ;;  %v556_v42 = vadd.f32 %v555_v36, %v8541_v54 }
 0x405   :  { %v558_v43 = vpop.f32.mrb[11].mxu0  ;;  %v592_v46 = vsel %vm295_vm2, %v564_v35, -inf  ;;  %v567_v50 = vadd.f32 %v7170_v39, %v8554_v62 }
 0x406   :  { %v559_v47 = vadd.f32 %v558_v43, %v8547_v57  ;;  %593 = vmax.xlane.f32.xlu0 %v592_v46  ;;  %v586_v51 = vsel %vm295_vm2, %v556_v42, -inf }
 0x407   :  { %v595_v59 = vsel %vm295_vm2, %v567_v50, -inf }
 0x408   :  { %v589_v48 = vsel %vm295_vm2, %v559_v47, -inf }
 0x409   :  { %590 = vmax.xlane.f32.xlu1 %v589_v48 }
 0x40a   :  { %587 = vmax.xlane.f32.xlu0 %v586_v51  ;;  %v7173_v53 = vpop.f32.mrb[12].mxu0 }
 0x40b   :  { %v571_v55 = vpop.f32.mrb[13].mxu0  ;;  %v8693_v58 = vadd.f32 %v7173_v53, %v8563_v3 }
 0x40c   :  { %v7174_v56 = vpop.f32.mrb[14].mxu0  ;;  %v8697_v60 = vadd.f32 %v571_v55, %v8572_v10  ;;  %v800_v55 = vsel %vm205_vm1, %v8664_v23, 0 }
 0x40d   :  { %v574_v49 = vpop.f32.mrb[15].mxu0  ;;  %v604_v61 = vsel %vm295_vm2, %v8693_v58, -inf  ;;  %v8702_v63 = vadd.f32 %v7174_v56, %v8582_v13 }
 0x40e   :  { %596 = vmax.xlane.f32.xlu0 %v595_v59  ;;  %v598_v0 = vsel %vm295_vm2, %v8697_v60, -inf  ;;  %v575_v2 = vadd.f32 %v574_v49, %v8600_v19 }
 0x40f   :  { %v607_v1 = vsel %vm295_vm2, %v8702_v63, -inf }
 0x410   :  { %v601_v4 = vsel %vm295_vm2, %v575_v2, -inf }
 0x412   :  { %605 = vmax.xlane.f32.xlu0 %v604_v61 }
 0x416   :  { %599 = vmax.xlane.f32.xlu0 %v598_v0 }
 0x41a   :  { %783 = vrot.lane.b32.xlu1 %v8499_v38, %s8375_s19  ;;  %608 = vmax.xlane.f32.xlu0 %v607_v1 }
 0x430   :  { %781 = vrot.lane.b32.xlu0 %v8487_v27, %s8375_s19 }
 0x434   :  { %771 = vrot.lane.b32.xlu0 %v8489_v28, %s8376_s20 }
 0x438   :  { %775 = vrot.lane.b32.xlu0 %v8499_v38, %s8376_s20 }
 0x43c   :  { %954 = vrot.lane.b32.xlu0 %v8487_v27, %s8377_s21 }
 0x43e   :  { %602 = vmax.xlane.f32.xlu1 %v601_v4 }
 0x44f   :  { %785 = vrot.lane.b32.xlu1 %v8497_v37, %s8375_s19 }
 0x453   :  { %773 = vrot.lane.b32.xlu1 %v8487_v27, %s8376_s20 }
 0x457   :  { %777 = vrot.lane.b32.xlu1 %v8497_v37, %s8376_s20 }
 0x45b   :  { %952 = vrot.lane.b32.xlu1 %v8489_v28, %s8377_s21 }
 0x45f   :  { %956 = vrot.lane.b32.xlu1 %v8499_v38, %s8377_s21 }
 0x463   :  { %958 = vrot.lane.b32.xlu1 %v8497_v37, %s8377_s21 }
 0x467   :  { %1069 = vrot.lane.b32.xlu1 %v8489_v28, %s8378_s22 }
 0x493   :  { %v594_v5 = vpop.xlane.xlu0 %593 }
 0x494   :  { %v612_v7 = vsub.f32 %v564_v35, %v594_v5 }
 0x496   :  { %v591_v6 = vpop.xlane.xlu1 %590  ;;  %v622_v22 = vmul.f32 1.442695, %v612_v7 }
 0x497   :  { %v611_v14 = vsub.f32 %v559_v47, %v591_v6  ;;  %v588_v17 = vpop.xlane.xlu0 %587 }
 0x498   :  { %v610_v18 = vsub.f32 %v556_v42, %v588_v17 }
 0x499   :  { %v620_v20 = vmul.f32 1.442695, %v611_v14 }
 0x49a   :  { %v618_v21 = vmul.f32 1.442695, %v610_v18  ;;  %v784_v59 = vpop.permute.xlu1 %783 }
 0x49b   :  { %7883 = vpow2.f32 %v620_v20  ;;  %v597_v34 = vpop.xlane.xlu0 %596  ;;  %v806_v61 = vsel %vm205_vm1, %v784_v59, 0 }
 0x49c   :  { %7885 = vpow2.f32 %v618_v21  ;;  %v613_v36 = vsub.f32 %v567_v50, %v597_v34 }
 0x49d   :  { %7887 = vpow2.f32 %v622_v22 }
 0x49e   :  { %v624_v39 = vmul.f32 1.442695, %v613_v36 }
 0x49f   :  { %v606_v43 = vpop.xlane.xlu0 %605 }
 0x4a0   :  { %7889 = vpow2.f32 %v624_v39  ;;  %v616_v4 = vsub.f32 %v8693_v58, %v606_v43 }
 0x4a2   :  { %v630_v14 = vmul.f32 1.442695, %v616_v4 }
 0x4a3   :  { %v600_v46 = vpop.xlane.xlu0 %599 }
 0x4a4   :  { %v614_v0 = vsub.f32 %v8697_v60, %v600_v46 }
 0x4a5   :  { %v8734_v48 = vpop.eup %7883 }
 0x4a6   :  { %v8736_v51 = vpop.eup %7885  ;;  %v626_v23 = vmul.f32 1.442695, %v614_v0 }
 0x4a7   :  { %v658_v35 = vpack.c.bf16 %v8734_v48, %v8736_v51  ;;  %v609_v42 = vpop.xlane.xlu0 %608  ;;  %v8740_v47 = vpop.eup %7887 }
 0x4a8   :  { %v617_v1 = vsub.f32 %v8702_v63, %v609_v42  ;;  %7891 = vpow2.f32 %v626_v23 }
 0x4a9   :  { %7183 = vmatprep.mubr.msk.bf16.mxu1 %vm295_vm2, %v658_v35 }
 0x4aa   :  { %v8743_v53 = vpop.eup %7889  ;;  %v632_v5 = vmul.f32 1.442695, %v617_v1 }
 0x4ab   :  { %v659_v50 = vpack.c.bf16 %v8743_v53, %v8740_v47  ;;  %v782_v56 = vpop.permute.xlu0 %781 }
 0x4ac   :  { %v803_v49 = vsel %vm205_vm1, %v782_v56, 0  ;;  %7893 = vpow2.f32 %v632_v5 }
 0x4ad   :  { %7184 = vmatmul.mubr.msk.bf16.vlgmr.msra.gmra.mrb[16].mxu1 %vm295_vm2, %v659_v50 }
 0x4ae   :  { %7192 = vmatpush3.bf16.xpose.msra.mxu1 %v800_v55 }
 0x4af   :  { %7757 = vmatprep.subr.msk.bf16.mxu1 %vm205_vm1, %v782_v56  ;;  %v772_v60 = vpop.permute.xlu0 %771 }
 0x4b2   :  { %v8759_v22 = vpop.eup %7891 }
 0x4b3   :  { %v776_v21 = vpop.permute.xlu0 %775 }
 0x4b6   :  { %7194 = vmatpush3.bf16.xpose.msra.mxu1 %v803_v49  ;;  %v8761_v34 = vpop.eup %7893 }
 0x4b7   :  { %7758 = vmatprep.subr.msk.bf16.mxu1 %vm205_vm1, %v784_v59  ;;  %v955_v35 = vpop.permute.xlu0 %954 }
 0x4be   :  { %7196 = vmatpush3.bf16.xpose.msra.mxu1 %v806_v61 }
 0x4cb   :  { %v603_v6 = vpop.xlane.xlu1 %602 }
 0x4cc   :  { %v615_v7 = vsub.f32 %v575_v2, %v603_v6 }
 0x4ce   :  { %v628_v17 = vmul.f32 1.442695, %v615_v7 }
 0x4cf   :  { %v786_v18 = vpop.permute.xlu1 %785 }
 0x4d0   :  { %7895 = vpow2.f32 %v628_v17  ;;  %7759 = vmatprep.subr.msk.bf16.mxu1 %vm205_vm1, %v786_v18  ;;  %v809_v20 = vsel %vm205_vm1, %v786_v18, 0 }
 0x4d1   :  { %7897 = vpow2.f32 %v630_v14  ;;  %7198 = vmatpush3.bf16.xpose.msra.mxu1 %v809_v20 }
 0x4d3   :  { %v774_v63 = vpop.permute.xlu1 %773 }
 0x4d7   :  { %v778_v58 = vpop.permute.xlu1 %777 }
 0x4da   :  { %v8763_v2 = vpop.eup %7895 }
 0x4db   :  { %v8765_v36 = vpop.eup %7897  ;;  %v953_v39 = vpop.permute.xlu1 %952  ;;  %v660_v43 = vpack.c.bf16 %v8763_v2, %v8759_v22 }
 0x4dc   :  { %7207 = vmatprep.subr.bf16.mxu0 %v953_v39  ;;  %v661_v46 = vpack.c.bf16 %v8761_v34, %v8765_v36 }
 0x4dd   :  { %7187 = vmatprep.mubr.msk.bf16.mxu1 %vm295_vm2, %v660_v43  ;;  %7208 = vmatpush3.bf16.msra.mxu0 %v953_v39 }
 0x4de   :  { %7188 = vmatmul.mubr.msk.bf16.gmra.mrb[20].mxu1 %vm295_vm2, %v661_v46  ;;  %7209 = vmatprep.subr.bf16.mxu0 %v955_v35 }
 0x4df   :  { %v957_v42 = vpop.permute.xlu1 %956  ;;  %7199 = vmatprep.mubr.msk.bf16.mxu1 %vm205_vm1, %v772_v60 }
 0x4e1   :  { %7210 = vmatpush3.bf16.msra.mxu0 %v955_v35 }
 0x4e2   :  { %7211 = vmatprep.subr.bf16.mxu0 %v957_v42 }
 0x4e3   :  { %v959_v50 = vpop.permute.xlu1 %958 }
 0x4e5   :  { %7212 = vmatpush3.bf16.msra.mxu0 %v957_v42 }
 0x4e6   :  { %7200 = vmatmul.mubr.msk.bf16.vlgmr.msra.gmra.mrb[24].mxu1 %vm205_vm1, %v774_v63  ;;  %7213 = vmatprep.subr.bf16.mxu0 %v959_v50 }
 0x4e7   :  { %7203 = vmatprep.mubr.msk.bf16.mxu1 %vm205_vm1, %v776_v21  ;;  %v8776_v55 = vpop.permute.xlu1 %1069 }
 0x4e9   :  { %7214 = vmatpush3.bf16.msra.mxu0 %v959_v50 }
 0x4ea   :  { %7760 = vmatprep.subr.msk.bf16.mxu0 %vm205_vm1, %v8776_v55 }
 0x4ee   :  { %7204 = vmatmul.mubr.msk.bf16.gmra.mrb[28].mxu1 %vm205_vm1, %v778_v58 }
 0x580   :  { %v8781_v56 = vpop.f32.mrb[16].mxu1 }
 0x581   :  { %v8783_v49 = vpop.f32.mrb[17].mxu1 }
 0x582   :  { %v8785_v59 = vpop.f32.mrb[18].mxu1 }
 0x583   :  { %v8787_v61 = vpop.f32.mrb[19].mxu1 }
 0x5b1   :  { %v8789_v0 = vpop.f32.mrb[20].mxu1 }
 0x5b2   :  { %v8791_v1 = vpop.f32.mrb[21].mxu1 }
 0x5b3   :  { %v8793_v4 = vpop.f32.mrb[22].mxu1 }
 0x5b4   :  { %v8795_v23 = vpop.f32.mrb[23].mxu1 }
 0x5b9   :  { %v7201_v5 = vpop.f32.mrb[24].mxu1 }
 0x5ba   :  { %v854_v6 = vadd.f32 %v7201_v5, %v8536_v52  ;;  %v845_v7 = vpop.f32.mrb[25].mxu1 }
 0x5bb   :  { %v7202_v14 = vpop.f32.mrb[26].mxu1  ;;  %v846_v17 = vadd.f32 %v845_v7, %v8541_v54 }
 0x5bc   :  { %v848_v18 = vpop.f32.mrb[27].mxu1  ;;  %v882_v20 = vsel %vm295_vm2, %v854_v6, -inf  ;;  %v857_v21 = vadd.f32 %v7202_v14, %v8554_v62 }
 0x5bd   :  { %v849_v60 = vadd.f32 %v848_v18, %v8547_v57  ;;  %883 = vmax.xlane.f32.xlu0 %v882_v20  ;;  %v876_v58 = vsel %vm295_vm2, %v846_v17, -inf }
 0x5be   :  { %v885_v50 = vsel %vm295_vm2, %v857_v21, -inf }
 0x5bf   :  { %v879_v63 = vsel %vm295_vm2, %v849_v60, -inf }
 0x5c0   :  { %880 = vmax.xlane.f32.xlu1 %v879_v63 }
 0x5c1   :  { %877 = vmax.xlane.f32.xlu0 %v876_v58  ;;  %v7205_v39 = vpop.f32.mrb[28].mxu1 }
 0x5c2   :  { %v861_v43 = vpop.f32.mrb[29].mxu1  ;;  %v8805_v35 = vadd.f32 %v7205_v39, %v8563_v3 }
 0x5c3   :  { %v7206_v46 = vpop.f32.mrb[30].mxu1  ;;  %v862_v5 = vadd.f32 %v861_v43, %v8572_v10 }
 0x5c4   :  { %v864_v42 = vpop.f32.mrb[31].mxu1  ;;  %v894_v7 = vsel %vm295_vm2, %v8805_v35, -inf  ;;  %v873_v14 = vadd.f32 %v7206_v46, %v8582_v13 }
 0x5c5   :  { %886 = vmax.xlane.f32.xlu0 %v885_v50  ;;  %v888_v18 = vsel %vm295_vm2, %v862_v5, -inf  ;;  %v865_v63 = vadd.f32 %v864_v42, %v8600_v19 }
 0x5c6   :  { %v897_v20 = vsel %vm295_vm2, %v873_v14, -inf }
 0x5c7   :  { %v891_v58 = vsel %vm295_vm2, %v865_v63, -inf }
 0x5c9   :  { %895 = vmax.xlane.f32.xlu0 %v894_v7 }
 0x5cd   :  { %889 = vmax.xlane.f32.xlu0 %v888_v18 }
 0x5d1   :  { %1073 = vrot.lane.b32.xlu1 %v8499_v38, %s8378_s22  ;;  %898 = vmax.xlane.f32.xlu0 %v897_v20 }
 0x5e7   :  { %1071 = vrot.lane.b32.xlu0 %v8487_v27, %s8378_s22 }
 0x5eb   :  { %1061 = vrot.lane.b32.xlu0 %v8489_v28, %s8379_s23 }
 0x5ef   :  { %1065 = vrot.lane.b32.xlu0 %v8499_v38, %s8379_s23 }
 0x5f5   :  { %892 = vmax.xlane.f32.xlu1 %v891_v58 }
 0x606   :  { %1075 = vrot.lane.b32.xlu1 %v8497_v37, %s8378_s22 }
 0x60a   :  { %1063 = vrot.lane.b32.xlu1 %v8487_v27, %s8379_s23 }
 0x60e   :  { %1067 = vrot.lane.b32.xlu1 %v8497_v37, %s8379_s23 }
 0x612   :  { %1242 = vrot.lane.b32.xlu1 %v8489_v28, %s11558_s24 }
 0x64a   :  { %v884_v39 = vpop.xlane.xlu0 %883 }
 0x64b   :  { %v902_v46 = vsub.f32 %v854_v6, %v884_v39 }
 0x64d   :  { %v881_v43 = vpop.xlane.xlu1 %880  ;;  %v912_v58 = vmul.f32 1.442695, %v902_v46 }
 0x64e   :  { %v901_v42 = vsub.f32 %v849_v60, %v881_v43  ;;  %v878_v50 = vpop.xlane.xlu0 %877 }
 0x64f   :  { %v900_v7 = vsub.f32 %v846_v17, %v878_v50 }
 0x650   :  { %v910_v18 = vmul.f32 1.442695, %v901_v42 }
 0x651   :  { %v908_v20 = vmul.f32 1.442695, %v900_v7  ;;  %v1074_v43 = vpop.permute.xlu1 %1073 }
 0x652   :  { %7899 = vpow2.f32 %v910_v18  ;;  %v887_v16 = vpop.xlane.xlu0 %886  ;;  %v1096_v46 = vsel %vm205_vm1, %v1074_v43, 0 }
 0x653   :  { %7901 = vpow2.f32 %v908_v20  ;;  %v903_v15 = vsub.f32 %v857_v21, %v887_v16  ;;  %v1090_v16 = vsel %vm205_vm1, %v8776_v55, 0 }
 0x654   :  { %7903 = vpow2.f32 %v912_v58 }
 0x655   :  { %v914_v32 = vmul.f32 1.442695, %v903_v15 }
 0x656   :  { %v896_v30 = vpop.xlane.xlu0 %895 }
 0x657   :  { %7905 = vpow2.f32 %v914_v32  ;;  %v906_v7 = vsub.f32 %v8805_v35, %v896_v30 }
 0x65a   :  { %v890_v33 = vpop.xlane.xlu0 %889 }
 0x65b   :  { %v904_v42 = vsub.f32 %v862_v5, %v890_v33 }
 0x65c   :  { %v8832_v31 = vpop.eup %7899 }
 0x65d   :  { %v8834_v28 = vpop.eup %7901  ;;  %v916_v18 = vmul.f32 1.442695, %v904_v42 }
 0x65e   :  { %v948_v6 = vpack.c.bf16 %v8832_v31, %v8834_v28  ;;  %v899_v17 = vpop.xlane.xlu0 %898  ;;  %v8838_v60 = vpop.eup %7903 }
 0x65f   :  { %v907_v50 = vsub.f32 %v873_v14, %v899_v17  ;;  %7907 = vpow2.f32 %v916_v18 }
 0x660   :  { %7215 = vmatprep.mubr.msk.bf16.mxu0 %vm295_vm2, %v948_v6  ;;  %v920_v6 = vmul.f32 1.442695, %v906_v7 }
 0x661   :  { %v8841_v39 = vpop.eup %7905  ;;  %v922_v20 = vmul.f32 1.442695, %v907_v50 }
 0x662   :  { %v949_v15 = vpack.c.bf16 %v8841_v39, %v8838_v60  ;;  %v1072_v32 = vpop.permute.xlu0 %1071 }
 0x663   :  { %v1093_v21 = vsel %vm205_vm1, %v1072_v32, 0  ;;  %7909 = vpow2.f32 %v922_v20 }
 0x664   :  { %7216 = vmatmul.mubr.msk.bf16.vlgmr.msra.gmra.mrb[16].mxu0 %vm295_vm2, %v949_v15 }
 0x665   :  { %7224 = vmatpush3.bf16.xpose.msra.mxu0 %v1090_v16 }
 0x666   :  { %7761 = vmatprep.subr.msk.bf16.mxu0 %vm205_vm1, %v1072_v32 }
 0x669   :  { %v8855_v14 = vpop.eup %7907 }
 0x66d   :  { %7226 = vmatpush3.bf16.xpose.msra.mxu0 %v1093_v21  ;;  %v8857_v30 = vpop.eup %7909 }
 0x66e   :  { %7762 = vmatprep.subr.msk.bf16.mxu0 %vm205_vm1, %v1074_v43 }
 0x675   :  { %7228 = vmatpush3.bf16.xpose.msra.mxu0 %v1096_v46  ;;  %v1062_v46 = vpop.permute.xlu0 %1061 }
 0x679   :  { %v1066_v42 = vpop.permute.xlu0 %1065 }
 0x682   :  { %v893_v55 = vpop.xlane.xlu1 %892 }
 0x683   :  { %v905_v58 = vsub.f32 %v865_v63, %v893_v55 }
 0x685   :  { %v918_v15 = vmul.f32 1.442695, %v905_v58 }
 0x686   :  { %v1076_v16 = vpop.permute.xlu1 %1075 }
 0x687   :  { %7911 = vpow2.f32 %v918_v15  ;;  %7763 = vmatprep.subr.msk.bf16.mxu0 %vm205_vm1, %v1076_v16  ;;  %v1099_v32 = vsel %vm205_vm1, %v1076_v16, 0 }
 0x688   :  { %7913 = vpow2.f32 %v920_v6  ;;  %7230 = vmatpush3.bf16.xpose.msra.mxu0 %v1099_v32 }
 0x68a   :  { %v1064_v33 = vpop.permute.xlu1 %1063 }
 0x68e   :  { %v1068_v5 = vpop.permute.xlu1 %1067 }
 0x691   :  { %v8859_v35 = vpop.eup %7911 }
 0x692   :  { %v8861_v63 = vpop.eup %7913  ;;  %v1243_v17 = vpop.permute.xlu1 %1242  ;;  %v950_v21 = vpack.c.bf16 %v8859_v35, %v8855_v14 }
 0x693   :  { %7239 = vmatprep.subr.bf16.mxu1 %v1243_v17  ;;  %v951_v43 = vpack.c.bf16 %v8857_v30, %v8861_v63 }
 0x694   :  { %7219 = vmatprep.mubr.msk.bf16.mxu0 %vm295_vm2, %v950_v21  ;;  %7240 = vmatpush3.bf16.msra.mxu1 %v1243_v17 }
 0x695   :  { %7220 = vmatmul.mubr.msk.bf16.gmra.mrb[20].mxu0 %vm295_vm2, %v951_v43 }
 0x696   :  { %7231 = vmatprep.mubr.msk.bf16.mxu0 %vm205_vm1, %v1062_v46 }
 0x69d   :  { %7232 = vmatmul.mubr.msk.bf16.vlgmr.msra.gmra.mrb[24].mxu0 %vm205_vm1, %v1064_v33 }
 0x69e   :  { %7235 = vmatprep.mubr.msk.bf16.mxu0 %vm205_vm1, %v1066_v42 }
 0x6a5   :  { %7236 = vmatmul.mubr.msk.bf16.gmra.mrb[28].mxu0 %vm205_vm1, %v1068_v5 }
 0x737   :  { %v8873_v50 = vpop.f32.mrb[16].mxu0 }
 0x738   :  { %v8875_v7 = vpop.f32.mrb[17].mxu0 }
 0x739   :  { %v8877_v18 = vpop.f32.mrb[18].mxu0 }
 0x73a   :  { %v8879_v20 = vpop.f32.mrb[19].mxu0 }
 0x768   :  { %v8881_v55 = vpop.f32.mrb[20].mxu0 }
 0x769   :  { %v8883_v58 = vpop.f32.mrb[21].mxu0 }
 0x76a   :  { %v8885_v6 = vpop.f32.mrb[22].mxu0 }
 0x76b   :  { %v8887_v15 = vpop.f32.mrb[23].mxu0 }
 0x770   :  { %v7233_v16 = vpop.f32.mrb[24].mxu0 }
 0x771   :  { %v8890_v32 = vadd.f32 %v7233_v16, %v8536_v52  ;;  %v1135_v33 = vpop.f32.mrb[25].mxu0 }
 0x772   :  { %v7234_v5 = vpop.f32.mrb[26].mxu0  ;;  %v8893_v17 = vadd.f32 %v1135_v33, %v8541_v54 }
 0x773   :  { %v1138_v21 = vpop.f32.mrb[27].mxu0  ;;  %v1172_v43 = vsel %vm295_vm2, %v8890_v32, -inf  ;;  %v8903_v26 = vadd.f32 %v7234_v5, %v8554_v62 }
 0x774   :  { %v8898_v46 = vadd.f32 %v1138_v21, %v8547_v57  ;;  %1173 = vmax.xlane.f32.xlu0 %v1172_v43  ;;  %v1166_v52 = vsel %vm295_vm2, %v8893_v17, -inf }
 0x775   :  { %v1175_v62 = vsel %vm295_vm2, %v8903_v26, -inf }
 0x776   :  { %v1169_v42 = vsel %vm295_vm2, %v8898_v46, -inf }
 0x777   :  { %1170 = vmax.xlane.f32.xlu1 %v1169_v42 }
 0x778   :  { %1167 = vmax.xlane.f32.xlu0 %v1166_v52  ;;  %v7237_v54 = vpop.f32.mrb[28].mxu0  ;;  %v640_v52 = vsel %vm295_vm2, %v8740_v47, 0.0  ;;  %v933_v47 = vsel %vm295_vm2, %v8841_v39, 0.0 }
 0x779   :  { %v8908_v16 = vadd.f32 %v7237_v54, %v8563_v3  ;;  %v1151_v33 = vpop.f32.mrb[29].mxu0 }
 0x77a   :  { %v7238_v24 = vpop.f32.mrb[30].mxu0  ;;  %v8911_v57 = vadd.f32 %v1151_v33, %v8572_v10 }
 0x77b   :  { %v8914_v21 = vadd.f32 %v7238_v24, %v8582_v13  ;;  %v1154_v43 = vpop.f32.mrb[31].mxu0  ;;  %v1184_v5 = vsel %vm295_vm2, %v8908_v16, -inf  ;;  %v637_v24 = vsel %vm295_vm2, %v8734_v48, 0.0  ;;  %v927_v48 = vsel %vm295_vm2, %v8832_v31, 0.0 }
 0x77c   :  { %1176 = vmax.xlane.f32.xlu0 %v1175_v62  ;;  %1185 = vmax.xlane.f32.xlu1 %v1184_v5  ;;  %v8921_v3 = vadd.f32 %v1154_v43, %v8600_v19  ;;  %v1178_v10 = vsel %vm295_vm2, %v8911_v57, -inf  ;;  %v634_v19 = vsel %vm295_vm2, %v8736_v51, 0.0  ;;  %v646_v51 = vsel %vm295_vm2, %v8759_v22, 0.0 }
 0x77d   :  { %v1187_v42 = vsel %vm295_vm2, %v8914_v21, -inf  ;;  %v655_v31 = vsel %vm295_vm2, %v8761_v34, 0.0  ;;  %v939_v22 = vsel %vm295_vm2, %v8859_v35, 0.0 }
 0x77e   :  { %v1181_v13 = vsel %vm295_vm2, %v8921_v3, -inf }
 0x780   :  { %1188 = vmax.xlane.f32.xlu0 %v1187_v42  ;;  %1179 = vmax.xlane.f32.xlu1 %v1178_v10 }
 0x784   :  { %1182 = vmax.xlane.f32.xlu0 %v1181_v13 }
 0x791   :  { %1246 = vrot.lane.b32.xlu1 %v8499_v38, %s11558_s24  ;;  %v924_v38 = vsel %vm295_vm2, %v8834_v28, 0.0  ;;  %v652_v28 = vsel %vm295_vm2, %v8765_v36, 0.0 }
 0x795   :  { %1248 = vrot.lane.b32.xlu1 %v8497_v37, %s11558_s24  ;;  %v643_v37 = vsel %vm295_vm2, %v8743_v53, 0.0  ;;  %v649_v53 = vsel %vm295_vm2, %v8763_v2, 0.0 }
 0x79a   :  { %1244 = vrot.lane.b32.xlu0 %v8487_v27, %s11558_s24  ;;  %v930_v27 = vsel %vm295_vm2, %v8838_v60, 0.0  ;;  %v936_v60 = vsel %vm295_vm2, %v8855_v14, 0.0 }
 0x7b9   :  { %635 = vadd.xlane.f32.xlu0 %v634_v19  ;;  %638 = vadd.xlane.f32.xlu1 %v637_v24 }
 0x7bd   :  { %641 = vadd.xlane.f32.xlu0 %v640_v52  ;;  %925 = vadd.xlane.f32.xlu1 %v924_v38 }
 0x7c1   :  { %644 = vadd.xlane.f32.xlu0 %v643_v37  ;;  %931 = vadd.xlane.f32.xlu1 %v930_v27 }
 0x7c5   :  { %928 = vadd.xlane.f32.xlu0 %v927_v48  ;;  %647 = vadd.xlane.f32.xlu1 %v646_v51 }
 0x7c9   :  { %934 = vadd.xlane.f32.xlu0 %v933_v47  ;;  %653 = vadd.xlane.f32.xlu1 %v652_v28 }
 0x7cd   :  { %650 = vadd.xlane.f32.xlu0 %v649_v53  ;;  %937 = vadd.xlane.f32.xlu1 %v936_v60 }
 0x7d1   :  { %656 = vadd.xlane.f32.xlu0 %v655_v31 }
 0x7d5   :  { %940 = vadd.xlane.f32.xlu0 %v939_v22 }
 0x801   :  { %v1174_v39 = vpop.xlane.xlu0 %1173 }
 0x802   :  { %v1192_v36 = vsub.f32 %v8890_v32, %v1174_v39 }
 0x804   :  { %v1202_v54 = vmul.f32 1.442695, %v1192_v36  ;;  %v1171_v33 = vpop.xlane.xlu1 %1170 }
 0x805   :  { %v1191_v2 = vsub.f32 %v8898_v46, %v1171_v33  ;;  %v1168_v43 = vpop.xlane.xlu0 %1167 }
 0x806   :  { %7915 = vpow2.f32 %v1202_v54  ;;  %v1190_v14 = vsub.f32 %v8893_v17, %v1168_v43 }
 0x807   :  { %v1200_v62 = vmul.f32 1.442695, %v1191_v2 }
 0x808   :  { %v1198_v5 = vmul.f32 1.442695, %v1190_v14 }
 0x809   :  { %7917 = vpow2.f32 %v1200_v62  ;;  %v1186_v34 = vpop.xlane.xlu1 %1185  ;;  %v1177_v42 = vpop.xlane.xlu0 %1176  ;;  %v945_v62 = vsel %vm295_vm2, %v8857_v30, 0.0 }
 0x80a   :  { %7919 = vpow2.f32 %v1198_v5  ;;  %v1193_v35 = vsub.f32 %v8903_v26, %v1177_v42  ;;  %v1196_v10 = vsub.f32 %v8908_v16, %v1186_v34  ;;  %v344_v34 = vsel %vm295_vm2, %v8624_v41, 0.0 }
 0x80b   :  { %v347_v41 = vsel %vm295_vm2, %v8622_v40, 0.0 }
 0x80c   :  { %v1204_v13 = vmul.f32 1.442695, %v1193_v35  ;;  %v1210_v52 = vmul.f32 1.442695, %v1196_v10  ;;  %v350_v10 = vsel %vm295_vm2, %v8628_v44, 0.0  ;;  %v353_v44 = vsel %vm295_vm2, %v8631_v45, 0.0 }
 0x80d   :  { %v1180_v32 = vpop.xlane.xlu1 %1179  ;;  %v1189_v19 = vpop.xlane.xlu0 %1188 }
 0x80e   :  { %v1194_v24 = vsub.f32 %v8911_v57, %v1180_v32  ;;  %7921 = vpow2.f32 %v1204_v13  ;;  %v1197_v26 = vsub.f32 %v8914_v21, %v1189_v19  ;;  %v942_v21 = vsel %vm295_vm2, %v8861_v63, 0.0 }
 0x80f   :  { %v356_v13 = vsel %vm295_vm2, %v8647_v8, 0.0  ;;  %v362_v32 = vsel %vm295_vm2, %v8653_v12, 0.0  ;;  %v359_v19 = vsel %vm295_vm2, %v8651_v11, 0.0  ;;  %v365_v8 = vsel %vm295_vm2, %v8649_v9, 0.0 }
 0x810   :  { %v7916_v46 = vpop.eup %7915  ;;  %v1206_v38 = vmul.f32 1.442695, %v1194_v24  ;;  %v1212_v60 = vmul.f32 1.442695, %v1197_v26 }
 0x811   :  { %v1183_v17 = vpop.xlane.xlu0 %1182  ;;  %v1220_v37 = vsel %vm295_vm2, %v7916_v46, 0.0  ;;  %v1247_v47 = vpop.permute.xlu1 %1246 }
 0x812   :  { %7923 = vpow2.f32 %v1206_v38  ;;  %v1195_v27 = vsub.f32 %v8921_v3, %v1183_v17  ;;  %1221 = vadd.xlane.f32.xlu1 %v1220_v37 }
 0x813   :  { %v7918_v48 = vpop.eup %7917  ;;  %7925 = vpow2.f32 %v1210_v52 }
 0x814   :  { %v7920_v16 = vpop.eup %7919  ;;  %v1208_v51 = vmul.f32 1.442695, %v1195_v27  ;;  %v1217_v33 = vsel %vm295_vm2, %v7918_v48, 0.0 }
 0x815   :  { %v1245_v28 = vpop.permute.xlu0 %1244  ;;  %v1214_v57 = vsel %vm295_vm2, %v7920_v16, 0.0  ;;  %v1238_v53 = vpack.c.bf16 %v7918_v48, %v7920_v16  ;;  %v1249_v22 = vpop.permute.xlu1 %1248 }
 0x816   :  { %7927 = vpow2.f32 %v1208_v51  ;;  %1215 = vadd.xlane.f32.xlu1 %v1214_v57  ;;  %7241 = vmatprep.subr.bf16.mxu1 %v1245_v28 }
 0x817   :  { %7242 = vmatpush3.bf16.msra.mxu1 %v1245_v28  ;;  %7247 = vmatprep.mubr.msk.bf16.mxu1 %vm295_vm2, %v1238_v53  ;;  %7929 = vpow2.f32 %v1212_v60 }
 0x818   :  { %7243 = vmatprep.subr.bf16.mxu1 %v1247_v47  ;;  %v7922_v3 = vpop.eup %7921 }
 0x819   :  { %v1223_v31 = vsel %vm295_vm2, %v7922_v3, 0.0  ;;  %v1239_v43 = vpack.c.bf16 %v7922_v3, %v7916_v46 }
 0x81a   :  { %943 = vadd.xlane.f32.xlu1 %v942_v21  ;;  %1224 = vadd.xlane.f32.xlu0 %v1223_v31 }
 0x81b   :  { %7244 = vmatpush3.bf16.msra.mxu1 %v1247_v47 }
 0x81c   :  { %v7924_v39 = vpop.eup %7923  ;;  %7245 = vmatprep.subr.bf16.mxu1 %v1249_v22 }
 0x81d   :  { %v1226_v36 = vsel %vm295_vm2, %v7924_v39, 0.0  ;;  %v7926_v54 = vpop.eup %7925 }
 0x81e   :  { %1227 = vadd.xlane.f32.xlu1 %v1226_v36  ;;  %1218 = vadd.xlane.f32.xlu0 %v1217_v33  ;;  %v1232_v63 = vsel %vm295_vm2, %v7926_v54, 0.0 }
 0x81f   :  { %7246 = vmatpush3.bf16.msra.mxu1 %v1249_v22 }
 0x820   :  { %v7928_v2 = vpop.eup %7927 }
 0x821   :  { %v1240_v14 = vpack.c.bf16 %v7928_v2, %v7924_v39  ;;  %v7930_v5 = vpop.eup %7929  ;;  %v1229_v42 = vsel %vm295_vm2, %v7928_v2, 0.0 }
 0x822   :  { %1233 = vadd.xlane.f32.xlu1 %v1232_v63  ;;  %7248 = vmatmul.mubr.msk.bf16.vlgmr.msra.gmra.mrb[32].mxu1 %vm295_vm2, %v1239_v43  ;;  %v1241_v35 = vpack.c.bf16 %v7930_v5, %v7926_v54  ;;  %v1235_v30 = vsel %vm295_vm2, %v7930_v5, 0.0 }
 0x823   :  { %946 = vadd.xlane.f32.xlu0 %v945_v62  ;;  %7251 = vmatprep.mubr.msk.bf16.mxu1 %vm295_vm2, %v1240_v14 }
 0x826   :  { %345 = vadd.xlane.f32.xlu1 %v344_v34 }
 0x827   :  { %1230 = vadd.xlane.f32.xlu0 %v1229_v42 }
 0x82a   :  { %351 = vadd.xlane.f32.xlu1 %v350_v10  ;;  %7252 = vmatmul.mubr.msk.bf16.gmra.mrb[36].mxu1 %vm295_vm2, %v1241_v35 }
 0x82b   :  { %1236 = vadd.xlane.f32.xlu0 %v1235_v30 }
 0x82e   :  { %357 = vadd.xlane.f32.xlu1 %v356_v13 }
 0x82f   :  { %348 = vadd.xlane.f32.xlu0 %v347_v41 }
 0x832   :  { %363 = vadd.xlane.f32.xlu1 %v362_v32 }
 0x833   :  { %354 = vadd.xlane.f32.xlu0 %v353_v44 }
 0x837   :  { %360 = vadd.xlane.f32.xlu0 %v359_v19 }
 0x83b   :  { %366 = vadd.xlane.f32.xlu0 %v365_v8 }
 0x846   :  { %v639_v24 = vpop.xlane.xlu1 %638  ;;  %v636_v46 = vpop.xlane.xlu0 %635 }
 0x847   :  { %7931 = vrcp.f32 %v639_v24 }
 0x848   :  { %7933 = vrcp.f32 %v636_v46 }
 0x84a   :  { %v926_v40 = vpop.xlane.xlu1 %925  ;;  %v642_v52 = vpop.xlane.xlu0 %641 }
 0x84b   :  { %7935 = vrcp.f32 %v642_v52 }
 0x84e   :  { %v932_v12 = vpop.xlane.xlu1 %931  ;;  %v645_v38 = vpop.xlane.xlu0 %644 }
 0x84f   :  { %7937 = vrcp.f32 %v645_v38 }
 0x850   :  { %7939 = vrcp.f32 %v926_v40 }
 0x851   :  { %v7932_v45 = vpop.eup %7931 }
 0x852   :  { %v7934_v17 = vpop.eup %7933  ;;  %v648_v37 = vpop.xlane.xlu1 %647  ;;  %v760_v27 = vmul.f32 %v7932_v45, %v8787_v61 }
 0x853   :  { %v929_v11 = vpop.xlane.xlu0 %928  ;;  %v759_v9 = vmul.f32 %v7934_v17, %v8783_v49 }
 0x854   :  { %7941 = vrcp.f32 %v929_v11 }
 0x855   :  { %v767_v48 = vpack.c.bf16 %v760_v27, %v759_v9  ;;  %7943 = vrcp.f32 %v932_v12  ;;  %v7936_v16 = vpop.eup %7935 }
 0x856   :  { %v654_v51 = vpop.xlane.xlu1 %653  ;;  %v761_v57 = vmul.f32 %v7936_v16, %v8781_v56 }
 0x857   :  { %v935_v26 = vpop.xlane.xlu0 %934  ;;  %1355 = vrot.lane.b32.xlu1 %v767_v48, %s11556_s25 }
 0x858   :  { %7945 = vrcp.f32 %v935_v26 }
 0x859   :  { %v7938_v47 = vpop.eup %7937  ;;  %7947 = vrcp.f32 %v648_v37 }
 0x85a   :  { %v762_v53 = vmul.f32 %v7938_v47, %v8785_v59  ;;  %v7940_v61 = vpop.eup %7939  ;;  %v938_v3 = vpop.xlane.xlu1 %937 }
 0x85b   :  { %v651_v28 = vpop.xlane.xlu0 %650  ;;  %v1049_v31 = vmul.f32 %v7940_v61, %v8875_v7 }
 0x85c   :  { %7949 = vrcp.f32 %v651_v28  ;;  %v768_v49 = vpack.c.bf16 %v762_v53, %v761_v57  ;;  %v11587_v53 = vld [vmem:[#allocation4_spill] sm:$0xff] }
 0x85d   :  { %7951 = vrcp.f32 %v654_v51 }
 0x85e   :  { %v7942_v60 = vpop.eup %7941  ;;  %1357 = vrot.lane.b32.xlu0 %v768_v49, %s11556_s25  ;;  %v11588_v49 = vld [vmem:[#allocation5_spill] sm:$0xff] }
 0x85f   :  { %v657_v21 = vpop.xlane.xlu0 %656  ;;  %v1050_v22 = vmul.f32 %v7942_v60, %v8879_v20  ;;  %v7944_v39 = vpop.eup %7943 }
 0x860   :  { %7953 = vrcp.f32 %v657_v21  ;;  %v1051_v59 = vmul.f32 %v7944_v39, %v8873_v50 }
 0x861   :  { %7955 = vrcp.f32 %v938_v3  ;;  %v1057_v36 = vpack.c.bf16 %v1050_v22, %v1049_v31  ;;  %v11589_v31 = vld [vmem:[#allocation7_spill] sm:$0xff]  ;;  %v11590_v22 = vld [vmem:[#allocation9_spill] sm:$0xff] }
 0x862   :  { %v7946_v56 = vpop.eup %7945 }
 0x863   :  { %v941_v54 = vpop.xlane.xlu0 %940  ;;  %1367 = vrot.lane.b32.xlu1 %v1057_v36, %s11554_s26  ;;  %v1052_v33 = vmul.f32 %v7946_v56, %v8877_v18  ;;  %v7948_v2 = vpop.eup %7947 }
 0x864   :  { %7957 = vrcp.f32 %v941_v54  ;;  %v763_v7 = vmul.f32 %v7948_v2, %v8791_v1  ;;  %v11592_v2 = vld [vmem:[#allocation8_spill] sm:$0xff] }
 0x865   :  { %v1058_v43 = vpack.c.bf16 %v1052_v33, %v1051_v59  ;;  %v11591_v59 = vld [vmem:[#allocation6_spill] sm:$0xff] }
 0x866   :  { %v7950_v63 = vpop.eup %7949 }
 0x867   :  { %v7952_v14 = vpop.eup %7951  ;;  %1369 = vrot.lane.b32.xlu1 %v1058_v43, %s11554_s26  ;;  %v764_v20 = vmul.f32 %v7950_v63, %v8795_v23 }
 0x868   :  { %v765_v34 = vmul.f32 %v7952_v14, %v8789_v0  ;;  %v7839_v0 = vld [vmem:[%s11503_s2] sm:$0xff]  }
 0x869   :  { %v769_v5 = vpack.c.bf16 %v764_v20, %v763_v7  ;;  %7255 = vmatprep.subr.bf16.mxu1 %v7839_v0 }
 0x86a   :  { %v7954_v62 = vpop.eup %7953  ;;  %7256 = vmatpush3.bf16.msra.mxu1 %v7839_v0 }
 0x86b   :  { %v766_v42 = vmul.f32 %v7954_v62, %v8793_v4  ;;  %v7956_v35 = vpop.eup %7955  ;;  %1359 = vrot.lane.b32.xlu0 %v769_v5, %s11556_s25  ;;  %v7840_v4 = vld [vmem:[%s11503_s2 + $0x8] sm:$0xff]  }
 0x86c   :  { %v9022_v10 = vmul.f32 %v7956_v35, %v8883_v58  ;;  %7257 = vmatprep.subr.bf16.mxu1 %v7840_v4 }
 0x86d   :  { %v770_v50 = vpack.c.bf16 %v766_v42, %v765_v34 }
 0x86e   :  { %v7958_v18 = vpop.eup %7957  ;;  %7258 = vmatpush3.bf16.msra.mxu1 %v7840_v4 }
 0x86f   :  { %1361 = vrot.lane.b32.xlu1 %v770_v50, %s11556_s25  ;;  %v9025_v1 = vmul.f32 %v7958_v18, %v8887_v15 }
 0x871   :  { %v1059_v23 = vpack.c.bf16 %v9025_v1, %v9022_v10 }
 0x89f   :  { %v1222_v58 = vpop.xlane.xlu1 %1221 }
 0x8a3   :  { %v1216_v30 = vpop.xlane.xlu1 %1215 }
 0x8a7   :  { %v944_v13 = vpop.xlane.xlu1 %943  ;;  %v1225_v15 = vpop.xlane.xlu0 %1224 }
 0x8a8   :  { %7959 = vrcp.f32 %v944_v13 }
 0x8ab   :  { %v1228_v41 = vpop.xlane.xlu1 %1227  ;;  %v1219_v32 = vpop.xlane.xlu0 %1218 }
 0x8af   :  { %v1234_v44 = vpop.xlane.xlu1 %1233 }
 0x8b0   :  { %v947_v19 = vpop.xlane.xlu0 %946 }
 0x8b1   :  { %7961 = vrcp.f32 %v947_v19 }
 0x8b2   :  { %v7960_v52 = vpop.eup %7959 }
 0x8b3   :  { %v346_v8 = vpop.xlane.xlu1 %345  ;;  %v9036_v45 = vmul.f32 %v7960_v52, %v8881_v55 }
 0x8b4   :  { %v1231_v24 = vpop.xlane.xlu0 %1230  ;;  %7963 = vrcp.f32 %v346_v8 }
 0x8b7   :  { %v352_v46 = vpop.xlane.xlu1 %351 }
 0x8b8   :  { %v1237_v40 = vpop.xlane.xlu0 %1236 }
 0x8bb   :  { %v7962_v12 = vpop.eup %7961  ;;  %v358_v37 = vpop.xlane.xlu1 %357 }
 0x8bc   :  { %v349_v38 = vpop.xlane.xlu0 %348  ;;  %v9039_v17 = vmul.f32 %v7962_v12, %v8885_v6 }
 0x8bd   :  { %7965 = vrcp.f32 %v349_v38 }
 0x8be   :  { %v1060_v11 = vpack.c.bf16 %v9039_v17, %v9036_v45  ;;  %7967 = vrcp.f32 %v352_v46  ;;  %v7964_v26 = vpop.eup %7963 }
 0x8bf   :  { %v364_v9 = vpop.xlane.xlu1 %363  ;;  %v9044_v51 = vmul.f32 %v7964_v26, %v8671_v25 }
 0x8c0   :  { %v355_v27 = vpop.xlane.xlu0 %354 }
 0x8c1   :  { %7969 = vrcp.f32 %v355_v27 }
 0x8c2   :  { %7971 = vrcp.f32 %v358_v37 }
 0x8c4   :  { %v361_v48 = vpop.xlane.xlu0 %360 }
 0x8c5   :  { %7973 = vrcp.f32 %v361_v48 }
 0x8c6   :  { %7975 = vrcp.f32 %v364_v9 }
 0x8c7   :  { %v7966_v16 = vpop.eup %7965 }
 0x8c8   :  { %v367_v55 = vpop.xlane.xlu0 %366  ;;  %v9047_v6 = vmul.f32 %v7966_v16, %v8675_v29  ;;  %v7968_v47 = vpop.eup %7967 }
 0x8c9   :  { %7977 = vrcp.f32 %v367_v55  ;;  %v9052_v61 = vmul.f32 %v7968_v47, %v11587_v53  ;;  %v1356_v27 = vpop.permute.xlu1 %1355 }
 0x8ca   :  { %v477_v28 = vpack.c.bf16 %v9047_v6, %v9044_v51  ;;  %7979 = vrcp.f32 %v1222_v58 }
 0x8cb   :  { %v7970_v57 = vpop.eup %7969  ;;  %7981 = vrcp.f32 %v1216_v30 }
 0x8cc   :  { %v9055_v60 = vmul.f32 %v7970_v57, %v11588_v49  ;;  %v7972_v3 = vpop.eup %7971  ;;  %7983 = vrcp.f32 %v1225_v15  ;;  %v1389_v10 = vsel %vm205_vm1, %v477_v28, %v1356_v27 }
 0x8cd   :  { %v9060_v29 = vmul.f32 %v7972_v3, %v11589_v31  ;;  %7985 = vrcp.f32 %v1219_v32  ;;  %v11593_v31 = vld [vmem:[#allocation2_spill] sm:$0xff] }
 0x8ce   :  { %v478_v25 = vpack.c.bf16 %v9055_v60, %v9052_v61  ;;  %7987 = vrcp.f32 %v1228_v41 }
 0x8cf   :  { %v7974_v21 = vpop.eup %7973  ;;  %7989 = vrcp.f32 %v1234_v44 }
 0x8d0   :  { %v9063_v39 = vmul.f32 %v7974_v21, %v11590_v22  ;;  %v7976_v36 = vpop.eup %7975  ;;  %7991 = vrcp.f32 %v1237_v40  ;;  %v1358_v26 = vpop.permute.xlu0 %1357  ;;  %v9121_v22 = vld [vmem:[%s11501_s5] sm:$0xff] }
 0x8d1   :  { %v9068_v33 = vmul.f32 %v7976_v36, %v11591_v59  ;;  %7993 = vrcp.f32 %v1231_v24 }
 0x8d2   :  { %v479_v56 = vpack.c.bf16 %v9063_v39, %v9060_v29  ;;  %v9116_v29 = vsub.s32 1, %v11593_v31 }
 0x8d3   :  { %v7978_v54 = vpop.eup %7977 }
 0x8d4   :  { %v9071_v43 = vmul.f32 %v7978_v54, %v11592_v2  ;;  %v7980_v14 = vpop.eup %7979  ;;  %11594 = vst [vmem:[#allocation4_spill] sm:$0xff] %v9116_v29  ;;  %v1420_v39 = vrot.slane %v9121_v22, %v9116_v29 }
 0x8d5   :  { %v7982_v20 = vpop.eup %7981  ;;  %v1368_v9 = vpop.permute.xlu1 %1367 }
 0x8d6   :  { %v480_v63 = vpack.c.bf16 %v9071_v43, %v9068_v33  ;;  %v7984_v5 = vpop.eup %7983  ;;  %v1401_v17 = vsel %vm1399_vm3, %v1389_v10, %v1368_v9  ;;  %v9128_v43 = vld [vmem:[%s11500_s0] sm:$0xff] }
 0x8d7   :  { %v7986_v42 = vpop.eup %7985 }
 0x8d8   :  { %v7988_v13 = vpop.eup %7987 }
 0x8d9   :  { %v7990_v41 = vpop.eup %7989  ;;  %v1370_v48 = vpop.permute.xlu1 %1369 }
 0x8da   :  { %v7992_v44 = vpop.eup %7991 }
 0x8db   :  { %v7994_v8 = vpop.eup %7993 }
 0x8dd   :  { %v1360_v45 = vpop.permute.xlu0 %1359 }
 0x8de   :  { %v1395_v28 = vsel %vm205_vm1, %v479_v56, %v1360_v45 }
 0x8e1   :  { %v1362_v16 = vpop.permute.xlu1 %1361 }
 0x8e2   :  { %v1398_v61 = vsel %vm205_vm1, %v480_v63, %v1362_v16 }
 0x8f5   :  { %v7249_v7 = vpop.f32.mrb[32].mxu1 }
 0x8f6   :  { %v1300_v62 = vpop.f32.mrb[33].mxu1  ;;  %v1341_v35 = vmul.f32 %v7980_v14, %v7249_v7 }
 0x8f7   :  { %v7250_v34 = vpop.f32.mrb[34].mxu1  ;;  %v1339_v0 = vmul.f32 %v7982_v20, %v1300_v62  ;;  %v9134_v20 = vld [vmem:[%s11500_s0 + $0x10] sm:$0xff] }
 0x8f8   :  { %v1342_v50 = vmul.f32 %v7984_v5, %v7250_v34  ;;  %v1303_v18 = vpop.f32.mrb[35].mxu1  ;;  %v9140_v5 = vld [vmem:[%s11500_s0 + $0x8] sm:$0xff] }
 0x8f9   :  { %v1340_v4 = vmul.f32 %v7986_v42, %v1303_v18  ;;  %v9148_v18 = vld [vmem:[%s11500_s0 + $0x18] sm:$0xff] }
 0x8fa   :  { %v1348_v58 = vpack.c.bf16 %v1342_v50, %v1341_v35 }
 0x8fb   :  { %v1347_v30 = vpack.c.bf16 %v1340_v4, %v1339_v0 }
 0x8fc   :  { %1381 = vrot.lane.b32.xlu1 %v1348_v58, %s11514_s11 }
 0x8fd   :  { %v7253_v15 = vpop.f32.mrb[36].mxu1  ;;  %1379 = vrot.lane.b32.xlu0 %v1347_v30, %s11514_s11 }
 0x8fe   :  { %v1316_v32 = vpop.f32.mrb[37].mxu1  ;;  %v1345_v24 = vmul.f32 %v7990_v41, %v7253_v15 }
 0x8ff   :  { %v7254_v19 = vpop.f32.mrb[38].mxu1  ;;  %v1343_v52 = vmul.f32 %v7988_v13, %v1316_v32  ;;  %v9155_v32 = vld [vmem:[%s11500_s0 + $0x20] sm:$0xff] }
 0x900   :  { %v1346_v46 = vmul.f32 %v7992_v44, %v7254_v19  ;;  %v1319_v40 = vpop.f32.mrb[39].mxu1  ;;  %1373 = vrot.lane.b32.xlu1 %v1060_v11, %s11554_s26 }
 0x901   :  { %v1344_v12 = vmul.f32 %v7994_v8, %v1319_v40  ;;  %1371 = vrot.lane.b32.xlu0 %v1059_v23, %s11554_s26  ;;  %v1392_v23 = vsel %vm205_vm1, %v478_v25, %v1358_v26 }
 0x902   :  { %v1350_v38 = vpack.c.bf16 %v1346_v46, %v1345_v24  ;;  %v1403_v55 = vsel %vm1399_vm3, %v1392_v23, %v1370_v48  ;;  %v9162_v24 = vld [vmem:[%s11500_s0 + $0x30] sm:$0xff] }
 0x903   :  { %v1349_v37 = vpack.c.bf16 %v1344_v12, %v1343_v52  ;;  %v9168_v52 = vld [vmem:[%s11500_s0 + $0x28] sm:$0xff] }
 0x904   :  { %1385 = vrot.lane.b32.xlu1 %v1350_v38, %s11514_s11 }
 0x905   :  { %1383 = vrot.lane.b32.xlu0 %v1349_v37, %s11514_s11  ;;  %v9175_v37 = vld [vmem:[%s11500_s0 + $0x38] sm:$0xff]  ;;  %s11625_s11 = smov 24  }
 0x96e   :  { %v1382_v1 = vpop.permute.xlu1 %1381 }
 0x96f   :  { %v1380_v11 = vpop.permute.xlu0 %1379  ;;  %v1412_v57 = vsel %vm1408_vm4, %v1403_v55, %v1382_v1 }
 0x970   :  { %v1410_v47 = vsel %vm1408_vm4, %v1401_v17, %v1380_v11 }
 0x971   :  { %7259 = vmatprep.mubr.msk.bf16.mxu1 %vm111_vm0, %v1410_v47 }
 0x972   :  { %v1374_v51 = vpop.permute.xlu1 %1373  ;;  %7260 = vmatmul.mubr.msk.bf16.vlgmr.msra.gmra.mrb[40].mxu1 %vm111_vm0, %v1412_v57 }
 0x973   :  { %v1372_v6 = vpop.permute.xlu0 %1371  ;;  %v1407_v3 = vsel %vm1399_vm3, %v1398_v61, %v1374_v51 }
 0x974   :  { %v1405_v49 = vsel %vm1399_vm3, %v1395_v28, %v1372_v6 }
 0x976   :  { %v1386_v53 = vpop.permute.xlu1 %1385 }
 0x977   :  { %v1384_v60 = vpop.permute.xlu0 %1383  ;;  %v1416_v21 = vsel %vm1408_vm4, %v1407_v3, %v1386_v53 }
 0x978   :  { %v1414_v25 = vsel %vm1408_vm4, %v1405_v49, %v1384_v60 }
 0x979   :  { %7263 = vmatprep.mubr.msk.bf16.mxu1 %vm111_vm0, %v1414_v25 }
 0x97a   :  { %7264 = vmatmul.mubr.msk.bf16.gmra.mrb[44].mxu1 %vm111_vm0, %v1416_v21 }
 0xa45   :  { %v7261_v36 = vpop.f32.mrb[40].mxu1 }
 0xa46   :  { %v1475_v56 = vpop.f32.mrb[41].mxu1  ;;  %v1484_v54 = vadd.f32 %v7261_v36, %v1420_v39 }
 0xa47   :  { %v1476_v59 = vadd.f32 %v1475_v56, %v1420_v39  ;;  %v7262_v33 = vpop.f32.mrb[42].mxu1 }
 0xa48   :  { %v1478_v2 = vpop.f32.mrb[43].mxu1  ;;  %v1487_v7 = vadd.f32 %v7262_v33, %v1420_v39  ;;  %v1508_v62 = vadd.f32 %v9134_v20, %v1484_v54 }
 0xa49   :  { %v1506_v63 = vadd.f32 %v9128_v43, %v1476_v59  ;;  %v1479_v14 = vadd.f32 %v1478_v2, %v1420_v39 }
 0xa4a   :  { %v1509_v0 = vadd.f32 %v9148_v18, %v1487_v7  ;;  %v1520_v15 = vsel %vm111_vm0, %v1508_v62, 0.0 }
 0xa4b   :  { %v1507_v34 = vadd.f32 %v9140_v5, %v1479_v14  ;;  %v1514_v42 = vsel %vm111_vm0, %v1506_v63, 0.0 }
 0xa4c   :  { %1515 = vadd.xlane.f32.xlu0 %v1514_v42  ;;  %v1523_v8 = vsel %vm111_vm0, %v1509_v0, 0.0 }
 0xa4d   :  { %v7265_v35 = vpop.f32.mrb[44].mxu1  ;;  %v1517_v50 = vsel %vm111_vm0, %v1507_v34, 0.0 }
 0xa4e   :  { %1518 = vadd.xlane.f32.xlu1 %v1517_v50  ;;  %v1491_v4 = vpop.f32.mrb[45].mxu1  ;;  %v1500_v58 = vadd.f32 %v7265_v35, %v1420_v39 }
 0xa4f   :  { %v1492_v30 = vadd.f32 %v1491_v4, %v1420_v39  ;;  %v7266_v13 = vpop.f32.mrb[46].mxu1 }
 0xa50   :  { %1521 = vadd.xlane.f32.xlu0 %v1520_v15  ;;  %v1494_v41 = vpop.f32.mrb[47].mxu1  ;;  %v1512_v46 = vadd.f32 %v9162_v24, %v1500_v58  ;;  %v1503_v40 = vadd.f32 %v7266_v13, %v1420_v39  ;;  %v7841_v15 = vld [vmem:[%s11504_s3] sm:$0xff]  }
 0xa51   :  { %v1510_v44 = vadd.f32 %v9155_v32, %v1492_v30  ;;  %v1495_v19 = vadd.f32 %v1494_v41, %v1420_v39  ;;  %7267 = vmatprep.subr.bf16.mxu0 %v7841_v15  ;;  %v7842_v41 = vld [vmem:[%s11504_s3 + $0x8] sm:$0xff]  }
 0xa52   :  { %v1513_v27 = vadd.f32 %v9175_v37, %v1503_v40  ;;  %v1532_v48 = vsel %vm111_vm0, %v1512_v46, 0.0  ;;  %7268 = vmatpush3.bf16.msra.mxu0 %v7841_v15 }
 0xa53   :  { %v1511_v12 = vadd.f32 %v9168_v52, %v1495_v19  ;;  %v1526_v38 = vsel %vm111_vm0, %v1510_v44, 0.0  ;;  %7269 = vmatprep.subr.bf16.mxu0 %v7842_v41  ;;  %v7844_v19 = vld [vmem:[%s11505_s4 + $0x8] sm:$0xff]  }
 0xa54   :  { %1524 = vadd.xlane.f32.xlu0 %v1523_v8  ;;  %1527 = vadd.xlane.f32.xlu1 %v1526_v38  ;;  %v1535_v26 = vsel %vm111_vm0, %v1513_v27, 0.0 }
 0xa55   :  { %v1529_v9 = vsel %vm111_vm0, %v1511_v12, 0.0 }
 0xa56   :  { %7270 = vmatpush3.bf16.msra.mxu0 %v7842_v41 }
 0xa58   :  { %1530 = vadd.xlane.f32.xlu0 %v1529_v9  ;;  %1533 = vadd.xlane.f32.xlu1 %v1532_v48 }
 0xa5c   :  { %1536 = vadd.xlane.f32.xlu0 %v1535_v26 }
 0xad9   :  { %v1516_v16 = vpop.xlane.xlu0 %1515 }
 0xada   :  { %v1539_v45 = vmul.f32 0.03125, %v1516_v16 }
 0xadb   :  { %v1519_v10 = vpop.xlane.xlu1 %1518 }
 0xadc   :  { %v9181_v1 = vsub.f32 %v1506_v63, %v1539_v45  ;;  %v1540_v23 = vmul.f32 0.03125, %v1519_v10 }
 0xadd   :  { %v1522_v17 = vpop.xlane.xlu0 %1521 }
 0xade   :  { %v9183_v11 = vsub.f32 %v1507_v34, %v1540_v23  ;;  %v1541_v55 = vmul.f32 0.03125, %v1522_v17  ;;  %v1555_v47 = vmul.f32 %v9181_v1, %v9181_v1  ;;  %v9234_v17 = vsub.s32 4, %v11593_v31 }
 0xae0   :  { %v9187_v57 = vsub.f32 %v1508_v62, %v1541_v55  ;;  %v1563_v51 = vsel %vm111_vm0, %v1555_v47, 0.0  ;;  %v1556_v6 = vmul.f32 %v9183_v11, %v9183_v11  ;;  %11595 = vst [vmem:[#allocation5_spill] sm:$0xff] %v9234_v17 }
 0xae1   :  { %v1528_v28 = vpop.xlane.xlu1 %1527  ;;  %1564 = vadd.xlane.f32.xlu1 %v1563_v51  ;;  %v1525_v53 = vpop.xlane.xlu0 %1524 }
 0xae2   :  { %v1543_v61 = vmul.f32 0.03125, %v1528_v28  ;;  %v1542_v49 = vmul.f32 0.03125, %v1525_v53  ;;  %v1566_v60 = vsel %vm111_vm0, %v1556_v6, 0.0  ;;  %v1557_v3 = vmul.f32 %v9187_v57, %v9187_v57 }
 0xae3   :  { %1567 = vadd.xlane.f32.xlu0 %v1566_v60 }
 0xae4   :  { %v9195_v25 = vsub.f32 %v1510_v44, %v1543_v61  ;;  %v9197_v21 = vsub.f32 %v1509_v0, %v1542_v49  ;;  %v1569_v39 = vsel %vm111_vm0, %v1557_v3, 0.0  ;;  %v7843_v44 = vld [vmem:[%s11505_s4] sm:$0xff]   ;;  %v1622_v61 = vrot.slane %v9121_v22, %v9234_v17 }
 0xae5   :  { %v1534_v36 = vpop.xlane.xlu1 %1533  ;;  %1570 = vadd.xlane.f32.xlu1 %v1569_v39  ;;  %v1531_v56 = vpop.xlane.xlu0 %1530  ;;  %7279 = vmatprep.subr.bf16.mxu1 %v7843_v44  ;;  %v9239_v49 = vsub.s32 5, %v11593_v31 }
 0xae6   :  { %v1545_v54 = vmul.f32 0.03125, %v1534_v36  ;;  %v1544_v59 = vmul.f32 0.03125, %v1531_v56  ;;  %v1559_v33 = vmul.f32 %v9195_v25, %v9195_v25  ;;  %v1558_v2 = vmul.f32 %v9197_v21, %v9197_v21  ;;  %7280 = vmatpush3.bf16.msra.mxu1 %v7843_v44 }
 0xae7   :  { %7281 = vmatprep.subr.bf16.mxu1 %v7844_v19  ;;  %11596 = vst [vmem:[#allocation7_spill] sm:$0xff] %v9239_v49 }
 0xae8   :  { %v9204_v63 = vsub.f32 %v1512_v46, %v1545_v54  ;;  %v9206_v14 = vsub.f32 %v1511_v12, %v1544_v59  ;;  %v1575_v7 = vsel %vm111_vm0, %v1559_v33, 0.0  ;;  %v1572_v62 = vsel %vm111_vm0, %v1558_v2, 0.0 }
 0xae9   :  { %1576 = vadd.xlane.f32.xlu1 %v1575_v7  ;;  %1573 = vadd.xlane.f32.xlu0 %v1572_v62  ;;  %v1537_v34 = vpop.xlane.xlu0 %1536  ;;  %v1634_v33 = vrot.slane %v9121_v22, %v9239_v49 }
 0xaea   :  { %v1546_v42 = vmul.f32 0.03125, %v1537_v34  ;;  %v1561_v35 = vmul.f32 %v9204_v63, %v9204_v63  ;;  %v1560_v50 = vmul.f32 %v9206_v14, %v9206_v14  ;;  %7282 = vmatpush3.bf16.msra.mxu1 %v7844_v19 }
 0xaec   :  { %v9214_v0 = vsub.f32 %v1513_v27, %v1546_v42  ;;  %v1581_v4 = vsel %vm111_vm0, %v1561_v35, 0.0  ;;  %v1578_v58 = vsel %vm111_vm0, %v1560_v50, 0.0 }
 0xaed   :  { %1582 = vadd.xlane.f32.xlu1 %v1581_v4  ;;  %1579 = vadd.xlane.f32.xlu0 %v1578_v58 }
 0xaee   :  { %v1562_v30 = vmul.f32 %v9214_v0, %v9214_v0 }
 0xaf0   :  { %v1584_v13 = vsel %vm111_vm0, %v1562_v30, 0.0 }
 0xaf1   :  { %1585 = vadd.xlane.f32.xlu0 %v1584_v13 }
 0xb6e   :  { %v1565_v8 = vpop.xlane.xlu1 %1564 }
 0xb6f   :  { %v1587_v46 = vmul.f32 0.03125, %v1565_v8 }
 0xb70   :  { %v1568_v40 = vpop.xlane.xlu0 %1567 }
 0xb71   :  { %v1595_v12 = vadd.f32 1e-05, %v1587_v46  ;;  %v1588_v38 = vmul.f32 0.03125, %v1568_v40 }
 0xb72   :  { %v1571_v27 = vpop.xlane.xlu1 %1570 }
 0xb73   :  { %7995 = vrsqrt.f32 %v1595_v12  ;;  %v1596_v9 = vadd.f32 1e-05, %v1588_v38  ;;  %v1589_v48 = vmul.f32 0.03125, %v1571_v27 }
 0xb75   :  { %7997 = vrsqrt.f32 %v1596_v9  ;;  %v1597_v26 = vadd.f32 1e-05, %v1589_v48 }
 0xb76   :  { %v1577_v16 = vpop.xlane.xlu1 %1576  ;;  %v1574_v45 = vpop.xlane.xlu0 %1573 }
 0xb77   :  { %7999 = vrsqrt.f32 %v1597_v26  ;;  %v1591_v10 = vmul.f32 0.03125, %v1577_v16  ;;  %v1590_v23 = vmul.f32 0.03125, %v1574_v45 }
 0xb79   :  { %v1599_v55 = vadd.f32 1e-05, %v1591_v10  ;;  %v1598_v47 = vadd.f32 1e-05, %v1590_v23  ;;  %v7845_v10 = vld [vmem:[%s11505_s4 + $0x10] sm:$0xff]   ;;  %v7846_v23 = vld [vmem:[%s11505_s4 + $0x18] sm:$0xff]  }
 0xb7a   :  { %v1583_v51 = vpop.xlane.xlu1 %1582  ;;  %v1580_v6 = vpop.xlane.xlu0 %1579  ;;  %7283 = vmatprep.subr.bf16.mxu1 %v7845_v10 }
 0xb7b   :  { %8001 = vrsqrt.f32 %v1599_v55  ;;  %v1593_v28 = vmul.f32 0.03125, %v1583_v51  ;;  %v1592_v53 = vmul.f32 0.03125, %v1580_v6  ;;  %7284 = vmatpush3.bf16.msra.mxu1 %v7845_v10  ;;  %v9286_v55 = vsub.s32 2, %v11593_v31 }
 0xb7c   :  { %8003 = vrsqrt.f32 %v1598_v47  ;;  %7285 = vmatprep.subr.bf16.mxu1 %v7846_v23 }
 0xb7d   :  { %v7996_v60 = vpop.eup %7995  ;;  %v1601_v3 = vadd.f32 1e-05, %v1593_v28  ;;  %v1600_v39 = vadd.f32 1e-05, %v1592_v53  ;;  %11597 = vst [vmem:[#allocation9_spill] sm:$0xff] %v9286_v55  ;;  %v1650_v47 = vrot.slane %v9121_v22, %v9286_v55 }
 0xb7e   :  { %v1586_v36 = vpop.xlane.xlu0 %1585  ;;  %v1611_v56 = vmul.f32 %v7996_v60, %v9181_v1 }
 0xb7f   :  { %v7998_v54 = vpop.eup %7997  ;;  %8005 = vrsqrt.f32 %v1601_v3  ;;  %v1594_v59 = vmul.f32 0.03125, %v1586_v36  ;;  %7286 = vmatpush3.bf16.msra.mxu1 %v7846_v23 }
 0xb80   :  { %8007 = vrsqrt.f32 %v1600_v39  ;;  %v1612_v2 = vmul.f32 %v7998_v54, %v9183_v11  ;;  %v1623_v7 = vmul.f32 %v1622_v61, %v1611_v56 }
 0xb81   :  { %v8000_v62 = vpop.eup %7999  ;;  %v1602_v34 = vadd.f32 1e-05, %v1594_v59 }
 0xb82   :  { %v1624_v42 = vmul.f32 %v1622_v61, %v1612_v2  ;;  %v1613_v35 = vmul.f32 %v8000_v62, %v9187_v57  ;;  %v9246_v50 = vadd.f32 %v1634_v33, %v1623_v7 }
 0xb83   :  { %8009 = vrsqrt.f32 %v1602_v34 }
 0xb84   :  { %v9248_v4 = vadd.f32 %v1634_v33, %v1624_v42  ;;  %v1625_v13 = vmul.f32 %v1622_v61, %v1613_v35 }
 0xb85   :  { %v8002_v1 = vpop.eup %8001 }
 0xb86   :  { %v8004_v58 = vpop.eup %8003  ;;  %v1643_v30 = vpack.c.bf16 %v9248_v4, %v9246_v50  ;;  %v1615_v11 = vmul.f32 %v8002_v1, %v9195_v25  ;;  %v9256_v8 = vadd.f32 %v1634_v33, %v1625_v13 }
 0xb87   :  { %v1614_v15 = vmul.f32 %v8004_v58, %v9197_v21 }
 0xb88   :  { %7271 = vmatprep.mubr.msk.bf16.mxu0 %vm111_vm0, %v1643_v30  ;;  %v1627_v12 = vmul.f32 %v1622_v61, %v1615_v11 }
 0xb89   :  { %v8006_v41 = vpop.eup %8005  ;;  %v1626_v44 = vmul.f32 %v1622_v61, %v1614_v15 }
 0xb8a   :  { %v8008_v57 = vpop.eup %8007  ;;  %v1617_v19 = vmul.f32 %v8006_v41, %v9204_v63  ;;  %v9265_v48 = vadd.f32 %v1634_v33, %v1627_v12 }
 0xb8b   :  { %v9258_v46 = vadd.f32 %v1634_v33, %v1626_v44  ;;  %v1616_v40 = vmul.f32 %v8008_v57, %v9206_v14 }
 0xb8c   :  { %v1629_v9 = vmul.f32 %v1622_v61, %v1617_v19  ;;  %v11516_v19 = vmov 0  }
 0xb8d   :  { %v8010_v38 = vpop.eup %8009  ;;  %v1644_v21 = vpack.c.bf16 %v9258_v46, %v9256_v8  ;;  %v1628_v27 = vmul.f32 %v1622_v61, %v1616_v40  ;;  %7815 = vset.pattern.permute.xlu1 %v11516_v19  ;;  %7816 = vset.pattern.permute.xlu0 %v11516_v19  ;;  %v9297_v40 = vsub.s32 3, %v11593_v31 }
 0xb8e   :  { %v1618_v25 = vmul.f32 %v8010_v38, %v9214_v0  ;;  %v9271_v14 = vadd.f32 %v1634_v33, %v1629_v9 }
 0xb8f   :  { %7272 = vmatmul.mubr.msk.bf16.vlgmr.msra.gmra.mrb[32].mxu0 %vm111_vm0, %v1644_v21  ;;  %v9267_v63 = vadd.f32 %v1634_v33, %v1628_v27  ;;  %11598 = vst [vmem:[#allocation6_spill] sm:$0xff] %v9297_v40  ;;  %v1755_v12 = vrot.slane %v9121_v22, %v9297_v40 }
 0xb90   :  { %v1630_v26 = vmul.f32 %v1622_v61, %v1618_v25 }
 0xb91   :  { %v1645_v16 = vpack.c.bf16 %v9267_v63, %v9265_v48 }
 0xb92   :  { %v9273_v45 = vadd.f32 %v1634_v33, %v1630_v26 }
 0xb93   :  { %7275 = vmatprep.mubr.msk.bf16.mxu0 %vm111_vm0, %v1645_v16 }
 0xb94   :  { %v1646_v0 = vpack.c.bf16 %v9273_v45, %v9271_v14 }
 0xb97   :  { %7276 = vmatmul.mubr.msk.bf16.gmra.mrb[36].mxu0 %vm111_vm0, %v1646_v0 }
 0xc62   :  { %v7273_v51 = vpop.f32.mrb[32].mxu0 }
 0xc63   :  { %v1718_v6 = vadd.f32 %v7273_v51, %v1650_v47  ;;  %v1709_v28 = vpop.f32.mrb[33].mxu0 }
 0xc64   :  { %v1710_v53 = vadd.f32 %v1709_v28, %v1650_v47  ;;  %v7274_v61 = vpop.f32.mrb[34].mxu0 }
 0xc65   :  { %v1721_v60 = vadd.f32 %v7274_v61, %v1650_v47  ;;  %v1712_v3 = vpop.f32.mrb[35].mxu0  ;;  %v1742_v36 = vmax.f32 %v1718_v6, 0.0 }
 0xc66   :  { %v1713_v39 = vadd.f32 %v1712_v3, %v1650_v47  ;;  %v1740_v54 = vmax.f32 %v1710_v53, 0.0 }
 0xc67   :  { %v1743_v56 = vmax.f32 %v1721_v60, 0.0 }
 0xc68   :  { %v1741_v59 = vmax.f32 %v1713_v39, 0.0 }
 0xc69   :  { %v1749_v33 = vpack.c.bf16 %v1743_v56, %v1742_v36 }
 0xc6a   :  { %v1748_v2 = vpack.c.bf16 %v1741_v59, %v1740_v54  ;;  %v7277_v7 = vpop.f32.mrb[36].mxu0 }
 0xc6b   :  { %v1734_v62 = vadd.f32 %v7277_v7, %v1650_v47  ;;  %v1725_v34 = vpop.f32.mrb[37].mxu0 }
 0xc6c   :  { %v1726_v42 = vadd.f32 %v1725_v34, %v1650_v47  ;;  %v7278_v35 = vpop.f32.mrb[38].mxu0  ;;  %7287 = vmatprep.mubr.msk.bf16.mxu1 %vm295_vm2, %v1748_v2  ;;  %v67_v34 = vld [vmem:[%s11506_s6 + $0x8] sm:$0xff] }
 0xc6d   :  { %v1737_v1 = vadd.f32 %v7278_v35, %v1650_v47  ;;  %v1728_v58 = vpop.f32.mrb[39].mxu0  ;;  %7288 = vmatmul.mubr.msk.bf16.vlgmr.msra.gmra.mrb[48].mxu1 %vm295_vm2, %v1749_v33  ;;  %v1746_v13 = vmax.f32 %v1734_v62, 0.0  ;;  %v69_v62 = vld [vmem:[%s11506_s6 + $0x18] sm:$0xff]  ;;  %v9348_v35 = vld [vmem:[%s11506_s6 + $0x20] sm:$0xff] }
 0xc6e   :  { %v1729_v30 = vadd.f32 %v1728_v58, %v1650_v47  ;;  %v1744_v11 = vmax.f32 %v1726_v42, 0.0  ;;  %v11518_v42 = vmov 1  }
 0xc6f   :  { %v1747_v15 = vmax.f32 %v1737_v1, 0.0  ;;  %v71_v1 = vld [vmem:[%s11506_s6 + $0x28] sm:$0xff] }
 0xc70   :  { %v1745_v41 = vmax.f32 %v1729_v30, 0.0 }
 0xc71   :  { %v1751_v44 = vpack.c.bf16 %v1747_v15, %v1746_v13 }
 0xc72   :  { %v1750_v57 = vpack.c.bf16 %v1745_v41, %v1744_v11 }
 0xc74   :  { %7291 = vmatprep.mubr.msk.bf16.mxu1 %vm295_vm2, %v1750_v57 }
 0xc75   :  { %7292 = vmatmul.mubr.msk.bf16.gmra.mrb[52].mxu1 %vm295_vm2, %v1751_v44 }
 0xd40   :  { %v7289_v38 = vpop.f32.mrb[48].mxu1 }
 0xd41   :  { %v1835_v21 = vadd.f32 %v7289_v38, %v1755_v12  ;;  %v1826_v27 = vpop.f32.mrb[49].mxu1 }
 0xd42   :  { %v1827_v25 = vadd.f32 %v1826_v27, %v1755_v12  ;;  %v7290_v9 = vpop.f32.mrb[50].mxu1 }
 0xd43   :  { %v1859_v26 = vadd.f32 %v1835_v21, %v9256_v8  ;;  %v1829_v16 = vpop.f32.mrb[51].mxu1  ;;  %v1838_v0 = vadd.f32 %v7290_v9, %v1755_v12 }
 0xd44   :  { %v1830_v10 = vadd.f32 %v1829_v16, %v1755_v12  ;;  %v1857_v23 = vadd.f32 %v1827_v25, %v9246_v50 }
 0xd45   :  { %v1871_v47 = vsel %vm111_vm0, %v1859_v26, 0.0  ;;  %v9308_v6 = vadd.f32 %v1838_v0, %v9258_v46 }
 0xd46   :  { %v9305_v51 = vadd.f32 %v1830_v10, %v9248_v4  ;;  %1872 = vadd.xlane.f32.xlu1 %v1871_v47  ;;  %v1865_v60 = vsel %vm111_vm0, %v1857_v23, 0.0 }
 0xd47   :  { %v1874_v46 = vsel %vm111_vm0, %v9308_v6, 0.0 }
 0xd48   :  { %v7293_v28 = vpop.f32.mrb[52].mxu1  ;;  %v1868_v53 = vsel %vm111_vm0, %v9305_v51, 0.0 }
 0xd49   :  { %v1851_v61 = vadd.f32 %v7293_v28, %v1755_v12  ;;  %1869 = vadd.xlane.f32.xlu0 %v1868_v53  ;;  %v1842_v8 = vpop.f32.mrb[53].mxu1 }
 0xd4a   :  { %v1843_v3 = vadd.f32 %v1842_v8, %v1755_v12  ;;  %1866 = vadd.xlane.f32.xlu1 %v1865_v60  ;;  %v7294_v50 = vpop.f32.mrb[54].mxu1 }
 0xd4b   :  { %v1863_v39 = vadd.f32 %v1851_v61, %v9271_v14  ;;  %v1845_v4 = vpop.f32.mrb[55].mxu1  ;;  %v1854_v36 = vadd.f32 %v7294_v50, %v1755_v12 }
 0xd4c   :  { %v1846_v56 = vadd.f32 %v1845_v4, %v1755_v12  ;;  %v9317_v54 = vadd.f32 %v1843_v3, %v9265_v48 }
 0xd4d   :  { %1875 = vadd.xlane.f32.xlu0 %v1874_v46  ;;  %v1883_v59 = vsel %vm111_vm0, %v1863_v39, 0.0  ;;  %v9324_v2 = vadd.f32 %v1854_v36, %v9273_v45  ;;  %v68_v45 = vld [vmem:[%s11506_s6 + $0x10] sm:$0xff] }
 0xd4e   :  { %v9321_v33 = vadd.f32 %v1846_v56, %v9267_v63  ;;  %1884 = vadd.xlane.f32.xlu1 %v1883_v59  ;;  %v1877_v7 = vsel %vm111_vm0, %v9317_v54, 0.0  ;;  %v66_v63 = vld [vmem:[%s11506_s6] sm:$0xff] }
 0xd4f   :  { %v1886_v48 = vsel %vm111_vm0, %v9324_v2, 0.0 }
 0xd50   :  { %v1880_v14 = vsel %vm111_vm0, %v9321_v33, 0.0 }
 0xd51   :  { %1881 = vadd.xlane.f32.xlu0 %v1880_v14 }
 0xd52   :  { %1878 = vadd.xlane.f32.xlu1 %v1877_v7 }
 0xd55   :  { %1887 = vadd.xlane.f32.xlu0 %v1886_v48 }
 0xd63   :  { %1995 = vperm.xlu1 %7815, %v66_v63  }
 0xd67   :  { %2005 = vperm.xlu1 %7815, %v68_v45  }
 0xd6b   :  { %2010 = vperm.xlu1 %7815, %v69_v62   ;;  %2000 = vperm.xlu0 %7816, %v67_v34  }
 0xd6f   :  { %7817 = vset.pattern.permute.xlu1 %v11518_v42 }
 0xd70   :  { %2050 = vperm.xlu1 %7817, %v66_v63   ;;  %v72_v63 = vld [vmem:[%s11506_s6 + $0x30] sm:$0xff] }
 0xd74   :  { %2054 = vperm.xlu1 %7817, %v67_v34  }
 0xd78   :  { %7818 = vset.pattern.permute.xlu1 %v11516_v19 }
 0xd79   :  { %2015 = vperm.xlu1 %7818, %v9348_v35  }
 0xd7d   :  { %2020 = vperm.xlu1 %7818, %v71_v1  }
 0xd81   :  { %7819 = vset.pattern.permute.xlu1 %v11518_v42 }
 0xd82   :  { %2058 = vperm.xlu1 %7819, %v68_v45  }
 0xd86   :  { %2062 = vperm.xlu1 %7819, %v69_v62  }
 0xd8a   :  { %7820 = vset.pattern.permute.xlu1 %v11516_v19 }
 0xdd3   :  { %v1873_v58 = vpop.xlane.xlu1 %1872 }
 0xdd4   :  { %v1891_v30 = vmul.f32 0.03125, %v1873_v58 }
 0xdd6   :  { %v9357_v13 = vsub.f32 %v1859_v26, %v1891_v30  ;;  %v1870_v15 = vpop.xlane.xlu0 %1869 }
 0xdd7   :  { %v1867_v11 = vpop.xlane.xlu1 %1866  ;;  %v1890_v57 = vmul.f32 0.03125, %v1870_v15 }
 0xdd8   :  { %v1889_v41 = vmul.f32 0.03125, %v1867_v11  ;;  %v1907_v44 = vmul.f32 %v9357_v13, %v9357_v13 }
 0xdd9   :  { %v9367_v16 = vsub.f32 %v9305_v51, %v1890_v57 }
 0xdda   :  { %v9361_v12 = vsub.f32 %v1857_v23, %v1889_v41  ;;  %v1876_v38 = vpop.xlane.xlu0 %1875  ;;  %v1919_v21 = vsel %vm111_vm0, %v1907_v44, 0.0 }
 0xddb   :  { %v1892_v27 = vmul.f32 0.03125, %v1876_v38  ;;  %v1885_v25 = vpop.xlane.xlu1 %1884  ;;  %1920 = vadd.xlane.f32.xlu1 %v1919_v21 }
 0xddc   :  { %v1895_v9 = vmul.f32 0.03125, %v1885_v25  ;;  %v1905_v26 = vmul.f32 %v9361_v12, %v9361_v12 }
 0xddd   :  { %v9370_v0 = vsub.f32 %v9308_v6, %v1892_v27  ;;  %v1906_v6 = vmul.f32 %v9367_v16, %v9367_v16 }
 0xdde   :  { %v9372_v10 = vsub.f32 %v1863_v39, %v1895_v9  ;;  %v1882_v23 = vpop.xlane.xlu0 %1881  ;;  %v1913_v47 = vsel %vm111_vm0, %v1905_v26, 0.0 }
 0xddf   :  { %1914 = vadd.xlane.f32.xlu1 %v1913_v47  ;;  %v1879_v28 = vpop.xlane.xlu1 %1878  ;;  %v1908_v53 = vmul.f32 %v9370_v0, %v9370_v0  ;;  %v1894_v60 = vmul.f32 0.03125, %v1882_v23  ;;  %v1916_v59 = vsel %vm111_vm0, %v1906_v6, 0.0 }
 0xde0   :  { %v1893_v61 = vmul.f32 0.03125, %v1879_v28  ;;  %v1911_v8 = vmul.f32 %v9372_v10, %v9372_v10 }
 0xde1   :  { %v1922_v51 = vsel %vm111_vm0, %v1908_v53, 0.0  ;;  %v9389_v56 = vsub.f32 %v9321_v33, %v1894_v60 }
 0xde2   :  { %v9383_v3 = vsub.f32 %v9317_v54, %v1893_v61  ;;  %1923 = vadd.xlane.f32.xlu0 %v1922_v51  ;;  %v1888_v50 = vpop.xlane.xlu0 %1887  ;;  %v1931_v39 = vsel %vm111_vm0, %v1911_v8, 0.0  ;;  %v9432_v8 = vsub.s32 6, %v11593_v31 }
 0xde3   :  { %v1896_v4 = vmul.f32 0.03125, %v1888_v50  ;;  %1932 = vadd.xlane.f32.xlu1 %v1931_v39  ;;  %v1910_v48 = vmul.f32 %v9389_v56, %v9389_v56  ;;  %v1996_v45 = vpop.permute.xlu1 %1995 }
 0xde4   :  { %v1909_v36 = vmul.f32 %v9383_v3, %v9383_v3  ;;  %11599 = vst [vmem:[#allocation8_spill] sm:$0xff] %v9432_v8 }
 0xde5   :  { %v9392_v46 = vsub.f32 %v9324_v2, %v1896_v4  ;;  %v1928_v33 = vsel %vm111_vm0, %v1910_v48, 0.0  ;;  %v73_v2 = vld [vmem:[%s11506_s6 + $0x38] sm:$0xff] }
 0xde6   :  { %1917 = vadd.xlane.f32.xlu0 %v1916_v59  ;;  %v1925_v54 = vsel %vm111_vm0, %v1909_v36, 0.0  ;;  %v9435_v59 = vsub.s32 7, %v11593_v31 }
 0xde7   :  { %1926 = vadd.xlane.f32.xlu1 %v1925_v54  ;;  %v1912_v14 = vmul.f32 %v9392_v46, %v9392_v46  ;;  %v9413_v62 = vpop.permute.xlu1 %2005  ;;  %v9439_v54 = vrot.slane %v9121_v22, %v9432_v8 }
 0xde8   :  { %11600 = vst [vmem:[#allocation2_spill] sm:$0xff] %v9435_v59 }
 0xde9   :  { %v1934_v7 = vsel %vm111_vm0, %v1912_v14, 0.0 }
 0xdea   :  { %1935 = vadd.xlane.f32.xlu0 %v1934_v7  ;;  %v9429_v57 = vpop.permute.xlu0 %2000 }
 0xdeb   :  { %v9415_v34 = vpop.permute.xlu1 %2010 }
 0xdee   :  { %1929 = vadd.xlane.f32.xlu0 %v1928_v33 }
 0xdf8   :  { %2030 = vperm.xlu1 %7820, %v73_v2  }
 0xdfc   :  { %7822 = vset.pattern.permute.xlu1 %v11518_v42 }
 0xdfd   :  { %2070 = vperm.xlu1 %7822, %v71_v1   ;;  %v9417_v1 = vpop.permute.xlu1 %2050 }
 0xe01   :  { %2074 = vperm.xlu1 %7822, %v72_v63   ;;  %v9419_v58 = vpop.permute.xlu1 %2054 }
 0xe04   :  { %2025 = vperm.xlu0 %7816, %v72_v63   ;;  %v9444_v63 = vrot.slane %v9121_v22, %v9435_v59 }
 0xe05   :  { %7824 = vset.pattern.permute.xlu1 %v11516_v19  ;;  %v9421_v30 = vpop.permute.xlu1 %2015 }
 0xe08   :  { %7821 = vset.pattern.permute.xlu0 %v11518_v42 }
 0xe09   :  { %2066 = vperm.xlu0 %7821, %v9348_v35   ;;  %v9423_v15 = vpop.permute.xlu1 %2020 }
 0xe0d   :  { %2078 = vperm.xlu0 %7821, %v73_v2   ;;  %v9425_v11 = vpop.permute.xlu1 %2058 }
 0xe11   :  { %7823 = vset.pattern.permute.xlu0 %v11516_v19  ;;  %v9427_v41 = vpop.permute.xlu1 %2062 }
 0xe68   :  { %v1921_v35 = vpop.xlane.xlu1 %1920 }
 0xe69   :  { %v1939_v44 = vmul.f32 0.03125, %v1921_v35 }
 0xe6b   :  { %v1947_v38 = vadd.f32 1e-05, %v1939_v44 }
 0xe6c   :  { %v1915_v21 = vpop.xlane.xlu1 %1914 }
 0xe6d   :  { %8011 = vrsqrt.f32 %v1947_v38  ;;  %v1937_v27 = vmul.f32 0.03125, %v1915_v21 }
 0xe6f   :  { %v1945_v25 = vadd.f32 1e-05, %v1937_v27  ;;  %v1924_v9 = vpop.xlane.xlu0 %1923 }
 0xe70   :  { %v1940_v26 = vmul.f32 0.03125, %v1924_v9  ;;  %v1933_v23 = vpop.xlane.xlu1 %1932 }
 0xe71   :  { %8013 = vrsqrt.f32 %v1945_v25  ;;  %v1943_v47 = vmul.f32 0.03125, %v1933_v23 }
 0xe72   :  { %v1948_v28 = vadd.f32 1e-05, %v1940_v26 }
 0xe73   :  { %v1951_v53 = vadd.f32 1e-05, %v1943_v47  ;;  %v1918_v61 = vpop.xlane.xlu0 %1917 }
 0xe74   :  { %8015 = vrsqrt.f32 %v1948_v28  ;;  %v1938_v60 = vmul.f32 0.03125, %v1918_v61  ;;  %v1927_v51 = vpop.xlane.xlu1 %1926 }
 0xe75   :  { %8017 = vrsqrt.f32 %v1951_v53  ;;  %v1941_v6 = vmul.f32 0.03125, %v1927_v51 }
 0xe76   :  { %v1946_v50 = vadd.f32 1e-05, %v1938_v60 }
 0xe77   :  { %v8012_v39 = vpop.eup %8011  ;;  %v1949_v4 = vadd.f32 1e-05, %v1941_v6  ;;  %v1936_v36 = vpop.xlane.xlu0 %1935 }
 0xe78   :  { %v1963_v14 = vmul.f32 %v8012_v39, %v9357_v13  ;;  %8019 = vrsqrt.f32 %v1946_v50  ;;  %v1944_v7 = vmul.f32 0.03125, %v1936_v36  ;;  %v74_v50 = vld [vmem:[%s11507_s7] sm:$0xff] }
 0xe79   :  { %8021 = vrsqrt.f32 %v1949_v4 }
 0xe7a   :  { %v1952_v48 = vadd.f32 1e-05, %v1944_v7  ;;  %v1975_v35 = vmul.f32 %v9439_v54, %v1963_v14 }
 0xe7b   :  { %v8014_v33 = vpop.eup %8013  ;;  %v1930_v2 = vpop.xlane.xlu0 %1929 }
 0xe7c   :  { %v1961_v31 = vmul.f32 %v8014_v33, %v9361_v12  ;;  %8023 = vrsqrt.f32 %v1952_v48  ;;  %v1942_v44 = vmul.f32 0.03125, %v1930_v2  ;;  %v1987_v22 = vadd.f32 %v9444_v63, %v1975_v35 }
 0xe7e   :  { %v8016_v38 = vpop.eup %8015  ;;  %v1973_v21 = vmul.f32 %v9439_v54, %v1961_v31  ;;  %v1950_v13 = vadd.f32 1e-05, %v1942_v44 }
 0xe7f   :  { %v8018_v27 = vpop.eup %8017  ;;  %v1964_v25 = vmul.f32 %v8016_v38, %v9370_v0 }
 0xe80   :  { %8025 = vrsqrt.f32 %v1950_v13  ;;  %v1967_v9 = vmul.f32 %v8018_v27, %v9372_v10  ;;  %v1985_v26 = vadd.f32 %v9444_v63, %v1973_v21  ;;  %v2035_v10 = vmul.f32 %v9413_v62, %v1987_v22 }
 0xe81   :  { %v1976_v23 = vmul.f32 %v9439_v54, %v1964_v25 }
 0xe82   :  { %v8020_v47 = vpop.eup %8019  ;;  %v2033_v12 = vmul.f32 %v1996_v45, %v1985_v26  ;;  %v1979_v60 = vmul.f32 %v9439_v54, %v1967_v9  ;;  %v2043_v33 = vadd.f32 %v9134_v20, %v2035_v10 }
 0xe83   :  { %v8022_v28 = vpop.eup %8021  ;;  %v1962_v53 = vmul.f32 %v8020_v47, %v9367_v16  ;;  %v1988_v61 = vadd.f32 %v9444_v63, %v1976_v23  ;;  %v2031_v16 = vpop.permute.xlu1 %2030 }
 0xe84   :  { %v2041_v0 = vadd.f32 %v9128_v43, %v2033_v12  ;;  %v1965_v51 = vmul.f32 %v8022_v28, %v9383_v3  ;;  %v1991_v14 = vadd.f32 %v9444_v63, %v1979_v60  ;;  %v2026_v7 = vpop.permute.xlu0 %2025 }
 0xe85   :  { %v1974_v6 = vmul.f32 %v9439_v54, %v1962_v53  ;;  %v2036_v45 = vmul.f32 %v9415_v34, %v1988_v61 }
 0xe86   :  { %v8024_v39 = vpop.eup %8023  ;;  %v9466_v4 = vadd.f32 %v9417_v1, %v2041_v0  ;;  %v1977_v36 = vmul.f32 %v9439_v54, %v1965_v51  ;;  %v77_v1 = vld [vmem:[%s11507_s7 + $0x18] sm:$0xff]  ;;  %v2039_v27 = vmul.f32 %v2026_v7, %v1991_v14  ;;  %v11522_v14 = vmov 0.0|0.0  }
 0xe87   :  { %v1968_v43 = vmul.f32 %v8024_v39, %v9392_v46  ;;  %v2044_v3 = vadd.f32 %v9148_v18, %v2036_v45  ;;  %v1986_v62 = vadd.f32 %v9444_v63, %v1974_v6  ;;  %v2071_v25 = vpop.permute.xlu1 %2070  ;;  %7712 = vmatprep.subr.bf16.mxu0 %v11522_v14  ;;  %v11520_v7 = vmov 0.0  }
 0xe88   :  { %11601 = vst [vmem:[#allocation10_spill] sm:$0xff] %v9466_v4  ;;  %v2089_v48 = vmul.f32 %v9466_v4, %v74_v50  ;;  %v1989_v34 = vadd.f32 %v9444_v63, %v1977_v36  ;;  %v2067_v9 = vpop.permute.xlu0 %2066  ;;  %v80_v50 = vld [vmem:[%s11507_s7 + $0x30] sm:$0xff]  ;;  %7311 = vmatprep.mubr.msk.f32.mxu0 %vm8387_vm5, %v11520_v7 }
 0xe89   :  { %v1980_v2 = vmul.f32 %v9439_v54, %v1968_v43  ;;  %v9481_v46 = vadd.f32 %v9427_v41, %v2044_v3  ;;  %v2034_v18 = vmul.f32 %v9429_v57, %v1986_v62  ;;  %v75_v57 = vld [vmem:[%s11507_s7 + $0x8] sm:$0xff] }
 0xe8a   :  { %v8026_v35 = vpop.eup %8025  ;;  %v2097_v31 = vsel %vm111_vm0, %v2089_v48, 0.0  ;;  %v2037_v44 = vmul.f32 %v9421_v30, %v1989_v34  ;;  %v9495_v30 = vadd.f32 %v9425_v11, %v2043_v33  ;;  %v2047_v11 = vadd.f32 %v9162_v24, %v2039_v27  ;;  %v90_v27 = vld [vmem:[%s11508_s9] sm:$0xff] }
 0xe8b   :  { %11602 = vst [vmem:[#allocation11_spill] sm:$0xff] %v9481_v46  ;;  %v1992_v38 = vadd.f32 %v9444_v63, %v1980_v2  ;;  %v1966_v21 = vmul.f32 %v8026_v35, %v9389_v56  ;;  %2098 = vadd.xlane.f32.xlu1 %v2097_v31  ;;  %v2092_v13 = vmul.f32 %v9481_v46, %v77_v1  ;;  %v2075_v61 = vpop.permute.xlu1 %2074 }
 0xe8c   :  { %v2042_v20 = vadd.f32 %v9140_v5, %v2034_v18  ;;  %v2045_v41 = vadd.f32 %v9155_v32, %v2037_v44  ;;  %11603 = vst [vmem:[#allocation12_spill] sm:$0xff] %v9495_v30  ;;  %v76_v5 = vld [vmem:[%s11507_s7 + $0x10] sm:$0xff]  ;;  %v2079_v60 = vpop.permute.xlu0 %2078 }
 0xe8d   :  { %v2040_v26 = vmul.f32 %v2031_v16, %v1992_v38  ;;  %v1978_v56 = vmul.f32 %v9439_v54, %v1966_v21  ;;  %v2106_v22 = vsel %vm111_vm0, %v2092_v13, 0.0  ;;  %v2091_v12 = vmul.f32 %v9495_v30, %v76_v5  ;;  %v7847_v13 = vld [vmem:[%s11499_s1 + $0x10] sm:$0xff]  }
 0xe8e   :  { %v9500_v23 = vadd.f32 %v9419_v58, %v2042_v20  ;;  %v9510_v28 = vadd.f32 %v2067_v9, %v2045_v41  ;;  %v2262_v9 = vpack.c.bf16 %v9481_v46, %v9495_v30  ;;  %v6622_v5 = vld [vmem:[%s11501_s5 + $0x10] sm:$0xff] }
 0xe8f   :  { %v1990_v32 = vadd.f32 %v9444_v63, %v1978_v56  ;;  %2107 = vadd.xlane.f32.xlu1 %v2106_v22  ;;  %v2048_v58 = vadd.f32 %v9175_v37, %v2040_v26  ;;  %v78_v63 = vld [vmem:[%s11507_s7 + $0x20] sm:$0xff]  ;;  %v2103_v24 = vsel %vm111_vm0, %v2091_v12, 0.0  ;;  %v9524_v37 = vadd.f32 %v2075_v61, %v2047_v11 }
 0xe90   :  { %11604 = vst [vmem:[#allocation13_spill] sm:$0xff] %v9500_v23  ;;  %v2090_v47 = vmul.f32 %v9500_v23, %v75_v57  ;;  %11605 = vst [vmem:[#allocation14_spill] sm:$0xff] %v9510_v28  ;;  %v2093_v6 = vmul.f32 %v9510_v28, %v78_v63  ;;  %v2261_v41 = vpack.c.bf16 %v9500_v23, %v9466_v4 }
 0xe91   :  { %v2038_v54 = vmul.f32 %v9423_v15, %v1990_v32  ;;  %v79_v15 = vld [vmem:[%s11507_s7 + $0x28] sm:$0xff]  ;;  %11607 = vst [vmem:[#allocation16_spill] sm:$0xff] %v9524_v37  ;;  %v9526_v10 = vadd.f32 %v2079_v60, %v2048_v58  ;;  %v2095_v36 = vmul.f32 %v9524_v37, %v80_v50 }
 0xe92   :  { %v2100_v53 = vsel %vm111_vm0, %v2090_v47, 0.0  ;;  %v2109_v16 = vsel %vm111_vm0, %v2093_v6, 0.0  ;;  %v11610_v32 = vld [vmem:[#allocation3_spill] sm:$0xff] }
 0xe93   :  { %2101 = vadd.xlane.f32.xlu0 %v2100_v53  ;;  %v2046_v0 = vadd.f32 %v9168_v52, %v2038_v54  ;;  %11608 = vst [vmem:[#allocation17_spill] sm:$0xff] %v9526_v10  ;;  %v81_v52 = vld [vmem:[%s11507_s7 + $0x38] sm:$0xff]  ;;  %v2115_v3 = vsel %vm111_vm0, %v2095_v36, 0.0  ;;  %v2264_v26 = vpack.c.bf16 %v9526_v10, %v9524_v37  ;;  %v2268_v47 = vrot.slane %v6622_v5, %v11610_v32 }
 0xe94   :  { %v2096_v43 = vmul.f32 %v9526_v10, %v81_v52 }
 0xe95   :  { %v9522_v51 = vadd.f32 %v2071_v25, %v2046_v0  ;;  %v7848_v25 = vld [vmem:[%s11499_s1 + $0x18] sm:$0xff]  }
 0xe96   :  { %v2118_v62 = vsel %vm111_vm0, %v2096_v43, 0.0 }
 0xe97   :  { %11606 = vst [vmem:[#allocation15_spill] sm:$0xff] %v9522_v51  ;;  %2104 = vadd.xlane.f32.xlu0 %v2103_v24  ;;  %v2094_v45 = vmul.f32 %v9522_v51, %v79_v15  ;;  %v2263_v57 = vpack.c.bf16 %v9522_v51, %v9510_v28 }
 0xe99   :  { %v2112_v39 = vsel %vm111_vm0, %v2094_v45, 0.0 }
 0xe9a   :  { %2113 = vadd.xlane.f32.xlu1 %v2112_v39 }
 0xe9b   :  { %2110 = vadd.xlane.f32.xlu0 %v2109_v16 }
 0xe9e   :  { %2119 = vadd.xlane.f32.xlu1 %v2118_v62 }
 0xe9f   :  { %2116 = vadd.xlane.f32.xlu0 %v2115_v3 }
 0xf18   :  { %v2099_v48 = vpop.xlane.xlu1 %2098 }
 0xf1c   :  { %v2108_v33 = vpop.xlane.xlu1 %2107 }
 0xf20   :  { %v2102_v34 = vpop.xlane.xlu0 %2101 }
 0xf21   :  { %v7713_v1 = vpack.c.bf16 %v2102_v34, %v2099_v48 }
 0xf23   :  { %7714 = vmatpush3.bf16.msra.mxu0 %v7713_v1 }
 0xf24   :  { %v2105_v2 = vpop.xlane.xlu0 %2104  ;;  %7715 = vmatprep.subr.bf16.mxu0 %v11522_v14 }
 0xf25   :  { %v7716_v18 = vpack.c.bf16 %v2108_v33, %v2105_v2 }
 0xf27   :  { %7717 = vmatpush3.bf16.msra.mxu0 %v7716_v18  ;;  %v2114_v35 = vpop.xlane.xlu1 %2113 }
 0xf28   :  { %v2111_v31 = vpop.xlane.xlu0 %2110  ;;  %7718 = vmatprep.subr.bf16.mxu0 %v11522_v14 }
 0xf29   :  { %v7719_v44 = vpack.c.bf16 %v2114_v35, %v2111_v31 }
 0xf2b   :  { %7720 = vmatpush3.bf16.msra.mxu0 %v7719_v44  ;;  %v2120_v38 = vpop.xlane.xlu1 %2119 }
 0xf2c   :  { %v2117_v21 = vpop.xlane.xlu0 %2116  ;;  %7721 = vmatprep.subr.bf16.mxu0 %v11522_v14 }
 0xf2d   :  { %v7722_v20 = vpack.c.bf16 %v2120_v38, %v2117_v21 }
 0xf2f   :  { %7723 = vmatpush3.bf16.msra.mxu0 %v7722_v20  ;;  %v9624_v20 = vld [vmem:[%s11502_s8 + $0x40] sm:$0xff] }
 0xf30   :  { %7314 = vmatprep.subr.bf16.mxu0 %v7847_v13 }
 0xf32   :  { %7312 = vmatmul.mubr.msk.f32.vlgmr.msra.gmra.mrb[40].mxu0 %vm295_vm2, %v90_v27 }
 0xf33   :  { %7315 = vmatpush3.bf16.msra.mxu0 %v7847_v13  ;;  %7318 = vmatprep.mubr.msk.bf16.mxu0 %vm111_vm0, %v2261_v41  ;;  %v9619_v13 = vld [vmem:[%s11502_s8 + $0x50] sm:$0xff] }
 0xf34   :  { %7316 = vmatprep.subr.bf16.mxu0 %v7848_v25 }
 0xf37   :  { %7317 = vmatpush3.bf16.msra.mxu0 %v7848_v25 }
 0xf3a   :  { %7319 = vmatmul.mubr.msk.bf16.vlgmr.msra.gmra.mrb[44].mxu0 %vm111_vm0, %v2262_v9  ;;  %v9630_v9 = vld [vmem:[%s11502_s8 + $0x58] sm:$0xff] }
 0xf3b   :  { %7322 = vmatprep.mubr.msk.bf16.mxu0 %vm111_vm0, %v2263_v57  ;;  %v9635_v57 = vld [vmem:[%s11502_s8 + $0x48] sm:$0xff] }
 0xf42   :  { %7323 = vmatmul.mubr.msk.bf16.gmra.mrb[48].mxu0 %vm111_vm0, %v2264_v26 }
0x1005   :  { %v9570_v56 = vpop.f32.mrb[40].mxu0 }
0x1006   :  { %11609 = vst [vmem:[#allocation18_spill] sm:$0xff] %v9570_v56  ;;  %v7313_v22 = vpop.f32.mrb[41].mxu0 }
0x100d   :  { %v7320_v11 = vpop.f32.mrb[44].mxu0 }
0x100e   :  { %v2327_v12 = vpop.f32.mrb[45].mxu0  ;;  %v2336_v58 = vadd.f32 %v7320_v11, %v2268_v47 }
0x100f   :  { %v7321_v54 = vpop.f32.mrb[46].mxu0  ;;  %v2328_v60 = vadd.f32 %v2327_v12, %v2268_v47 }
0x1010   :  { %v2339_v53 = vadd.f32 %v7321_v54, %v2268_v47  ;;  %v2330_v61 = vpop.f32.mrb[47].mxu0 }
0x1011   :  { %v2331_v63 = vadd.f32 %v2330_v61, %v2268_v47  ;;  %v9651_v61 = vld [vmem:[%s11502_s8 + $0x60] sm:$0xff] }
0x1012   :  { %v9576_v0 = vpack.c.bf16 %v2339_v53, %v2336_v58  ;;  %v9645_v58 = vld [vmem:[%s11502_s8 + $0x70] sm:$0xff] }
0x1013   :  { %v9578_v24 = vpack.c.bf16 %v2331_v63, %v2328_v60 }
0x1014   :  { %2368 = vrot.lane.b32.xlu1 %v9576_v0, %s8370_s15 }
0x1015   :  { %v7324_v15 = vpop.f32.mrb[48].mxu0  ;;  %2366 = vrot.lane.b32.xlu0 %v9578_v24, %s8370_s15  ;;  %7334 = vmatprep.mubr.msk.bf16.mxu1 %vm205_vm1, %v9578_v24 }
0x1016   :  { %v2343_v6 = vpop.f32.mrb[49].mxu0  ;;  %v2352_v52 = vadd.f32 %v7324_v15, %v2268_v47 }
0x1017   :  { %v7325_v50 = vpop.f32.mrb[50].mxu0  ;;  %v2344_v16 = vadd.f32 %v2343_v6, %v2268_v47 }
0x1018   :  { %v2355_v45 = vadd.f32 %v7325_v50, %v2268_v47  ;;  %v2346_v39 = vpop.f32.mrb[51].mxu0  ;;  %v9658_v50 = vld [vmem:[%s11502_s8 + $0x78] sm:$0xff] }
0x1019   :  { %v2347_v36 = vadd.f32 %v2346_v39, %v2268_v47 }
0x101a   :  { %v9586_v43 = vpack.c.bf16 %v2355_v45, %v2352_v52  ;;  %v9663_v52 = vld [vmem:[%s11502_s8 + $0x68] sm:$0xff] }
0x101b   :  { %v9588_v3 = vpack.c.bf16 %v2347_v36, %v2344_v16 }
0x101c   :  { %2372 = vrot.lane.b32.xlu0 %v9586_v43, %s8370_s15 }
0x101d   :  { %2370 = vrot.lane.b32.xlu1 %v9588_v3, %s8370_s15 }
0x1020   :  { %2539 = vrot.lane.b32.xlu0 %v9578_v24, %s8371_s16 }
0x1021   :  { %2541 = vrot.lane.b32.xlu1 %v9576_v0, %s8371_s16 }
0x1024   :  { %2545 = vrot.lane.b32.xlu0 %v9586_v43, %s8371_s16 }
0x1025   :  { %2543 = vrot.lane.b32.xlu1 %v9588_v3, %s8371_s16 }
0x1086   :  { %v2369_v34 = vpop.permute.xlu1 %2368 }
0x1087   :  { %v2367_v62 = vpop.permute.xlu0 %2366  ;;  %v2390_v2 = vsel %vm205_vm1, %v2369_v34, 0 }
0x1088   :  { %7764 = vmatprep.subr.msk.bf16.mxu1 %vm205_vm1, %v2367_v62  ;;  %v2387_v48 = vsel %vm205_vm1, %v2367_v62, 0 }
0x1089   :  { %7327 = vmatpush3.bf16.xpose.msra.mxu1 %v2387_v48 }
0x108a   :  { %7765 = vmatprep.subr.msk.bf16.mxu1 %vm205_vm1, %v2369_v34 }
0x108e   :  { %v2373_v1 = vpop.permute.xlu0 %2372 }
0x108f   :  { %v2371_v33 = vpop.permute.xlu1 %2370  ;;  %v2396_v21 = vsel %vm205_vm1, %v2373_v1, 0 }
0x1090   :  { %v2393_v44 = vsel %vm205_vm1, %v2371_v33, 0 }
0x1091   :  { %7329 = vmatpush3.bf16.xpose.msra.mxu1 %v2390_v2 }
0x1092   :  { %7766 = vmatprep.subr.msk.bf16.mxu1 %vm205_vm1, %v2371_v33  ;;  %v2540_v18 = vpop.permute.xlu0 %2539 }
0x1093   :  { %v2542_v35 = vpop.permute.xlu1 %2541  ;;  %7342 = vmatprep.subr.bf16.mxu0 %v2540_v18 }
0x1094   :  { %7343 = vmatpush3.bf16.msra.mxu0 %v2540_v18 }
0x1095   :  { %7344 = vmatprep.subr.bf16.mxu0 %v2542_v35 }
0x1096   :  { %v2546_v38 = vpop.permute.xlu0 %2545 }
0x1097   :  { %v2544_v31 = vpop.permute.xlu1 %2543 }
0x1098   :  { %7345 = vmatpush3.bf16.msra.mxu0 %v2542_v35 }
0x1099   :  { %7331 = vmatpush3.bf16.xpose.msra.mxu1 %v2393_v44  ;;  %7346 = vmatprep.subr.bf16.mxu0 %v2544_v31 }
0x109a   :  { %7767 = vmatprep.subr.msk.bf16.mxu1 %vm205_vm1, %v2373_v1 }
0x109c   :  { %7347 = vmatpush3.bf16.msra.mxu0 %v2544_v31 }
0x109d   :  { %7348 = vmatprep.subr.bf16.mxu0 %v2546_v38 }
0x10a0   :  { %7349 = vmatpush3.bf16.msra.mxu0 %v2546_v38 }
0x10a1   :  { %7333 = vmatpush3.bf16.xpose.msra.mxu1 %v2396_v21 }
0x10a8   :  { %7335 = vmatmul.mubr.msk.bf16.vlgmr.msra.gmra.mrb[56].mxu1 %vm205_vm1, %v9576_v0 }
0x10a9   :  { %7338 = vmatprep.mubr.msk.bf16.mxu1 %vm205_vm1, %v9588_v3 }
0x10b0   :  { %7339 = vmatmul.mubr.msk.bf16.gmra.mrb[60].mxu1 %vm205_vm1, %v9586_v43 }
0x117b   :  { %v7336_v27 = vpop.f32.mrb[56].mxu1 }
0x117c   :  { %v2441_v25 = vadd.f32 %v7336_v27, %v9619_v13  ;;  %v2432_v41 = vpop.f32.mrb[57].mxu1 }
0x117d   :  { %v2433_v26 = vadd.f32 %v9624_v20, %v2432_v41  ;;  %v7337_v22 = vpop.f32.mrb[58].mxu1 }
0x117e   :  { %v2435_v5 = vpop.f32.mrb[59].mxu1  ;;  %v2469_v47 = vsel %vm295_vm2, %v2441_v25, -inf  ;;  %v2444_v11 = vadd.f32 %v7337_v22, %v9630_v9 }
0x117f   :  { %v2436_v12 = vadd.f32 %v9635_v57, %v2435_v5  ;;  %2470 = vmax.xlane.f32.xlu0 %v2469_v47  ;;  %v2463_v54 = vsel %vm295_vm2, %v2433_v26, -inf }
0x1180   :  { %2464 = vmax.xlane.f32.xlu1 %v2463_v54  ;;  %v2472_v63 = vsel %vm295_vm2, %v2444_v11, -inf }
0x1181   :  { %v2466_v53 = vsel %vm295_vm2, %v2436_v12, -inf }
0x1183   :  { %v7340_v60 = vpop.f32.mrb[60].mxu1  ;;  %2467 = vmax.xlane.f32.xlu0 %v2466_v53 }
0x1184   :  { %v2457_v15 = vadd.f32 %v7340_v60, %v9645_v58  ;;  %v2448_v6 = vpop.f32.mrb[61].mxu1  ;;  %2473 = vmax.xlane.f32.xlu1 %v2472_v63 }
0x1185   :  { %v2449_v45 = vadd.f32 %v9651_v61, %v2448_v6  ;;  %v7341_v39 = vpop.f32.mrb[62].mxu1 }
0x1186   :  { %v2451_v16 = vpop.f32.mrb[63].mxu1  ;;  %v2481_v36 = vsel %vm295_vm2, %v2457_v15, -inf  ;;  %v2460_v62 = vadd.f32 %v7341_v39, %v9658_v50 }
0x1187   :  { %v2452_v48 = vadd.f32 %v9663_v52, %v2451_v16  ;;  %2482 = vmax.xlane.f32.xlu0 %v2481_v36  ;;  %v2475_v34 = vsel %vm295_vm2, %v2449_v45, -inf }
0x1188   :  { %2476 = vmax.xlane.f32.xlu1 %v2475_v34  ;;  %v2484_v33 = vsel %vm295_vm2, %v2460_v62, -inf }
0x1189   :  { %v2478_v1 = vsel %vm295_vm2, %v2452_v48, -inf }
0x118b   :  { %2479 = vmax.xlane.f32.xlu0 %v2478_v1 }
0x118c   :  { %2485 = vmax.xlane.f32.xlu1 %v2484_v33 }
0x119d   :  { %2658 = vrot.lane.b32.xlu1 %v9576_v0, %s8372_s17 }
0x11a1   :  { %2656 = vrot.lane.b32.xlu0 %v9578_v24, %s8372_s17  ;;  %2660 = vrot.lane.b32.xlu1 %v9588_v3, %s8372_s17 }
0x11a5   :  { %2662 = vrot.lane.b32.xlu0 %v9586_v43, %s8372_s17  ;;  %2648 = vrot.lane.b32.xlu1 %v9578_v24, %s8373_s12 }
0x11a9   :  { %2650 = vrot.lane.b32.xlu0 %v9576_v0, %s8373_s12  ;;  %2652 = vrot.lane.b32.xlu1 %v9588_v3, %s8373_s12 }
0x11ad   :  { %2654 = vrot.lane.b32.xlu0 %v9586_v43, %s8373_s12  ;;  %2831 = vrot.lane.b32.xlu1 %v9576_v0, %s8374_s18 }
0x11b1   :  { %2829 = vrot.lane.b32.xlu0 %v9578_v24, %s8374_s18  ;;  %2833 = vrot.lane.b32.xlu1 %v9588_v3, %s8374_s18 }
0x11b5   :  { %2835 = vrot.lane.b32.xlu0 %v9586_v43, %s8374_s18 }
0x120c   :  { %v2471_v2 = vpop.xlane.xlu0 %2470 }
0x120d   :  { %v2489_v18 = vsub.f32 %v2441_v25, %v2471_v2  ;;  %v2465_v35 = vpop.xlane.xlu1 %2464 }
0x120e   :  { %v2487_v31 = vsub.f32 %v2433_v26, %v2465_v35 }
0x120f   :  { %v2499_v44 = vmul.f32 1.442695, %v2489_v18 }
0x1210   :  { %v2495_v38 = vmul.f32 1.442695, %v2487_v31  ;;  %v2468_v21 = vpop.xlane.xlu0 %2467 }
0x1211   :  { %v2488_v27 = vsub.f32 %v2436_v12, %v2468_v21  ;;  %v2474_v41 = vpop.xlane.xlu1 %2473  ;;  %8027 = vpow2.f32 %v2499_v44 }
0x1212   :  { %v2490_v22 = vsub.f32 %v2444_v11, %v2474_v41  ;;  %8029 = vpow2.f32 %v2495_v38 }
0x1213   :  { %v2497_v5 = vmul.f32 1.442695, %v2488_v27 }
0x1214   :  { %v2501_v47 = vmul.f32 1.442695, %v2490_v22  ;;  %v2483_v54 = vpop.xlane.xlu0 %2482 }
0x1215   :  { %8031 = vpow2.f32 %v2497_v5  ;;  %v2493_v53 = vsub.f32 %v2457_v15, %v2483_v54  ;;  %v2477_v60 = vpop.xlane.xlu1 %2476 }
0x1216   :  { %8033 = vpow2.f32 %v2501_v47  ;;  %v2491_v63 = vsub.f32 %v2449_v45, %v2477_v60 }
0x1217   :  { %v2507_v6 = vmul.f32 1.442695, %v2493_v53 }
0x1218   :  { %v2503_v25 = vmul.f32 1.442695, %v2491_v63  ;;  %v2480_v39 = vpop.xlane.xlu0 %2479 }
0x1219   :  { %v2492_v26 = vsub.f32 %v2452_v48, %v2480_v39  ;;  %v2486_v16 = vpop.xlane.xlu1 %2485  ;;  %8035 = vpow2.f32 %v2507_v6 }
0x121a   :  { %v2494_v36 = vsub.f32 %v2460_v62, %v2486_v16  ;;  %8037 = vpow2.f32 %v2503_v25 }
0x121b   :  { %v2505_v12 = vmul.f32 1.442695, %v2492_v26  ;;  %v9696_v1 = vpop.eup %8027 }
0x121c   :  { %v2509_v11 = vmul.f32 1.442695, %v2494_v36  ;;  %v2657_v34 = vpop.permute.xlu0 %2656  ;;  %v9699_v33 = vpop.eup %8029 }
0x121d   :  { %8039 = vpow2.f32 %v2505_v12  ;;  %7768 = vmatprep.subr.msk.bf16.mxu0 %vm205_vm1, %v2657_v34  ;;  %v2659_v15 = vpop.permute.xlu1 %2658  ;;  %v2677_v31 = vsel %vm205_vm1, %v2657_v34, 0 }
0x121e   :  { %8041 = vpow2.f32 %v2509_v11  ;;  %v2680_v60 = vsel %vm205_vm1, %v2659_v15, 0 }
0x121f   :  { %v9701_v45 = vpop.eup %8031 }
0x1220   :  { %v9703_v2 = vpop.eup %8033  ;;  %v2663_v48 = vpop.permute.xlu0 %2662  ;;  %v2535_v62 = vpack.c.bf16 %v9701_v45, %v9699_v33 }
0x1221   :  { %v2536_v18 = vpack.c.bf16 %v9703_v2, %v9696_v1  ;;  %v2661_v35 = vpop.permute.xlu1 %2660  ;;  %v2686_v16 = vsel %vm205_vm1, %v2663_v48, 0 }
0x1222   :  { %7350 = vmatprep.mubr.msk.bf16.mxu0 %vm295_vm2, %v2535_v62  ;;  %v2683_v39 = vsel %vm205_vm1, %v2661_v35, 0 }
0x1223   :  { %7351 = vmatmul.mubr.msk.bf16.vlgmr.msra.gmra.mrb[52].mxu0 %vm295_vm2, %v2536_v18  ;;  %v9712_v38 = vpop.eup %8035 }
0x1224   :  { %7359 = vmatpush3.bf16.xpose.msra.mxu0 %v2677_v31  ;;  %v2651_v44 = vpop.permute.xlu0 %2650  ;;  %v9715_v27 = vpop.eup %8037 }
0x1225   :  { %7769 = vmatprep.subr.msk.bf16.mxu0 %vm205_vm1, %v2659_v15  ;;  %v2649_v21 = vpop.permute.xlu1 %2648 }
0x1227   :  { %v9717_v41 = vpop.eup %8039 }
0x1228   :  { %v9719_v22 = vpop.eup %8041  ;;  %v2655_v5 = vpop.permute.xlu0 %2654  ;;  %v2537_v47 = vpack.c.bf16 %v9717_v41, %v9715_v27 }
0x1229   :  { %v2653_v54 = vpop.permute.xlu1 %2652  ;;  %v2538_v53 = vpack.c.bf16 %v9719_v22, %v9712_v38 }
0x122a   :  { %7354 = vmatprep.mubr.msk.bf16.mxu0 %vm295_vm2, %v2537_v47 }
0x122b   :  { %7355 = vmatmul.mubr.msk.bf16.gmra.mrb[56].mxu0 %vm295_vm2, %v2538_v53 }
0x122c   :  { %7361 = vmatpush3.bf16.xpose.msra.mxu0 %v2680_v60  ;;  %v2830_v63 = vpop.permute.xlu0 %2829  ;;  %7366 = vmatprep.mubr.msk.bf16.mxu0 %vm205_vm1, %v2649_v21 }
0x122d   :  { %7770 = vmatprep.subr.msk.bf16.mxu0 %vm205_vm1, %v2661_v35  ;;  %7374 = vmatprep.subr.bf16.mxu1 %v2830_v63  ;;  %v2832_v6 = vpop.permute.xlu1 %2831 }
0x122e   :  { %7375 = vmatpush3.bf16.msra.mxu1 %v2830_v63 }
0x122f   :  { %7376 = vmatprep.subr.bf16.mxu1 %v2832_v6 }
0x1230   :  { %v2836_v26 = vpop.permute.xlu0 %2835 }
0x1231   :  { %v2834_v25 = vpop.permute.xlu1 %2833 }
0x1232   :  { %7377 = vmatpush3.bf16.msra.mxu1 %v2832_v6 }
0x1233   :  { %7378 = vmatprep.subr.bf16.mxu1 %v2834_v25 }
0x1234   :  { %7363 = vmatpush3.bf16.xpose.msra.mxu0 %v2683_v39 }
0x1235   :  { %7771 = vmatprep.subr.msk.bf16.mxu0 %vm205_vm1, %v2663_v48 }
0x1236   :  { %7379 = vmatpush3.bf16.msra.mxu1 %v2834_v25 }
0x1237   :  { %7380 = vmatprep.subr.bf16.mxu1 %v2836_v26 }
0x123a   :  { %7381 = vmatpush3.bf16.msra.mxu1 %v2836_v26 }
0x123c   :  { %7365 = vmatpush3.bf16.xpose.msra.mxu0 %v2686_v16 }
0x1243   :  { %7367 = vmatmul.mubr.msk.bf16.vlgmr.msra.gmra.mrb[60].mxu0 %vm205_vm1, %v2651_v44 }
0x1244   :  { %7370 = vmatprep.mubr.msk.bf16.mxu0 %vm205_vm1, %v2653_v54 }
0x124b   :  { %7371 = vmatmul.mubr.msk.bf16.gmra.mrb[64].mxu0 %vm205_vm1, %v2655_v5 }
0x12f6   :  { %v9736_v36 = vpop.f32.mrb[52].mxu0 }
0x12f7   :  { %11611 = vst [vmem:[#allocation19_spill] sm:$0xff] %v9736_v36  ;;  %v9738_v12 = vpop.f32.mrb[53].mxu0 }
0x12f8   :  { %v9740_v11 = vpop.f32.mrb[54].mxu0 }
0x12f9   :  { %11612 = vst [vmem:[#allocation20_spill] sm:$0xff] %v9740_v11  ;;  %v9742_v34 = vpop.f32.mrb[55].mxu0 }
0x12fa   :  { %11613 = vst [vmem:[#allocation21_spill] sm:$0xff] %v9742_v34 }
0x12fe   :  { %v9744_v15 = vpop.f32.mrb[56].mxu0 }
0x12ff   :  { %11614 = vst [vmem:[#allocation22_spill] sm:$0xff] %v9744_v15  ;;  %v9746_v62 = vpop.f32.mrb[57].mxu0 }
0x1300   :  { %11615 = vst [vmem:[#allocation23_spill] sm:$0xff] %v9746_v62  ;;  %v9748_v48 = vpop.f32.mrb[58].mxu0 }
0x1301   :  { %11616 = vst [vmem:[#allocation24_spill] sm:$0xff] %v9748_v48  ;;  %v9750_v18 = vpop.f32.mrb[59].mxu0 }
0x1302   :  { %11617 = vst [vmem:[#allocation25_spill] sm:$0xff] %v9750_v18 }
0x1316   :  { %v7368_v35 = vpop.f32.mrb[60].mxu0 }
0x1317   :  { %v2731_v31 = vadd.f32 %v7368_v35, %v9619_v13  ;;  %v2722_v44 = vpop.f32.mrb[61].mxu0 }
0x1318   :  { %v2723_v21 = vadd.f32 %v9624_v20, %v2722_v44  ;;  %v7369_v5 = vpop.f32.mrb[62].mxu0 }
0x1319   :  { %v2725_v47 = vpop.f32.mrb[63].mxu0  ;;  %v2759_v54 = vsel %vm295_vm2, %v2731_v31, -inf  ;;  %v2734_v53 = vadd.f32 %v7369_v5, %v9630_v9 }
0x131a   :  { %v2726_v60 = vadd.f32 %v9635_v57, %v2725_v47  ;;  %2760 = vmax.xlane.f32.xlu0 %v2759_v54  ;;  %v2753_v63 = vsel %vm295_vm2, %v2723_v21, -inf }
0x131b   :  { %2754 = vmax.xlane.f32.xlu1 %v2753_v63  ;;  %v2762_v39 = vsel %vm295_vm2, %v2734_v53, -inf }
0x131c   :  { %v2756_v6 = vsel %vm295_vm2, %v2726_v60, -inf }
0x131e   :  { %2757 = vmax.xlane.f32.xlu0 %v2756_v6  ;;  %v7372_v25 = vpop.f32.mrb[64].mxu0 }
0x131f   :  { %v2747_v26 = vadd.f32 %v7372_v25, %v9645_v58  ;;  %2763 = vmax.xlane.f32.xlu1 %v2762_v39  ;;  %v2738_v16 = vpop.f32.mrb[65].mxu0 }
0x1320   :  { %v2739_v35 = vadd.f32 %v9651_v61, %v2738_v16  ;;  %v7373_v44 = vpop.f32.mrb[66].mxu0 }
0x1321   :  { %v2741_v5 = vpop.f32.mrb[67].mxu0  ;;  %v2771_v47 = vsel %vm295_vm2, %v2747_v26, -inf  ;;  %v2750_v54 = vadd.f32 %v7373_v44, %v9658_v50 }
0x1322   :  { %v2742_v63 = vadd.f32 %v9663_v52, %v2741_v5  ;;  %2772 = vmax.xlane.f32.xlu0 %v2771_v47  ;;  %v2765_v6 = vsel %vm295_vm2, %v2739_v35, -inf }
0x1323   :  { %2766 = vmax.xlane.f32.xlu1 %v2765_v6  ;;  %v2774_v25 = vsel %vm295_vm2, %v2750_v54, -inf }
0x1324   :  { %v2768_v19 = vsel %vm295_vm2, %v2742_v63, -inf }
0x1326   :  { %2769 = vmax.xlane.f32.xlu0 %v2768_v19 }
0x1327   :  { %2775 = vmax.xlane.f32.xlu1 %v2774_v25 }
0x1338   :  { %2948 = vrot.lane.b32.xlu1 %v9576_v0, %s8375_s19 }
0x133c   :  { %2946 = vrot.lane.b32.xlu0 %v9578_v24, %s8375_s19  ;;  %2950 = vrot.lane.b32.xlu1 %v9588_v3, %s8375_s19 }
0x1340   :  { %2952 = vrot.lane.b32.xlu0 %v9586_v43, %s8375_s19  ;;  %2938 = vrot.lane.b32.xlu1 %v9578_v24, %s8376_s20 }
0x1344   :  { %2940 = vrot.lane.b32.xlu0 %v9576_v0, %s8376_s20  ;;  %2942 = vrot.lane.b32.xlu1 %v9588_v3, %s8376_s20 }
0x1348   :  { %2944 = vrot.lane.b32.xlu0 %v9586_v43, %s8376_s20  ;;  %3121 = vrot.lane.b32.xlu1 %v9576_v0, %s8377_s21 }
0x134c   :  { %3119 = vrot.lane.b32.xlu0 %v9578_v24, %s8377_s21  ;;  %3123 = vrot.lane.b32.xlu1 %v9588_v3, %s8377_s21 }
0x1350   :  { %3125 = vrot.lane.b32.xlu0 %v9586_v43, %s8377_s21 }
0x13a7   :  { %v2761_v19 = vpop.xlane.xlu0 %2760 }
0x13a8   :  { %v2779_v39 = vsub.f32 %v2731_v31, %v2761_v19  ;;  %v2755_v16 = vpop.xlane.xlu1 %2754 }
0x13a9   :  { %v2777_v44 = vsub.f32 %v2723_v21, %v2755_v16 }
0x13aa   :  { %v2789_v5 = vmul.f32 1.442695, %v2779_v39 }
0x13ab   :  { %v2785_v47 = vmul.f32 1.442695, %v2777_v44  ;;  %v2758_v6 = vpop.xlane.xlu0 %2757 }
0x13ac   :  { %v2778_v25 = vsub.f32 %v2726_v60, %v2758_v6  ;;  %v2764_v42 = vpop.xlane.xlu1 %2763  ;;  %8043 = vpow2.f32 %v2789_v5 }
0x13ad   :  { %v2780_v7 = vsub.f32 %v2734_v53, %v2764_v42  ;;  %8045 = vpow2.f32 %v2785_v47 }
0x13ae   :  { %v2787_v14 = vmul.f32 1.442695, %v2778_v25 }
0x13af   :  { %v2791_v56 = vmul.f32 1.442695, %v2780_v7  ;;  %v2773_v32 = vpop.xlane.xlu0 %2772 }
0x13b0   :  { %8047 = vpow2.f32 %v2787_v14  ;;  %v2783_v59 = vsub.f32 %v2747_v26, %v2773_v32  ;;  %v2767_v8 = vpop.xlane.xlu1 %2766 }
0x13b1   :  { %8049 = vpow2.f32 %v2791_v56  ;;  %v2781_v40 = vsub.f32 %v2739_v35, %v2767_v8 }
0x13b2   :  { %v2797_v55 = vmul.f32 1.442695, %v2783_v59 }
0x13b3   :  { %v2793_v31 = vmul.f32 1.442695, %v2781_v40  ;;  %v2770_v19 = vpop.xlane.xlu0 %2769 }
0x13b4   :  { %v2782_v21 = vsub.f32 %v2742_v63, %v2770_v19  ;;  %v2776_v39 = vpop.xlane.xlu1 %2775  ;;  %8051 = vpow2.f32 %v2797_v55 }
0x13b5   :  { %v2784_v16 = vsub.f32 %v2750_v54, %v2776_v39  ;;  %8053 = vpow2.f32 %v2793_v31 }
0x13b6   :  { %v2795_v60 = vmul.f32 1.442695, %v2782_v21  ;;  %v9792_v44 = vpop.eup %8043 }
0x13b7   :  { %v2799_v42 = vmul.f32 1.442695, %v2784_v16  ;;  %v2947_v53 = vpop.permute.xlu0 %2946  ;;  %v9795_v7 = vpop.eup %8045 }
0x13b8   :  { %8055 = vpow2.f32 %v2795_v60  ;;  %7772 = vmatprep.subr.msk.bf16.mxu1 %vm205_vm1, %v2947_v53  ;;  %v2949_v14 = vpop.permute.xlu1 %2948  ;;  %v2967_v26 = vsel %vm205_vm1, %v2947_v53, 0 }
0x13b9   :  { %8057 = vpow2.f32 %v2799_v42  ;;  %v2970_v39 = vsel %vm205_vm1, %v2949_v14, 0 }
0x13ba   :  { %v9797_v8 = vpop.eup %8047 }
0x13bb   :  { %v9799_v40 = vpop.eup %8049  ;;  %v2953_v59 = vpop.permute.xlu0 %2952  ;;  %v2825_v55 = vpack.c.bf16 %v9797_v8, %v9795_v7 }
0x13bc   :  { %v2826_v56 = vpack.c.bf16 %v9799_v40, %v9792_v44  ;;  %v2951_v32 = vpop.permute.xlu1 %2950 }
0x13bd   :  { %7382 = vmatprep.mubr.msk.bf16.mxu1 %vm295_vm2, %v2825_v55  ;;  %v2973_v53 = vsel %vm205_vm1, %v2951_v32, 0 }
0x13be   :  { %7383 = vmatmul.mubr.msk.bf16.vlgmr.msra.gmra.mrb[64].mxu1 %vm295_vm2, %v2826_v56  ;;  %v9808_v54 = vpop.eup %8051 }
0x13bf   :  { %7391 = vmatpush3.bf16.xpose.msra.mxu1 %v2967_v26  ;;  %v2941_v35 = vpop.permute.xlu0 %2940  ;;  %v9811_v5 = vpop.eup %8053 }
0x13c0   :  { %7773 = vmatprep.subr.msk.bf16.mxu1 %vm205_vm1, %v2949_v14  ;;  %v2939_v63 = vpop.permute.xlu1 %2938  ;;  %v2976_v14 = vsel %vm205_vm1, %v2953_v59, 0 }
0x13c2   :  { %v9813_v47 = vpop.eup %8055 }
0x13c3   :  { %v9815_v6 = vpop.eup %8057  ;;  %v2945_v25 = vpop.permute.xlu0 %2944  ;;  %v2827_v31 = vpack.c.bf16 %v9813_v47, %v9811_v5 }
0x13c4   :  { %v2943_v19 = vpop.permute.xlu1 %2942  ;;  %v2828_v21 = vpack.c.bf16 %v9815_v6, %v9808_v54 }
0x13c5   :  { %7386 = vmatprep.mubr.msk.bf16.mxu1 %vm295_vm2, %v2827_v31 }
0x13c6   :  { %7387 = vmatmul.mubr.msk.bf16.gmra.mrb[68].mxu1 %vm295_vm2, %v2828_v21 }
0x13c7   :  { %7393 = vmatpush3.bf16.xpose.msra.mxu1 %v2970_v39  ;;  %v3120_v16 = vpop.permute.xlu0 %3119  ;;  %7398 = vmatprep.mubr.msk.bf16.mxu1 %vm205_vm1, %v2939_v63 }
0x13c8   :  { %7774 = vmatprep.subr.msk.bf16.mxu1 %vm205_vm1, %v2951_v32  ;;  %7406 = vmatprep.subr.bf16.mxu0 %v3120_v16  ;;  %v3122_v60 = vpop.permute.xlu1 %3121 }
0x13c9   :  { %7407 = vmatpush3.bf16.msra.mxu0 %v3120_v16 }
0x13ca   :  { %7408 = vmatprep.subr.bf16.mxu0 %v3122_v60 }
0x13cb   :  { %v3126_v55 = vpop.permute.xlu0 %3125 }
0x13cc   :  { %v3124_v42 = vpop.permute.xlu1 %3123 }
0x13cd   :  { %7409 = vmatpush3.bf16.msra.mxu0 %v3122_v60 }
0x13ce   :  { %7410 = vmatprep.subr.bf16.mxu0 %v3124_v42 }
0x13cf   :  { %7395 = vmatpush3.bf16.xpose.msra.mxu1 %v2973_v53 }
0x13d0   :  { %7775 = vmatprep.subr.msk.bf16.mxu1 %vm205_vm1, %v2953_v59 }
0x13d1   :  { %7411 = vmatpush3.bf16.msra.mxu0 %v3124_v42 }
0x13d2   :  { %7412 = vmatprep.subr.bf16.mxu0 %v3126_v55 }
0x13d5   :  { %7413 = vmatpush3.bf16.msra.mxu0 %v3126_v55 }
0x13d7   :  { %7397 = vmatpush3.bf16.xpose.msra.mxu1 %v2976_v14 }
0x13de   :  { %7399 = vmatmul.mubr.msk.bf16.vlgmr.msra.gmra.mrb[72].mxu1 %vm205_vm1, %v2941_v35 }
0x13df   :  { %7402 = vmatprep.mubr.msk.bf16.mxu1 %vm205_vm1, %v2943_v19 }
0x13e6   :  { %7403 = vmatmul.mubr.msk.bf16.gmra.mrb[76].mxu1 %vm205_vm1, %v2945_v25 }
0x1491   :  { %v9832_v56 = vpop.f32.mrb[64].mxu1 }
0x1492   :  { %v9834_v32 = vpop.f32.mrb[65].mxu1 }
0x1493   :  { %v9836_v26 = vpop.f32.mrb[66].mxu1 }
0x1494   :  { %v9838_v63 = vpop.f32.mrb[67].mxu1 }
0x1499   :  { %v9840_v31 = vpop.f32.mrb[68].mxu1 }
0x149a   :  { %v9842_v21 = vpop.f32.mrb[69].mxu1 }
0x149b   :  { %v9844_v59 = vpop.f32.mrb[70].mxu1 }
0x149c   :  { %v9846_v39 = vpop.f32.mrb[71].mxu1 }
0x14b1   :  { %v7400_v35 = vpop.f32.mrb[72].mxu1 }
0x14b2   :  { %v3021_v19 = vadd.f32 %v7400_v35, %v9619_v13  ;;  %v3012_v25 = vpop.f32.mrb[73].mxu1 }
0x14b3   :  { %v3013_v16 = vadd.f32 %v9624_v20, %v3012_v25  ;;  %v7401_v60 = vpop.f32.mrb[74].mxu1 }
0x14b4   :  { %v3015_v42 = vpop.f32.mrb[75].mxu1  ;;  %v3049_v53 = vsel %vm295_vm2, %v3021_v19, -inf  ;;  %v3024_v55 = vadd.f32 %v7401_v60, %v9630_v9 }
0x14b5   :  { %v3016_v14 = vadd.f32 %v9635_v57, %v3015_v42  ;;  %3050 = vmax.xlane.f32.xlu0 %v3049_v53  ;;  %v3043_v49 = vsel %vm295_vm2, %v3013_v16, -inf }
0x14b6   :  { %3044 = vmax.xlane.f32.xlu1 %v3043_v49  ;;  %v3052_v35 = vsel %vm295_vm2, %v3024_v55, -inf }
0x14b7   :  { %v3046_v17 = vsel %vm295_vm2, %v3016_v14, -inf }
0x14b9   :  { %3047 = vmax.xlane.f32.xlu0 %v3046_v17  ;;  %v7404_v10 = vpop.f32.mrb[76].mxu1 }
0x14ba   :  { %v3037_v25 = vadd.f32 %v7404_v10, %v9645_v58  ;;  %3053 = vmax.xlane.f32.xlu1 %v3052_v35  ;;  %v3028_v51 = vpop.f32.mrb[77].mxu1 }
0x14bb   :  { %v3029_v37 = vadd.f32 %v9651_v61, %v3028_v51  ;;  %v7405_v28 = vpop.f32.mrb[78].mxu1 }
0x14bc   :  { %v3031_v60 = vpop.f32.mrb[79].mxu1  ;;  %v3061_v42 = vsel %vm295_vm2, %v3037_v25, -inf  ;;  %v3040_v53 = vadd.f32 %v7405_v28, %v9658_v50 }
0x14bd   :  { %v3032_v49 = vadd.f32 %v9663_v52, %v3031_v60  ;;  %3062 = vmax.xlane.f32.xlu0 %v3061_v42  ;;  %v3055_v17 = vsel %vm295_vm2, %v3029_v37, -inf }
0x14be   :  { %3056 = vmax.xlane.f32.xlu1 %v3055_v17  ;;  %v3064_v10 = vsel %vm295_vm2, %v3040_v53, -inf }
0x14bf   :  { %v3058_v30 = vsel %vm295_vm2, %v3032_v49, -inf }
0x14c1   :  { %3059 = vmax.xlane.f32.xlu0 %v3058_v30 }
0x14c2   :  { %3065 = vmax.xlane.f32.xlu1 %v3064_v10 }
0x14d3   :  { %3238 = vrot.lane.b32.xlu1 %v9576_v0, %s8378_s22 }
0x14d7   :  { %3236 = vrot.lane.b32.xlu0 %v9578_v24, %s8378_s22  ;;  %3240 = vrot.lane.b32.xlu1 %v9588_v3, %s8378_s22 }
0x14db   :  { %3242 = vrot.lane.b32.xlu0 %v9586_v43, %s8378_s22  ;;  %3228 = vrot.lane.b32.xlu1 %v9578_v24, %s8379_s23 }
0x14df   :  { %3230 = vrot.lane.b32.xlu0 %v9576_v0, %s8379_s23  ;;  %3232 = vrot.lane.b32.xlu1 %v9588_v3, %s8379_s23 }
0x14e3   :  { %3234 = vrot.lane.b32.xlu0 %v9586_v43, %s8379_s23 }
0x14e7   :  { %3409 = vrot.lane.b32.xlu0 %v9578_v24, %s11558_s24 }
0x1542   :  { %v3051_v30 = vpop.xlane.xlu0 %3050 }
0x1543   :  { %v3069_v28 = vsub.f32 %v3021_v19, %v3051_v30  ;;  %v3045_v51 = vpop.xlane.xlu1 %3044 }
0x1544   :  { %v3067_v35 = vsub.f32 %v3013_v16, %v3045_v51 }
0x1545   :  { %v3079_v60 = vmul.f32 1.442695, %v3069_v28 }
0x1546   :  { %v3075_v42 = vmul.f32 1.442695, %v3067_v35  ;;  %v3048_v17 = vpop.xlane.xlu0 %3047 }
0x1547   :  { %v3068_v10 = vsub.f32 %v3016_v14, %v3048_v17  ;;  %v3054_v23 = vpop.xlane.xlu1 %3053  ;;  %8059 = vpow2.f32 %v3079_v60 }
0x1548   :  { %v3070_v46 = vsub.f32 %v3024_v55, %v3054_v23  ;;  %8061 = vpow2.f32 %v3075_v42 }
0x1549   :  { %v3077_v4 = vmul.f32 1.442695, %v3068_v10 }
0x154a   :  { %v3081_v29 = vmul.f32 1.442695, %v3070_v46  ;;  %v3063_v48 = vpop.xlane.xlu0 %3062 }
0x154b   :  { %8063 = vpow2.f32 %v3077_v4  ;;  %v3073_v15 = vsub.f32 %v3037_v25, %v3063_v48  ;;  %v3057_v18 = vpop.xlane.xlu1 %3056 }
0x154c   :  { %8065 = vpow2.f32 %v3081_v29  ;;  %v3071_v24 = vsub.f32 %v3029_v37, %v3057_v18 }
0x154d   :  { %v3087_v62 = vmul.f32 1.442695, %v3073_v15 }
0x154e   :  { %v3083_v19 = vmul.f32 1.442695, %v3071_v24  ;;  %v3060_v30 = vpop.xlane.xlu0 %3059 }
0x154f   :  { %v3072_v16 = vsub.f32 %v3032_v49, %v3060_v30  ;;  %v3066_v28 = vpop.xlane.xlu1 %3065  ;;  %8067 = vpow2.f32 %v3087_v62 }
0x1550   :  { %v3074_v51 = vsub.f32 %v3040_v53, %v3066_v28  ;;  %8069 = vpow2.f32 %v3083_v19 }
0x1551   :  { %v3085_v14 = vmul.f32 1.442695, %v3072_v16  ;;  %v9882_v35 = vpop.eup %8059 }
0x1552   :  { %v3089_v23 = vmul.f32 1.442695, %v3074_v51  ;;  %v3237_v55 = vpop.permute.xlu0 %3236  ;;  %v9885_v4 = vpop.eup %8061 }
0x1553   :  { %8071 = vpow2.f32 %v3085_v14  ;;  %7776 = vmatprep.subr.msk.bf16.mxu0 %vm205_vm1, %v3237_v55  ;;  %v3239_v46 = vpop.permute.xlu1 %3238  ;;  %v3257_v18 = vsel %vm205_vm1, %v3237_v55, 0 }
0x1554   :  { %8073 = vpow2.f32 %v3089_v23  ;;  %v3260_v16 = vsel %vm205_vm1, %v3239_v46, 0 }
0x1555   :  { %v9887_v29 = vpop.eup %8063 }
0x1556   :  { %v9889_v37 = vpop.eup %8065  ;;  %v3243_v15 = vpop.permute.xlu0 %3242  ;;  %v3115_v62 = vpack.c.bf16 %v9887_v29, %v9885_v4 }
0x1557   :  { %v3116_v48 = vpack.c.bf16 %v9889_v37, %v9882_v35  ;;  %v3241_v49 = vpop.permute.xlu1 %3240  ;;  %v3266_v14 = vsel %vm205_vm1, %v3243_v15, 0 }
0x1558   :  { %7414 = vmatprep.mubr.msk.bf16.mxu0 %vm295_vm2, %v3115_v62  ;;  %v3263_v51 = vsel %vm205_vm1, %v3241_v49, 0 }
0x1559   :  { %7415 = vmatmul.mubr.msk.bf16.vlgmr.msra.gmra.mrb[68].mxu0 %vm295_vm2, %v3116_v48  ;;  %v9898_v53 = vpop.eup %8067 }
0x155a   :  { %7423 = vmatpush3.bf16.xpose.msra.mxu0 %v3257_v18  ;;  %v3231_v25 = vpop.permute.xlu0 %3230  ;;  %v9901_v60 = vpop.eup %8069 }
0x155b   :  { %7777 = vmatprep.subr.msk.bf16.mxu0 %vm205_vm1, %v3239_v46  ;;  %v3229_v30 = vpop.permute.xlu1 %3228 }
0x155d   :  { %v9903_v42 = vpop.eup %8071 }
0x155e   :  { %v9905_v17 = vpop.eup %8073  ;;  %v3235_v10 = vpop.permute.xlu0 %3234  ;;  %v3117_v24 = vpack.c.bf16 %v9903_v42, %v9901_v60 }
0x155f   :  { %v3118_v19 = vpack.c.bf16 %v9905_v17, %v9898_v53  ;;  %v3233_v23 = vpop.permute.xlu1 %3232 }
0x1560   :  { %7418 = vmatprep.mubr.msk.bf16.mxu0 %vm295_vm2, %v3117_v24 }
0x1561   :  { %7419 = vmatmul.mubr.msk.bf16.gmra.mrb[72].mxu0 %vm295_vm2, %v3118_v19 }
0x1562   :  { %7425 = vmatpush3.bf16.xpose.msra.mxu0 %v3260_v16  ;;  %v3410_v28 = vpop.permute.xlu0 %3409  ;;  %7430 = vmatprep.mubr.msk.bf16.mxu0 %vm205_vm1, %v3229_v30 }
0x1563   :  { %7778 = vmatprep.subr.msk.bf16.mxu0 %vm205_vm1, %v3241_v49  ;;  %7438 = vmatprep.subr.bf16.mxu1 %v3410_v28 }
0x1564   :  { %7439 = vmatpush3.bf16.msra.mxu1 %v3410_v28 }
0x156a   :  { %7427 = vmatpush3.bf16.xpose.msra.mxu0 %v3263_v51 }
0x156b   :  { %7779 = vmatprep.subr.msk.bf16.mxu0 %vm205_vm1, %v3243_v15 }
0x1572   :  { %7429 = vmatpush3.bf16.xpose.msra.mxu0 %v3266_v14 }
0x1579   :  { %7431 = vmatmul.mubr.msk.bf16.vlgmr.msra.gmra.mrb[76].mxu0 %vm205_vm1, %v3231_v25 }
0x157a   :  { %7434 = vmatprep.mubr.msk.bf16.mxu0 %vm205_vm1, %v3233_v23 }
0x1581   :  { %7435 = vmatmul.mubr.msk.bf16.gmra.mrb[80].mxu0 %vm205_vm1, %v3235_v10 }
0x162c   :  { %v9922_v55 = vpop.f32.mrb[68].mxu0 }
0x162d   :  { %v9924_v46 = vpop.f32.mrb[69].mxu0 }
0x162e   :  { %v9926_v62 = vpop.f32.mrb[70].mxu0 }
0x162f   :  { %v9928_v48 = vpop.f32.mrb[71].mxu0 }
0x1634   :  { %v9930_v18 = vpop.f32.mrb[72].mxu0 }
0x1635   :  { %v9932_v49 = vpop.f32.mrb[73].mxu0 }
0x1636   :  { %v9934_v15 = vpop.f32.mrb[74].mxu0 }
0x1637   :  { %v9936_v24 = vpop.f32.mrb[75].mxu0 }
0x164c   :  { %v7432_v25 = vpop.f32.mrb[76].mxu0 }
0x164d   :  { %v3311_v19 = vadd.f32 %v7432_v25, %v9619_v13  ;;  %v3302_v10 = vpop.f32.mrb[77].mxu0 }
0x164e   :  { %v3303_v30 = vadd.f32 %v9624_v20, %v3302_v10  ;;  %v7433_v16 = vpop.f32.mrb[78].mxu0 }
0x164f   :  { %v3305_v28 = vpop.f32.mrb[79].mxu0  ;;  %v3339_v51 = vsel %vm295_vm2, %v3311_v19, -inf  ;;  %v3314_v14 = vadd.f32 %v7433_v16, %v9630_v9 }
0x1650   :  { %v3306_v23 = vadd.f32 %v9635_v57, %v3305_v28  ;;  %3340 = vmax.xlane.f32.xlu0 %v3339_v51  ;;  %v3333_v11 = vsel %vm295_vm2, %v3303_v30, -inf }
0x1651   :  { %3334 = vmax.xlane.f32.xlu1 %v3333_v11  ;;  %v3342_v13 = vsel %vm295_vm2, %v3314_v14, -inf }
0x1652   :  { %v3336_v36 = vsel %vm295_vm2, %v3306_v23, -inf }
0x1654   :  { %3337 = vmax.xlane.f32.xlu0 %v3336_v36  ;;  %v7436_v34 = vpop.f32.mrb[80].mxu0 }
0x1655   :  { %v9947_v20 = vadd.f32 %v7436_v34, %v9645_v58  ;;  %3343 = vmax.xlane.f32.xlu1 %v3342_v13  ;;  %v3318_v25 = vpop.f32.mrb[81].mxu0  ;;  %v2807_v34 = vsel %vm295_vm2, %v9792_v44, 0.0  ;;  %v3100_v44 = vsel %vm295_vm2, %v9889_v37, 0.0 }
0x1656   :  { %v3319_v10 = vadd.f32 %v9651_v61, %v3318_v25  ;;  %v7437_v9 = vpop.f32.mrb[82].mxu0 }
0x1657   :  { %v3321_v16 = vpop.f32.mrb[83].mxu0  ;;  %v3351_v57 = vsel %vm295_vm2, %v9947_v20, -inf  ;;  %v9953_v11 = vadd.f32 %v7437_v9, %v9658_v50  ;;  %v2804_v50 = vsel %vm295_vm2, %v9797_v8, 0.0  ;;  %v3097_v8 = vsel %vm295_vm2, %v9882_v35, 0.0 }
0x1658   :  { %v3345_v36 = vsel %vm295_vm2, %v3319_v10, -inf  ;;  %v3322_v28 = vadd.f32 %v9663_v52, %v3321_v16  ;;  %v2801_v52 = vsel %vm295_vm2, %v9795_v7, 0.0  ;;  %v2813_v7 = vsel %vm295_vm2, %v9811_v5, 0.0 }
0x1659   :  { %3352 = vmax.xlane.f32.xlu1 %v3351_v57  ;;  %3346 = vmax.xlane.f32.xlu0 %v3345_v36  ;;  %v3354_v58 = vsel %vm295_vm2, %v9953_v11, -inf }
0x165a   :  { %v3348_v61 = vsel %vm295_vm2, %v3322_v28, -inf }
0x165d   :  { %3355 = vmax.xlane.f32.xlu1 %v3354_v58 }
0x1661   :  { %3349 = vmax.xlane.f32.xlu1 %v3348_v61 }
0x166f   :  { %3413 = vrot.lane.b32.xlu0 %v9588_v3, %s11558_s24  ;;  %v2810_v3 = vsel %vm295_vm2, %v9799_v40, 0.0  ;;  %v2816_v40 = vsel %vm295_vm2, %v9813_v47, 0.0 }
0x1672   :  { %3411 = vrot.lane.b32.xlu1 %v9576_v0, %s11558_s24  ;;  %v3091_v0 = vsel %vm295_vm2, %v9885_v4, 0.0 }
0x1673   :  { %3415 = vrot.lane.b32.xlu0 %v9586_v43, %s11558_s24  ;;  %v3094_v43 = vsel %vm295_vm2, %v9887_v29, 0.0 }
0x1692   :  { %2805 = vadd.xlane.f32.xlu0 %v2804_v50 }
0x1696   :  { %2802 = vadd.xlane.f32.xlu1 %v2801_v52  ;;  %2808 = vadd.xlane.f32.xlu0 %v2807_v34 }
0x169a   :  { %2811 = vadd.xlane.f32.xlu1 %v2810_v3  ;;  %3092 = vadd.xlane.f32.xlu0 %v3091_v0 }
0x169e   :  { %3095 = vadd.xlane.f32.xlu1 %v3094_v43  ;;  %3098 = vadd.xlane.f32.xlu0 %v3097_v8 }
0x16a2   :  { %3101 = vadd.xlane.f32.xlu1 %v3100_v44  ;;  %2814 = vadd.xlane.f32.xlu0 %v2813_v7 }
0x16a6   :  { %2817 = vadd.xlane.f32.xlu1 %v2816_v40 }
0x16dd   :  { %v3341_v4 = vpop.xlane.xlu0 %3340 }
0x16de   :  { %v3359_v51 = vsub.f32 %v3311_v19, %v3341_v4  ;;  %v3335_v29 = vpop.xlane.xlu1 %3334 }
0x16df   :  { %v3357_v13 = vsub.f32 %v3303_v30, %v3335_v29 }
0x16e0   :  { %v3369_v25 = vmul.f32 1.442695, %v3359_v51 }
0x16e1   :  { %v3365_v35 = vmul.f32 1.442695, %v3357_v13  ;;  %v3338_v9 = vpop.xlane.xlu0 %3337 }
0x16e2   :  { %8075 = vpow2.f32 %v3369_v25  ;;  %v3358_v16 = vsub.f32 %v3306_v23, %v3338_v9  ;;  %v3344_v57 = vpop.xlane.xlu1 %3343  ;;  %v3103_v25 = vsel %vm295_vm2, %v9901_v60, 0.0 }
0x16e3   :  { %v3360_v37 = vsub.f32 %v3314_v14, %v3344_v57  ;;  %8077 = vpow2.f32 %v3365_v35  ;;  %v2822_v35 = vsel %vm295_vm2, %v9815_v6, 0.0 }
0x16e4   :  { %v3367_v36 = vmul.f32 1.442695, %v3358_v16  ;;  %v3109_v16 = vsel %vm295_vm2, %v9898_v53, 0.0 }
0x16e5   :  { %v3371_v5 = vmul.f32 1.442695, %v3360_v37  ;;  %v3106_v37 = vsel %vm295_vm2, %v9903_v42, 0.0 }
0x16e6   :  { %8079 = vpow2.f32 %v3367_v36  ;;  %v3353_v58 = vpop.xlane.xlu1 %3352  ;;  %v3347_v61 = vpop.xlane.xlu0 %3346 }
0x16e7   :  { %8081 = vpow2.f32 %v3371_v5  ;;  %v3361_v47 = vsub.f32 %v3319_v10, %v3347_v61  ;;  %v3363_v14 = vsub.f32 %v9947_v20, %v3353_v58  ;;  %v3112_v5 = vsel %vm295_vm2, %v9905_v17, 0.0 }
0x16e8   :  { %v2517_v17 = vsel %vm295_vm2, %v9696_v1, 0.0  ;;  %v2526_v1 = vsel %vm295_vm2, %v9717_v41, 0.0 }
0x16e9   :  { %v3373_v34 = vmul.f32 1.442695, %v3361_v47  ;;  %v2511_v47 = vsel %vm295_vm2, %v9699_v33, 0.0  ;;  %v2529_v33 = vsel %vm295_vm2, %v9712_v38, 0.0 }
0x16ea   :  { %v3356_v50 = vpop.xlane.xlu1 %3355  ;;  %v3414_v51 = vpop.permute.xlu0 %3413 }
0x16eb   :  { %v3364_v8 = vsub.f32 %v9953_v11, %v3356_v50  ;;  %8083 = vpow2.f32 %v3373_v34  ;;  %v2819_v11 = vsel %vm295_vm2, %v9808_v54, 0.0 }
0x16ec   :  { %v8076_v52 = vpop.eup %8075 }
0x16ed   :  { %v3387_v19 = vsel %vm295_vm2, %v8076_v52, 0.0  ;;  %v8078_v30 = vpop.eup %8077  ;;  %v3379_v20 = vmul.f32 1.442695, %v3364_v8 }
0x16ee   :  { %3388 = vadd.xlane.f32.xlu0 %v3387_v19  ;;  %v3350_v3 = vpop.xlane.xlu1 %3349  ;;  %v3381_v7 = vsel %vm295_vm2, %v8078_v30, 0.0  ;;  %v3416_v13 = vpop.permute.xlu0 %3415  ;;  %v2523_v19 = vsel %vm295_vm2, %v9715_v27, 0.0 }
0x16ef   :  { %v3362_v0 = vsub.f32 %v3322_v28, %v3350_v3  ;;  %v3377_v28 = vmul.f32 1.442695, %v3363_v14 }
0x16f0   :  { %v8080_v23 = vpop.eup %8079 }
0x16f1   :  { %v8082_v43 = vpop.eup %8081  ;;  %v3375_v44 = vmul.f32 1.442695, %v3362_v0  ;;  %v3405_v40 = vpack.c.bf16 %v8080_v23, %v8078_v30  ;;  %v3384_v29 = vsel %vm295_vm2, %v8080_v23, 0.0  ;;  %v2520_v30 = vsel %vm295_vm2, %v9703_v2, 0.0 }
0x16f2   :  { %3382 = vadd.xlane.f32.xlu0 %v3381_v7  ;;  %v3412_v10 = vpop.permute.xlu1 %3411  ;;  %v3390_v4 = vsel %vm295_vm2, %v8082_v43, 0.0  ;;  %v3406_v57 = vpack.c.bf16 %v8082_v43, %v8076_v52  ;;  %v2514_v52 = vsel %vm295_vm2, %v9701_v45, 0.0  ;;  %v2532_v45 = vsel %vm295_vm2, %v9719_v22, 0.0 }
0x16f3   :  { %8085 = vpow2.f32 %v3375_v44  ;;  %7446 = vmatprep.mubr.msk.bf16.mxu1 %vm295_vm2, %v3405_v40  ;;  %3391 = vadd.xlane.f32.xlu1 %v3390_v4 }
0x16f4   :  { %7440 = vmatprep.subr.bf16.mxu1 %v3412_v10  ;;  %8087 = vpow2.f32 %v3377_v28 }
0x16f5   :  { %7441 = vmatpush3.bf16.msra.mxu1 %v3412_v10  ;;  %8089 = vpow2.f32 %v3379_v20  ;;  %v8084_v9 = vpop.eup %8083 }
0x16f6   :  { %7442 = vmatprep.subr.bf16.mxu1 %v3414_v51  ;;  %2820 = vadd.xlane.f32.xlu0 %v2819_v11  ;;  %v3393_v6 = vsel %vm295_vm2, %v8084_v9, 0.0 }
0x16f7   :  { %3385 = vadd.xlane.f32.xlu1 %v3384_v29 }
0x16f9   :  { %7443 = vmatpush3.bf16.msra.mxu1 %v3414_v51 }
0x16fa   :  { %7444 = vmatprep.subr.bf16.mxu1 %v3416_v13  ;;  %3104 = vadd.xlane.f32.xlu0 %v3103_v25 }
0x16fb   :  { %2823 = vadd.xlane.f32.xlu1 %v2822_v35 }
0x16fd   :  { %v8086_v54 = vpop.eup %8085  ;;  %7445 = vmatpush3.bf16.msra.mxu1 %v3416_v13 }
0x16fe   :  { %3110 = vadd.xlane.f32.xlu0 %v3109_v16  ;;  %v3407_v36 = vpack.c.bf16 %v8086_v54, %v8084_v9  ;;  %v8088_v60 = vpop.eup %8087  ;;  %v3396_v42 = vsel %vm295_vm2, %v8086_v54, 0.0 }
0x16ff   :  { %3107 = vadd.xlane.f32.xlu1 %v3106_v37  ;;  %v8090_v58 = vpop.eup %8089  ;;  %v3399_v53 = vsel %vm295_vm2, %v8088_v60, 0.0 }
0x1700   :  { %7447 = vmatmul.mubr.msk.bf16.vlgmr.msra.gmra.mrb[80].mxu1 %vm295_vm2, %v3406_v57  ;;  %v3408_v61 = vpack.c.bf16 %v8090_v58, %v8088_v60  ;;  %v3402_v50 = vsel %vm295_vm2, %v8090_v58, 0.0 }
0x1701   :  { %7450 = vmatprep.mubr.msk.bf16.mxu1 %vm295_vm2, %v3407_v36 }
0x1702   :  { %3394 = vadd.xlane.f32.xlu0 %v3393_v6 }
0x1703   :  { %3113 = vadd.xlane.f32.xlu1 %v3112_v5 }
0x1706   :  { %3400 = vadd.xlane.f32.xlu0 %v3399_v53 }
0x1707   :  { %3397 = vadd.xlane.f32.xlu1 %v3396_v42 }
0x1708   :  { %7451 = vmatmul.mubr.msk.bf16.gmra.mrb[84].mxu1 %vm295_vm2, %v3408_v61 }
0x170a   :  { %2512 = vadd.xlane.f32.xlu0 %v2511_v47 }
0x170b   :  { %3403 = vadd.xlane.f32.xlu1 %v3402_v50 }
0x170e   :  { %2518 = vadd.xlane.f32.xlu0 %v2517_v17 }
0x170f   :  { %2515 = vadd.xlane.f32.xlu1 %v2514_v52 }
0x1712   :  { %2524 = vadd.xlane.f32.xlu0 %v2523_v19 }
0x1713   :  { %2521 = vadd.xlane.f32.xlu1 %v2520_v30 }
0x1716   :  { %2530 = vadd.xlane.f32.xlu0 %v2529_v33 }
0x1717   :  { %2527 = vadd.xlane.f32.xlu1 %v2526_v1 }
0x171b   :  { %2533 = vadd.xlane.f32.xlu1 %v2532_v45 }
0x171f   :  { %v2806_v34 = vpop.xlane.xlu0 %2805 }
0x1720   :  { %8091 = vrcp.f32 %v2806_v34 }
0x1723   :  { %v2809_v27 = vpop.xlane.xlu0 %2808  ;;  %v2803_v3 = vpop.xlane.xlu1 %2802 }
0x1724   :  { %8093 = vrcp.f32 %v2803_v3 }
0x1725   :  { %8095 = vrcp.f32 %v2809_v27 }
0x1727   :  { %v3093_v2 = vpop.xlane.xlu0 %3092  ;;  %v2812_v0 = vpop.xlane.xlu1 %2811 }
0x1728   :  { %8097 = vrcp.f32 %v2812_v0 }
0x1729   :  { %8099 = vrcp.f32 %v3093_v2 }
0x172a   :  { %v8092_v14 = vpop.eup %8091 }
0x172b   :  { %v3099_v38 = vpop.xlane.xlu0 %3098  ;;  %v3096_v23 = vpop.xlane.xlu1 %3095  ;;  %v2927_v44 = vmul.f32 %v8092_v14, %v9838_v63 }
0x172c   :  { %8101 = vrcp.f32 %v3096_v23 }
0x172d   :  { %8103 = vrcp.f32 %v3099_v38 }
0x172e   :  { %v8094_v41 = vpop.eup %8093 }
0x172f   :  { %v2815_v43 = vpop.xlane.xlu0 %2814  ;;  %v3102_v8 = vpop.xlane.xlu1 %3101  ;;  %v2926_v22 = vmul.f32 %v8094_v41, %v9834_v32 }
0x1730   :  { %v8096_v7 = vpop.eup %8095  ;;  %8105 = vrcp.f32 %v3102_v8 }
0x1731   :  { %8107 = vrcp.f32 %v2815_v43  ;;  %v2934_v40 = vpack.c.bf16 %v2927_v44, %v2926_v22  ;;  %v2928_v51 = vmul.f32 %v8096_v7, %v9832_v56 }
0x1732   :  { %v8098_v10 = vpop.eup %8097 }
0x1733   :  { %v2818_v4 = vpop.xlane.xlu1 %2817  ;;  %3522 = vrot.lane.b32.xlu0 %v2934_v40, %s11556_s25  ;;  %v2929_v28 = vmul.f32 %v8098_v10, %v9836_v26  ;;  %v8100_v20 = vpop.eup %8099 }
0x1734   :  { %8109 = vrcp.f32 %v2818_v4  ;;  %v3216_v32 = vmul.f32 %v8100_v20, %v9924_v46  ;;  %v11619_v20 = vld [vmem:[#allocation19_spill] sm:$0xff] }
0x1735   :  { %v2935_v11 = vpack.c.bf16 %v2929_v28, %v2928_v51 }
0x1736   :  { %v8102_v29 = vpop.eup %8101 }
0x1737   :  { %3524 = vrot.lane.b32.xlu1 %v2935_v11, %s11556_s25  ;;  %v3217_v63 = vmul.f32 %v8102_v29, %v9928_v48  ;;  %v8104_v13 = vpop.eup %8103  ;;  %v7849_v48 = vld [vmem:[%s11503_s2 + $0x10] sm:$0xff]  }
0x1738   :  { %v3218_v54 = vmul.f32 %v8104_v13, %v9922_v55  ;;  %v7850_v55 = vld [vmem:[%s11503_s2 + $0x18] sm:$0xff]   ;;  %7454 = vmatprep.subr.bf16.mxu1 %v7849_v48  ;;  %v11620_v29 = vld [vmem:[#allocation20_spill] sm:$0xff] }
0x1739   :  { %v3224_v25 = vpack.c.bf16 %v3217_v63, %v3216_v32  ;;  %7455 = vmatpush3.bf16.msra.mxu1 %v7849_v48  ;;  %v11623_v48 = vld [vmem:[#allocation22_spill] sm:$0xff] }
0x173a   :  { %v8106_v35 = vpop.eup %8105  ;;  %7456 = vmatprep.subr.bf16.mxu1 %v7850_v55 }
0x173b   :  { %v8108_v9 = vpop.eup %8107  ;;  %3534 = vrot.lane.b32.xlu1 %v3224_v25, %s11554_s26  ;;  %v3219_v56 = vmul.f32 %v8106_v35, %v9926_v62  ;;  %v11621_v25 = vld [vmem:[#allocation23_spill] sm:$0xff] }
0x173c   :  { %v10040_v57 = vmul.f32 %v8108_v9, %v9842_v21  ;;  %v11622_v9 = vld [vmem:[#allocation25_spill] sm:$0xff] }
0x173d   :  { %v3225_v16 = vpack.c.bf16 %v3219_v56, %v3218_v54  ;;  %7457 = vmatpush3.bf16.msra.mxu1 %v7850_v55 }
0x173e   :  { %v8110_v26 = vpop.eup %8109 }
0x173f   :  { %v10043_v37 = vmul.f32 %v8110_v26, %v9846_v39  ;;  %3536 = vrot.lane.b32.xlu0 %v3225_v16, %s11554_s26 }
0x1741   :  { %v2936_v46 = vpack.c.bf16 %v10043_v37, %v10040_v57 }
0x177b   :  { %v10054_v21 = vpop.xlane.xlu0 %3388 }
0x177f   :  { %v10056_v39 = vpop.xlane.xlu0 %3382 }
0x1780   :  { %v10058_v62 = vpop.xlane.xlu1 %3391 }
0x1783   :  { %v2821_v36 = vpop.xlane.xlu0 %2820 }
0x1784   :  { %v10060_v6 = vpop.xlane.xlu1 %3385  ;;  %8111 = vrcp.f32 %v2821_v36  ;;  %v11624_v36 = vld [vmem:[#allocation24_spill] sm:$0xff] }
0x1787   :  { %v3105_v60 = vpop.xlane.xlu0 %3104 }
0x1788   :  { %v2824_v5 = vpop.xlane.xlu1 %2823 }
0x1789   :  { %8113 = vrcp.f32 %v2824_v5 }
0x178a   :  { %8115 = vrcp.f32 %v3105_v60 }
0x178b   :  { %v3111_v58 = vpop.xlane.xlu0 %3110 }
0x178c   :  { %v3108_v53 = vpop.xlane.xlu1 %3107 }
0x178d   :  { %8117 = vrcp.f32 %v3108_v53 }
0x178e   :  { %8119 = vrcp.f32 %v3111_v58  ;;  %v8112_v47 = vpop.eup %8111 }
0x178f   :  { %v3395_v42 = vpop.xlane.xlu0 %3394  ;;  %v10063_v19 = vmul.f32 %v8112_v47, %v9840_v31 }
0x1790   :  { %v3114_v61 = vpop.xlane.xlu1 %3113 }
0x1791   :  { %8121 = vrcp.f32 %v3114_v61 }
0x1793   :  { %v8114_v50 = vpop.eup %8113  ;;  %v3401_v17 = vpop.xlane.xlu0 %3400 }
0x1794   :  { %v3398_v52 = vpop.xlane.xlu1 %3397  ;;  %v10066_v30 = vmul.f32 %v8114_v50, %v9844_v59  ;;  %v8116_v33 = vpop.eup %8115 }
0x1795   :  { %v10071_v3 = vmul.f32 %v8116_v33, %v9932_v49 }
0x1796   :  { %v2937_v1 = vpack.c.bf16 %v10066_v30, %v10063_v19 }
0x1797   :  { %v8118_v45 = vpop.eup %8117  ;;  %v2513_v34 = vpop.xlane.xlu0 %2512 }
0x1798   :  { %v3404_v27 = vpop.xlane.xlu1 %3403  ;;  %v10074_v2 = vmul.f32 %v8118_v45, %v9936_v24  ;;  %v8120_v0 = vpop.eup %8119  ;;  %8123 = vrcp.f32 %v2513_v34 }
0x1799   :  { %v10079_v14 = vmul.f32 %v8120_v0, %v9930_v18 }
0x179a   :  { %v3226_v31 = vpack.c.bf16 %v10074_v2, %v10071_v3 }
0x179b   :  { %v8122_v38 = vpop.eup %8121  ;;  %v2519_v59 = vpop.xlane.xlu0 %2518 }
0x179c   :  { %v2516_v23 = vpop.xlane.xlu1 %2515  ;;  %v10082_v41 = vmul.f32 %v8122_v38, %v9934_v15  ;;  %v11618_v15 = vld [vmem:[#allocation21_spill] sm:$0xff] }
0x179d   :  { %8125 = vrcp.f32 %v2516_v23 }
0x179e   :  { %v3227_v49 = vpack.c.bf16 %v10082_v41, %v10079_v14  ;;  %8127 = vrcp.f32 %v2519_v59 }
0x179f   :  { %v2525_v24 = vpop.xlane.xlu0 %2524 }
0x17a0   :  { %v2522_v43 = vpop.xlane.xlu1 %2521 }
0x17a1   :  { %8129 = vrcp.f32 %v2522_v43 }
0x17a2   :  { %8131 = vrcp.f32 %v2525_v24  ;;  %v8124_v44 = vpop.eup %8123 }
0x17a3   :  { %v2531_v8 = vpop.xlane.xlu0 %2530  ;;  %v10087_v18 = vmul.f32 %v8124_v44, %v9738_v12 }
0x17a4   :  { %v2528_v22 = vpop.xlane.xlu1 %2527 }
0x17a5   :  { %8133 = vrcp.f32 %v2528_v22 }
0x17a6   :  { %8135 = vrcp.f32 %v2531_v8 }
0x17a7   :  { %v8126_v7 = vpop.eup %8125  ;;  %v3523_v30 = vpop.permute.xlu0 %3522 }
0x17a8   :  { %v10090_v40 = vmul.f32 %v8126_v7, %v11618_v15  ;;  %v2534_v10 = vpop.xlane.xlu1 %2533  ;;  %v8128_v4 = vpop.eup %8127 }
0x17a9   :  { %8137 = vrcp.f32 %v2534_v10  ;;  %v10095_v11 = vmul.f32 %v8128_v4, %v11619_v20 }
0x17aa   :  { %v2644_v51 = vpack.c.bf16 %v10090_v40, %v10087_v18  ;;  %8139 = vrcp.f32 %v10054_v21 }
0x17ab   :  { %v8130_v28 = vpop.eup %8129  ;;  %8141 = vrcp.f32 %v10056_v39 }
0x17ac   :  { %v2639_v32 = vmul.f32 %v8130_v28, %v11620_v29  ;;  %v8132_v63 = vpop.eup %8131  ;;  %8143 = vrcp.f32 %v10058_v62  ;;  %v3525_v19 = vpop.permute.xlu1 %3524 }
0x17ad   :  { %v10100_v35 = vmul.f32 %v8132_v63, %v11621_v25  ;;  %8145 = vrcp.f32 %v10060_v6  ;;  %v10167_v25 = vld [vmem:[%s11501_s5 + $0x10] sm:$0xff] }
0x17ae   :  { %v2645_v13 = vpack.c.bf16 %v2639_v32, %v10095_v11  ;;  %8147 = vrcp.f32 %v3395_v42 }
0x17af   :  { %v8134_v12 = vpop.eup %8133  ;;  %8149 = vrcp.f32 %v3401_v17 }
0x17b0   :  { %v10103_v54 = vmul.f32 %v8134_v12, %v11622_v9  ;;  %v8136_v56 = vpop.eup %8135  ;;  %8151 = vrcp.f32 %v3404_v27  ;;  %v3535_v37 = vpop.permute.xlu1 %3534 }
0x17b1   :  { %v10108_v55 = vmul.f32 %v8136_v56, %v11623_v48  ;;  %8153 = vrcp.f32 %v3398_v52  ;;  %v3537_v57 = vpop.permute.xlu0 %3536 }
0x17b2   :  { %v2646_v26 = vpack.c.bf16 %v10103_v54, %v10100_v35  ;;  %v11626_v35 = vld [vmem:[#allocation4_spill] sm:$0xff] }
0x17b3   :  { %v8138_v16 = vpop.eup %8137  ;;  %v3585_v9 = vrot.slane %v10167_v25, %v11626_v35 }
0x17b4   :  { %v10111_v60 = vmul.f32 %v8138_v16, %v11624_v36  ;;  %v8140_v58 = vpop.eup %8139 }
0x17b5   :  { %v8142_v61 = vpop.eup %8141 }
0x17b6   :  { %v2647_v5 = vpack.c.bf16 %v10111_v60, %v10108_v55  ;;  %v8144_v50 = vpop.eup %8143  ;;  %v11627_v60 = vld [vmem:[#allocation10_spill] sm:$0xff] }
0x17b7   :  { %v8146_v45 = vpop.eup %8145 }
0x17b8   :  { %v8148_v6 = vpop.eup %8147 }
0x17b9   :  { %v8150_v17 = vpop.eup %8149 }
0x17ba   :  { %v8152_v52 = vpop.eup %8151 }
0x17bb   :  { %v8154_v24 = vpop.eup %8153 }
0x17d3   :  { %v7448_v53 = vpop.f32.mrb[80].mxu1 }
0x17d4   :  { %v3467_v47 = vpop.f32.mrb[81].mxu1  ;;  %v3508_v34 = vmul.f32 %v8140_v58, %v7448_v53  ;;  %v11628_v53 = vld [vmem:[#allocation11_spill] sm:$0xff] }
0x17d5   :  { %v7449_v33 = vpop.f32.mrb[82].mxu1  ;;  %v3506_v38 = vmul.f32 %v8142_v61, %v3467_v47  ;;  %v11629_v47 = vld [vmem:[#allocation13_spill] sm:$0xff] }
0x17d6   :  { %v3509_v0 = vmul.f32 %v8144_v50, %v7449_v33  ;;  %v3470_v21 = vpop.f32.mrb[83].mxu1 }
0x17d7   :  { %v3507_v39 = vmul.f32 %v8146_v45, %v3470_v21  ;;  %v11630_v45 = vld [vmem:[#allocation12_spill] sm:$0xff] }
0x17d8   :  { %v3515_v59 = vpack.c.bf16 %v3509_v0, %v3508_v34 }
0x17d9   :  { %v3514_v62 = vpack.c.bf16 %v3507_v39, %v3506_v38 }
0x17da   :  { %3548 = vrot.lane.b32.xlu0 %v3515_v59, %s11625_s11 }
0x17db   :  { %v7452_v42 = vpop.f32.mrb[84].mxu1  ;;  %3546 = vrot.lane.b32.xlu1 %v3514_v62, %s11625_s11 }
0x17dc   :  { %v3483_v27 = vpop.f32.mrb[85].mxu1  ;;  %v3512_v43 = vmul.f32 %v8150_v17, %v7452_v42 }
0x17dd   :  { %v7453_v23 = vpop.f32.mrb[86].mxu1  ;;  %v3510_v44 = vmul.f32 %v8148_v6, %v3483_v27  ;;  %v11631_v27 = vld [vmem:[#allocation14_spill] sm:$0xff] }
0x17de   :  { %v3513_v8 = vmul.f32 %v8152_v52, %v7453_v23  ;;  %v3486_v22 = vpop.f32.mrb[87].mxu1  ;;  %3528 = vrot.lane.b32.xlu0 %v2937_v1, %s11556_s25  ;;  %v3556_v1 = vsel %vm205_vm1, %v2644_v51, %v3523_v30 }
0x17df   :  { %v3511_v7 = vmul.f32 %v8154_v24, %v3486_v22  ;;  %3526 = vrot.lane.b32.xlu1 %v2936_v46, %s11556_s25  ;;  %v3559_v46 = vsel %vm205_vm1, %v2645_v13, %v3525_v19  ;;  %v3567_v41 = vsel %vm1399_vm3, %v3556_v1, %v3535_v37  ;;  %v11633_v22 = vld [vmem:[#allocation15_spill] sm:$0xff] }
0x17e0   :  { %v3517_v15 = vpack.c.bf16 %v3513_v8, %v3512_v43  ;;  %v3569_v2 = vsel %vm1399_vm3, %v3559_v46, %v3537_v57  ;;  %v11632_v43 = vld [vmem:[#allocation16_spill] sm:$0xff] }
0x17e1   :  { %v3516_v10 = vpack.c.bf16 %v3511_v7, %v3510_v44 }
0x17e2   :  { %3540 = vrot.lane.b32.xlu0 %v3227_v49, %s11554_s26 }
0x17e3   :  { %3538 = vrot.lane.b32.xlu1 %v3226_v31, %s11554_s26 }
0x17e6   :  { %3552 = vrot.lane.b32.xlu0 %v3517_v15, %s11625_s11  ;;  %v11634_v15 = vld [vmem:[#allocation17_spill] sm:$0xff] }
0x17e7   :  { %3550 = vrot.lane.b32.xlu1 %v3516_v10, %s11625_s11 }
0x184c   :  { %v3549_v14 = vpop.permute.xlu0 %3548 }
0x184d   :  { %v3547_v3 = vpop.permute.xlu1 %3546  ;;  %v3577_v49 = vsel %vm1408_vm4, %v3569_v2, %v3549_v14 }
0x184e   :  { %v3575_v31 = vsel %vm1408_vm4, %v3567_v41, %v3547_v3 }
0x184f   :  { %7458 = vmatprep.mubr.msk.bf16.mxu1 %vm111_vm0, %v3575_v31 }
0x1850   :  { %v3529_v4 = vpop.permute.xlu0 %3528  ;;  %7459 = vmatmul.mubr.msk.bf16.vlgmr.msra.gmra.mrb[88].mxu1 %vm111_vm0, %v3577_v49 }
0x1851   :  { %v3527_v28 = vpop.permute.xlu1 %3526  ;;  %v3565_v11 = vsel %vm205_vm1, %v2647_v5, %v3529_v4 }
0x1852   :  { %v3562_v40 = vsel %vm205_vm1, %v2646_v26, %v3527_v28 }
0x1854   :  { %v3541_v20 = vpop.permute.xlu0 %3540 }
0x1855   :  { %v3539_v18 = vpop.permute.xlu1 %3538  ;;  %v3573_v63 = vsel %vm1399_vm3, %v3565_v11, %v3541_v20 }
0x1856   :  { %v3571_v29 = vsel %vm1399_vm3, %v3562_v40, %v3539_v18 }
0x1858   :  { %v3553_v51 = vpop.permute.xlu0 %3552 }
0x1859   :  { %v3551_v32 = vpop.permute.xlu1 %3550  ;;  %v3581_v12 = vsel %vm1408_vm4, %v3573_v63, %v3553_v51 }
0x185a   :  { %v3579_v13 = vsel %vm1408_vm4, %v3571_v29, %v3551_v32 }
0x185b   :  { %7462 = vmatprep.mubr.msk.bf16.mxu1 %vm111_vm0, %v3579_v13 }
0x185c   :  { %7463 = vmatmul.mubr.msk.bf16.gmra.mrb[92].mxu1 %vm111_vm0, %v3581_v12 }
0x1923   :  { %v7460_v54 = vpop.f32.mrb[88].mxu1 }
0x1924   :  { %v3640_v56 = vpop.f32.mrb[89].mxu1  ;;  %v3649_v36 = vadd.f32 %v7460_v54, %v3585_v9 }
0x1925   :  { %v3641_v26 = vadd.f32 %v3640_v56, %v3585_v9  ;;  %v7461_v16 = vpop.f32.mrb[90].mxu1 }
0x1926   :  { %v3652_v48 = vadd.f32 %v7461_v16, %v3585_v9  ;;  %v3643_v55 = vpop.f32.mrb[91].mxu1  ;;  %v3673_v34 = vadd.f32 %v3649_v36, %v11630_v45 }
0x1927   :  { %v3671_v5 = vadd.f32 %v3641_v26, %v11627_v60  ;;  %v3644_v58 = vadd.f32 %v3643_v55, %v3585_v9 }
0x1928   :  { %v3674_v61 = vadd.f32 %v3652_v48, %v11628_v53  ;;  %v3685_v39 = vsel %vm111_vm0, %v3673_v34, 0.0 }
0x1929   :  { %v3672_v50 = vadd.f32 %v3644_v58, %v11629_v47  ;;  %v3679_v33 = vsel %vm111_vm0, %v3671_v5, 0.0 }
0x192a   :  { %3680 = vadd.xlane.f32.xlu1 %v3679_v33  ;;  %v3688_v21 = vsel %vm111_vm0, %v3674_v61, 0.0 }
0x192b   :  { %v3682_v0 = vsel %vm111_vm0, %v3672_v50, 0.0 }
0x192c   :  { %3683 = vadd.xlane.f32.xlu0 %v3682_v0 }
0x192e   :  { %3689 = vadd.xlane.f32.xlu1 %v3688_v21 }
0x192f   :  { %v7464_v38 = vpop.f32.mrb[92].mxu1 }
0x1930   :  { %3686 = vadd.xlane.f32.xlu0 %v3685_v39  ;;  %v3656_v59 = vpop.f32.mrb[93].mxu1  ;;  %v3665_v62 = vadd.f32 %v7464_v38, %v3585_v9 }
0x1931   :  { %v3657_v6 = vadd.f32 %v3656_v59, %v3585_v9  ;;  %v7465_v42 = vpop.f32.mrb[94].mxu1 }
0x1932   :  { %v3659_v17 = vpop.f32.mrb[95].mxu1  ;;  %v3668_v23 = vadd.f32 %v7465_v42, %v3585_v9  ;;  %v3677_v8 = vadd.f32 %v3665_v62, %v11632_v43  ;;  %v7851_v62 = vld [vmem:[%s11504_s3 + $0x10] sm:$0xff]   ;;  %v11635_v42 = vmov 0.0|0.0  }
0x1933   :  { %v3675_v52 = vadd.f32 %v3657_v6, %v11631_v27  ;;  %v3660_v24 = vadd.f32 %v3659_v17, %v3585_v9  ;;  %7466 = vmatprep.subr.bf16.mxu0 %v7851_v62  ;;  %v7852_v6 = vld [vmem:[%s11504_s3 + $0x18] sm:$0xff]   ;;  %v7853_v17 = vld [vmem:[%s11505_s4 + $0x20] sm:$0xff]  }
0x1934   :  { %v3678_v10 = vadd.f32 %v3668_v23, %v11634_v15  ;;  %v3697_v30 = vsel %vm111_vm0, %v3677_v8, 0.0  ;;  %7467 = vmatpush3.bf16.msra.mxu0 %v7851_v62  ;;  %7478 = vmatprep.subr.bf16.mxu1 %v7853_v17 }
0x1935   :  { %v3676_v44 = vadd.f32 %v3660_v24, %v11633_v22  ;;  %v3691_v7 = vsel %vm111_vm0, %v3675_v52, 0.0  ;;  %7468 = vmatprep.subr.bf16.mxu0 %v7852_v6  ;;  %7479 = vmatpush3.bf16.msra.mxu1 %v7853_v17 }
0x1936   :  { %3692 = vadd.xlane.f32.xlu0 %v3691_v7  ;;  %v3700_v57 = vsel %vm111_vm0, %v3678_v10, 0.0 }
0x1937   :  { %v3694_v19 = vsel %vm111_vm0, %v3676_v44, 0.0 }
0x1938   :  { %3695 = vadd.xlane.f32.xlu1 %v3694_v19  ;;  %7469 = vmatpush3.bf16.msra.mxu0 %v7852_v6 }
0x1939   :  { %7724 = vmatprep.subr.bf16.mxu0 %v11635_v42 }
0x193a   :  { %3698 = vadd.xlane.f32.xlu0 %v3697_v30 }
0x193c   :  { %3701 = vadd.xlane.f32.xlu1 %v3700_v57 }
0x19b7   :  { %v3681_v37 = vpop.xlane.xlu1 %3680 }
0x19b8   :  { %v3703_v46 = vmul.f32 0.03125, %v3681_v37 }
0x19b9   :  { %v3684_v1 = vpop.xlane.xlu0 %3683 }
0x19ba   :  { %v10187_v14 = vsub.f32 %v3671_v5, %v3703_v46  ;;  %v3704_v41 = vmul.f32 0.03125, %v3684_v1 }
0x19bb   :  { %v3690_v3 = vpop.xlane.xlu1 %3689 }
0x19bc   :  { %v10189_v2 = vsub.f32 %v3672_v50, %v3704_v41  ;;  %v3706_v31 = vmul.f32 0.03125, %v3690_v3  ;;  %v3719_v49 = vmul.f32 %v10187_v14, %v10187_v14 }
0x19bd   :  { %v3687_v4 = vpop.xlane.xlu0 %3686 }
0x19be   :  { %v10193_v28 = vsub.f32 %v3674_v61, %v3706_v31  ;;  %v3705_v20 = vmul.f32 0.03125, %v3687_v4  ;;  %v3727_v18 = vsel %vm111_vm0, %v3719_v49, 0.0  ;;  %v3720_v40 = vmul.f32 %v10189_v2, %v10189_v2  ;;  %v11636_v31 = vld [vmem:[#allocation5_spill] sm:$0xff] }
0x19bf   :  { %3728 = vadd.xlane.f32.xlu0 %v3727_v18  ;;  %v3786_v49 = vrot.slane %v10167_v25, %v11636_v31 }
0x19c0   :  { %v10198_v51 = vsub.f32 %v3673_v34, %v3705_v20  ;;  %v3730_v11 = vsel %vm111_vm0, %v3720_v40, 0.0  ;;  %v3722_v29 = vmul.f32 %v10193_v28, %v10193_v28 }
0x19c1   :  { %3731 = vadd.xlane.f32.xlu1 %v3730_v11 }
0x19c2   :  { %v3721_v32 = vmul.f32 %v10198_v51, %v10198_v51  ;;  %v3736_v9 = vsel %vm111_vm0, %v3722_v29, 0.0 }
0x19c3   :  { %v3693_v63 = vpop.xlane.xlu0 %3692 }
0x19c4   :  { %v3707_v13 = vmul.f32 0.03125, %v3693_v63  ;;  %v3733_v12 = vsel %vm111_vm0, %v3721_v32, 0.0 }
0x19c5   :  { %3734 = vadd.xlane.f32.xlu0 %v3733_v12  ;;  %3737 = vadd.xlane.f32.xlu1 %v3736_v9  ;;  %v3696_v54 = vpop.xlane.xlu1 %3695  ;;  %v11637_v12 = vld [vmem:[#allocation7_spill] sm:$0xff] }
0x19c6   :  { %v10207_v56 = vsub.f32 %v3675_v52, %v3707_v13  ;;  %v3708_v26 = vmul.f32 0.03125, %v3696_v54  ;;  %v7854_v52 = vld [vmem:[%s11505_s4 + $0x28] sm:$0xff]   ;;  %v3798_v9 = vrot.slane %v10167_v25, %v11637_v12 }
0x19c7   :  { %v3699_v16 = vpop.xlane.xlu0 %3698  ;;  %7480 = vmatprep.subr.bf16.mxu1 %v7854_v52 }
0x19c8   :  { %v10209_v48 = vsub.f32 %v3676_v44, %v3708_v26  ;;  %v3709_v55 = vmul.f32 0.03125, %v3699_v16  ;;  %v3723_v36 = vmul.f32 %v10207_v56, %v10207_v56  ;;  %7481 = vmatpush3.bf16.msra.mxu1 %v7854_v52 }
0x19c9   :  { %v3702_v5 = vpop.xlane.xlu1 %3701 }
0x19ca   :  { %v10213_v58 = vsub.f32 %v3677_v8, %v3709_v55  ;;  %v3710_v61 = vmul.f32 0.03125, %v3702_v5  ;;  %v3739_v50 = vsel %vm111_vm0, %v3723_v36, 0.0  ;;  %v3724_v33 = vmul.f32 %v10209_v48, %v10209_v48 }
0x19cb   :  { %3740 = vadd.xlane.f32.xlu0 %v3739_v50 }
0x19cc   :  { %v10218_v34 = vsub.f32 %v3678_v10, %v3710_v61  ;;  %v3742_v0 = vsel %vm111_vm0, %v3724_v33, 0.0  ;;  %v3725_v21 = vmul.f32 %v10213_v58, %v10213_v58 }
0x19cd   :  { %3743 = vadd.xlane.f32.xlu1 %v3742_v0 }
0x19ce   :  { %v3745_v38 = vsel %vm111_vm0, %v3725_v21, 0.0  ;;  %v3726_v39 = vmul.f32 %v10218_v34, %v10218_v34 }
0x19cf   :  { %3746 = vadd.xlane.f32.xlu0 %v3745_v38 }
0x19d0   :  { %v3748_v59 = vsel %vm111_vm0, %v3726_v39, 0.0 }
0x19d1   :  { %3749 = vadd.xlane.f32.xlu1 %v3748_v59 }
0x1a4c   :  { %v3729_v23 = vpop.xlane.xlu0 %3728 }
0x1a4d   :  { %v3751_v24 = vmul.f32 0.03125, %v3729_v23 }
0x1a4e   :  { %v3732_v8 = vpop.xlane.xlu1 %3731 }
0x1a4f   :  { %v3759_v44 = vadd.f32 1e-05, %v3751_v24  ;;  %v3752_v7 = vmul.f32 0.03125, %v3732_v8 }
0x1a51   :  { %8155 = vrsqrt.f32 %v3759_v44  ;;  %v3760_v10 = vadd.f32 1e-05, %v3752_v7 }
0x1a52   :  { %v3735_v19 = vpop.xlane.xlu0 %3734  ;;  %v3738_v30 = vpop.xlane.xlu1 %3737 }
0x1a53   :  { %8157 = vrsqrt.f32 %v3760_v10  ;;  %v3753_v57 = vmul.f32 0.03125, %v3735_v19  ;;  %v3754_v37 = vmul.f32 0.03125, %v3738_v30 }
0x1a55   :  { %v3761_v46 = vadd.f32 1e-05, %v3753_v57  ;;  %v3762_v1 = vadd.f32 1e-05, %v3754_v37 }
0x1a57   :  { %8159 = vrsqrt.f32 %v3761_v46 }
0x1a58   :  { %8161 = vrsqrt.f32 %v3762_v1  ;;  %v3741_v41 = vpop.xlane.xlu0 %3740 }
0x1a59   :  { %v3755_v3 = vmul.f32 0.03125, %v3741_v41  ;;  %v11638_v41 = vmov 0.0  }
0x1a5a   :  { %v3744_v4 = vpop.xlane.xlu1 %3743 }
0x1a5b   :  { %v8156_v20 = vpop.eup %8155  ;;  %v3763_v18 = vadd.f32 1e-05, %v3755_v3  ;;  %v3756_v40 = vmul.f32 0.03125, %v3744_v4  ;;  %v7856_v3 = vld [vmem:[%s11505_s4 + $0x38] sm:$0xff]   ;;  %v6624_v4 = vld [vmem:[%s11506_s6 + $0x40] sm:$0xff] }
0x1a5c   :  { %v3747_v11 = vpop.xlane.xlu0 %3746  ;;  %v3775_v29 = vmul.f32 %v8156_v20, %v10187_v14  ;;  %v6626_v20 = vld [vmem:[%s11506_s6 + $0x50] sm:$0xff]  ;;  %4159 = vperm.xlu0 %7823, %v6624_v4  }
0x1a5d   :  { %v8158_v32 = vpop.eup %8157  ;;  %8163 = vrsqrt.f32 %v3763_v18  ;;  %v3764_v63 = vadd.f32 1e-05, %v3756_v40  ;;  %v3757_v13 = vmul.f32 0.03125, %v3747_v11  ;;  %v10300_v18 = vld [vmem:[%s11506_s6 + $0x60] sm:$0xff]  ;;  %v6627_v40 = vld [vmem:[%s11506_s6 + $0x58] sm:$0xff]  ;;  %v11639_v11 = vmov 1  }
0x1a5e   :  { %v3750_v54 = vpop.xlane.xlu1 %3749  ;;  %v3776_v26 = vmul.f32 %v8158_v32, %v10189_v2  ;;  %v3787_v16 = vmul.f32 %v3786_v49, %v3775_v29  ;;  %v10310_v29 = vld [vmem:[%s11506_s6 + $0x68] sm:$0xff]  ;;  %v11640_v32 = vmov 0  }
0x1a5f   :  { %8165 = vrsqrt.f32 %v3764_v63  ;;  %v3765_v55 = vadd.f32 1e-05, %v3757_v13  ;;  %v3758_v36 = vmul.f32 0.03125, %v3750_v54  ;;  %v11641_v63 = vld [vmem:[#allocation9_spill] sm:$0xff] }
0x1a60   :  { %v3788_v5 = vmul.f32 %v3786_v49, %v3776_v26  ;;  %v10247_v0 = vadd.f32 %v3798_v9, %v3787_v16  ;;  %4179 = vperm.xlu0 %7823, %v10300_v18   ;;  %v3814_v13 = vrot.slane %v10167_v25, %v11641_v63 }
0x1a61   :  { %v8160_v61 = vpop.eup %8159  ;;  %8167 = vrsqrt.f32 %v3765_v55  ;;  %v3766_v50 = vadd.f32 1e-05, %v3758_v36 }
0x1a62   :  { %v8162_v33 = vpop.eup %8161  ;;  %v3777_v14 = vmul.f32 %v8160_v61, %v10198_v51  ;;  %v10249_v21 = vadd.f32 %v3798_v9, %v3788_v5 }
0x1a63   :  { %v3778_v38 = vmul.f32 %v8162_v33, %v10193_v28  ;;  %8169 = vrsqrt.f32 %v3766_v50 }
0x1a64   :  { %v3789_v39 = vmul.f32 %v3786_v49, %v3777_v14  ;;  %v3807_v2 = vpack.c.bf16 %v10249_v21, %v10247_v0 }
0x1a65   :  { %v3790_v59 = vmul.f32 %v3786_v49, %v3778_v38 }
0x1a66   :  { %v10254_v62 = vadd.f32 %v3798_v9, %v3789_v39  ;;  %7470 = vmatprep.mubr.msk.bf16.mxu0 %vm111_vm0, %v3807_v2 }
0x1a67   :  { %v8164_v6 = vpop.eup %8163  ;;  %v10257_v17 = vadd.f32 %v3798_v9, %v3790_v59 }
0x1a68   :  { %v3779_v51 = vmul.f32 %v8164_v6, %v10207_v56 }
0x1a69   :  { %v8166_v52 = vpop.eup %8165  ;;  %v3808_v23 = vpack.c.bf16 %v10257_v17, %v10254_v62 }
0x1a6a   :  { %v3780_v28 = vmul.f32 %v8166_v52, %v10209_v48  ;;  %v3791_v24 = vmul.f32 %v3786_v49, %v3779_v51 }
0x1a6b   :  { %v8168_v8 = vpop.eup %8167  ;;  %7471 = vmatmul.mubr.msk.bf16.vlgmr.msra.gmra.mrb[84].mxu0 %vm111_vm0, %v3808_v23 }
0x1a6c   :  { %v3792_v44 = vmul.f32 %v3786_v49, %v3780_v28  ;;  %v3781_v7 = vmul.f32 %v8168_v8, %v10213_v58  ;;  %v10265_v19 = vadd.f32 %v3798_v9, %v3791_v24 }
0x1a6d   :  { %v8170_v10 = vpop.eup %8169 }
0x1a6e   :  { %v10267_v30 = vadd.f32 %v3798_v9, %v3792_v44  ;;  %v3782_v56 = vmul.f32 %v8170_v10, %v10218_v34  ;;  %v3793_v57 = vmul.f32 %v3786_v49, %v3781_v7  ;;  %v7855_v34 = vld [vmem:[%s11505_s4 + $0x30] sm:$0xff]  }
0x1a6f   :  { %7482 = vmatprep.subr.bf16.mxu1 %v7855_v34 }
0x1a70   :  { %v3809_v37 = vpack.c.bf16 %v10267_v30, %v10265_v19  ;;  %v3794_v46 = vmul.f32 %v3786_v49, %v3782_v56  ;;  %v10273_v48 = vadd.f32 %v3798_v9, %v3793_v57  ;;  %7483 = vmatpush3.bf16.msra.mxu1 %v7855_v34  ;;  %v6625_v49 = vld [vmem:[%s11506_s6 + $0x48] sm:$0xff] }
0x1a71   :  { %7484 = vmatprep.subr.bf16.mxu1 %v7856_v3  ;;  %4164 = vperm.xlu1 %7824, %v6625_v49  }
0x1a72   :  { %7474 = vmatprep.mubr.msk.bf16.mxu0 %vm111_vm0, %v3809_v37  ;;  %v10275_v1 = vadd.f32 %v3798_v9, %v3794_v46  ;;  %v11642_v46 = vld [vmem:[#allocation6_spill] sm:$0xff] }
0x1a74   :  { %v3810_v58 = vpack.c.bf16 %v10275_v1, %v10273_v48  ;;  %7485 = vmatpush3.bf16.msra.mxu1 %v7856_v3 }
0x1a75   :  { %4169 = vperm.xlu1 %7824, %v6626_v20  }
0x1a76   :  { %7475 = vmatmul.mubr.msk.bf16.gmra.mrb[88].mxu0 %vm111_vm0, %v3810_v58  ;;  %v3919_v58 = vrot.slane %v10167_v25, %v11642_v46 }
0x1a77   :  { %7510 = vmatprep.mubr.msk.f32.mxu0 %vm8387_vm5, %v11638_v41 }
0x1a79   :  { %4174 = vperm.xlu1 %7824, %v6627_v40  }
0x1a7d   :  { %7825 = vset.pattern.permute.xlu1 %v11639_v11 }
0x1a7e   :  { %4214 = vperm.xlu1 %7825, %v6624_v4  }
0x1a82   :  { %4218 = vperm.xlu1 %7825, %v6625_v49  }
0x1a86   :  { %4222 = vperm.xlu1 %7825, %v6626_v20  }
0x1a8a   :  { %4226 = vperm.xlu1 %7825, %v6627_v40  }
0x1a8e   :  { %7826 = vset.pattern.permute.xlu1 %v11640_v32 }
0x1a8f   :  { %4184 = vperm.xlu1 %7826, %v10310_v29  }
0x1b3e   :  { %v7472_v9 = vpop.f32.mrb[84].mxu0 }
0x1b3f   :  { %v3882_v54 = vadd.f32 %v7472_v9, %v3814_v13  ;;  %v3873_v26 = vpop.f32.mrb[85].mxu0 }
0x1b40   :  { %v3874_v16 = vadd.f32 %v3873_v26, %v3814_v13  ;;  %v7473_v55 = vpop.f32.mrb[86].mxu0 }
0x1b41   :  { %v3885_v36 = vadd.f32 %v7473_v55, %v3814_v13  ;;  %v3876_v5 = vpop.f32.mrb[87].mxu0  ;;  %v3906_v50 = vmax.f32 %v3882_v54, 0.0 }
0x1b42   :  { %v3877_v61 = vadd.f32 %v3876_v5, %v3814_v13  ;;  %v3904_v14 = vmax.f32 %v3874_v16, 0.0 }
0x1b43   :  { %v3907_v33 = vmax.f32 %v3885_v36, 0.0 }
0x1b44   :  { %v3905_v38 = vmax.f32 %v3877_v61, 0.0 }
0x1b45   :  { %v3913_v39 = vpack.c.bf16 %v3907_v33, %v3906_v50 }
0x1b46   :  { %v3912_v2 = vpack.c.bf16 %v3905_v38, %v3904_v14 }
0x1b48   :  { %7486 = vmatprep.mubr.msk.bf16.mxu1 %vm295_vm2, %v3912_v2 }
0x1b49   :  { %7487 = vmatmul.mubr.msk.bf16.vlgmr.msra.gmra.mrb[96].mxu1 %vm295_vm2, %v3913_v39  ;;  %v7476_v59 = vpop.f32.mrb[88].mxu0 }
0x1b4a   :  { %v3898_v6 = vadd.f32 %v7476_v59, %v3814_v13  ;;  %v3889_v51 = vpop.f32.mrb[89].mxu0 }
0x1b4b   :  { %v3890_v52 = vadd.f32 %v3889_v51, %v3814_v13  ;;  %v7477_v23 = vpop.f32.mrb[90].mxu0 }
0x1b4c   :  { %v3901_v28 = vadd.f32 %v7477_v23, %v3814_v13  ;;  %v3892_v24 = vpop.f32.mrb[91].mxu0  ;;  %v3910_v44 = vmax.f32 %v3898_v6, 0.0 }
0x1b4d   :  { %v3893_v8 = vadd.f32 %v3892_v24, %v3814_v13  ;;  %v3908_v10 = vmax.f32 %v3890_v52, 0.0 }
0x1b4e   :  { %v3911_v7 = vmax.f32 %v3901_v28, 0.0 }
0x1b4f   :  { %v3909_v56 = vmax.f32 %v3893_v8, 0.0 }
0x1b50   :  { %v3915_v57 = vpack.c.bf16 %v3911_v7, %v3910_v44 }
0x1b51   :  { %v3914_v37 = vpack.c.bf16 %v3909_v56, %v3908_v10  ;;  %v10369_v10 = vpop.permute.xlu0 %4159 }
0x1b53   :  { %7490 = vmatprep.mubr.msk.bf16.mxu1 %vm295_vm2, %v3914_v37 }
0x1b54   :  { %7491 = vmatmul.mubr.msk.bf16.gmra.mrb[100].mxu1 %vm295_vm2, %v3915_v57 }
0x1b55   :  { %v10373_v57 = vpop.permute.xlu0 %4179 }
0x1c1c   :  { %v7488_v34 = vpop.f32.mrb[96].mxu1 }
0x1c1d   :  { %v3999_v3 = vadd.f32 %v7488_v34, %v3919_v58  ;;  %v3990_v49 = vpop.f32.mrb[97].mxu1 }
0x1c1e   :  { %v3991_v4 = vadd.f32 %v3990_v49, %v3919_v58  ;;  %v7489_v20 = vpop.f32.mrb[98].mxu1 }
0x1c1f   :  { %v4023_v40 = vadd.f32 %v3999_v3, %v10254_v62  ;;  %v4002_v13 = vadd.f32 %v7489_v20, %v3919_v58  ;;  %v3993_v9 = vpop.f32.mrb[99].mxu1 }
0x1c20   :  { %v3994_v54 = vadd.f32 %v3993_v9, %v3919_v58  ;;  %v4021_v26 = vadd.f32 %v3991_v4, %v10247_v0 }
0x1c21   :  { %v4024_v16 = vadd.f32 %v4002_v13, %v10257_v17  ;;  %v4035_v55 = vsel %vm111_vm0, %v4023_v40, 0.0 }
0x1c22   :  { %4036 = vadd.xlane.f32.xlu0 %v4035_v55  ;;  %v4022_v36 = vadd.f32 %v3994_v54, %v10249_v21  ;;  %v4029_v61 = vsel %vm111_vm0, %v4021_v26, 0.0 }
0x1c23   :  { %v4038_v5 = vsel %vm111_vm0, %v4024_v16, 0.0 }
0x1c24   :  { %4039 = vadd.xlane.f32.xlu1 %v4038_v5  ;;  %v4032_v62 = vsel %vm111_vm0, %v4022_v36, 0.0 }
0x1c26   :  { %4030 = vadd.xlane.f32.xlu0 %v4029_v61 }
0x1c27   :  { %v7492_v50 = vpop.f32.mrb[100].mxu1 }
0x1c28   :  { %4033 = vadd.xlane.f32.xlu1 %v4032_v62  ;;  %v4015_v33 = vadd.f32 %v7492_v50, %v3919_v58  ;;  %v4006_v14 = vpop.f32.mrb[101].mxu1 }
0x1c29   :  { %v4007_v0 = vadd.f32 %v4006_v14, %v3919_v58  ;;  %v7493_v38 = vpop.f32.mrb[102].mxu1 }
0x1c2a   :  { %v10331_v17 = vadd.f32 %v4015_v33, %v10273_v48  ;;  %v4018_v39 = vadd.f32 %v7493_v38, %v3919_v58  ;;  %v4009_v2 = vpop.f32.mrb[103].mxu1 }
0x1c2b   :  { %v4010_v21 = vadd.f32 %v4009_v2, %v3919_v58  ;;  %v10334_v59 = vadd.f32 %v4007_v0, %v10265_v19 }
0x1c2c   :  { %v10337_v6 = vadd.f32 %v4018_v39, %v10275_v1  ;;  %v4047_v51 = vsel %vm111_vm0, %v10331_v17, 0.0  ;;  %v10353_v1 = vld [vmem:[%s11506_s6 + $0x78] sm:$0xff]  ;;  %v7857_v39 = vld [vmem:[%s11499_s1 + $0x20] sm:$0xff]  }
0x1c2d   :  { %4048 = vadd.xlane.f32.xlu0 %v4047_v51  ;;  %v10342_v52 = vadd.f32 %v4010_v21, %v10267_v30  ;;  %v4041_v23 = vsel %vm111_vm0, %v10334_v59, 0.0  ;;  %v10357_v30 = vpop.permute.xlu1 %4164  ;;  %7513 = vmatprep.subr.bf16.mxu1 %v7857_v39 }
0x1c2e   :  { %v4050_v48 = vsel %vm111_vm0, %v10337_v6, 0.0  ;;  %7514 = vmatpush3.bf16.msra.mxu1 %v7857_v39 }
0x1c2f   :  { %4051 = vadd.xlane.f32.xlu1 %v4050_v48  ;;  %v4044_v19 = vsel %vm111_vm0, %v10342_v52, 0.0 }
0x1c31   :  { %4042 = vadd.xlane.f32.xlu0 %v4041_v23  ;;  %v10359_v28 = vpop.permute.xlu1 %4169 }
0x1c33   :  { %4045 = vadd.xlane.f32.xlu1 %v4044_v19 }
0x1c35   :  { %v10361_v24 = vpop.permute.xlu1 %4174 }
0x1c39   :  { %v10363_v8 = vpop.permute.xlu1 %4214 }
0x1c3d   :  { %v10365_v44 = vpop.permute.xlu1 %4218 }
0x1c41   :  { %v10367_v7 = vpop.permute.xlu1 %4222 }
0x1c44   :  { %4194 = vperm.xlu1 %7826, %v10353_v1  }
0x1c45   :  { %v10371_v56 = vpop.permute.xlu1 %4226 }
0x1c48   :  { %7828 = vset.pattern.permute.xlu1 %v11639_v11 }
0x1c49   :  { %v10375_v37 = vpop.permute.xlu1 %4184 }
0x1caf   :  { %v4037_v58 = vpop.xlane.xlu0 %4036 }
0x1cb0   :  { %v4055_v34 = vmul.f32 0.03125, %v4037_v58 }
0x1cb1   :  { %v4040_v3 = vpop.xlane.xlu1 %4039 }
0x1cb2   :  { %v10377_v49 = vsub.f32 %v4023_v40, %v4055_v34  ;;  %v4056_v4 = vmul.f32 0.03125, %v4040_v3 }
0x1cb3   :  { %v4031_v20 = vpop.xlane.xlu0 %4030 }
0x1cb4   :  { %v10379_v13 = vsub.f32 %v4024_v16, %v4056_v4  ;;  %v4053_v9 = vmul.f32 0.03125, %v4031_v20  ;;  %v4071_v54 = vmul.f32 %v10377_v49, %v10377_v49 }
0x1cb5   :  { %v4034_v55 = vpop.xlane.xlu1 %4033 }
0x1cb6   :  { %v10383_v5 = vsub.f32 %v4021_v26, %v4053_v9  ;;  %v4054_v61 = vmul.f32 0.03125, %v4034_v55  ;;  %v4083_v62 = vsel %vm111_vm0, %v4071_v54, 0.0  ;;  %v4072_v50 = vmul.f32 %v10379_v13, %v10379_v13 }
0x1cb7   :  { %4084 = vadd.xlane.f32.xlu0 %v4083_v62 }
0x1cb8   :  { %v10388_v40 = vsub.f32 %v4022_v36, %v4054_v61  ;;  %v4086_v33 = vsel %vm111_vm0, %v4072_v50, 0.0  ;;  %v4069_v16 = vmul.f32 %v10383_v5, %v10383_v5  ;;  %v6630_v36 = vld [vmem:[%s11506_s6 + $0x70] sm:$0xff] }
0x1cb9   :  { %4087 = vadd.xlane.f32.xlu1 %v4086_v33 }
0x1cba   :  { %v4077_v14 = vsel %vm111_vm0, %v4069_v16, 0.0  ;;  %v4070_v26 = vmul.f32 %v10388_v40, %v10388_v40  ;;  %v4049_v38 = vpop.xlane.xlu0 %4048 }
0x1cbb   :  { %4078 = vadd.xlane.f32.xlu0 %v4077_v14  ;;  %v4059_v21 = vmul.f32 0.03125, %v4049_v38 }
0x1cbc   :  { %v4080_v0 = vsel %vm111_vm0, %v4070_v26, 0.0  ;;  %v4052_v2 = vpop.xlane.xlu1 %4051 }
0x1cbd   :  { %4081 = vadd.xlane.f32.xlu1 %v4080_v0  ;;  %v4060_v48 = vmul.f32 0.03125, %v4052_v2  ;;  %v10409_v19 = vsub.f32 %v10331_v17, %v4059_v21 }
0x1cbe   :  { %v4043_v51 = vpop.xlane.xlu0 %4042 }
0x1cbf   :  { %v4057_v58 = vmul.f32 0.03125, %v4043_v51  ;;  %v10412_v34 = vsub.f32 %v10337_v6, %v4060_v48  ;;  %v4075_v20 = vmul.f32 %v10409_v19, %v10409_v19  ;;  %v11644_v48 = vld [vmem:[#allocation2_spill] sm:$0xff] }
0x1cc0   :  { %v4046_v23 = vpop.xlane.xlu1 %4045 }
0x1cc1   :  { %v4058_v3 = vmul.f32 0.03125, %v4046_v23  ;;  %v10415_v4 = vsub.f32 %v10334_v59, %v4057_v58  ;;  %v4076_v54 = vmul.f32 %v10412_v34, %v10412_v34  ;;  %v4095_v17 = vsel %vm111_vm0, %v4075_v20, 0.0 }
0x1cc2   :  { %v10444_v23 = vrot.slane %v10167_v25, %v11644_v48 }
0x1cc3   :  { %v10420_v9 = vsub.f32 %v10342_v52, %v4058_v3  ;;  %v4073_v55 = vmul.f32 %v10415_v4, %v10415_v4  ;;  %v4098_v6 = vsel %vm111_vm0, %v4076_v54, 0.0 }
0x1cc4   :  { %v10436_v62 = vpop.permute.xlu1 %4194 }
0x1cc5   :  { %v4074_v59 = vmul.f32 %v10420_v9, %v10420_v9  ;;  %v4089_v61 = vsel %vm111_vm0, %v4073_v55, 0.0 }
0x1cc7   :  { %v4092_v52 = vsel %vm111_vm0, %v4074_v59, 0.0 }
0x1cce   :  { %4234 = vperm.xlu1 %7828, %v10310_v29   ;;  %v7858_v29 = vld [vmem:[%s11499_s1 + $0x28] sm:$0xff]  }
0x1ccf   :  { %7515 = vmatprep.subr.bf16.mxu1 %v7858_v29 }
0x1cd0   :  { %7516 = vmatpush3.bf16.msra.mxu1 %v7858_v29 }
0x1cd1   :  { %4189 = vperm.xlu0 %7823, %v6630_v36  }
0x1cd5   :  { %7827 = vset.pattern.permute.xlu0 %v11639_v11 }
0x1cf0   :  { %4096 = vadd.xlane.f32.xlu0 %v4095_v17 }
0x1cf2   :  { %4099 = vadd.xlane.f32.xlu1 %v4098_v6 }
0x1cf4   :  { %4090 = vadd.xlane.f32.xlu0 %v4089_v61 }
0x1cf6   :  { %4093 = vadd.xlane.f32.xlu1 %v4092_v52 }
0x1d07   :  { %4238 = vperm.xlu1 %7828, %v6630_v36  }
0x1d0a   :  { %4230 = vperm.xlu0 %7827, %v10300_v18  }
0x1d0b   :  { %7830 = vset.pattern.permute.xlu1 %v11640_v32 }
0x1d0e   :  { %4242 = vperm.xlu0 %7827, %v10353_v1   ;;  %v11643_v1 = vld [vmem:[#allocation8_spill] sm:$0xff] }
0x1d0f   :  { %v10440_v29 = vrot.slane %v10167_v25, %v11643_v1 }
0x1d12   :  { %7829 = vset.pattern.permute.xlu0 %v11640_v32 }
0x1d44   :  { %v4085_v50 = vpop.xlane.xlu0 %4084 }
0x1d45   :  { %v4103_v33 = vmul.f32 0.03125, %v4085_v50 }
0x1d46   :  { %v4088_v16 = vpop.xlane.xlu1 %4087 }
0x1d47   :  { %v4111_v14 = vadd.f32 1e-05, %v4103_v33  ;;  %v4104_v26 = vmul.f32 0.03125, %v4088_v16 }
0x1d48   :  { %v4079_v0 = vpop.xlane.xlu0 %4078 }
0x1d49   :  { %8171 = vrsqrt.f32 %v4111_v14  ;;  %v4112_v38 = vadd.f32 1e-05, %v4104_v26  ;;  %v4101_v39 = vmul.f32 0.03125, %v4079_v0 }
0x1d4a   :  { %v4082_v36 = vpop.xlane.xlu1 %4081 }
0x1d4b   :  { %8173 = vrsqrt.f32 %v4112_v38  ;;  %v4109_v18 = vadd.f32 1e-05, %v4101_v39  ;;  %v4102_v2 = vmul.f32 0.03125, %v4082_v36  ;;  %v6632_v39 = vld [vmem:[%s11507_s7 + $0x40] sm:$0xff] }
0x1d4d   :  { %8175 = vrsqrt.f32 %v4109_v18  ;;  %v4110_v21 = vadd.f32 1e-05, %v4102_v2 }
0x1d4f   :  { %8177 = vrsqrt.f32 %v4110_v21 }
0x1d53   :  { %v8172_v51 = vpop.eup %8171 }
0x1d54   :  { %v4127_v58 = vmul.f32 %v8172_v51, %v10377_v49 }
0x1d55   :  { %v8174_v3 = vpop.eup %8173 }
0x1d56   :  { %v4139_v20 = vmul.f32 %v10440_v29, %v4127_v58  ;;  %v4128_v54 = vmul.f32 %v8174_v3, %v10379_v13  ;;  %v4190_v3 = vpop.permute.xlu0 %4189 }
0x1d57   :  { %v8176_v17 = vpop.eup %8175 }
0x1d58   :  { %v4140_v55 = vmul.f32 %v10440_v29, %v4128_v54  ;;  %v4125_v6 = vmul.f32 %v8176_v17, %v10383_v5  ;;  %v4151_v59 = vadd.f32 %v10444_v23, %v4139_v20  ;;  %v6634_v5 = vld [vmem:[%s11507_s7 + $0x50] sm:$0xff]  ;;  %v4235_v20 = vpop.permute.xlu1 %4234 }
0x1d59   :  { %v8178_v61 = vpop.eup %8177 }
0x1d5a   :  { %v4152_v52 = vadd.f32 %v10444_v23, %v4140_v55  ;;  %v4137_v25 = vmul.f32 %v10440_v29, %v4125_v6  ;;  %v4126_v50 = vmul.f32 %v8178_v61, %v10388_v40  ;;  %v4199_v49 = vmul.f32 %v10359_v28, %v4151_v59 }
0x1d5c   :  { %v4200_v33 = vmul.f32 %v10361_v24, %v4152_v52  ;;  %v4138_v13 = vmul.f32 %v10440_v29, %v4126_v50  ;;  %v4207_v16 = vadd.f32 %v4199_v49, %v11630_v45  ;;  %v4149_v14 = vadd.f32 %v10444_v23, %v4137_v25 }
0x1d5e   :  { %v4208_v26 = vadd.f32 %v4200_v33, %v11628_v53  ;;  %v4150_v0 = vadd.f32 %v10444_v23, %v4138_v13  ;;  %v10466_v40 = vadd.f32 %v10367_v7, %v4207_v16  ;;  %v4197_v28 = vmul.f32 %v10369_v10, %v4149_v14 }
0x1d60   :  { %11645 = vst [vmem:[#allocation21_spill] sm:$0xff] %v10466_v40  ;;  %v4255_v24 = vmul.f32 %v6634_v5, %v10466_v40  ;;  %v4205_v38 = vadd.f32 %v4197_v28, %v11627_v60  ;;  %v4198_v45 = vmul.f32 %v10357_v30, %v4150_v0  ;;  %v10476_v36 = vadd.f32 %v10371_v56, %v4208_v26  ;;  %v6633_v60 = vld [vmem:[%s11507_s7 + $0x48] sm:$0xff]  ;;  %v6635_v30 = vld [vmem:[%s11507_s7 + $0x58] sm:$0xff] }
0x1d62   :  { %11646 = vst [vmem:[#allocation19_spill] sm:$0xff] %v10476_v36  ;;  %v4267_v53 = vsel %vm111_vm0, %v4255_v24, 0.0  ;;  %v10480_v7 = vadd.f32 %v10363_v8, %v4205_v38  ;;  %v4206_v10 = vadd.f32 %v4198_v45, %v11629_v47  ;;  %v4256_v21 = vmul.f32 %v6635_v30, %v10476_v36 }
0x1d63   :  { %4268 = vadd.xlane.f32.xlu0 %v4267_v53  ;;  %v4427_v51 = vpack.c.bf16 %v10476_v36, %v10466_v40 }
0x1d64   :  { %11647 = vst [vmem:[#allocation20_spill] sm:$0xff] %v10480_v7  ;;  %v4253_v18 = vmul.f32 %v6632_v39, %v10480_v7  ;;  %v10491_v56 = vadd.f32 %v10365_v44, %v4206_v10  ;;  %v4270_v44 = vsel %vm111_vm0, %v4256_v21, 0.0  ;;  %v6638_v21 = vld [vmem:[%s11507_s7 + $0x70] sm:$0xff] }
0x1d66   :  { %11648 = vst [vmem:[#allocation23_spill] sm:$0xff] %v10491_v56  ;;  %v4261_v2 = vsel %vm111_vm0, %v4253_v18, 0.0  ;;  %v4426_v8 = vpack.c.bf16 %v10491_v56, %v10480_v7  ;;  %v4254_v47 = vmul.f32 %v6633_v60, %v10491_v56 }
0x1d67   :  { %4262 = vadd.xlane.f32.xlu1 %v4261_v2 }
0x1d68   :  { %7517 = vmatprep.mubr.msk.bf16.mxu1 %vm111_vm0, %v4426_v8  ;;  %v4264_v58 = vsel %vm111_vm0, %v4254_v47, 0.0 }
0x1d69   :  { %7518 = vmatmul.mubr.msk.bf16.vlgmr.msra.gmra.mrb[104].mxu1 %vm111_vm0, %v4427_v51  ;;  %4265 = vadd.xlane.f32.xlu0 %v4264_v58 }
0x1d6b   :  { %4271 = vadd.xlane.f32.xlu1 %v4270_v44 }
0x1d7d   :  { %v4097_v54 = vpop.xlane.xlu0 %4096 }
0x1d7e   :  { %v4107_v17 = vmul.f32 0.03125, %v4097_v54 }
0x1d7f   :  { %v4100_v55 = vpop.xlane.xlu1 %4099 }
0x1d80   :  { %v4115_v6 = vadd.f32 1e-05, %v4107_v17  ;;  %v4108_v59 = vmul.f32 0.03125, %v4100_v55 }
0x1d81   :  { %v4091_v61 = vpop.xlane.xlu0 %4090 }
0x1d82   :  { %8179 = vrsqrt.f32 %v4115_v6  ;;  %v4116_v52 = vadd.f32 1e-05, %v4108_v59  ;;  %v4105_v25 = vmul.f32 0.03125, %v4091_v61 }
0x1d83   :  { %v4094_v50 = vpop.xlane.xlu1 %4093 }
0x1d84   :  { %8181 = vrsqrt.f32 %v4116_v52  ;;  %v4113_v49 = vadd.f32 1e-05, %v4105_v25  ;;  %v4106_v33 = vmul.f32 0.03125, %v4094_v50 }
0x1d86   :  { %8183 = vrsqrt.f32 %v4113_v49  ;;  %v4114_v13 = vadd.f32 1e-05, %v4106_v33 }
0x1d87   :  { %v4239_v47 = vpop.permute.xlu1 %4238 }
0x1d88   :  { %8185 = vrsqrt.f32 %v4114_v13 }
0x1d89   :  { %v4231_v24 = vpop.permute.xlu0 %4230 }
0x1d8c   :  { %v8180_v16 = vpop.eup %8179 }
0x1d8d   :  { %v4131_v14 = vmul.f32 %v8180_v16, %v10409_v19 }
0x1d8e   :  { %v8182_v5 = vpop.eup %8181 }
0x1d8f   :  { %v4143_v26 = vmul.f32 %v10440_v29, %v4131_v14  ;;  %v4132_v0 = vmul.f32 %v8182_v5, %v10412_v34 }
0x1d90   :  { %v8184_v28 = vpop.eup %8183 }
0x1d91   :  { %v4155_v38 = vadd.f32 %v10444_v23, %v4143_v26  ;;  %v4129_v45 = vmul.f32 %v8184_v28, %v10415_v4  ;;  %v4144_v39 = vmul.f32 %v10440_v29, %v4132_v0  ;;  %v4243_v4 = vpop.permute.xlu0 %4242 }
0x1d92   :  { %v8186_v53 = vpop.eup %8185 }
0x1d93   :  { %v4130_v10 = vmul.f32 %v8186_v53, %v10420_v9  ;;  %v4203_v60 = vmul.f32 %v4190_v3, %v4155_v38  ;;  %v4141_v30 = vmul.f32 %v10440_v29, %v4129_v45  ;;  %v4156_v19 = vadd.f32 %v10444_v23, %v4144_v39  ;;  %v6648_v45 = vld [vmem:[%s11508_s9 + $0x8] sm:$0xff]  ;;  %v6730_v39 = vld [vmem:[%s11501_s5 + $0x20] sm:$0xff] }
0x1d94   :  { %v11653_v53 = vld [vmem:[#allocation3_spill] sm:$0xff] }
0x1d95   :  { %v4142_v18 = vmul.f32 %v10440_v29, %v4130_v10  ;;  %v4211_v34 = vadd.f32 %v4203_v60, %v11632_v43  ;;  %v4153_v2 = vadd.f32 %v10444_v23, %v4141_v30  ;;  %v4204_v8 = vmul.f32 %v10436_v62, %v4156_v19  ;;  %v6639_v43 = vld [vmem:[%s11507_s7 + $0x78] sm:$0xff] }
0x1d96   :  { %v4433_v10 = vrot.slane %v6730_v39, %v11653_v53 }
0x1d97   :  { %v4154_v9 = vadd.f32 %v10444_v23, %v4142_v18  ;;  %v10521_v51 = vadd.f32 %v4239_v47, %v4211_v34  ;;  %v4201_v58 = vmul.f32 %v10373_v57, %v4153_v2  ;;  %v4212_v29 = vadd.f32 %v4204_v8, %v11634_v15  ;;  %v6636_v23 = vld [vmem:[%s11507_s7 + $0x60] sm:$0xff] }
0x1d99   :  { %11649 = vst [vmem:[#allocation25_spill] sm:$0xff] %v10521_v51  ;;  %v4209_v62 = vadd.f32 %v4201_v58, %v11631_v27  ;;  %v10529_v44 = vadd.f32 %v4243_v4, %v4212_v29  ;;  %v4259_v3 = vmul.f32 %v6638_v21, %v10521_v51  ;;  %v4202_v54 = vmul.f32 %v10375_v37, %v4154_v9  ;;  %v6637_v27 = vld [vmem:[%s11507_s7 + $0x68] sm:$0xff] }
0x1d9b   :  { %11650 = vst [vmem:[#allocation22_spill] sm:$0xff] %v10529_v44  ;;  %v10536_v17 = vadd.f32 %v4231_v24, %v4209_v62  ;;  %v4279_v15 = vsel %vm111_vm0, %v4259_v3, 0.0  ;;  %v4260_v57 = vmul.f32 %v6639_v43, %v10529_v44  ;;  %v4210_v55 = vadd.f32 %v4202_v54, %v11633_v22 }
0x1d9c   :  { %4280 = vadd.xlane.f32.xlu0 %v4279_v15  ;;  %v4429_v22 = vpack.c.bf16 %v10529_v44, %v10521_v51 }
0x1d9d   :  { %11651 = vst [vmem:[#allocation24_spill] sm:$0xff] %v10536_v17  ;;  %v4282_v6 = vsel %vm111_vm0, %v4260_v57, 0.0  ;;  %v4257_v37 = vmul.f32 %v6636_v23, %v10536_v17  ;;  %v10546_v59 = vadd.f32 %v4235_v20, %v4210_v55 }
0x1d9e   :  { %4283 = vadd.xlane.f32.xlu1 %v4282_v6 }
0x1d9f   :  { %11652 = vst [vmem:[#allocation10_spill] sm:$0xff] %v10546_v59  ;;  %v4273_v61 = vsel %vm111_vm0, %v4257_v37, 0.0  ;;  %v4428_v52 = vpack.c.bf16 %v10546_v59, %v10536_v17  ;;  %v4258_v25 = vmul.f32 %v6637_v27, %v10546_v59 }
0x1da0   :  { %4274 = vadd.xlane.f32.xlu0 %v4273_v61 }
0x1da1   :  { %7521 = vmatprep.mubr.msk.bf16.mxu1 %vm111_vm0, %v4428_v52  ;;  %v4276_v50 = vsel %vm111_vm0, %v4258_v25, 0.0 }
0x1da2   :  { %4277 = vadd.xlane.f32.xlu1 %v4276_v50  ;;  %7522 = vmatmul.mubr.msk.bf16.gmra.mrb[108].mxu1 %vm111_vm0, %v4429_v22 }
0x1df0   :  { %v4269_v20 = vpop.xlane.xlu0 %4268 }
0x1df4   :  { %v4263_v49 = vpop.xlane.xlu1 %4262 }
0x1df6   :  { %v4266_v33 = vpop.xlane.xlu0 %4265 }
0x1df7   :  { %v7725_v13 = vpack.c.bf16 %v4266_v33, %v4263_v49 }
0x1df8   :  { %v4272_v16 = vpop.xlane.xlu1 %4271 }
0x1df9   :  { %7726 = vmatpush3.bf16.msra.mxu0 %v7725_v13  ;;  %v7728_v14 = vpack.c.bf16 %v4272_v16, %v4269_v20  ;;  %v6599_v13 = vld [vmem:[%s11501_s5 + $0x8] ss:$0 sm:$0xff]  ;;  %v11654_v16 = vld [vmem:[#allocation18_spill] sm:$0xff] }
0x1dfa   :  { %7727 = vmatprep.subr.bf16.mxu0 %v11635_v42 }
0x1dfd   :  { %7729 = vmatpush3.bf16.msra.mxu0 %v7728_v14  ;;  %v2195_v14 = vadd.f32 %v6599_v13, %v11654_v16 }
0x1dfe   :  { %7730 = vmatprep.subr.bf16.mxu0 %v11635_v42 }
0x1e29   :  { %v4281_v5 = vpop.xlane.xlu0 %4280 }
0x1e2b   :  { %v4284_v26 = vpop.xlane.xlu1 %4283 }
0x1e2c   :  { %v7734_v38 = vpack.c.bf16 %v4284_v26, %v4281_v5  ;;  %v6707_v5 = vld [vmem:[%s11501_s5 + $0x18] ss:$0 sm:$0xff]  ;;  %v6601_v26 = vmul.f32 -1.442695, %v2195_v14 }
0x1e2d   :  { %v4275_v0 = vpop.xlane.xlu0 %4274 }
0x1e2e   :  { %8187 = vpow2.f32 %v6601_v26 }
0x1e2f   :  { %v4278_v28 = vpop.xlane.xlu1 %4277 }
0x1e30   :  { %v7731_v24 = vpack.c.bf16 %v4278_v28, %v4275_v0 }
0x1e32   :  { %7732 = vmatpush3.bf16.msra.mxu0 %v7731_v24 }
0x1e33   :  { %7733 = vmatprep.subr.bf16.mxu0 %v11635_v42 }
0x1e36   :  { %7735 = vmatpush3.bf16.msra.mxu0 %v7734_v38 }
0x1e39   :  { %7511 = vmatmul.mubr.msk.f32.vlgmr.msra.gmra.mrb[42].mxu0 %vm295_vm2, %v6648_v45  ;;  %v8188_v45 = vpop.eup %8187 }
0x1e3a   :  { %v2201_v53 = vadd.f32 1.0, %v8188_v45 }
0x1e3c   :  { %v7519_v60 = vpop.f32.mrb[104].mxu1 }
0x1e3d   :  { %v4492_v30 = vpop.f32.mrb[105].mxu1  ;;  %v4501_v18 = vadd.f32 %v7519_v60, %v4433_v10 }
0x1e3e   :  { %v7520_v19 = vpop.f32.mrb[106].mxu1  ;;  %v4493_v8 = vadd.f32 %v4492_v30, %v4433_v10 }
0x1e3f   :  { %v4504_v34 = vadd.f32 %v7520_v19, %v4433_v10  ;;  %v4495_v2 = vpop.f32.mrb[107].mxu1 }
0x1e40   :  { %v4496_v47 = vadd.f32 %v4495_v2, %v4433_v10  ;;  %v10625_v2 = vld [vmem:[%s11502_s8 + $0x80] sm:$0xff] }
0x1e41   :  { %v10568_v4 = vpack.c.bf16 %v4504_v34, %v4501_v18  ;;  %v10620_v34 = vld [vmem:[%s11502_s8 + $0x90] sm:$0xff] }
0x1e42   :  { %v10570_v21 = vpack.c.bf16 %v4496_v47, %v4493_v8 }
0x1e43   :  { %4533 = vrot.lane.b32.xlu1 %v10568_v4, %s8370_s15 }
0x1e44   :  { %4531 = vrot.lane.b32.xlu0 %v10570_v21, %s8370_s15  ;;  %7533 = vmatprep.mubr.msk.bf16.mxu0 %vm205_vm1, %v10570_v21 }
0x1e75   :  { %v7523_v9 = vpop.f32.mrb[108].mxu1 }
0x1e76   :  { %v4508_v58 = vpop.f32.mrb[109].mxu1  ;;  %v4517_v43 = vadd.f32 %v7523_v9, %v4433_v10 }
0x1e77   :  { %v7524_v29 = vpop.f32.mrb[110].mxu1  ;;  %v4509_v54 = vadd.f32 %v4508_v58, %v4433_v10  ;;  %v10631_v58 = vld [vmem:[%s11502_s8 + $0x98] sm:$0xff] }
0x1e78   :  { %v4520_v62 = vadd.f32 %v7524_v29, %v4433_v10  ;;  %v4511_v3 = vpop.f32.mrb[111].mxu1  ;;  %v10636_v29 = vld [vmem:[%s11502_s8 + $0x88] sm:$0xff] }
0x1e79   :  { %v4512_v23 = vadd.f32 %v4511_v3, %v4433_v10 }
0x1e7a   :  { %v10578_v15 = vpack.c.bf16 %v4520_v62, %v4517_v43 }
0x1e7b   :  { %v10580_v57 = vpack.c.bf16 %v4512_v23, %v4509_v54 }
0x1e7c   :  { %4537 = vrot.lane.b32.xlu0 %v10578_v15, %s8370_s15 }
0x1e7d   :  { %4535 = vrot.lane.b32.xlu1 %v10580_v57, %s8370_s15 }
0x1e80   :  { %4704 = vrot.lane.b32.xlu0 %v10570_v21, %s8371_s16 }
0x1e81   :  { %4706 = vrot.lane.b32.xlu1 %v10568_v4, %s8371_s16 }
0x1e84   :  { %4710 = vrot.lane.b32.xlu0 %v10578_v15, %s8371_s16 }
0x1e85   :  { %4708 = vrot.lane.b32.xlu1 %v10580_v57, %s8371_s16 }
0x1eb5   :  { %v4534_v6 = vpop.permute.xlu1 %4533 }
0x1eb6   :  { %v4532_v55 = vpop.permute.xlu0 %4531  ;;  %v4555_v37 = vsel %vm205_vm1, %v4534_v6, 0 }
0x1eb7   :  { %7780 = vmatprep.subr.msk.bf16.mxu0 %vm205_vm1, %v4532_v55  ;;  %v4552_v27 = vsel %vm205_vm1, %v4532_v55, 0 }
0x1eb8   :  { %7526 = vmatpush3.bf16.xpose.msra.mxu0 %v4552_v27 }
0x1eb9   :  { %7781 = vmatprep.subr.msk.bf16.mxu0 %vm205_vm1, %v4534_v6  ;;  %v10646_v6 = vld [vmem:[%s11502_s8 + $0xb0] sm:$0xff] }
0x1ec0   :  { %7528 = vmatpush3.bf16.xpose.msra.mxu0 %v4555_v37 }
0x1eee   :  { %v4538_v61 = vpop.permute.xlu0 %4537 }
0x1eef   :  { %v4536_v52 = vpop.permute.xlu1 %4535  ;;  %v4561_v49 = vsel %vm205_vm1, %v4538_v61, 0 }
0x1ef0   :  { %7782 = vmatprep.subr.msk.bf16.mxu0 %vm205_vm1, %v4536_v52  ;;  %v4558_v25 = vsel %vm205_vm1, %v4536_v52, 0 }
0x1ef1   :  { %7530 = vmatpush3.bf16.xpose.msra.mxu0 %v4558_v25 }
0x1ef2   :  { %v4705_v22 = vpop.permute.xlu0 %4704  ;;  %7783 = vmatprep.subr.msk.bf16.mxu0 %vm205_vm1, %v4538_v61  ;;  %v10652_v61 = vld [vmem:[%s11502_s8 + $0xa0] sm:$0xff] }
0x1ef3   :  { %7541 = vmatprep.subr.bf16.mxu1 %v4705_v22  ;;  %v4707_v50 = vpop.permute.xlu1 %4706 }
0x1ef4   :  { %7542 = vmatpush3.bf16.msra.mxu1 %v4705_v22 }
0x1ef5   :  { %7543 = vmatprep.subr.bf16.mxu1 %v4707_v50 }
0x1ef6   :  { %v4711_v33 = vpop.permute.xlu0 %4710 }
0x1ef7   :  { %v4709_v20 = vpop.permute.xlu1 %4708 }
0x1ef8   :  { %7544 = vmatpush3.bf16.msra.mxu1 %v4707_v50 }
0x1ef9   :  { %7532 = vmatpush3.bf16.xpose.msra.mxu0 %v4561_v49  ;;  %7545 = vmatprep.subr.bf16.mxu1 %v4709_v20  ;;  %v10664_v49 = vld [vmem:[%s11502_s8 + $0xa8] sm:$0xff] }
0x1efc   :  { %7546 = vmatpush3.bf16.msra.mxu1 %v4709_v20  ;;  %v10659_v20 = vld [vmem:[%s11502_s8 + $0xb8] sm:$0xff]  ;;  %s11660_s8 = smov 40  }
0x1efd   :  { %7547 = vmatprep.subr.bf16.mxu1 %v4711_v33 }
0x1f00   :  { %7534 = vmatmul.mubr.msk.bf16.vlgmr.msra.gmra.mrb[92].mxu0 %vm205_vm1, %v10568_v4  ;;  %7548 = vmatpush3.bf16.msra.mxu1 %v4711_v33 }
0x1f01   :  { %7537 = vmatprep.mubr.msk.bf16.mxu0 %vm205_vm1, %v10580_v57 }
0x1f08   :  { %7538 = vmatmul.mubr.msk.bf16.gmra.mrb[96].mxu0 %vm205_vm1, %v10578_v15 }
0x1f0c   :  { %v4358_v0 = vpop.f32.mrb[42].mxu0 }
0x1f0d   :  { %v4359_v28 = vadd.f32 %v6707_v5, %v4358_v0  ;;  %v7512_v24 = vpop.f32.mrb[43].mxu0 }
0x1f0f   :  { %v6709_v38 = vmul.f32 -1.442695, %v4359_v28 }
0x1f11   :  { %8189 = vpow2.f32 %v6709_v38 }
0x1f1b   :  { %v8190_v39 = vpop.eup %8189 }
0x1f1c   :  { %v4365_v10 = vadd.f32 1.0, %v8190_v39 }
0x1f1e   :  { %8191 = vrcp.f32 %v4365_v10 }
0x1f1f   :  { %8193 = vrcp.f32 %v2201_v53 }
0x1f28   :  { %v8192_v60 = vpop.eup %8191 }
0x1f29   :  { %v4368_v30 = vmul.f32 0.5, %v8192_v60  ;;  %v8194_v19 = vpop.eup %8193 }
0x1f2b   :  { %v10615_v18 = vadd.f32 %v8194_v19, %v4368_v30 }
0x1f2d   :  { %11655 = vst [vmem:[#allocation11_spill] sm:$0xff] %v10615_v18 }
0x1fd3   :  { %v7535_v8 = vpop.f32.mrb[92].mxu0 }
0x1fd4   :  { %v4606_v47 = vadd.f32 %v7535_v8, %v10620_v34  ;;  %v4597_v9 = vpop.f32.mrb[93].mxu0 }
0x1fd5   :  { %v4598_v43 = vadd.f32 %v10625_v2, %v4597_v9  ;;  %v7536_v62 = vpop.f32.mrb[94].mxu0 }
0x1fd6   :  { %v4600_v3 = vpop.f32.mrb[95].mxu0  ;;  %v4634_v54 = vsel %vm295_vm2, %v4606_v47, -inf  ;;  %v4609_v23 = vadd.f32 %v7536_v62, %v10631_v58 }
0x1fd7   :  { %v4601_v55 = vadd.f32 %v10636_v29, %v4600_v3  ;;  %4635 = vmax.xlane.f32.xlu0 %v4634_v54  ;;  %v4628_v27 = vsel %vm295_vm2, %v4598_v43, -inf }
0x1fd8   :  { %4629 = vmax.xlane.f32.xlu1 %v4628_v27  ;;  %v4637_v25 = vsel %vm295_vm2, %v4609_v23, -inf }
0x1fd9   :  { %v4631_v37 = vsel %vm295_vm2, %v4601_v55, -inf }
0x1fdb   :  { %v7539_v52 = vpop.f32.mrb[96].mxu0  ;;  %4632 = vmax.xlane.f32.xlu0 %v4631_v37 }
0x1fdc   :  { %v4622_v22 = vadd.f32 %v7539_v52, %v10646_v6  ;;  %v4613_v50 = vpop.f32.mrb[97].mxu0  ;;  %4638 = vmax.xlane.f32.xlu1 %v4637_v25 }
0x1fdd   :  { %v4614_v33 = vadd.f32 %v10652_v61, %v4613_v50  ;;  %v7540_v13 = vpop.f32.mrb[98].mxu0 }
0x1fde   :  { %v4616_v16 = vpop.f32.mrb[99].mxu0  ;;  %v4646_v14 = vsel %vm295_vm2, %v4622_v22, -inf  ;;  %v4625_v5 = vadd.f32 %v7540_v13, %v10659_v20 }
0x1fdf   :  { %v4617_v26 = vadd.f32 %v10664_v49, %v4616_v16  ;;  %4647 = vmax.xlane.f32.xlu0 %v4646_v14  ;;  %v4640_v0 = vsel %vm295_vm2, %v4614_v33, -inf }
0x1fe0   :  { %4641 = vmax.xlane.f32.xlu1 %v4640_v0  ;;  %v4649_v24 = vsel %vm295_vm2, %v4625_v5, -inf }
0x1fe1   :  { %v4643_v28 = vsel %vm295_vm2, %v4617_v26, -inf }
0x1fe3   :  { %4644 = vmax.xlane.f32.xlu0 %v4643_v28 }
0x1fe4   :  { %4650 = vmax.xlane.f32.xlu1 %v4649_v24 }
0x1ff5   :  { %4823 = vrot.lane.b32.xlu1 %v10568_v4, %s8372_s17 }
0x1ff9   :  { %4821 = vrot.lane.b32.xlu0 %v10570_v21, %s8372_s17  ;;  %4825 = vrot.lane.b32.xlu1 %v10580_v57, %s8372_s17 }
0x1ffd   :  { %4827 = vrot.lane.b32.xlu0 %v10578_v15, %s8372_s17  ;;  %4813 = vrot.lane.b32.xlu1 %v10570_v21, %s8373_s12  ;;  %s11661_s17 = smov 8  }
0x2001   :  { %4815 = vrot.lane.b32.xlu0 %v10568_v4, %s8373_s12  ;;  %4817 = vrot.lane.b32.xlu1 %v10580_v57, %s8373_s12 }
0x2005   :  { %4819 = vrot.lane.b32.xlu0 %v10578_v15, %s8373_s12  ;;  %4996 = vrot.lane.b32.xlu1 %v10568_v4, %s8374_s18  ;;  %s11662_s12 = smov 16  }
0x2009   :  { %4994 = vrot.lane.b32.xlu0 %v10570_v21, %s8374_s18  ;;  %4998 = vrot.lane.b32.xlu1 %v10580_v57, %s8374_s18 }
0x200d   :  { %5000 = vrot.lane.b32.xlu0 %v10578_v15, %s8374_s18 }
0x2064   :  { %v4636_v38 = vpop.xlane.xlu0 %4635 }
0x2065   :  { %v4654_v45 = vsub.f32 %v4606_v47, %v4636_v38  ;;  %v4630_v39 = vpop.xlane.xlu1 %4629 }
0x2066   :  { %v4652_v53 = vsub.f32 %v4598_v43, %v4630_v39 }
0x2067   :  { %v4664_v10 = vmul.f32 1.442695, %v4654_v45 }
0x2068   :  { %v4660_v60 = vmul.f32 1.442695, %v4652_v53  ;;  %v4633_v30 = vpop.xlane.xlu0 %4632 }
0x2069   :  { %v4653_v19 = vsub.f32 %v4601_v55, %v4633_v30  ;;  %v4639_v8 = vpop.xlane.xlu1 %4638  ;;  %8195 = vpow2.f32 %v4664_v10 }
0x206a   :  { %v4655_v9 = vsub.f32 %v4609_v23, %v4639_v8  ;;  %8197 = vpow2.f32 %v4660_v60 }
0x206b   :  { %v4662_v62 = vmul.f32 1.442695, %v4653_v19 }
0x206c   :  { %v4666_v3 = vmul.f32 1.442695, %v4655_v9  ;;  %v4648_v54 = vpop.xlane.xlu0 %4647 }
0x206d   :  { %8199 = vpow2.f32 %v4662_v62  ;;  %v4658_v27 = vsub.f32 %v4622_v22, %v4648_v54  ;;  %v4642_v37 = vpop.xlane.xlu1 %4641 }
0x206e   :  { %8201 = vpow2.f32 %v4666_v3  ;;  %v4656_v52 = vsub.f32 %v4614_v33, %v4642_v37 }
0x206f   :  { %v4672_v25 = vmul.f32 1.442695, %v4658_v27 }
0x2070   :  { %v4668_v47 = vmul.f32 1.442695, %v4656_v52  ;;  %v4645_v50 = vpop.xlane.xlu0 %4644 }
0x2071   :  { %v4657_v43 = vsub.f32 %v4617_v26, %v4645_v50  ;;  %v4651_v13 = vpop.xlane.xlu1 %4650  ;;  %8203 = vpow2.f32 %v4672_v25 }
0x2072   :  { %v4659_v16 = vsub.f32 %v4625_v5, %v4651_v13  ;;  %8205 = vpow2.f32 %v4668_v47 }
0x2073   :  { %v4670_v55 = vmul.f32 1.442695, %v4657_v43  ;;  %v10697_v0 = vpop.eup %8195 }
0x2074   :  { %v4674_v23 = vmul.f32 1.442695, %v4659_v16  ;;  %v4822_v14 = vpop.permute.xlu0 %4821  ;;  %v10700_v28 = vpop.eup %8197 }
0x2075   :  { %8207 = vpow2.f32 %v4670_v55  ;;  %7784 = vmatprep.subr.msk.bf16.mxu1 %vm205_vm1, %v4822_v14  ;;  %v4824_v22 = vpop.permute.xlu1 %4823  ;;  %v4842_v39 = vsel %vm205_vm1, %v4822_v14, 0 }
0x2076   :  { %8209 = vpow2.f32 %v4674_v23  ;;  %v4845_v27 = vsel %vm205_vm1, %v4824_v22, 0 }
0x2077   :  { %v10702_v33 = vpop.eup %8199 }
0x2078   :  { %v10704_v24 = vpop.eup %8201  ;;  %v4828_v26 = vpop.permute.xlu0 %4827  ;;  %v4700_v5 = vpack.c.bf16 %v10702_v33, %v10700_v28 }
0x2079   :  { %v4701_v38 = vpack.c.bf16 %v10704_v24, %v10697_v0  ;;  %v4826_v45 = vpop.permute.xlu1 %4825  ;;  %v4851_v43 = vsel %vm205_vm1, %v4828_v26, 0 }
0x207a   :  { %7549 = vmatprep.mubr.msk.bf16.mxu1 %vm295_vm2, %v4700_v5  ;;  %v4848_v47 = vsel %vm205_vm1, %v4826_v45, 0 }
0x207b   :  { %7550 = vmatmul.mubr.msk.bf16.vlgmr.msra.gmra.mrb[112].mxu1 %vm295_vm2, %v4701_v38  ;;  %v10713_v10 = vpop.eup %8203 }
0x207c   :  { %7558 = vmatpush3.bf16.xpose.msra.mxu1 %v4842_v39  ;;  %v4816_v53 = vpop.permute.xlu0 %4815  ;;  %v10716_v30 = vpop.eup %8205 }
0x207d   :  { %7785 = vmatprep.subr.msk.bf16.mxu1 %vm205_vm1, %v4824_v22  ;;  %v4814_v60 = vpop.permute.xlu1 %4813 }
0x207f   :  { %v10718_v19 = vpop.eup %8207 }
0x2080   :  { %v10720_v8 = vpop.eup %8209  ;;  %v4820_v9 = vpop.permute.xlu0 %4819  ;;  %v4702_v62 = vpack.c.bf16 %v10718_v19, %v10716_v30 }
0x2081   :  { %v4818_v3 = vpop.permute.xlu1 %4817  ;;  %v4703_v54 = vpack.c.bf16 %v10720_v8, %v10713_v10 }
0x2082   :  { %7553 = vmatprep.mubr.msk.bf16.mxu1 %vm295_vm2, %v4702_v62 }
0x2083   :  { %7554 = vmatmul.mubr.msk.bf16.gmra.mrb[116].mxu1 %vm295_vm2, %v4703_v54 }
0x2084   :  { %7560 = vmatpush3.bf16.xpose.msra.mxu1 %v4845_v27  ;;  %v4995_v37 = vpop.permute.xlu0 %4994  ;;  %7565 = vmatprep.mubr.msk.bf16.mxu1 %vm205_vm1, %v4814_v60 }
0x2085   :  { %7786 = vmatprep.subr.msk.bf16.mxu1 %vm205_vm1, %v4826_v45  ;;  %7573 = vmatprep.subr.bf16.mxu0 %v4995_v37  ;;  %v4997_v52 = vpop.permute.xlu1 %4996 }
0x2086   :  { %7574 = vmatpush3.bf16.msra.mxu0 %v4995_v37 }
0x2087   :  { %7575 = vmatprep.subr.bf16.mxu0 %v4997_v52 }
0x2088   :  { %v5001_v50 = vpop.permute.xlu0 %5000 }
0x2089   :  { %v4999_v25 = vpop.permute.xlu1 %4998 }
0x208a   :  { %7576 = vmatpush3.bf16.msra.mxu0 %v4997_v52 }
0x208b   :  { %7577 = vmatprep.subr.bf16.mxu0 %v4999_v25 }
0x208c   :  { %7562 = vmatpush3.bf16.xpose.msra.mxu1 %v4848_v47 }
0x208d   :  { %7787 = vmatprep.subr.msk.bf16.mxu1 %vm205_vm1, %v4828_v26 }
0x208e   :  { %7578 = vmatpush3.bf16.msra.mxu0 %v4999_v25 }
0x208f   :  { %7579 = vmatprep.subr.bf16.mxu0 %v5001_v50 }
0x2092   :  { %7580 = vmatpush3.bf16.msra.mxu0 %v5001_v50 }
0x2094   :  { %7564 = vmatpush3.bf16.xpose.msra.mxu1 %v4851_v43 }
0x209b   :  { %7566 = vmatmul.mubr.msk.bf16.vlgmr.msra.gmra.mrb[120].mxu1 %vm205_vm1, %v4816_v53 }
0x209c   :  { %7569 = vmatprep.mubr.msk.bf16.mxu1 %vm205_vm1, %v4818_v3 }
0x20a3   :  { %7570 = vmatmul.mubr.msk.bf16.gmra.mrb[124].mxu1 %vm205_vm1, %v4820_v9 }
0x214e   :  { %v10737_v13 = vpop.f32.mrb[112].mxu1 }
0x214f   :  { %v10739_v16 = vpop.f32.mrb[113].mxu1 }
0x2150   :  { %v10741_v55 = vpop.f32.mrb[114].mxu1 }
0x2151   :  { %v10743_v23 = vpop.f32.mrb[115].mxu1 }
0x2156   :  { %v10745_v14 = vpop.f32.mrb[116].mxu1 }
0x2157   :  { %11656 = vst [vmem:[#allocation13_spill] sm:$0xff] %v10745_v14  ;;  %v10747_v22 = vpop.f32.mrb[117].mxu1 }
0x2158   :  { %11657 = vst [vmem:[#allocation12_spill] sm:$0xff] %v10747_v22  ;;  %v10749_v26 = vpop.f32.mrb[118].mxu1 }
0x2159   :  { %11658 = vst [vmem:[#allocation14_spill] sm:$0xff] %v10749_v26  ;;  %v10751_v5 = vpop.f32.mrb[119].mxu1 }
0x215a   :  { %11659 = vst [vmem:[#allocation16_spill] sm:$0xff] %v10751_v5 }
0x216e   :  { %v7567_v38 = vpop.f32.mrb[120].mxu1 }
0x216f   :  { %v4896_v45 = vadd.f32 %v7567_v38, %v10620_v34  ;;  %v4887_v39 = vpop.f32.mrb[121].mxu1 }
0x2170   :  { %v4888_v53 = vadd.f32 %v10625_v2, %v4887_v39  ;;  %v7568_v60 = vpop.f32.mrb[122].mxu1 }
0x2171   :  { %v4890_v9 = vpop.f32.mrb[123].mxu1  ;;  %v4924_v62 = vsel %vm295_vm2, %v4896_v45, -inf  ;;  %v4899_v3 = vadd.f32 %v7568_v60, %v10631_v58 }
0x2172   :  { %v4891_v54 = vadd.f32 %v10636_v29, %v4890_v9  ;;  %4925 = vmax.xlane.f32.xlu0 %v4924_v62  ;;  %v4918_v27 = vsel %vm295_vm2, %v4888_v53, -inf }
0x2173   :  { %4919 = vmax.xlane.f32.xlu1 %v4918_v27  ;;  %v4927_v25 = vsel %vm295_vm2, %v4899_v3, -inf }
0x2174   :  { %v4921_v37 = vsel %vm295_vm2, %v4891_v54, -inf }
0x2176   :  { %4922 = vmax.xlane.f32.xlu0 %v4921_v37  ;;  %v7571_v52 = vpop.f32.mrb[124].mxu1 }
0x2177   :  { %v4912_v47 = vadd.f32 %v7571_v52, %v10646_v6  ;;  %4928 = vmax.xlane.f32.xlu1 %v4927_v25  ;;  %v4903_v50 = vpop.f32.mrb[125].mxu1 }
0x2178   :  { %v4904_v43 = vadd.f32 %v10652_v61, %v4903_v50  ;;  %v7572_v38 = vpop.f32.mrb[126].mxu1 }
0x2179   :  { %v4906_v39 = vpop.f32.mrb[127].mxu1  ;;  %v4936_v60 = vsel %vm295_vm2, %v4912_v47, -inf  ;;  %v4915_v9 = vadd.f32 %v7572_v38, %v10659_v20 }
0x217a   :  { %v4907_v62 = vadd.f32 %v10664_v49, %v4906_v39  ;;  %4937 = vmax.xlane.f32.xlu0 %v4936_v60  ;;  %v4930_v27 = vsel %vm295_vm2, %v4904_v43, -inf }
0x217b   :  { %4931 = vmax.xlane.f32.xlu1 %v4930_v27  ;;  %v4939_v52 = vsel %vm295_vm2, %v4915_v9, -inf }
0x217c   :  { %v4933_v37 = vsel %vm295_vm2, %v4907_v62, -inf }
0x217e   :  { %4934 = vmax.xlane.f32.xlu0 %v4933_v37 }
0x217f   :  { %4940 = vmax.xlane.f32.xlu1 %v4939_v52 }
0x2190   :  { %5113 = vrot.lane.b32.xlu1 %v10568_v4, %s8375_s19 }
0x2194   :  { %5111 = vrot.lane.b32.xlu0 %v10570_v21, %s8375_s19  ;;  %5115 = vrot.lane.b32.xlu1 %v10580_v57, %s8375_s19 }
0x2198   :  { %5117 = vrot.lane.b32.xlu0 %v10578_v15, %s8375_s19  ;;  %5103 = vrot.lane.b32.xlu1 %v10570_v21, %s8376_s20 }
0x219c   :  { %5105 = vrot.lane.b32.xlu0 %v10568_v4, %s8376_s20  ;;  %5107 = vrot.lane.b32.xlu1 %v10580_v57, %s8376_s20 }
0x21a0   :  { %5109 = vrot.lane.b32.xlu0 %v10578_v15, %s8376_s20  ;;  %5286 = vrot.lane.b32.xlu1 %v10568_v4, %s8377_s21 }
0x21a4   :  { %5284 = vrot.lane.b32.xlu0 %v10570_v21, %s8377_s21  ;;  %5288 = vrot.lane.b32.xlu1 %v10580_v57, %s8377_s21 }
0x21a8   :  { %5290 = vrot.lane.b32.xlu0 %v10578_v15, %s8377_s21 }
0x21ff   :  { %v4926_v25 = vpop.xlane.xlu0 %4925 }
0x2200   :  { %v4944_v50 = vsub.f32 %v4896_v45, %v4926_v25  ;;  %v4920_v38 = vpop.xlane.xlu1 %4919 }
0x2201   :  { %v4942_v39 = vsub.f32 %v4888_v53, %v4920_v38 }
0x2202   :  { %v4954_v60 = vmul.f32 1.442695, %v4944_v50 }
0x2203   :  { %v4950_v27 = vmul.f32 1.442695, %v4942_v39  ;;  %v4923_v37 = vpop.xlane.xlu0 %4922 }
0x2204   :  { %v4943_v52 = vsub.f32 %v4891_v54, %v4923_v37  ;;  %v4929_v18 = vpop.xlane.xlu1 %4928  ;;  %8211 = vpow2.f32 %v4954_v60 }
0x2205   :  { %v4945_v48 = vsub.f32 %v4899_v3, %v4929_v18  ;;  %8213 = vpow2.f32 %v4950_v27 }
0x2206   :  { %v4952_v1 = vmul.f32 1.442695, %v4943_v52 }
0x2207   :  { %v4956_v32 = vmul.f32 1.442695, %v4945_v48  ;;  %v4938_v11 = vpop.xlane.xlu0 %4937 }
0x2208   :  { %8215 = vpow2.f32 %v4952_v1  ;;  %v4948_v46 = vsub.f32 %v4912_v47, %v4938_v11  ;;  %v4932_v63 = vpop.xlane.xlu1 %4931 }
0x2209   :  { %8217 = vpow2.f32 %v4956_v32  ;;  %v4946_v41 = vsub.f32 %v4904_v43, %v4932_v63 }
0x220a   :  { %v4962_v12 = vmul.f32 1.442695, %v4948_v46 }
0x220b   :  { %v4958_v45 = vmul.f32 1.442695, %v4946_v41  ;;  %v4935_v25 = vpop.xlane.xlu0 %4934 }
0x220c   :  { %v4947_v53 = vsub.f32 %v4907_v62, %v4935_v25  ;;  %v4941_v50 = vpop.xlane.xlu1 %4940  ;;  %8219 = vpow2.f32 %v4962_v12 }
0x220d   :  { %v4949_v38 = vsub.f32 %v4915_v9, %v4941_v50  ;;  %8221 = vpow2.f32 %v4958_v45 }
0x220e   :  { %v4960_v54 = vmul.f32 1.442695, %v4947_v53  ;;  %v10793_v39 = vpop.eup %8211 }
0x220f   :  { %v4964_v18 = vmul.f32 1.442695, %v4949_v38  ;;  %v5112_v3 = vpop.permute.xlu0 %5111  ;;  %v10796_v1 = vpop.eup %8213 }
0x2210   :  { %8223 = vpow2.f32 %v4960_v54  ;;  %7788 = vmatprep.subr.msk.bf16.mxu0 %vm205_vm1, %v5112_v3  ;;  %v5114_v11 = vpop.permute.xlu1 %5113  ;;  %v5132_v47 = vsel %vm205_vm1, %v5112_v3, 0 }
0x2211   :  { %8225 = vpow2.f32 %v4964_v18  ;;  %v5135_v50 = vsel %vm205_vm1, %v5114_v11, 0 }
0x2212   :  { %v10798_v32 = vpop.eup %8215 }
0x2213   :  { %v10800_v41 = vpop.eup %8217  ;;  %v5118_v63 = vpop.permute.xlu0 %5117  ;;  %v4990_v12 = vpack.c.bf16 %v10798_v32, %v10796_v1 }
0x2214   :  { %v4991_v46 = vpack.c.bf16 %v10800_v41, %v10793_v39  ;;  %v5116_v48 = vpop.permute.xlu1 %5115 }
0x2215   :  { %7581 = vmatprep.mubr.msk.bf16.mxu0 %vm295_vm2, %v4990_v12  ;;  %v5138_v3 = vsel %vm205_vm1, %v5116_v48, 0 }
0x2216   :  { %7582 = vmatmul.mubr.msk.bf16.vlgmr.msra.gmra.mrb[100].mxu0 %vm295_vm2, %v4991_v46  ;;  %v10809_v9 = vpop.eup %8219 }
0x2217   :  { %7590 = vmatpush3.bf16.xpose.msra.mxu0 %v5132_v47  ;;  %v5106_v43 = vpop.permute.xlu0 %5105  ;;  %v10812_v60 = vpop.eup %8221 }
0x2218   :  { %7789 = vmatprep.subr.msk.bf16.mxu0 %vm205_vm1, %v5114_v11  ;;  %v5104_v62 = vpop.permute.xlu1 %5103  ;;  %v5141_v11 = vsel %vm205_vm1, %v5118_v63, 0 }
0x221a   :  { %v10814_v27 = vpop.eup %8223 }
0x221b   :  { %v10816_v37 = vpop.eup %8225  ;;  %v5110_v52 = vpop.permute.xlu0 %5109  ;;  %v4992_v45 = vpack.c.bf16 %v10814_v27, %v10812_v60 }
0x221c   :  { %v5108_v25 = vpop.permute.xlu1 %5107  ;;  %v4993_v53 = vpack.c.bf16 %v10816_v37, %v10809_v9 }
0x221d   :  { %7585 = vmatprep.mubr.msk.bf16.mxu0 %vm295_vm2, %v4992_v45 }
0x221e   :  { %7586 = vmatmul.mubr.msk.bf16.gmra.mrb[104].mxu0 %vm295_vm2, %v4993_v53 }
0x221f   :  { %7592 = vmatpush3.bf16.xpose.msra.mxu0 %v5135_v50  ;;  %v5285_v38 = vpop.permute.xlu0 %5284  ;;  %7597 = vmatprep.mubr.msk.bf16.mxu0 %vm205_vm1, %v5104_v62 }
0x2220   :  { %7790 = vmatprep.subr.msk.bf16.mxu0 %vm205_vm1, %v5116_v48  ;;  %7605 = vmatprep.subr.bf16.mxu1 %v5285_v38  ;;  %v5287_v54 = vpop.permute.xlu1 %5286 }
0x2221   :  { %7606 = vmatpush3.bf16.msra.mxu1 %v5285_v38 }
0x2222   :  { %7607 = vmatprep.subr.bf16.mxu1 %v5287_v54 }
0x2223   :  { %v5291_v12 = vpop.permute.xlu0 %5290 }
0x2224   :  { %v5289_v18 = vpop.permute.xlu1 %5288 }
0x2225   :  { %7608 = vmatpush3.bf16.msra.mxu1 %v5287_v54 }
0x2226   :  { %7609 = vmatprep.subr.bf16.mxu1 %v5289_v18 }
0x2227   :  { %7594 = vmatpush3.bf16.xpose.msra.mxu0 %v5138_v3 }
0x2228   :  { %7791 = vmatprep.subr.msk.bf16.mxu0 %vm205_vm1, %v5118_v63 }
0x2229   :  { %7610 = vmatpush3.bf16.msra.mxu1 %v5289_v18 }
0x222a   :  { %7611 = vmatprep.subr.bf16.mxu1 %v5291_v12 }
0x222d   :  { %7612 = vmatpush3.bf16.msra.mxu1 %v5291_v12 }
0x222f   :  { %7596 = vmatpush3.bf16.xpose.msra.mxu0 %v5141_v11 }
0x2236   :  { %7598 = vmatmul.mubr.msk.bf16.vlgmr.msra.gmra.mrb[108].mxu0 %vm205_vm1, %v5106_v43 }
0x2237   :  { %7601 = vmatprep.mubr.msk.bf16.mxu0 %vm205_vm1, %v5108_v25 }
0x223e   :  { %7602 = vmatmul.mubr.msk.bf16.gmra.mrb[112].mxu0 %vm205_vm1, %v5110_v52 }
0x22e9   :  { %v10833_v46 = vpop.f32.mrb[100].mxu0 }
0x22ea   :  { %v10835_v48 = vpop.f32.mrb[101].mxu0 }
0x22eb   :  { %v10837_v47 = vpop.f32.mrb[102].mxu0 }
0x22ec   :  { %v10839_v62 = vpop.f32.mrb[103].mxu0 }
0x22f1   :  { %v10841_v45 = vpop.f32.mrb[104].mxu0 }
0x22f2   :  { %v10843_v53 = vpop.f32.mrb[105].mxu0 }
0x22f3   :  { %v10845_v63 = vpop.f32.mrb[106].mxu0 }
0x22f4   :  { %v10847_v50 = vpop.f32.mrb[107].mxu0 }
0x2309   :  { %v7599_v43 = vpop.f32.mrb[108].mxu0 }
0x230a   :  { %v5186_v25 = vadd.f32 %v7599_v43, %v10620_v34  ;;  %v5177_v52 = vpop.f32.mrb[109].mxu0 }
0x230b   :  { %v5178_v38 = vadd.f32 %v10625_v2, %v5177_v52  ;;  %v7600_v54 = vpop.f32.mrb[110].mxu0 }
0x230c   :  { %v5180_v18 = vpop.f32.mrb[111].mxu0  ;;  %v5214_v3 = vsel %vm295_vm2, %v5186_v25, -inf  ;;  %v5189_v12 = vadd.f32 %v7600_v54, %v10631_v58 }
0x230d   :  { %v5181_v11 = vadd.f32 %v10636_v29, %v5180_v18  ;;  %5215 = vmax.xlane.f32.xlu0 %v5214_v3  ;;  %v5208_v31 = vsel %vm295_vm2, %v5178_v38, -inf }
0x230e   :  { %5209 = vmax.xlane.f32.xlu1 %v5208_v31  ;;  %v5217_v43 = vsel %vm295_vm2, %v5189_v12, -inf }
0x230f   :  { %v5211_v42 = vsel %vm295_vm2, %v5181_v11, -inf }
0x2311   :  { %5212 = vmax.xlane.f32.xlu0 %v5211_v42  ;;  %v7603_v44 = vpop.f32.mrb[112].mxu0 }
0x2312   :  { %v5202_v52 = vadd.f32 %v7603_v44, %v10646_v6  ;;  %5218 = vmax.xlane.f32.xlu1 %v5217_v43  ;;  %v5193_v51 = vpop.f32.mrb[113].mxu0 }
0x2313   :  { %v5194_v59 = vadd.f32 %v10652_v61, %v5193_v51  ;;  %v7604_v17 = vpop.f32.mrb[114].mxu0 }
0x2314   :  { %v5196_v54 = vpop.f32.mrb[115].mxu0  ;;  %v5226_v18 = vsel %vm295_vm2, %v5202_v52, -inf  ;;  %v5205_v3 = vadd.f32 %v7604_v17, %v10659_v20 }
0x2315   :  { %v5197_v31 = vadd.f32 %v10664_v49, %v5196_v54  ;;  %5227 = vmax.xlane.f32.xlu0 %v5226_v18  ;;  %v5220_v42 = vsel %vm295_vm2, %v5194_v59, -inf }
0x2316   :  { %5221 = vmax.xlane.f32.xlu1 %v5220_v42  ;;  %v5229_v44 = vsel %vm295_vm2, %v5205_v3, -inf }
0x2317   :  { %v5223_v40 = vsel %vm295_vm2, %v5197_v31, -inf }
0x2319   :  { %5224 = vmax.xlane.f32.xlu0 %v5223_v40 }
0x231a   :  { %5230 = vmax.xlane.f32.xlu1 %v5229_v44 }
0x232b   :  { %5403 = vrot.lane.b32.xlu1 %v10568_v4, %s8378_s22 }
0x232f   :  { %5401 = vrot.lane.b32.xlu0 %v10570_v21, %s8378_s22  ;;  %5405 = vrot.lane.b32.xlu1 %v10580_v57, %s8378_s22 }
0x2333   :  { %5407 = vrot.lane.b32.xlu0 %v10578_v15, %s8378_s22  ;;  %5393 = vrot.lane.b32.xlu1 %v10570_v21, %s8379_s23 }
0x2337   :  { %5395 = vrot.lane.b32.xlu0 %v10568_v4, %s8379_s23  ;;  %5397 = vrot.lane.b32.xlu1 %v10580_v57, %s8379_s23 }
0x233b   :  { %5399 = vrot.lane.b32.xlu0 %v10578_v15, %s8379_s23  ;;  %5576 = vrot.lane.b32.xlu1 %v10568_v4, %s11660_s8 }
0x233f   :  { %5574 = vrot.lane.b32.xlu0 %v10570_v21, %s11660_s8 }
0x239a   :  { %v5216_v40 = vpop.xlane.xlu0 %5215 }
0x239b   :  { %v5234_v51 = vsub.f32 %v5186_v25, %v5216_v40  ;;  %v5210_v17 = vpop.xlane.xlu1 %5209 }
0x239c   :  { %v5232_v43 = vsub.f32 %v5178_v38, %v5210_v17 }
0x239d   :  { %v5244_v54 = vmul.f32 1.442695, %v5234_v51 }
0x239e   :  { %v5240_v18 = vmul.f32 1.442695, %v5232_v43  ;;  %v5213_v42 = vpop.xlane.xlu0 %5212 }
0x239f   :  { %v5233_v44 = vsub.f32 %v5181_v11, %v5213_v42  ;;  %v5219_v56 = vpop.xlane.xlu1 %5218  ;;  %8227 = vpow2.f32 %v5244_v54 }
0x23a0   :  { %v5235_v36 = vsub.f32 %v5189_v12, %v5219_v56  ;;  %8229 = vpow2.f32 %v5240_v18 }
0x23a1   :  { %v5242_v7 = vmul.f32 1.442695, %v5233_v44 }
0x23a2   :  { %v5246_v35 = vmul.f32 1.442695, %v5235_v36  ;;  %v5228_v26 = vpop.xlane.xlu0 %5227 }
0x23a3   :  { %8231 = vpow2.f32 %v5242_v7  ;;  %v5238_v4 = vsub.f32 %v5202_v52, %v5228_v26  ;;  %v5222_v14 = vpop.xlane.xlu1 %5221 }
0x23a4   :  { %8233 = vpow2.f32 %v5246_v35  ;;  %v5236_v21 = vsub.f32 %v5194_v59, %v5222_v14 }
0x23a5   :  { %v5252_v5 = vmul.f32 1.442695, %v5238_v4 }
0x23a6   :  { %v5248_v25 = vmul.f32 1.442695, %v5236_v21  ;;  %v5225_v40 = vpop.xlane.xlu0 %5224 }
0x23a7   :  { %v5237_v38 = vsub.f32 %v5197_v31, %v5225_v40  ;;  %v5231_v51 = vpop.xlane.xlu1 %5230  ;;  %8235 = vpow2.f32 %v5252_v5 }
0x23a8   :  { %v5239_v17 = vsub.f32 %v5205_v3, %v5231_v51  ;;  %8237 = vpow2.f32 %v5248_v25 }
0x23a9   :  { %v5250_v11 = vmul.f32 1.442695, %v5237_v38  ;;  %v10885_v43 = vpop.eup %8227 }
0x23aa   :  { %v5254_v56 = vmul.f32 1.442695, %v5239_v17  ;;  %v5402_v12 = vpop.permute.xlu0 %5401  ;;  %v10888_v7 = vpop.eup %8229 }
0x23ab   :  { %8239 = vpow2.f32 %v5250_v11  ;;  %7792 = vmatprep.subr.msk.bf16.mxu1 %vm205_vm1, %v5402_v12  ;;  %v5404_v36 = vpop.permute.xlu1 %5403  ;;  %v5422_v3 = vsel %vm205_vm1, %v5402_v12, 0 }
0x23ac   :  { %8241 = vpow2.f32 %v5254_v56  ;;  %v5425_v51 = vsel %vm205_vm1, %v5404_v36, 0 }
0x23ad   :  { %v10890_v35 = vpop.eup %8231 }
0x23ae   :  { %v10892_v59 = vpop.eup %8233  ;;  %v5408_v14 = vpop.permute.xlu0 %5407  ;;  %v5280_v26 = vpack.c.bf16 %v10890_v35, %v10888_v7 }
0x23af   :  { %v5281_v5 = vpack.c.bf16 %v10892_v59, %v10885_v43  ;;  %v5406_v52 = vpop.permute.xlu1 %5405  ;;  %v5431_v12 = vsel %vm205_vm1, %v5408_v14, 0 }
0x23b0   :  { %7613 = vmatprep.mubr.msk.bf16.mxu1 %vm295_vm2, %v5280_v26  ;;  %v5428_v56 = vsel %vm205_vm1, %v5406_v52, 0 }
0x23b1   :  { %7614 = vmatmul.mubr.msk.bf16.vlgmr.msra.gmra.mrb[128].mxu1 %vm295_vm2, %v5281_v5  ;;  %v10901_v54 = vpop.eup %8235 }
0x23b2   :  { %7622 = vmatpush3.bf16.xpose.msra.mxu1 %v5422_v3  ;;  %v5396_v31 = vpop.permute.xlu0 %5395  ;;  %v10904_v42 = vpop.eup %8237 }
0x23b3   :  { %7793 = vmatprep.subr.msk.bf16.mxu1 %vm205_vm1, %v5404_v36  ;;  %v5394_v18 = vpop.permute.xlu1 %5393 }
0x23b5   :  { %v10906_v44 = vpop.eup %8239 }
0x23b6   :  { %v10908_v4 = vpop.eup %8241  ;;  %v5400_v21 = vpop.permute.xlu0 %5399  ;;  %v5282_v25 = vpack.c.bf16 %v10906_v44, %v10904_v42 }
0x23b7   :  { %v5398_v40 = vpop.permute.xlu1 %5397  ;;  %v5283_v38 = vpack.c.bf16 %v10908_v4, %v10901_v54 }
0x23b8   :  { %7617 = vmatprep.mubr.msk.bf16.mxu1 %vm295_vm2, %v5282_v25 }
0x23b9   :  { %7618 = vmatmul.mubr.msk.bf16.gmra.mrb[132].mxu1 %vm295_vm2, %v5283_v38 }
0x23ba   :  { %7624 = vmatpush3.bf16.xpose.msra.mxu1 %v5425_v51  ;;  %v5575_v17 = vpop.permute.xlu0 %5574  ;;  %7629 = vmatprep.mubr.msk.bf16.mxu1 %vm205_vm1, %v5394_v18 }
0x23bb   :  { %7794 = vmatprep.subr.msk.bf16.mxu1 %vm205_vm1, %v5406_v52  ;;  %7637 = vmatprep.subr.bf16.mxu0 %v5575_v17  ;;  %v5577_v11 = vpop.permute.xlu1 %5576 }
0x23bc   :  { %7638 = vmatpush3.bf16.msra.mxu0 %v5575_v17 }
0x23bd   :  { %7639 = vmatprep.subr.bf16.mxu0 %v5577_v11 }
0x23c0   :  { %7640 = vmatpush3.bf16.msra.mxu0 %v5577_v11 }
0x23c2   :  { %7626 = vmatpush3.bf16.xpose.msra.mxu1 %v5428_v56 }
0x23c3   :  { %7795 = vmatprep.subr.msk.bf16.mxu1 %vm205_vm1, %v5408_v14 }
0x23ca   :  { %7628 = vmatpush3.bf16.xpose.msra.mxu1 %v5431_v12 }
0x23d1   :  { %7630 = vmatmul.mubr.msk.bf16.vlgmr.msra.gmra.mrb[136].mxu1 %vm205_vm1, %v5396_v31 }
0x23d2   :  { %7633 = vmatprep.mubr.msk.bf16.mxu1 %vm205_vm1, %v5398_v40 }
0x23d9   :  { %7634 = vmatmul.mubr.msk.bf16.gmra.mrb[140].mxu1 %vm205_vm1, %v5400_v21 }
0x2484   :  { %v10925_v36 = vpop.f32.mrb[128].mxu1 }
0x2485   :  { %v10927_v26 = vpop.f32.mrb[129].mxu1 }
0x2486   :  { %v10929_v5 = vpop.f32.mrb[130].mxu1 }
0x2487   :  { %v10931_v3 = vpop.f32.mrb[131].mxu1 }
0x248c   :  { %v10933_v52 = vpop.f32.mrb[132].mxu1 }
0x248d   :  { %v10935_v18 = vpop.f32.mrb[133].mxu1 }
0x248e   :  { %v10937_v14 = vpop.f32.mrb[134].mxu1 }
0x248f   :  { %v10939_v25 = vpop.f32.mrb[135].mxu1 }
0x24a4   :  { %v7631_v31 = vpop.f32.mrb[136].mxu1 }
0x24a5   :  { %v10942_v40 = vadd.f32 %v7631_v31, %v10620_v34  ;;  %v5467_v21 = vpop.f32.mrb[137].mxu1 }
0x24a6   :  { %v10945_v38 = vadd.f32 %v10625_v2, %v5467_v21  ;;  %v7632_v51 = vpop.f32.mrb[138].mxu1 }
0x24a7   :  { %v5470_v17 = vpop.f32.mrb[139].mxu1  ;;  %v5504_v11 = vsel %vm295_vm2, %v10942_v40, -inf  ;;  %v10950_v56 = vadd.f32 %v7632_v51, %v10631_v58 }
0x24a8   :  { %v10953_v12 = vadd.f32 %v10636_v29, %v5470_v17  ;;  %5505 = vmax.xlane.f32.xlu0 %v5504_v11  ;;  %v5498_v34 = vsel %vm295_vm2, %v10945_v38, -inf }
0x24a9   :  { %5499 = vmax.xlane.f32.xlu1 %v5498_v34  ;;  %v5507_v21 = vsel %vm295_vm2, %v10950_v56, -inf }
0x24aa   :  { %v5501_v2 = vsel %vm295_vm2, %v10953_v12, -inf }
0x24ac   :  { %5502 = vmax.xlane.f32.xlu0 %v5501_v2  ;;  %v7635_v31 = vpop.f32.mrb[140].mxu1 }
0x24ad   :  { %v10962_v22 = vadd.f32 %v7635_v31, %v10646_v6  ;;  %5508 = vmax.xlane.f32.xlu1 %v5507_v21  ;;  %v5483_v58 = vpop.f32.mrb[141].mxu1  ;;  %v4972_v21 = vsel %vm295_vm2, %v10793_v39, 0.0  ;;  %v5265_v39 = vsel %vm295_vm2, %v10892_v59, 0.0 }
0x24ae   :  { %v7636_v29 = vpop.f32.mrb[142].mxu1  ;;  %v10965_v51 = vadd.f32 %v10652_v61, %v5483_v58  ;;  %v4975_v58 = vsel %vm295_vm2, %v10800_v41, 0.0  ;;  %v4981_v41 = vsel %vm295_vm2, %v10814_v27, 0.0 }
0x24af   :  { %v10968_v17 = vadd.f32 %v7636_v29, %v10659_v20  ;;  %v5486_v11 = vpop.f32.mrb[143].mxu1  ;;  %v5516_v34 = vsel %vm295_vm2, %v10962_v22, -inf  ;;  %v4969_v20 = vsel %vm295_vm2, %v10798_v32, 0.0  ;;  %v4978_v32 = vsel %vm295_vm2, %v10812_v60, 0.0 }
0x24b0   :  { %5517 = vmax.xlane.f32.xlu0 %v5516_v34  ;;  %v10973_v2 = vadd.f32 %v10664_v49, %v5486_v11  ;;  %v5510_v31 = vsel %vm295_vm2, %v10965_v51, -inf  ;;  %v4966_v49 = vsel %vm295_vm2, %v10796_v1, 0.0  ;;  %v5262_v1 = vsel %vm295_vm2, %v10885_v43, 0.0 }
0x24b1   :  { %v5519_v6 = vsel %vm295_vm2, %v10968_v17, -inf  ;;  %v4987_v43 = vsel %vm295_vm2, %v10816_v37, 0.0  ;;  %v5271_v60 = vsel %vm295_vm2, %v10906_v44, 0.0 }
0x24b2   :  { %5520 = vmax.xlane.f32.xlu1 %v5519_v6  ;;  %v5513_v61 = vsel %vm295_vm2, %v10973_v2, -inf }
0x24b4   :  { %5511 = vmax.xlane.f32.xlu0 %v5510_v31 }
0x24b6   :  { %5514 = vmax.xlane.f32.xlu1 %v5513_v61 }
0x24c7   :  { %5578 = vrot.lane.b32.xlu1 %v10580_v57, %s11660_s8  ;;  %v5256_v57 = vsel %vm295_vm2, %v10888_v7, 0.0  ;;  %v4984_v7 = vsel %vm295_vm2, %v10809_v9, 0.0 }
0x24ca   :  { %5580 = vrot.lane.b32.xlu0 %v10578_v15, %s11660_s8  ;;  %v5259_v15 = vsel %vm295_vm2, %v10890_v35, 0.0  ;;  %v5268_v35 = vsel %vm295_vm2, %v10904_v42, 0.0 }
0x24e9   :  { %4970 = vadd.xlane.f32.xlu0 %v4969_v20 }
0x24eb   :  { %4967 = vadd.xlane.f32.xlu1 %v4966_v49 }
0x24ed   :  { %4973 = vadd.xlane.f32.xlu0 %v4972_v21 }
0x24ef   :  { %4976 = vadd.xlane.f32.xlu1 %v4975_v58 }
0x24f1   :  { %5257 = vadd.xlane.f32.xlu0 %v5256_v57 }
0x24f3   :  { %5260 = vadd.xlane.f32.xlu1 %v5259_v15 }
0x24f5   :  { %5263 = vadd.xlane.f32.xlu0 %v5262_v1 }
0x24f7   :  { %5266 = vadd.xlane.f32.xlu1 %v5265_v39 }
0x24f9   :  { %4979 = vadd.xlane.f32.xlu0 %v4978_v32 }
0x24fb   :  { %4982 = vadd.xlane.f32.xlu1 %v4981_v41 }
0x24fd   :  { %4985 = vadd.xlane.f32.xlu0 %v4984_v7 }
0x24ff   :  { %4988 = vadd.xlane.f32.xlu1 %v4987_v43 }
0x2501   :  { %5269 = vadd.xlane.f32.xlu0 %v5268_v35 }
0x2503   :  { %5272 = vadd.xlane.f32.xlu1 %v5271_v60 }
0x2535   :  { %v5506_v59 = vpop.xlane.xlu0 %5505 }
0x2536   :  { %v5524_v27 = vsub.f32 %v10942_v40, %v5506_v59  ;;  %v5500_v29 = vpop.xlane.xlu1 %5499  ;;  %v5274_v59 = vsel %vm295_vm2, %v10901_v54, 0.0 }
0x2537   :  { %v5522_v11 = vsub.f32 %v10945_v38, %v5500_v29 }
0x2538   :  { %v5534_v9 = vmul.f32 1.442695, %v5524_v27 }
0x2539   :  { %v5530_v34 = vmul.f32 1.442695, %v5522_v11  ;;  %v5503_v6 = vpop.xlane.xlu0 %5502 }
0x253a   :  { %8243 = vpow2.f32 %v5534_v9  ;;  %v5523_v37 = vsub.f32 %v10953_v12, %v5503_v6  ;;  %v5509_v31 = vpop.xlane.xlu1 %5508 }
0x253b   :  { %v5525_v42 = vsub.f32 %v10950_v56, %v5509_v31  ;;  %8245 = vpow2.f32 %v5530_v34 }
0x253c   :  { %v5532_v61 = vmul.f32 1.442695, %v5523_v37  ;;  %v5277_v37 = vsel %vm295_vm2, %v10908_v4, 0.0 }
0x253d   :  { %v5536_v20 = vmul.f32 1.442695, %v5525_v42  ;;  %v5518_v44 = vpop.xlane.xlu0 %5517 }
0x253e   :  { %8247 = vpow2.f32 %v5532_v61  ;;  %v5528_v40 = vsub.f32 %v10962_v22, %v5518_v44  ;;  %v4676_v44 = vsel %vm295_vm2, %v10700_v28, 0.0  ;;  %v4694_v28 = vsel %vm295_vm2, %v10713_v10, 0.0 }
0x253f   :  { %8249 = vpow2.f32 %v5536_v20  ;;  %v5521_v49 = vpop.xlane.xlu1 %5520 }
0x2540   :  { %v5529_v38 = vsub.f32 %v10968_v17, %v5521_v49  ;;  %v5542_v57 = vmul.f32 1.442695, %v5528_v40  ;;  %v4682_v40 = vsel %vm295_vm2, %v10697_v0, 0.0  ;;  %v4679_v49 = vsel %vm295_vm2, %v10702_v33, 0.0 }
0x2541   :  { %v5512_v21 = vpop.xlane.xlu0 %5511  ;;  %v4691_v0 = vsel %vm295_vm2, %v10718_v19, 0.0  ;;  %v4697_v33 = vsel %vm295_vm2, %v10720_v8, 0.0 }
0x2542   :  { %v5526_v58 = vsub.f32 %v10965_v51, %v5512_v21  ;;  %v5544_v39 = vmul.f32 1.442695, %v5529_v38  ;;  %v4688_v38 = vsel %vm295_vm2, %v10716_v30, 0.0  ;;  %v4685_v21 = vsel %vm295_vm2, %v10704_v24, 0.0 }
0x2543   :  { %v5515_v15 = vpop.xlane.xlu1 %5514 }
0x2544   :  { %v8244_v12 = vpop.eup %8243  ;;  %v5538_v1 = vmul.f32 1.442695, %v5526_v58  ;;  %v5527_v56 = vsub.f32 %v10973_v2, %v5515_v15 }
0x2545   :  { %v5552_v32 = vsel %vm295_vm2, %v8244_v12, 0.0  ;;  %v8246_v41 = vpop.eup %8245  ;;  %v5581_v51 = vpop.permute.xlu0 %5580 }
0x2546   :  { %8251 = vpow2.f32 %v5538_v1  ;;  %v5540_v7 = vmul.f32 1.442695, %v5527_v56  ;;  %5553 = vadd.xlane.f32.xlu0 %v5552_v32  ;;  %v5546_v35 = vsel %vm295_vm2, %v8246_v41, 0.0 }
0x2547   :  { %8253 = vpow2.f32 %v5542_v57  ;;  %v5579_v22 = vpop.permute.xlu1 %5578 }
0x2548   :  { %v8248_v43 = vpop.eup %8247  ;;  %8255 = vpow2.f32 %v5540_v7  ;;  %7641 = vmatprep.subr.bf16.mxu0 %v5579_v22 }
0x2549   :  { %v8250_v17 = vpop.eup %8249  ;;  %8257 = vpow2.f32 %v5544_v39  ;;  %7642 = vmatpush3.bf16.msra.mxu0 %v5579_v22  ;;  %v5570_v60 = vpack.c.bf16 %v8248_v43, %v8246_v41  ;;  %v5549_v29 = vsel %vm295_vm2, %v8248_v43, 0.0 }
0x254a   :  { %5547 = vadd.xlane.f32.xlu0 %v5546_v35  ;;  %7643 = vmatprep.subr.bf16.mxu0 %v5581_v51  ;;  %v5555_v2 = vsel %vm295_vm2, %v8250_v17, 0.0  ;;  %v5571_v27 = vpack.c.bf16 %v8250_v17, %v8244_v12 }
0x254b   :  { %7645 = vmatprep.mubr.msk.bf16.mxu0 %vm295_vm2, %v5570_v60  ;;  %5556 = vadd.xlane.f32.xlu1 %v5555_v2 }
0x254d   :  { %7644 = vmatpush3.bf16.msra.mxu0 %v5581_v51 }
0x254e   :  { %5275 = vadd.xlane.f32.xlu0 %v5274_v59 }
0x254f   :  { %5550 = vadd.xlane.f32.xlu1 %v5549_v29 }
0x2550   :  { %v8252_v11 = vpop.eup %8251  ;;  %7646 = vmatmul.mubr.msk.bf16.vlgmr.msra.gmra.mrb[116].mxu0 %vm295_vm2, %v5571_v27 }
0x2551   :  { %v8254_v9 = vpop.eup %8253  ;;  %v5558_v34 = vsel %vm295_vm2, %v8252_v11, 0.0 }
0x2552   :  { %v8256_v6 = vpop.eup %8255  ;;  %5559 = vadd.xlane.f32.xlu0 %v5558_v34  ;;  %v5564_v54 = vsel %vm295_vm2, %v8254_v9, 0.0 }
0x2553   :  { %v8258_v31 = vpop.eup %8257  ;;  %5278 = vadd.xlane.f32.xlu1 %v5277_v37  ;;  %v5572_v42 = vpack.c.bf16 %v8256_v6, %v8252_v11  ;;  %v5561_v61 = vsel %vm295_vm2, %v8256_v6, 0.0 }
0x2554   :  { %v5573_v20 = vpack.c.bf16 %v8258_v31, %v8254_v9  ;;  %v5567_v4 = vsel %vm295_vm2, %v8258_v31, 0.0 }
0x2555   :  { %7649 = vmatprep.mubr.msk.bf16.mxu0 %vm295_vm2, %v5572_v42 }
0x2556   :  { %5565 = vadd.xlane.f32.xlu0 %v5564_v54 }
0x2557   :  { %5562 = vadd.xlane.f32.xlu1 %v5561_v61 }
0x2558   :  { %7650 = vmatmul.mubr.msk.bf16.gmra.mrb[120].mxu0 %vm295_vm2, %v5573_v20 }
0x255a   :  { %4677 = vadd.xlane.f32.xlu0 %v4676_v44 }
0x255b   :  { %5568 = vadd.xlane.f32.xlu1 %v5567_v4 }
0x255e   :  { %4683 = vadd.xlane.f32.xlu0 %v4682_v40 }
0x255f   :  { %4680 = vadd.xlane.f32.xlu1 %v4679_v49 }
0x2562   :  { %4689 = vadd.xlane.f32.xlu0 %v4688_v38 }
0x2563   :  { %4686 = vadd.xlane.f32.xlu1 %v4685_v21 }
0x2566   :  { %4695 = vadd.xlane.f32.xlu0 %v4694_v28 }
0x2567   :  { %4692 = vadd.xlane.f32.xlu1 %v4691_v0 }
0x256b   :  { %4698 = vadd.xlane.f32.xlu1 %v4697_v33 }
0x2576   :  { %v4971_v58 = vpop.xlane.xlu0 %4970 }
0x2577   :  { %8259 = vrcp.f32 %v4971_v58 }
0x2578   :  { %v4968_v30 = vpop.xlane.xlu1 %4967 }
0x2579   :  { %8261 = vrcp.f32 %v4968_v30 }
0x257a   :  { %v4974_v57 = vpop.xlane.xlu0 %4973 }
0x257b   :  { %8263 = vrcp.f32 %v4974_v57 }
0x257c   :  { %v4977_v24 = vpop.xlane.xlu1 %4976 }
0x257d   :  { %8265 = vrcp.f32 %v4977_v24 }
0x257e   :  { %v5258_v15 = vpop.xlane.xlu0 %5257 }
0x257f   :  { %8267 = vrcp.f32 %v5258_v15 }
0x2580   :  { %v5261_v10 = vpop.xlane.xlu1 %5260 }
0x2581   :  { %v8260_v12 = vpop.eup %8259  ;;  %8269 = vrcp.f32 %v5261_v10 }
0x2582   :  { %v5264_v1 = vpop.xlane.xlu0 %5263  ;;  %v5092_v39 = vmul.f32 %v8260_v12, %v10839_v62 }
0x2583   :  { %v8262_v19 = vpop.eup %8261  ;;  %8271 = vrcp.f32 %v5264_v1 }
0x2584   :  { %v5267_v56 = vpop.xlane.xlu1 %5266  ;;  %v5091_v8 = vmul.f32 %v8262_v19, %v10835_v48 }
0x2585   :  { %v8264_v32 = vpop.eup %8263  ;;  %8273 = vrcp.f32 %v5267_v56 }
0x2586   :  { %v4980_v41 = vpop.xlane.xlu0 %4979  ;;  %v5099_v7 = vpack.c.bf16 %v5092_v39, %v5091_v8  ;;  %v5093_v17 = vmul.f32 %v8264_v32, %v10833_v46 }
0x2587   :  { %v8266_v22 = vpop.eup %8265  ;;  %8275 = vrcp.f32 %v4980_v41 }
0x2588   :  { %5687 = vrot.lane.b32.xlu0 %v5099_v7, %s11661_s17  ;;  %v4983_v43 = vpop.xlane.xlu1 %4982  ;;  %v5094_v51 = vmul.f32 %v8266_v22, %v10837_v47 }
0x2589   :  { %v8268_v35 = vpop.eup %8267  ;;  %8277 = vrcp.f32 %v4983_v43 }
0x258a   :  { %v4986_v60 = vpop.xlane.xlu0 %4985  ;;  %v5100_v2 = vpack.c.bf16 %v5094_v51, %v5093_v17  ;;  %v5381_v59 = vmul.f32 %v8268_v35, %v10927_v26 }
0x258b   :  { %v8270_v48 = vpop.eup %8269  ;;  %8279 = vrcp.f32 %v4986_v60 }
0x258c   :  { %5689 = vrot.lane.b32.xlu1 %v5100_v2, %s11661_s17  ;;  %v4989_v62 = vpop.xlane.xlu1 %4988  ;;  %v5382_v27 = vmul.f32 %v8270_v48, %v10931_v3 }
0x258d   :  { %v8272_v29 = vpop.eup %8271  ;;  %8281 = vrcp.f32 %v4989_v62 }
0x258e   :  { %v5270_v11 = vpop.xlane.xlu0 %5269  ;;  %v5389_v9 = vpack.c.bf16 %v5382_v27, %v5381_v59  ;;  %v5383_v34 = vmul.f32 %v8272_v29, %v10925_v36  ;;  %v11663_v27 = vld [vmem:[#allocation12_spill] sm:$0xff] }
0x258f   :  { %v8274_v46 = vpop.eup %8273  ;;  %8283 = vrcp.f32 %v5270_v11  ;;  %v11664_v29 = vld [vmem:[#allocation16_spill] sm:$0xff] }
0x2590   :  { %5699 = vrot.lane.b32.xlu1 %v5389_v9, %s11662_s12  ;;  %v5273_v47 = vpop.xlane.xlu1 %5272  ;;  %v5384_v6 = vmul.f32 %v8274_v46, %v10929_v5 }
0x2591   :  { %v8276_v37 = vpop.eup %8275  ;;  %8285 = vrcp.f32 %v5273_v47  ;;  %v11665_v47 = vld [vmem:[#allocation13_spill] sm:$0xff] }
0x2592   :  { %v5390_v31 = vpack.c.bf16 %v5384_v6, %v5383_v34  ;;  %v5095_v26 = vmul.f32 %v8276_v37, %v10843_v53 }
0x2593   :  { %v8278_v42 = vpop.eup %8277 }
0x2594   :  { %5701 = vrot.lane.b32.xlu0 %v5390_v31, %s11662_s12  ;;  %v5096_v3 = vmul.f32 %v8278_v42, %v10847_v50 }
0x2595   :  { %v8280_v54 = vpop.eup %8279 }
0x2596   :  { %v5101_v61 = vpack.c.bf16 %v5096_v3, %v5095_v26  ;;  %v5097_v44 = vmul.f32 %v8280_v54, %v10841_v45  ;;  %v7859_v45 = vld [vmem:[%s11503_s2 + $0x20] sm:$0xff]  }
0x2597   :  { %v8282_v20 = vpop.eup %8281  ;;  %7653 = vmatprep.subr.bf16.mxu0 %v7859_v45 }
0x2598   :  { %5691 = vrot.lane.b32.xlu1 %v5101_v61, %s11661_s17  ;;  %v5098_v36 = vmul.f32 %v8282_v20, %v10845_v63  ;;  %v7860_v63 = vld [vmem:[%s11503_s2 + $0x28] sm:$0xff]   ;;  %7654 = vmatpush3.bf16.msra.mxu0 %v7859_v45 }
0x2599   :  { %v8284_v5 = vpop.eup %8283  ;;  %7655 = vmatprep.subr.bf16.mxu0 %v7860_v63 }
0x259a   :  { %v5102_v4 = vpack.c.bf16 %v5098_v36, %v5097_v44  ;;  %v11072_v49 = vmul.f32 %v8284_v5, %v10935_v18 }
0x259b   :  { %v8286_v40 = vpop.eup %8285 }
0x259c   :  { %5693 = vrot.lane.b32.xlu0 %v5102_v4, %s11661_s17  ;;  %v11075_v53 = vmul.f32 %v8286_v40, %v10939_v25  ;;  %7656 = vmatpush3.bf16.msra.mxu0 %v7860_v63 }
0x259e   :  { %v5391_v50 = vpack.c.bf16 %v11075_v53, %v11072_v49 }
0x25d3   :  { %v5554_v18 = vpop.xlane.xlu0 %5553 }
0x25d7   :  { %v5548_v38 = vpop.xlane.xlu0 %5547 }
0x25d8   :  { %v5557_v21 = vpop.xlane.xlu1 %5556 }
0x25db   :  { %v5276_v25 = vpop.xlane.xlu0 %5275 }
0x25dc   :  { %v5551_v28 = vpop.xlane.xlu1 %5550  ;;  %8287 = vrcp.f32 %v5276_v25 }
0x25df   :  { %v5560_v0 = vpop.xlane.xlu0 %5559 }
0x25e0   :  { %v5279_v33 = vpop.xlane.xlu1 %5278 }
0x25e1   :  { %8289 = vrcp.f32 %v5279_v33 }
0x25e3   :  { %v5566_v58 = vpop.xlane.xlu0 %5565 }
0x25e4   :  { %v5563_v30 = vpop.xlane.xlu1 %5562 }
0x25e6   :  { %v8288_v15 = vpop.eup %8287 }
0x25e7   :  { %v4678_v57 = vpop.xlane.xlu0 %4677  ;;  %v11086_v19 = vmul.f32 %v8288_v15, %v10933_v52 }
0x25e8   :  { %v5569_v24 = vpop.xlane.xlu1 %5568  ;;  %8291 = vrcp.f32 %v4678_v57 }
0x25eb   :  { %v8290_v10 = vpop.eup %8289  ;;  %v4684_v12 = vpop.xlane.xlu0 %4683 }
0x25ec   :  { %v4681_v1 = vpop.xlane.xlu1 %4680  ;;  %v11089_v56 = vmul.f32 %v8290_v10, %v10937_v14 }
0x25ed   :  { %8293 = vrcp.f32 %v4681_v1 }
0x25ee   :  { %v5392_v8 = vpack.c.bf16 %v11089_v56, %v11086_v19  ;;  %8295 = vrcp.f32 %v4684_v12 }
0x25ef   :  { %v4690_v39 = vpop.xlane.xlu0 %4689 }
0x25f0   :  { %v4687_v32 = vpop.xlane.xlu1 %4686 }
0x25f1   :  { %8297 = vrcp.f32 %v4687_v32 }
0x25f2   :  { %8299 = vrcp.f32 %v4690_v39  ;;  %v8292_v22 = vpop.eup %8291 }
0x25f3   :  { %v4696_v41 = vpop.xlane.xlu0 %4695  ;;  %v11094_v17 = vmul.f32 %v8292_v22, %v10739_v16 }
0x25f4   :  { %v4693_v7 = vpop.xlane.xlu1 %4692 }
0x25f5   :  { %8301 = vrcp.f32 %v4693_v7 }
0x25f6   :  { %8303 = vrcp.f32 %v4696_v41 }
0x25f7   :  { %v8294_v43 = vpop.eup %8293 }
0x25f8   :  { %v4699_v52 = vpop.xlane.xlu1 %4698  ;;  %v11097_v14 = vmul.f32 %v8294_v43, %v10743_v23  ;;  %v8296_v51 = vpop.eup %8295 }
0x25f9   :  { %8305 = vrcp.f32 %v4699_v52  ;;  %v11102_v2 = vmul.f32 %v8296_v51, %v10737_v13 }
0x25fa   :  { %v4809_v35 = vpack.c.bf16 %v11097_v14, %v11094_v17  ;;  %8307 = vrcp.f32 %v5554_v18  ;;  %v5688_v39 = vpop.permute.xlu0 %5687 }
0x25fb   :  { %v8298_v60 = vpop.eup %8297  ;;  %8309 = vrcp.f32 %v5548_v38 }
0x25fc   :  { %v11105_v48 = vmul.f32 %v8298_v60, %v10741_v55  ;;  %v8300_v62 = vpop.eup %8299  ;;  %v11666_v55 = vld [vmem:[#allocation14_spill] sm:$0xff]  ;;  %8311 = vrcp.f32 %v5557_v21  ;;  %v5721_v56 = vsel %vm205_vm1, %v4809_v35, %v5688_v39 }
0x25fd   :  { %v11110_v23 = vmul.f32 %v8300_v62, %v11663_v27  ;;  %8313 = vrcp.f32 %v5551_v28  ;;  %v11165_v27 = vld [vmem:[%s11501_s5 + $0x20] sm:$0xff] }
0x25fe   :  { %v4810_v16 = vpack.c.bf16 %v11105_v48, %v11102_v2  ;;  %8315 = vrcp.f32 %v5560_v0  ;;  %v5690_v1 = vpop.permute.xlu1 %5689 }
0x25ff   :  { %v8302_v59 = vpop.eup %8301  ;;  %8317 = vrcp.f32 %v5566_v58 }
0x2600   :  { %v11113_v11 = vmul.f32 %v8302_v59, %v11664_v29  ;;  %v8304_v9 = vpop.eup %8303  ;;  %8319 = vrcp.f32 %v5569_v24  ;;  %v5724_v49 = vsel %vm205_vm1, %v4810_v16, %v5690_v1 }
0x2601   :  { %v11118_v34 = vmul.f32 %v8304_v9, %v11665_v47  ;;  %8321 = vrcp.f32 %v5563_v30 }
0x2602   :  { %v4811_v46 = vpack.c.bf16 %v11113_v11, %v11110_v23  ;;  %v5700_v41 = vpop.permute.xlu1 %5699  ;;  %v11667_v23 = vld [vmem:[#allocation4_spill] sm:$0xff] }
0x2603   :  { %v8306_v13 = vpop.eup %8305  ;;  %v5732_v53 = vsel %vm1399_vm3, %v5721_v56, %v5700_v41  ;;  %v5750_v29 = vrot.slane %v11165_v27, %v11667_v23 }
0x2604   :  { %v11121_v6 = vmul.f32 %v8306_v13, %v11666_v55  ;;  %v8308_v31 = vpop.eup %8307 }
0x2605   :  { %v8310_v26 = vpop.eup %8309 }
0x2606   :  { %v4812_v37 = vpack.c.bf16 %v11121_v6, %v11118_v34  ;;  %v8312_v54 = vpop.eup %8311  ;;  %v5702_v32 = vpop.permute.xlu0 %5701  ;;  %v11668_v6 = vld [vmem:[#allocation20_spill] sm:$0xff] }
0x2607   :  { %v8314_v20 = vpop.eup %8313  ;;  %v5734_v22 = vsel %vm1399_vm3, %v5724_v49, %v5702_v32 }
0x2608   :  { %v8316_v18 = vpop.eup %8315 }
0x2609   :  { %v8318_v21 = vpop.eup %8317 }
0x260a   :  { %v8320_v28 = vpop.eup %8319  ;;  %v5692_v19 = vpop.permute.xlu1 %5691 }
0x260b   :  { %v8322_v33 = vpop.eup %8321  ;;  %v5727_v14 = vsel %vm205_vm1, %v4811_v46, %v5692_v19 }
0x260e   :  { %v5694_v7 = vpop.permute.xlu0 %5693 }
0x260f   :  { %v5730_v60 = vsel %vm205_vm1, %v4812_v37, %v5694_v7 }
0x2623   :  { %v7647_v42 = vpop.f32.mrb[116].mxu0 }
0x2624   :  { %v5632_v3 = vpop.f32.mrb[117].mxu0  ;;  %v5673_v44 = vmul.f32 %v8308_v31, %v7647_v42  ;;  %v11669_v42 = vld [vmem:[#allocation19_spill] sm:$0xff] }
0x2625   :  { %v7648_v61 = vpop.f32.mrb[118].mxu0  ;;  %v5671_v4 = vmul.f32 %v8310_v26, %v5632_v3  ;;  %v11670_v3 = vld [vmem:[#allocation23_spill] sm:$0xff] }
0x2626   :  { %v5674_v36 = vmul.f32 %v8312_v54, %v7648_v61  ;;  %v5635_v5 = vpop.f32.mrb[119].mxu0 }
0x2627   :  { %v5672_v40 = vmul.f32 %v8314_v20, %v5635_v5  ;;  %v11671_v20 = vld [vmem:[#allocation21_spill] sm:$0xff] }
0x2628   :  { %v5680_v45 = vpack.c.bf16 %v5674_v36, %v5673_v44 }
0x2629   :  { %v5679_v63 = vpack.c.bf16 %v5672_v40, %v5671_v4 }
0x262a   :  { %5713 = vrot.lane.b32.xlu0 %v5680_v45, %s11625_s11 }
0x262b   :  { %v7651_v38 = vpop.f32.mrb[120].mxu0  ;;  %5711 = vrot.lane.b32.xlu1 %v5679_v63, %s11625_s11 }
0x262c   :  { %v5648_v25 = vpop.f32.mrb[121].mxu0  ;;  %v5677_v58 = vmul.f32 %v8318_v21, %v7651_v38 }
0x262d   :  { %v7652_v0 = vpop.f32.mrb[122].mxu0  ;;  %v5675_v24 = vmul.f32 %v8316_v18, %v5648_v25  ;;  %v11672_v25 = vld [vmem:[#allocation24_spill] sm:$0xff] }
0x262e   :  { %v5678_v30 = vmul.f32 %v8320_v28, %v7652_v0  ;;  %v5651_v57 = vpop.f32.mrb[123].mxu0  ;;  %5705 = vrot.lane.b32.xlu0 %v5392_v8, %s11662_s12 }
0x262f   :  { %v5676_v15 = vmul.f32 %v8322_v33, %v5651_v57  ;;  %5703 = vrot.lane.b32.xlu1 %v5391_v50, %s11662_s12  ;;  %v11674_v57 = vld [vmem:[#allocation25_spill] sm:$0xff] }
0x2630   :  { %v5682_v10 = vpack.c.bf16 %v5678_v30, %v5677_v58  ;;  %v11673_v58 = vld [vmem:[#allocation10_spill] sm:$0xff] }
0x2631   :  { %v5681_v12 = vpack.c.bf16 %v5676_v15, %v5675_v24  ;;  %v11675_v15 = vld [vmem:[#allocation22_spill] sm:$0xff] }
0x2632   :  { %5717 = vrot.lane.b32.xlu0 %v5682_v10, %s11625_s11 }
0x2633   :  { %5715 = vrot.lane.b32.xlu1 %v5681_v12, %s11625_s11 }
0x269c   :  { %v5714_v8 = vpop.permute.xlu0 %5713 }
0x269d   :  { %v5712_v50 = vpop.permute.xlu1 %5711  ;;  %v5742_v52 = vsel %vm1408_vm4, %v5734_v22, %v5714_v8 }
0x269e   :  { %v5740_v43 = vsel %vm1408_vm4, %v5732_v53, %v5712_v50 }
0x269f   :  { %7657 = vmatprep.mubr.msk.bf16.mxu0 %vm111_vm0, %v5740_v43 }
0x26a0   :  { %v5706_v51 = vpop.permute.xlu0 %5705  ;;  %7658 = vmatmul.mubr.msk.bf16.vlgmr.msra.gmra.mrb[124].mxu0 %vm111_vm0, %v5742_v52 }
0x26a1   :  { %v5704_v17 = vpop.permute.xlu1 %5703  ;;  %v5738_v62 = vsel %vm1399_vm3, %v5730_v60, %v5706_v51 }
0x26a2   :  { %v5736_v2 = vsel %vm1399_vm3, %v5727_v14, %v5704_v17 }
0x26a4   :  { %v5718_v35 = vpop.permute.xlu0 %5717 }
0x26a5   :  { %v5716_v48 = vpop.permute.xlu1 %5715  ;;  %v5746_v59 = vsel %vm1408_vm4, %v5738_v62, %v5718_v35 }
0x26a6   :  { %v5744_v16 = vsel %vm1408_vm4, %v5736_v2, %v5716_v48 }
0x26a7   :  { %7661 = vmatprep.mubr.msk.bf16.mxu0 %vm111_vm0, %v5744_v16 }
0x26a8   :  { %7662 = vmatmul.mubr.msk.bf16.gmra.mrb[128].mxu0 %vm111_vm0, %v5746_v59 }
0x2773   :  { %v7659_v11 = vpop.f32.mrb[124].mxu0 }
0x2774   :  { %v5805_v9 = vpop.f32.mrb[125].mxu0  ;;  %v5814_v47 = vadd.f32 %v7659_v11, %v5750_v29 }
0x2775   :  { %v5806_v46 = vadd.f32 %v5805_v9, %v5750_v29  ;;  %v7660_v13 = vpop.f32.mrb[126].mxu0 }
0x2776   :  { %v5817_v34 = vadd.f32 %v7660_v13, %v5750_v29  ;;  %v5808_v55 = vpop.f32.mrb[127].mxu0  ;;  %v5838_v44 = vadd.f32 %v5814_v47, %v11671_v20 }
0x2777   :  { %v5836_v37 = vadd.f32 %v5806_v46, %v11668_v6  ;;  %v5809_v31 = vadd.f32 %v5808_v55, %v5750_v29 }
0x2778   :  { %v5839_v26 = vadd.f32 %v5817_v34, %v11669_v42  ;;  %v5850_v38 = vsel %vm111_vm0, %v5838_v44, 0.0 }
0x2779   :  { %v5837_v54 = vadd.f32 %v5809_v31, %v11670_v3  ;;  %v5844_v61 = vsel %vm111_vm0, %v5836_v37, 0.0 }
0x277a   :  { %5845 = vadd.xlane.f32.xlu1 %v5844_v61  ;;  %v5853_v63 = vsel %vm111_vm0, %v5839_v26, 0.0 }
0x277b   :  { %v7663_v36 = vpop.f32.mrb[128].mxu0  ;;  %v5847_v5 = vsel %vm111_vm0, %v5837_v54, 0.0 }
0x277c   :  { %5848 = vadd.xlane.f32.xlu0 %v5847_v5  ;;  %v5821_v4 = vpop.f32.mrb[129].mxu0  ;;  %v5830_v21 = vadd.f32 %v7663_v36, %v5750_v29 }
0x277d   :  { %v5822_v40 = vadd.f32 %v5821_v4, %v5750_v29  ;;  %v7664_v45 = vpop.f32.mrb[130].mxu0 }
0x277e   :  { %5854 = vadd.xlane.f32.xlu1 %v5853_v63  ;;  %v5824_v18 = vpop.f32.mrb[131].mxu0  ;;  %v5833_v0 = vadd.f32 %v7664_v45, %v5750_v29  ;;  %v5842_v24 = vadd.f32 %v5830_v21, %v11674_v57  ;;  %v7861_v45 = vld [vmem:[%s11504_s3 + $0x20] sm:$0xff]   ;;  %v7862_v63 = vld [vmem:[%s11504_s3 + $0x28] sm:$0xff]  }
0x277f   :  { %v5840_v28 = vadd.f32 %v5822_v40, %v11672_v25  ;;  %v5825_v33 = vadd.f32 %v5824_v18, %v5750_v29  ;;  %7665 = vmatprep.subr.bf16.mxu1 %v7861_v45  ;;  %v11676_v18 = vmov 0.0|0.0   ;;  %v7864_v21 = vld [vmem:[%s11505_s4 + $0x48] sm:$0xff]  }
0x2780   :  { %5851 = vadd.xlane.f32.xlu0 %v5850_v38  ;;  %v5843_v10 = vadd.f32 %v5833_v0, %v11675_v15  ;;  %v5862_v32 = vsel %vm111_vm0, %v5842_v24, 0.0  ;;  %7666 = vmatpush3.bf16.msra.mxu1 %v7861_v45  ;;  %v7863_v38 = vld [vmem:[%s11505_s4 + $0x40] sm:$0xff]  }
0x2781   :  { %v5841_v30 = vadd.f32 %v5825_v33, %v11673_v58  ;;  %v5856_v1 = vsel %vm111_vm0, %v5840_v28, 0.0  ;;  %7667 = vmatprep.subr.bf16.mxu1 %v7862_v63  ;;  %7677 = vmatprep.subr.bf16.mxu0 %v7863_v38 }
0x2782   :  { %v5865_v39 = vsel %vm111_vm0, %v5843_v10, 0.0  ;;  %7678 = vmatpush3.bf16.msra.mxu0 %v7863_v38 }
0x2783   :  { %v5859_v12 = vsel %vm111_vm0, %v5841_v30, 0.0  ;;  %7679 = vmatprep.subr.bf16.mxu0 %v7864_v21 }
0x2784   :  { %5860 = vadd.xlane.f32.xlu1 %v5859_v12  ;;  %5857 = vadd.xlane.f32.xlu0 %v5856_v1 }
0x2785   :  { %7668 = vmatpush3.bf16.msra.mxu1 %v7862_v63 }
0x2786   :  { %7736 = vmatprep.subr.bf16.mxu1 %v11676_v18  ;;  %7680 = vmatpush3.bf16.msra.mxu0 %v7864_v21 }
0x2788   :  { %5866 = vadd.xlane.f32.xlu1 %v5865_v39  ;;  %5863 = vadd.xlane.f32.xlu0 %v5862_v32 }
0x2807   :  { %v5846_v41 = vpop.xlane.xlu1 %5845 }
0x2808   :  { %v5868_v7 = vmul.f32 0.03125, %v5846_v41 }
0x2809   :  { %v5849_v19 = vpop.xlane.xlu0 %5848 }
0x280a   :  { %v11185_v56 = vsub.f32 %v5836_v37, %v5868_v7  ;;  %v5869_v8 = vmul.f32 0.03125, %v5849_v19 }
0x280b   :  { %v5855_v49 = vpop.xlane.xlu1 %5854 }
0x280c   :  { %v11187_v53 = vsub.f32 %v5837_v54, %v5869_v8  ;;  %v5871_v50 = vmul.f32 0.03125, %v5855_v49  ;;  %v5884_v22 = vmul.f32 %v11185_v56, %v11185_v56 }
0x280d   :  { %v5852_v43 = vpop.xlane.xlu0 %5851 }
0x280e   :  { %v11191_v52 = vsub.f32 %v5839_v26, %v5871_v50  ;;  %v5870_v51 = vmul.f32 0.03125, %v5852_v43  ;;  %v5892_v17 = vsel %vm111_vm0, %v5884_v22, 0.0  ;;  %v5885_v14 = vmul.f32 %v11187_v53, %v11187_v53 }
0x280f   :  { %5893 = vadd.xlane.f32.xlu0 %v5892_v17 }
0x2810   :  { %v11196_v35 = vsub.f32 %v5838_v44, %v5870_v51  ;;  %v5895_v60 = vsel %vm111_vm0, %v5885_v14, 0.0  ;;  %v5887_v2 = vmul.f32 %v11191_v52, %v11191_v52  ;;  %v11677_v51 = vld [vmem:[#allocation5_spill] sm:$0xff] }
0x2811   :  { %5896 = vadd.xlane.f32.xlu1 %v5895_v60  ;;  %v5858_v48 = vpop.xlane.xlu0 %5857  ;;  %v5861_v62 = vpop.xlane.xlu1 %5860  ;;  %v5951_v17 = vrot.slane %v11165_v27, %v11677_v51 }
0x2812   :  { %v5872_v16 = vmul.f32 0.03125, %v5858_v48  ;;  %v5873_v59 = vmul.f32 0.03125, %v5861_v62  ;;  %v5886_v23 = vmul.f32 %v11196_v35, %v11196_v35  ;;  %v5901_v46 = vsel %vm111_vm0, %v5887_v2, 0.0 }
0x2814   :  { %v11203_v29 = vsub.f32 %v5840_v28, %v5872_v16  ;;  %v11205_v11 = vsub.f32 %v5841_v30, %v5873_v59  ;;  %v5898_v9 = vsel %vm111_vm0, %v5886_v23, 0.0 }
0x2815   :  { %v5864_v13 = vpop.xlane.xlu0 %5863  ;;  %5899 = vadd.xlane.f32.xlu0 %v5898_v9  ;;  %5902 = vadd.xlane.f32.xlu1 %v5901_v46  ;;  %v5867_v47 = vpop.xlane.xlu1 %5866 }
0x2816   :  { %v5874_v34 = vmul.f32 0.03125, %v5864_v13  ;;  %v5875_v55 = vmul.f32 0.03125, %v5867_v47  ;;  %v5888_v37 = vmul.f32 %v11203_v29, %v11203_v29  ;;  %v5889_v31 = vmul.f32 %v11205_v11, %v11205_v11  ;;  %v11678_v13 = vld [vmem:[#allocation7_spill] sm:$0xff] }
0x2817   :  { %v5963_v47 = vrot.slane %v11165_v27, %v11678_v13 }
0x2818   :  { %v11213_v26 = vsub.f32 %v5842_v24, %v5874_v34  ;;  %v11215_v54 = vsub.f32 %v5843_v10, %v5875_v55  ;;  %v5904_v61 = vsel %vm111_vm0, %v5888_v37, 0.0  ;;  %v5907_v44 = vsel %vm111_vm0, %v5889_v31, 0.0 }
0x2819   :  { %5905 = vadd.xlane.f32.xlu0 %v5904_v61  ;;  %5908 = vadd.xlane.f32.xlu1 %v5907_v44 }
0x281a   :  { %v5890_v36 = vmul.f32 %v11213_v26, %v11213_v26  ;;  %v5891_v5 = vmul.f32 %v11215_v54, %v11215_v54 }
0x281c   :  { %v5910_v4 = vsel %vm111_vm0, %v5890_v36, 0.0  ;;  %v5913_v40 = vsel %vm111_vm0, %v5891_v5, 0.0 }
0x281d   :  { %5911 = vadd.xlane.f32.xlu0 %v5910_v4  ;;  %5914 = vadd.xlane.f32.xlu1 %v5913_v40 }
0x289c   :  { %v5894_v28 = vpop.xlane.xlu0 %5893 }
0x289d   :  { %v5916_v0 = vmul.f32 0.03125, %v5894_v28 }
0x289e   :  { %v5897_v33 = vpop.xlane.xlu1 %5896 }
0x289f   :  { %v5924_v30 = vadd.f32 1e-05, %v5916_v0  ;;  %v5917_v24 = vmul.f32 0.03125, %v5897_v33 }
0x28a1   :  { %8323 = vrsqrt.f32 %v5924_v30  ;;  %v5925_v10 = vadd.f32 1e-05, %v5917_v24 }
0x28a2   :  { %v5900_v12 = vpop.xlane.xlu0 %5899  ;;  %v5903_v1 = vpop.xlane.xlu1 %5902 }
0x28a3   :  { %8325 = vrsqrt.f32 %v5925_v10  ;;  %v5918_v39 = vmul.f32 0.03125, %v5900_v12  ;;  %v5919_v32 = vmul.f32 0.03125, %v5903_v1 }
0x28a5   :  { %v5926_v41 = vadd.f32 1e-05, %v5918_v39  ;;  %v5927_v7 = vadd.f32 1e-05, %v5919_v32 }
0x28a6   :  { %v5906_v19 = vpop.xlane.xlu0 %5905  ;;  %v5909_v8 = vpop.xlane.xlu1 %5908 }
0x28a7   :  { %8327 = vrsqrt.f32 %v5926_v41  ;;  %v5920_v49 = vmul.f32 0.03125, %v5906_v19  ;;  %v5921_v50 = vmul.f32 0.03125, %v5909_v8  ;;  %v7866_v19 = vld [vmem:[%s11505_s4 + $0x58] sm:$0xff]  }
0x28a8   :  { %8329 = vrsqrt.f32 %v5927_v7  ;;  %v7865_v7 = vld [vmem:[%s11505_s4 + $0x50] sm:$0xff]   ;;  %v11680_v8 = vld [vmem:[#allocation9_spill] sm:$0xff] }
0x28a9   :  { %v5928_v22 = vadd.f32 1e-05, %v5920_v49  ;;  %v5929_v43 = vadd.f32 1e-05, %v5921_v50  ;;  %7681 = vmatprep.subr.bf16.mxu0 %v7865_v7  ;;  %v5979_v49 = vrot.slane %v11165_v27, %v11680_v8 }
0x28aa   :  { %v5912_v14 = vpop.xlane.xlu0 %5911  ;;  %v5915_v60 = vpop.xlane.xlu1 %5914  ;;  %7682 = vmatpush3.bf16.msra.mxu0 %v7865_v7 }
0x28ab   :  { %v8324_v2 = vpop.eup %8323  ;;  %8331 = vrsqrt.f32 %v5928_v22  ;;  %v5922_v48 = vmul.f32 0.03125, %v5912_v14  ;;  %v5923_v62 = vmul.f32 0.03125, %v5915_v60  ;;  %7683 = vmatprep.subr.bf16.mxu0 %v7866_v19 }
0x28ac   :  { %v5940_v16 = vmul.f32 %v8324_v2, %v11185_v56  ;;  %8333 = vrsqrt.f32 %v5929_v43 }
0x28ad   :  { %v8326_v59 = vpop.eup %8325  ;;  %v5930_v23 = vadd.f32 1e-05, %v5922_v48  ;;  %v5931_v9 = vadd.f32 1e-05, %v5923_v62 }
0x28ae   :  { %v5941_v46 = vmul.f32 %v8326_v59, %v11187_v53  ;;  %v5952_v34 = vmul.f32 %v5951_v17, %v5940_v16  ;;  %7684 = vmatpush3.bf16.msra.mxu0 %v7866_v19 }
0x28af   :  { %8335 = vrsqrt.f32 %v5930_v23 }
0x28b0   :  { %8337 = vrsqrt.f32 %v5931_v9  ;;  %v5953_v55 = vmul.f32 %v5951_v17, %v5941_v46  ;;  %v11245_v44 = vadd.f32 %v5963_v47, %v5952_v34 }
0x28b1   :  { %v8328_v37 = vpop.eup %8327 }
0x28b2   :  { %v8330_v31 = vpop.eup %8329  ;;  %v5942_v61 = vmul.f32 %v8328_v37, %v11196_v35  ;;  %v11247_v56 = vadd.f32 %v5963_v47, %v5953_v55 }
0x28b3   :  { %v5943_v36 = vmul.f32 %v8330_v31, %v11191_v52 }
0x28b4   :  { %v5954_v5 = vmul.f32 %v5951_v17, %v5942_v61  ;;  %v5972_v53 = vpack.c.bf16 %v11247_v56, %v11245_v44 }
0x28b5   :  { %v8332_v4 = vpop.eup %8331  ;;  %v5955_v40 = vmul.f32 %v5951_v17, %v5943_v36 }
0x28b6   :  { %v8334_v45 = vpop.eup %8333  ;;  %v11252_v63 = vadd.f32 %v5963_v47, %v5954_v5  ;;  %v5944_v38 = vmul.f32 %v8332_v4, %v11203_v29  ;;  %7669 = vmatprep.mubr.msk.bf16.mxu1 %vm111_vm0, %v5972_v53 }
0x28b7   :  { %v11256_v35 = vadd.f32 %v5963_v47, %v5955_v40  ;;  %v5945_v21 = vmul.f32 %v8334_v45, %v11205_v11 }
0x28b8   :  { %v5956_v28 = vmul.f32 %v5951_v17, %v5944_v38  ;;  %v11681_v38 = vld [vmem:[#allocation6_spill] sm:$0xff] }
0x28b9   :  { %v8336_v0 = vpop.eup %8335  ;;  %v5973_v52 = vpack.c.bf16 %v11256_v35, %v11252_v63  ;;  %v5957_v33 = vmul.f32 %v5951_v17, %v5945_v21  ;;  %v6084_v21 = vrot.slane %v11165_v27, %v11681_v38 }
0x28ba   :  { %v8338_v30 = vpop.eup %8337  ;;  %v5946_v24 = vmul.f32 %v8336_v0, %v11213_v26  ;;  %v11262_v10 = vadd.f32 %v5963_v47, %v5956_v28 }
0x28bb   :  { %v5947_v12 = vmul.f32 %v8338_v30, %v11215_v54  ;;  %7670 = vmatmul.mubr.msk.bf16.vlgmr.msra.gmra.mrb[144].mxu1 %vm111_vm0, %v5973_v52  ;;  %v11266_v29 = vadd.f32 %v5963_v47, %v5957_v33  ;;  %v11679_v54 = vmov 0.0  }
0x28bc   :  { %v5958_v1 = vmul.f32 %v5951_v17, %v5946_v24 }
0x28bd   :  { %v5974_v11 = vpack.c.bf16 %v11266_v29, %v11262_v10  ;;  %v5959_v39 = vmul.f32 %v5951_v17, %v5947_v12 }
0x28be   :  { %v11270_v32 = vadd.f32 %v5963_v47, %v5958_v1 }
0x28bf   :  { %7673 = vmatprep.mubr.msk.bf16.mxu1 %vm111_vm0, %v5974_v11  ;;  %v11273_v41 = vadd.f32 %v5963_v47, %v5959_v39 }
0x28c1   :  { %v5975_v26 = vpack.c.bf16 %v11273_v41, %v11270_v32 }
0x28c3   :  { %7674 = vmatmul.mubr.msk.bf16.gmra.mrb[148].mxu1 %vm111_vm0, %v5975_v26 }
0x28c4   :  { %7709 = vmatprep.mubr.msk.f32.mxu1 %vm8387_vm5, %v11679_v54 }
0x298e   :  { %v7671_v50 = vpop.f32.mrb[144].mxu1 }
0x298f   :  { %v6047_v22 = vadd.f32 %v7671_v50, %v5979_v49  ;;  %v6038_v43 = vpop.f32.mrb[145].mxu1 }
0x2990   :  { %v6039_v51 = vadd.f32 %v6038_v43, %v5979_v49  ;;  %v7672_v17 = vpop.f32.mrb[146].mxu1 }
0x2991   :  { %v6050_v14 = vadd.f32 %v7672_v17, %v5979_v49  ;;  %v6041_v60 = vpop.f32.mrb[147].mxu1  ;;  %v6071_v48 = vmax.f32 %v6047_v22, 0.0 }
0x2992   :  { %v6042_v2 = vadd.f32 %v6041_v60, %v5979_v49  ;;  %v6069_v16 = vmax.f32 %v6039_v51, 0.0 }
0x2993   :  { %v6072_v62 = vmax.f32 %v6050_v14, 0.0 }
0x2994   :  { %v6070_v59 = vmax.f32 %v6042_v2, 0.0 }
0x2995   :  { %v6078_v23 = vpack.c.bf16 %v6072_v62, %v6071_v48  ;;  %v6733_v48 = vld [vmem:[%s11506_s6 + $0x88] sm:$0xff]  ;;  %v6732_v62 = vld [vmem:[%s11506_s6 + $0x80] sm:$0xff] }
0x2996   :  { %v6077_v9 = vpack.c.bf16 %v6070_v59, %v6069_v16  ;;  %v7675_v46 = vpop.f32.mrb[148].mxu1  ;;  %v11682_v16 = vmov 1   ;;  %v6736_v59 = vld [vmem:[%s11506_s6 + $0xa0] sm:$0xff] }
0x2997   :  { %v6063_v13 = vadd.f32 %v7675_v46, %v5979_v49  ;;  %v6054_v47 = vpop.f32.mrb[149].mxu1 }
0x2998   :  { %v6055_v34 = vadd.f32 %v6054_v47, %v5979_v49  ;;  %v7676_v55 = vpop.f32.mrb[150].mxu1  ;;  %7685 = vmatprep.mubr.msk.bf16.mxu0 %vm295_vm2, %v6077_v9  ;;  %v6737_v9 = vld [vmem:[%s11506_s6 + $0xa8] sm:$0xff] }
0x2999   :  { %v6066_v37 = vadd.f32 %v7676_v55, %v5979_v49  ;;  %v6057_v31 = vpop.f32.mrb[151].mxu1  ;;  %7686 = vmatmul.mubr.msk.bf16.vlgmr.msra.gmra.mrb[132].mxu0 %vm295_vm2, %v6078_v23  ;;  %v6075_v36 = vmax.f32 %v6063_v13, 0.0  ;;  %v11683_v23 = vmov 0  }
0x299a   :  { %v6058_v61 = vadd.f32 %v6057_v31, %v5979_v49  ;;  %v6073_v53 = vmax.f32 %v6055_v34, 0.0 }
0x299b   :  { %v6076_v5 = vmax.f32 %v6066_v37, 0.0 }
0x299c   :  { %v6074_v4 = vmax.f32 %v6058_v61, 0.0 }
0x299d   :  { %v6080_v40 = vpack.c.bf16 %v6076_v5, %v6075_v36 }
0x299e   :  { %v6079_v45 = vpack.c.bf16 %v6074_v4, %v6073_v53 }
0x29a0   :  { %7689 = vmatprep.mubr.msk.bf16.mxu0 %vm295_vm2, %v6079_v45 }
0x29a1   :  { %7690 = vmatmul.mubr.msk.bf16.gmra.mrb[136].mxu0 %vm295_vm2, %v6080_v40 }
0x2a6c   :  { %v7687_v28 = vpop.f32.mrb[132].mxu0 }
0x2a6d   :  { %v6164_v0 = vadd.f32 %v7687_v28, %v6084_v21  ;;  %v6155_v52 = vpop.f32.mrb[133].mxu0 }
0x2a6e   :  { %v6156_v33 = vadd.f32 %v6155_v52, %v6084_v21  ;;  %v7688_v30 = vpop.f32.mrb[134].mxu0 }
0x2a6f   :  { %v6188_v24 = vadd.f32 %v6164_v0, %v11252_v63  ;;  %v6167_v12 = vadd.f32 %v7688_v30, %v6084_v21  ;;  %v6158_v1 = vpop.f32.mrb[135].mxu0 }
0x2a70   :  { %v6159_v11 = vadd.f32 %v6158_v1, %v6084_v21  ;;  %v6186_v39 = vadd.f32 %v6156_v33, %v11245_v44 }
0x2a71   :  { %v6189_v26 = vadd.f32 %v6167_v12, %v11256_v35  ;;  %v6200_v54 = vsel %vm111_vm0, %v6188_v24, 0.0 }
0x2a72   :  { %6201 = vadd.xlane.f32.xlu0 %v6200_v54  ;;  %v11299_v7 = vadd.f32 %v6159_v11, %v11247_v56  ;;  %v6194_v63 = vsel %vm111_vm0, %v6186_v39, 0.0 }
0x2a73   :  { %v6203_v19 = vsel %vm111_vm0, %v6189_v26, 0.0 }
0x2a74   :  { %6204 = vadd.xlane.f32.xlu1 %v6203_v19  ;;  %v7691_v8 = vpop.f32.mrb[136].mxu0  ;;  %v6197_v17 = vsel %vm111_vm0, %v11299_v7, 0.0 }
0x2a75   :  { %v6180_v49 = vadd.f32 %v7691_v8, %v6084_v21  ;;  %v6171_v50 = vpop.f32.mrb[137].mxu0 }
0x2a76   :  { %v6172_v22 = vadd.f32 %v6171_v50, %v6084_v21  ;;  %6195 = vadd.xlane.f32.xlu0 %v6194_v63  ;;  %v7692_v43 = vpop.f32.mrb[138].mxu0  ;;  %v6738_v50 = vld [vmem:[%s11506_s6 + $0xb0] sm:$0xff]  ;;  %v6739_v63 = vld [vmem:[%s11506_s6 + $0xb8] sm:$0xff] }
0x2a77   :  { %v6192_v44 = vadd.f32 %v6180_v49, %v11270_v32  ;;  %v6183_v35 = vadd.f32 %v7692_v43, %v6084_v21  ;;  %v6174_v51 = vpop.f32.mrb[139].mxu0  ;;  %v6734_v32 = vld [vmem:[%s11506_s6 + $0x90] sm:$0xff] }
0x2a78   :  { %v6175_v56 = vadd.f32 %v6174_v51, %v6084_v21  ;;  %6198 = vadd.xlane.f32.xlu1 %v6197_v17  ;;  %v6190_v14 = vadd.f32 %v6172_v22, %v11262_v10  ;;  %v11318_v10 = vld [vmem:[%s11506_s6 + $0x98] sm:$0xff] }
0x2a79   :  { %v6212_v60 = vsel %vm111_vm0, %v6192_v44, 0.0  ;;  %v6193_v46 = vadd.f32 %v6183_v35, %v11273_v41 }
0x2a7a   :  { %6213 = vadd.xlane.f32.xlu0 %v6212_v60  ;;  %v6206_v2 = vsel %vm111_vm0, %v6190_v14, 0.0  ;;  %v11336_v13 = vadd.f32 %v6175_v56, %v11266_v29 }
0x2a7b   :  { %v6215_v47 = vsel %vm111_vm0, %v6193_v46, 0.0 }
0x2a7c   :  { %v6209_v34 = vsel %vm111_vm0, %v11336_v13, 0.0 }
0x2a7e   :  { %6207 = vadd.xlane.f32.xlu0 %v6206_v2 }
0x2a89   :  { %6329 = vperm.xlu1 %7830, %v6733_v48  }
0x2a8d   :  { %6334 = vperm.xlu1 %7830, %v6734_v32  }
0x2a91   :  { %6339 = vperm.xlu1 %7830, %v11318_v10  }
0x2a94   :  { %6324 = vperm.xlu0 %7829, %v6732_v62  }
0x2a95   :  { %7831 = vset.pattern.permute.xlu1 %v11682_v16 }
0x2a96   :  { %6379 = vperm.xlu1 %7831, %v6732_v62  }
0x2a98   :  { %7834 = vset.pattern.permute.xlu0 %v11682_v16 }
0x2a9a   :  { %6383 = vperm.xlu1 %7831, %v6733_v48  }
0x2a9e   :  { %7832 = vset.pattern.permute.xlu1 %v11683_v23 }
0x2a9f   :  { %6344 = vperm.xlu1 %7832, %v6736_v59  }
0x2aa3   :  { %6349 = vperm.xlu1 %7832, %v6737_v9  }
0x2aa7   :  { %7833 = vset.pattern.permute.xlu1 %v11682_v16 }
0x2ac7   :  { %6216 = vadd.xlane.f32.xlu1 %v6215_v47 }
0x2acb   :  { %6210 = vadd.xlane.f32.xlu1 %v6209_v34 }
0x2adc   :  { %6387 = vperm.xlu1 %7833, %v6734_v32  }
0x2ae0   :  { %7835 = vset.pattern.permute.xlu1 %v11683_v23 }
0x2aff   :  { %v6202_v55 = vpop.xlane.xlu0 %6201 }
0x2b00   :  { %v6220_v37 = vmul.f32 0.03125, %v6202_v55 }
0x2b01   :  { %v6205_v31 = vpop.xlane.xlu1 %6204 }
0x2b02   :  { %v11342_v61 = vsub.f32 %v6188_v24, %v6220_v37  ;;  %v6221_v36 = vmul.f32 0.03125, %v6205_v31 }
0x2b03   :  { %v6196_v41 = vpop.xlane.xlu0 %6195 }
0x2b04   :  { %v11344_v5 = vsub.f32 %v6189_v26, %v6221_v36  ;;  %v6218_v29 = vmul.f32 0.03125, %v6196_v41  ;;  %v6236_v53 = vmul.f32 %v11342_v61, %v11342_v61 }
0x2b05   :  { %v6199_v4 = vpop.xlane.xlu1 %6198 }
0x2b06   :  { %v11348_v40 = vsub.f32 %v6186_v39, %v6218_v29  ;;  %v6219_v45 = vmul.f32 0.03125, %v6199_v4  ;;  %v6248_v38 = vsel %vm111_vm0, %v6236_v53, 0.0  ;;  %v6237_v21 = vmul.f32 %v11344_v5, %v11344_v5 }
0x2b07   :  { %v6214_v28 = vpop.xlane.xlu0 %6213  ;;  %6249 = vadd.xlane.f32.xlu0 %v6248_v38 }
0x2b08   :  { %v11354_v0 = vsub.f32 %v11299_v7, %v6219_v45  ;;  %v6224_v52 = vmul.f32 0.03125, %v6214_v28  ;;  %v6251_v33 = vsel %vm111_vm0, %v6237_v21, 0.0  ;;  %v6234_v30 = vmul.f32 %v11348_v40, %v11348_v40 }
0x2b09   :  { %6252 = vadd.xlane.f32.xlu1 %v6251_v33  ;;  %v11381_v22 = vpop.permute.xlu1 %6329 }
0x2b0a   :  { %v11359_v24 = vsub.f32 %v6192_v44, %v6224_v52  ;;  %v6242_v12 = vsel %vm111_vm0, %v6234_v30, 0.0  ;;  %v6235_v1 = vmul.f32 %v11354_v0, %v11354_v0  ;;  %v11684_v30 = vld [vmem:[#allocation8_spill] sm:$0xff] }
0x2b0b   :  { %6243 = vadd.xlane.f32.xlu0 %v6242_v12  ;;  %v6208_v11 = vpop.xlane.xlu0 %6207  ;;  %v11408_v12 = vrot.slane %v11165_v27, %v11684_v30 }
0x2b0c   :  { %v6222_v39 = vmul.f32 0.03125, %v6208_v11  ;;  %v6245_v26 = vsel %vm111_vm0, %v6235_v1, 0.0  ;;  %v6240_v54 = vmul.f32 %v11359_v24, %v11359_v24 }
0x2b0d   :  { %6246 = vadd.xlane.f32.xlu1 %v6245_v26  ;;  %v6335_v43 = vpop.permute.xlu1 %6334  ;;  %v11685_v26 = vld [vmem:[#allocation2_spill] sm:$0xff] }
0x2b0e   :  { %v11367_v7 = vsub.f32 %v6190_v14, %v6222_v39  ;;  %v6260_v19 = vsel %vm111_vm0, %v6240_v54, 0.0  ;;  %v11413_v54 = vrot.slane %v11165_v27, %v11685_v26 }
0x2b0f   :  { %6261 = vadd.xlane.f32.xlu0 %v6260_v19 }
0x2b10   :  { %v6238_v8 = vmul.f32 %v11367_v7, %v11367_v7 }
0x2b11   :  { %v11383_v44 = vpop.permute.xlu1 %6339 }
0x2b12   :  { %v6254_v49 = vsel %vm111_vm0, %v6238_v8, 0.0 }
0x2b13   :  { %6255 = vadd.xlane.f32.xlu0 %v6254_v49 }
0x2b15   :  { %v11385_v35 = vpop.permute.xlu1 %6379 }
0x2b19   :  { %v11387_v51 = vpop.permute.xlu1 %6383 }
0x2b1e   :  { %6354 = vperm.xlu1 %7835, %v6738_v50   ;;  %v11389_v17 = vpop.permute.xlu1 %6344 }
0x2b22   :  { %6359 = vperm.xlu1 %7835, %v6739_v63   ;;  %v11391_v56 = vpop.permute.xlu1 %6349 }
0x2b26   :  { %7836 = vset.pattern.permute.xlu1 %v11682_v16 }
0x2b27   :  { %6399 = vperm.xlu1 %7836, %v6737_v9   ;;  %v6325_v9 = vpop.permute.xlu0 %6324 }
0x2b29   :  { %6391 = vperm.xlu0 %7834, %v11318_v10  }
0x2b2d   :  { %6395 = vperm.xlu0 %7834, %v6736_v59  }
0x2b31   :  { %6403 = vperm.xlu0 %7834, %v6738_v50  }
0x2b54   :  { %v6217_v14 = vpop.xlane.xlu1 %6216 }
0x2b55   :  { %v6225_v60 = vmul.f32 0.03125, %v6217_v14 }
0x2b57   :  { %v11393_v2 = vsub.f32 %v6193_v46, %v6225_v60 }
0x2b58   :  { %v6211_v48 = vpop.xlane.xlu1 %6210 }
0x2b59   :  { %v6223_v32 = vmul.f32 0.03125, %v6211_v48  ;;  %v6241_v10 = vmul.f32 %v11393_v2, %v11393_v2 }
0x2b5b   :  { %v11398_v62 = vsub.f32 %v11336_v13, %v6223_v32  ;;  %v6263_v16 = vsel %vm111_vm0, %v6241_v10, 0.0 }
0x2b5c   :  { %6264 = vadd.xlane.f32.xlu1 %v6263_v16  ;;  %v11404_v46 = vpop.permute.xlu1 %6387 }
0x2b5d   :  { %v6239_v59 = vmul.f32 %v11398_v62, %v11398_v62 }
0x2b5f   :  { %v6257_v23 = vsel %vm111_vm0, %v6239_v59, 0.0 }
0x2b60   :  { %6258 = vadd.xlane.f32.xlu1 %v6257_v23 }
0x2b71   :  { %6407 = vperm.xlu1 %7836, %v6739_v63  }
0x2b94   :  { %v6250_v47 = vpop.xlane.xlu0 %6249 }
0x2b95   :  { %v6268_v34 = vmul.f32 0.03125, %v6250_v47 }
0x2b96   :  { %v6253_v55 = vpop.xlane.xlu1 %6252 }
0x2b97   :  { %v6276_v37 = vadd.f32 1e-05, %v6268_v34  ;;  %v6269_v31 = vmul.f32 0.03125, %v6253_v55 }
0x2b98   :  { %v6244_v13 = vpop.xlane.xlu0 %6243 }
0x2b99   :  { %8339 = vrsqrt.f32 %v6276_v37  ;;  %v6277_v36 = vadd.f32 1e-05, %v6269_v31  ;;  %v6266_v41 = vmul.f32 0.03125, %v6244_v13 }
0x2b9a   :  { %v6247_v29 = vpop.xlane.xlu1 %6246 }
0x2b9b   :  { %8341 = vrsqrt.f32 %v6277_v36  ;;  %v6274_v53 = vadd.f32 1e-05, %v6266_v41  ;;  %v6267_v4 = vmul.f32 0.03125, %v6247_v29 }
0x2b9c   :  { %v6262_v45 = vpop.xlane.xlu0 %6261 }
0x2b9d   :  { %8343 = vrsqrt.f32 %v6274_v53  ;;  %v6275_v38 = vadd.f32 1e-05, %v6267_v4  ;;  %v6272_v21 = vmul.f32 0.03125, %v6262_v45 }
0x2b9e   :  { %v6355_v36 = vpop.permute.xlu1 %6354 }
0x2b9f   :  { %8345 = vrsqrt.f32 %v6275_v38  ;;  %v6280_v28 = vadd.f32 1e-05, %v6272_v21 }
0x2ba0   :  { %v6256_v52 = vpop.xlane.xlu0 %6255 }
0x2ba1   :  { %8347 = vrsqrt.f32 %v6280_v28  ;;  %v6270_v33 = vmul.f32 0.03125, %v6256_v52 }
0x2ba3   :  { %v8340_v1 = vpop.eup %8339  ;;  %v6278_v11 = vadd.f32 1e-05, %v6270_v33  ;;  %v6743_v33 = vld [vmem:[%s11507_s7 + $0x98] sm:$0xff] }
0x2ba4   :  { %v6292_v39 = vmul.f32 %v8340_v1, %v11342_v61 }
0x2ba5   :  { %v8342_v19 = vpop.eup %8341  ;;  %8349 = vrsqrt.f32 %v6278_v11 }
0x2ba6   :  { %v6293_v8 = vmul.f32 %v8342_v19, %v11344_v5  ;;  %v6304_v49 = vmul.f32 %v11408_v12, %v6292_v39 }
0x2ba7   :  { %v8344_v50 = vpop.eup %8343 }
0x2ba8   :  { %v6290_v63 = vmul.f32 %v8344_v50, %v11348_v40  ;;  %v6305_v14 = vmul.f32 %v11408_v12, %v6293_v8  ;;  %v6316_v60 = vadd.f32 %v11413_v54, %v6304_v49  ;;  %v6392_v59 = vpop.permute.xlu0 %6391  ;;  %v6746_v8 = vld [vmem:[%s11507_s7 + $0xb0] sm:$0xff] }
0x2ba9   :  { %v8346_v48 = vpop.eup %8345 }
0x2baa   :  { %v6291_v61 = vmul.f32 %v8346_v48, %v11354_v0  ;;  %v6317_v32 = vadd.f32 %v11413_v54, %v6305_v14  ;;  %v6302_v27 = vmul.f32 %v11408_v12, %v6290_v63  ;;  %v6364_v10 = vmul.f32 %v6335_v43, %v6316_v60  ;;  %v6360_v60 = vpop.permute.xlu1 %6359 }
0x2bab   :  { %v8348_v16 = vpop.eup %8347 }
0x2bac   :  { %v6296_v5 = vmul.f32 %v8348_v16, %v11359_v24  ;;  %v6314_v23 = vadd.f32 %v11413_v54, %v6302_v27  ;;  %v6303_v40 = vmul.f32 %v11408_v12, %v6291_v61  ;;  %v6365_v47 = vmul.f32 %v11383_v44, %v6317_v32  ;;  %v6396_v29 = vpop.permute.xlu0 %6395  ;;  %v6740_v44 = vld [vmem:[%s11507_s7 + $0x80] sm:$0xff] }
0x2bad   :  { %v6372_v37 = vadd.f32 %v6364_v10, %v11671_v20 }
0x2bae   :  { %v6308_v34 = vmul.f32 %v11408_v12, %v6296_v5  ;;  %v6362_v55 = vmul.f32 %v6325_v9, %v6314_v23  ;;  %v6315_v0 = vadd.f32 %v11413_v54, %v6303_v40  ;;  %v6373_v41 = vadd.f32 %v6365_v47, %v11669_v42  ;;  %v6400_v48 = vpop.permute.xlu1 %6399 }
0x2baf   :  { %v8350_v31 = vpop.eup %8349  ;;  %v6412_v45 = vadd.f32 %v11404_v46, %v6372_v37 }
0x2bb0   :  { %v6320_v43 = vadd.f32 %v11413_v54, %v6308_v34  ;;  %v6294_v13 = vmul.f32 %v8350_v31, %v11367_v7  ;;  %v6370_v24 = vadd.f32 %v6362_v55, %v11668_v6  ;;  %v6363_v9 = vmul.f32 %v11381_v22, %v6315_v0  ;;  %v6742_v6 = vld [vmem:[%s11507_s7 + $0x90] sm:$0xff]  ;;  %v6741_v22 = vld [vmem:[%s11507_s7 + $0x88] sm:$0xff]  ;;  %v6404_v30 = vpop.permute.xlu0 %6403 }
0x2bb1   :  { %v6413_v21 = vadd.f32 %v6392_v59, %v6373_v41  ;;  %v6420_v52 = vmul.f32 %v6742_v6, %v6412_v45 }
0x2bb2   :  { %v6368_v53 = vmul.f32 %v6355_v36, %v6320_v43  ;;  %v6306_v20 = vmul.f32 %v11408_v12, %v6294_v13  ;;  %v6410_v4 = vadd.f32 %v11385_v35, %v6370_v24  ;;  %v6371_v7 = vadd.f32 %v6363_v9, %v11670_v3 }
0x2bb3   :  { %v6421_v39 = vmul.f32 %v6743_v33, %v6413_v21  ;;  %v6432_v19 = vsel %vm111_vm0, %v6420_v52, 0.0  ;;  %v6756_v21 = vld [vmem:[%s11508_s9 + $0x10] sm:$0xff] }
0x2bb4   :  { %v6318_v42 = vadd.f32 %v11413_v54, %v6306_v20  ;;  %v6418_v38 = vmul.f32 %v6740_v44, %v6410_v4  ;;  %v6411_v28 = vadd.f32 %v11387_v51, %v6371_v7  ;;  %v6376_v46 = vadd.f32 %v6368_v53, %v11674_v57  ;;  %v6744_v51 = vld [vmem:[%s11507_s7 + $0xa0] sm:$0xff] }
0x2bb6   :  { %v6366_v35 = vmul.f32 %v11389_v17, %v6318_v42  ;;  %v6426_v3 = vsel %vm111_vm0, %v6418_v38, 0.0  ;;  %v6419_v1 = vmul.f32 %v6741_v22, %v6411_v28  ;;  %v6416_v26 = vadd.f32 %v6404_v30, %v6376_v46  ;;  %v6815_v28 = vld [vmem:[%s11501_s5 + $0x28] ss:$0 sm:$0xff] }
0x2bb7   :  { %6427 = vadd.xlane.f32.xlu0 %v6426_v3 }
0x2bb8   :  { %v6374_v11 = vadd.f32 %v6366_v35, %v11672_v25  ;;  %v6429_v17 = vsel %vm111_vm0, %v6419_v1, 0.0  ;;  %v6424_v50 = vmul.f32 %v6746_v8, %v6416_v26  ;;  %v6435_v25 = vsel %vm111_vm0, %v6421_v39, 0.0 }
0x2bb9   :  { %6430 = vadd.xlane.f32.xlu1 %v6429_v17 }
0x2bba   :  { %v6414_v57 = vadd.f32 %v6396_v29, %v6374_v11  ;;  %v6444_v14 = vsel %vm111_vm0, %v6424_v50, 0.0  ;;  %v6747_v29 = vld [vmem:[%s11507_s7 + $0xb8] sm:$0xff]  ;;  %v11686_v11 = vld [vmem:[#allocation11_spill] sm:$0xff] }
0x2bbb   :  { %6433 = vadd.xlane.f32.xlu0 %v6432_v19 }
0x2bbc   :  { %v6422_v49 = vmul.f32 %v6744_v51, %v6414_v57 }
0x2bbe   :  { %v6438_v63 = vsel %vm111_vm0, %v6422_v49, 0.0 }
0x2bbf   :  { %6436 = vadd.xlane.f32.xlu0 %v6435_v25  ;;  %6439 = vadd.xlane.f32.xlu1 %v6438_v63 }
0x2bc3   :  { %6445 = vadd.xlane.f32.xlu1 %v6444_v14 }
0x2be9   :  { %v6265_v61 = vpop.xlane.xlu1 %6264 }
0x2bea   :  { %v6273_v32 = vmul.f32 0.03125, %v6265_v61 }
0x2bec   :  { %v6281_v27 = vadd.f32 1e-05, %v6273_v32 }
0x2bed   :  { %v6259_v10 = vpop.xlane.xlu1 %6258 }
0x2bee   :  { %8351 = vrsqrt.f32 %v6281_v27  ;;  %v6271_v16 = vmul.f32 0.03125, %v6259_v10 }
0x2bf0   :  { %v6279_v59 = vadd.f32 1e-05, %v6271_v16 }
0x2bf1   :  { %v6408_v36 = vpop.permute.xlu1 %6407 }
0x2bf2   :  { %8353 = vrsqrt.f32 %v6279_v59 }
0x2bf8   :  { %v8352_v5 = vpop.eup %8351 }
0x2bf9   :  { %v6297_v23 = vmul.f32 %v8352_v5, %v11393_v2  ;;  %v6745_v2 = vld [vmem:[%s11507_s7 + $0xa8] sm:$0xff] }
0x2bfb   :  { %v6309_v40 = vmul.f32 %v11408_v12, %v6297_v23 }
0x2bfc   :  { %v8354_v47 = vpop.eup %8353 }
0x2bfd   :  { %v6295_v34 = vmul.f32 %v8354_v47, %v11398_v62  ;;  %v6321_v55 = vadd.f32 %v11413_v54, %v6309_v40 }
0x2bff   :  { %v6369_v0 = vmul.f32 %v6360_v60, %v6321_v55  ;;  %v6307_v37 = vmul.f32 %v11408_v12, %v6295_v34 }
0x2c01   :  { %v6319_v31 = vadd.f32 %v11413_v54, %v6307_v37  ;;  %v6377_v43 = vadd.f32 %v6369_v0, %v11675_v15 }
0x2c03   :  { %v6367_v13 = vmul.f32 %v11391_v56, %v6319_v31  ;;  %v6417_v41 = vadd.f32 %v6408_v36, %v6377_v43 }
0x2c05   :  { %v6375_v24 = vadd.f32 %v6367_v13, %v11673_v58  ;;  %v6425_v44 = vmul.f32 %v6747_v29, %v6417_v41 }
0x2c07   :  { %v6415_v62 = vadd.f32 %v6400_v48, %v6375_v24  ;;  %v6447_v15 = vsel %vm111_vm0, %v6425_v44, 0.0 }
0x2c09   :  { %v6423_v12 = vmul.f32 %v6745_v2, %v6415_v62 }
0x2c0b   :  { %v6441_v54 = vsel %vm111_vm0, %v6423_v12, 0.0 }
0x2c0c   :  { %6442 = vadd.xlane.f32.xlu0 %v6441_v54 }
0x2c10   :  { %6448 = vadd.xlane.f32.xlu0 %v6447_v15 }
0x2c44   :  { %v6428_v58 = vpop.xlane.xlu0 %6427 }
0x2c46   :  { %v6431_v56 = vpop.xlane.xlu1 %6430 }
0x2c47   :  { %v7737_v9 = vpack.c.bf16 %v6431_v56, %v6428_v58 }
0x2c48   :  { %v6434_v53 = vpop.xlane.xlu0 %6433 }
0x2c49   :  { %7738 = vmatpush3.bf16.msra.mxu1 %v7737_v9 }
0x2c4a   :  { %7739 = vmatprep.subr.bf16.mxu1 %v11676_v18 }
0x2c4c   :  { %v6437_v20 = vpop.xlane.xlu0 %6436  ;;  %v6440_v45 = vpop.xlane.xlu1 %6439 }
0x2c4d   :  { %v7740_v4 = vpack.c.bf16 %v6437_v20, %v6434_v53 }
0x2c4f   :  { %7741 = vmatpush3.bf16.msra.mxu1 %v7740_v4 }
0x2c50   :  { %7742 = vmatprep.subr.bf16.mxu1 %v11676_v18  ;;  %v6446_v42 = vpop.xlane.xlu1 %6445 }
0x2c99   :  { %v6443_v7 = vpop.xlane.xlu0 %6442 }
0x2c9a   :  { %v7743_v6 = vpack.c.bf16 %v6443_v7, %v6440_v45 }
0x2c9c   :  { %7744 = vmatpush3.bf16.msra.mxu1 %v7743_v6 }
0x2c9d   :  { %v6449_v38 = vpop.xlane.xlu0 %6448  ;;  %7745 = vmatprep.subr.bf16.mxu1 %v11676_v18 }
0x2c9e   :  { %v7746_v22 = vpack.c.bf16 %v6449_v38, %v6446_v42 }
0x2ca0   :  { %7747 = vmatpush3.bf16.msra.mxu1 %v7746_v22 }
0x2ca3   :  { %7710 = vmatmul.mubr.msk.f32.vlgmr.msra.gmra.mrb[152].mxu1 %vm295_vm2, %v6756_v21 }
0x2d76   :  { %v6523_v35 = vpop.f32.mrb[152].mxu1 }
0x2d77   :  { %v6524_v46 = vadd.f32 %v6815_v28, %v6523_v35  ;;  %v7711_v3 = vpop.f32.mrb[153].mxu1 }
0x2d79   :  { %v6817_v52 = vmul.f32 -1.442695, %v6524_v46 }
0x2d7b   :  { %8355 = vpow2.f32 %v6817_v52 }
0x2d85   :  { %v8356_v33 = vpop.eup %8355 }
0x2d86   :  { %v6530_v30 = vadd.f32 1.0, %v8356_v33 }
0x2d88   :  { %8357 = vrcp.f32 %v6530_v30 }
0x2d92   :  { %v8358_v18 = vpop.eup %8357 }
0x2d93   :  { %v6533_v1 = vmul.f32 0.25, %v8358_v18 }
0x2d95   :  { %v6534_v51 = vadd.f32 %v6533_v1, %v11686_v11 }
0x2d97   :  { %6536 = vst.msk [vmem:[%s11509_s10] sm:$0xff] %vm6535_vm6, %v6534_v51 }

</bundles_post_ra>
